<compile_context>
chip_gen: v7x
topology: tpu7x:2x2x1
jax: 0.10.0
libtpu: 0.0.40
codegen_flags: <defaults>
</compile_context>

<pallas_src>
import functools

import jax
import jax.numpy as jnp
from jax.experimental import pallas as pl
from jax.experimental.pallas import tpu as pltpu


# ---------------------------------------------------------------------------
# Fused transposed matmul + bias (+ ReLU):  out = act(W @ X + b)
#   W: (Co, K)   X: (K, M)   b: (Co, 1)   out: (Co, M)
# Grid only over M; every block carries the full K (fits VMEM easily here).
# ---------------------------------------------------------------------------
def _wx_bias_act_kernel(w_ref, x_ref, b_ref, o_ref, *, apply_relu):
    acc = jnp.dot(w_ref[...], x_ref[...], preferred_element_type=jnp.float32)
    acc = acc + b_ref[...]
    if apply_relu:
        acc = jnp.maximum(acc, 0.0)
    o_ref[...] = acc.astype(o_ref.dtype)


def _pick_m_tile(m, max_tile=4608):
    """Largest multiple-of-128 divisor of m that is <= max_tile, else m (1 block)."""
    best = None
    t = 128
    while t <= min(m, max_tile):
        if m % t == 0:
            best = t
        t += 128
    return best if best is not None else m


def wx_bias_act(w_mat, x_km, b_col, *, apply_relu):
    co, k = w_mat.shape
    k2, m = x_km.shape
    assert k == k2 and b_col.shape == (co, 1)
    tm = _pick_m_tile(m)
    grid = (m // tm,)
    return pl.pallas_call(
        functools.partial(_wx_bias_act_kernel, apply_relu=apply_relu),
        out_shape=jax.ShapeDtypeStruct((co, m), jnp.float32),
        grid=grid,
        in_specs=[
            pl.BlockSpec((co, k), lambda i: (0, 0)),   # full weight, resident
            pl.BlockSpec((k, tm), lambda i: (0, i)),   # im2col slab, tiled over M
            pl.BlockSpec((co, 1), lambda i: (0, 0)),   # bias column
        ],
        out_specs=pl.BlockSpec((co, tm), lambda i: (0, i)),
        compiler_params=pltpu.CompilerParams(
            dimension_semantics=("parallel",)),
    )(w_mat, x_km, b_col)


# ---------------------------------------------------------------------------
# Conv2d (valid, stride 1) on CNHW activations via im2col + Pallas matmul
# ---------------------------------------------------------------------------
def conv2d_act_cnhw(x, w_mat, b_col, *, kh=3, kw=3, apply_relu=True):
    """x: (C, N, H, W); w_mat: (Co, K_pad); b_col: (Co, 1) -> (Co, N, Ho, Wo)."""
    c, n, h, w = x.shape
    ho, wo = h - kh + 1, w - kw + 1
    # im2col in (K, M) layout; row order (c, i, j) matches PyTorch weight reshape.
    cols = [x[:, :, i:i + ho, j:j + wo] for i in range(kh) for j in range(kw)]
    patches = jnp.stack(cols, axis=1).reshape(c * kh * kw, n * ho * wo)
    k_pad = w_mat.shape[1]
    if k_pad > patches.shape[0]:                      # only conv1: K 27 -> 32
        patches = jnp.pad(patches, ((0, k_pad - patches.shape[0]), (0, 0)))
    y = wx_bias_act(w_mat, patches, b_col, apply_relu=apply_relu)
    return y.reshape(w_mat.shape[0], n, ho, wo)       # stays in CNHW layout


# ---------------------------------------------------------------------------
# MaxPool2d(kernel=2, stride=2): Pallas 4-way max over lane-dense views
# ---------------------------------------------------------------------------
def _max4_kernel(a_ref, b_ref, c_ref, d_ref, o_ref):
    o_ref[...] = jnp.maximum(jnp.maximum(a_ref[...], b_ref[...]),
                             jnp.maximum(c_ref[...], d_ref[...]))


def maxpool2x2_cnhw(x):
    """x: (C, N, H, W) with even H, W -> (C, N, H//2, W//2)."""
    c, n, h, w = x.shape
    ho, wo = h // 2, w // 2
    views = [x[:, :, i::2, j::2].reshape(c * n, ho * wo)   # lane-dense rows
             for i in (0, 1) for j in (0, 1)]
    spec = pl.BlockSpec((c * n, ho * wo), lambda i: (0, 0))
    out = pl.pallas_call(
        _max4_kernel,
        out_shape=jax.ShapeDtypeStruct((c * n, ho * wo), jnp.float32),
        grid=(1,),
        in_specs=[spec] * 4,
        out_specs=spec,
    )(*views)
    return out.reshape(c, n, ho, wo)


# ---------------------------------------------------------------------------
# Fused FC1 -> ReLU -> FC2 -> ReLU -> FC3 in a single pallas_call
# ---------------------------------------------------------------------------
def _fc_chain_kernel(x_ref, w1_ref, b1_ref, w2_ref, b2_ref, w3_ref, b3_ref, o_ref):
    h = jnp.dot(x_ref[...], w1_ref[...], preferred_element_type=jnp.float32)
    h = jnp.maximum(h + b1_ref[...], 0.0)
    h = jnp.dot(h, w2_ref[...], preferred_element_type=jnp.float32)
    h = jnp.maximum(h + b2_ref[...], 0.0)
    h = jnp.dot(h, w3_ref[...], preferred_element_type=jnp.float32) + b3_ref[...]
    o_ref[...] = h[:, : o_ref.shape[1]].astype(o_ref.dtype)   # drop lane padding


def fc_chain(x, w1t, b1r, w2t, b2r, w3t, b3r, *, n_out):
    m = x.shape[0]
    full = lambda a: pl.BlockSpec(a.shape, lambda i: (0,) * a.ndim)
    return pl.pallas_call(
        _fc_chain_kernel,
        out_shape=jax.ShapeDtypeStruct((m, n_out), jnp.float32),
        grid=(1,),
        in_specs=[full(x), full(w1t), full(b1r),
                  full(w2t), full(b2r), full(w3t), full(b3r)],
        out_specs=pl.BlockSpec((m, n_out), lambda i: (0, 0)),
    )(x, w1t, b1r, w2t, b2r, w3t, b3r)


# ---------------------------------------------------------------------------
# One-time parameter preparation (reshape / transpose / pad OUTSIDE the jit)
# ---------------------------------------------------------------------------
def prepare_params(raw):
    def conv_w(w, k_pad_to=None):
        co = w.shape[0]
        k = w.shape[1] * w.shape[2] * w.shape[3]
        wm = w.reshape(co, k)
        if k_pad_to is not None and k_pad_to > k:
            wm = jnp.pad(wm, ((0, 0), (0, k_pad_to - k)))
        return wm

    n_out = raw["fw3"].shape[0]                       # = 2
    return {
        "w1m": conv_w(raw["w1"], k_pad_to=32),        # K: 27 -> 32 (sublane align)
        "b1c": raw["b1"].reshape(-1, 1),
        "w2m": conv_w(raw["w2"]),                     # (32, 144)
        "b2c": raw["b2"].reshape(-1, 1),
        "w3m": conv_w(raw["w3"]),                     # (16, 288)
        "b3c": raw["b3"].reshape(-1, 1),
        "fw1t": raw["fw1"].T,                         # (7056, 120)
        "fb1r": raw["fb1"].reshape(1, -1),
        "fw2t": raw["fw2"].T,                         # (120, 60)
        "fb2r": raw["fb2"].reshape(1, -1),
        # pad fc3's tiny output dim (2) to a full 128-lane vector (sliced in-kernel)
        "fw3t": jnp.pad(raw["fw3"].T, ((0, 0), (0, 128 - n_out))),
        "fb3r": jnp.pad(raw["fb3"].reshape(1, -1), ((0, 0), (0, 128 - n_out))),
    }


# ---------------------------------------------------------------------------
# Full forward pass (mirrors MyNet.forward)
# ---------------------------------------------------------------------------
def mynet_forward(x_nchw, p, *, n_out):
    x = jnp.transpose(x_nchw, (1, 0, 2, 3))           # one-time NCHW -> CNHW
    x = conv2d_act_cnhw(x, p["w1m"], p["b1c"])        # conv1 + relu  (16, N, 96, 96)
    x = maxpool2x2_cnhw(x)                            # pool1         (16, N, 48, 48)
    x = conv2d_act_cnhw(x, p["w2m"], p["b2c"])        # conv2 + relu  (32, N, 46, 46)
    x = maxpool2x2_cnhw(x)                            # pool2         (32, N, 23, 23)
    x = conv2d_act_cnhw(x, p["w3m"], p["b3c"])        # conv3 + relu  (16, N, 21, 21)
    n = x.shape[1]
    feat = jnp.transpose(x, (1, 0, 2, 3)).reshape(n, -1)   # (N, 7056), PyTorch (c,h,w) order
    return fc_chain(feat, p["fw1t"], p["fb1r"], p["fw2t"], p["fb2r"],
                    p["fw3t"], p["fb3r"], n_out=n_out)


if __name__ == "__main__":
    key = jax.random.PRNGKey(0)
    keys = jax.random.split(key, 13)

    def init(k, shape, scale):
        return jax.random.normal(k, shape, jnp.float32) * scale

    raw = {
        "w1": init(keys[0], (16, 3, 3, 3), 0.10),
        "b1": init(keys[1], (16,), 0.10),
        "w2": init(keys[2], (32, 16, 3, 3), 0.05),
        "b2": init(keys[3], (32,), 0.05),
        "w3": init(keys[4], (16, 32, 3, 3), 0.05),
        "b3": init(keys[5], (16,), 0.05),
        "fw1": init(keys[6], (120, 21 * 21 * 16), 0.01),
        "fb1": init(keys[7], (120,), 0.01),
        "fw2": init(keys[8], (60, 120), 0.05),
        "fb2": init(keys[9], (60,), 0.05),
        "fw3": init(keys[10], (2, 60), 0.05),
        "fb3": init(keys[11], (2,), 0.05),
    }
    params = prepare_params(raw)                      # pad/reshape once, outside jit

    # Input spatial size 98 is required by the architecture so that the flatten
    # sees exactly 21*21*16 = 7056 features per example.
    x = jax.random.normal(keys[12], (2, 3, 98, 98), jnp.float32)

    fwd = jax.jit(functools.partial(mynet_forward, n_out=raw["fw3"].shape[0]))
    out = fwd(x, params)
    jax.block_until_ready(out)
    assert out.shape == (2, 2), out.shape
    print("KERNEL_OK")
</pallas_src>

<mosaic_0001>
module attributes {stable_mosaic.version = 11 : i64} {
  func.func @_wx_bias_act_kernel(%arg0: i32, %arg1: memref<16x32xf32, #tpu.memory_space<vmem>>, %arg2: memref<32x4608xf32, #tpu.memory_space<vmem>>, %arg3: memref<16x1xf32, #tpu.memory_space<vmem>>, %arg4: memref<16x4608xf32, #tpu.memory_space<vmem>>) attributes {dimension_semantics = [#tpu.dimension_semantics<parallel>], iteration_bounds = array<i64: 4>, scalar_prefetch = 0 : i64, scratch_operands = 0 : i64, tpu.core_type = #tpu.core_type<tc>, window_params = [{pipeline_mode = #tpu.pipeline_mode<synchronous>, transform_indices = @transform_0, window_bounds = array<i64: 16, 32>}, {transform_indices = @transform_1, window_bounds = array<i64: 32, 4608>}, {pipeline_mode = #tpu.pipeline_mode<synchronous>, transform_indices = @transform_2, window_bounds = array<i64: 16, 1>}, {transform_indices = @transform_3, window_bounds = array<i64: 16, 4608>}]} {
    %c0 = arith.constant 0 : index
    %c0_0 = arith.constant 0 : index
    %0 = vector.load %arg1[%c0, %c0_0] : memref<16x32xf32, #tpu.memory_space<vmem>>, vector<16x32xf32>
    %c0_1 = arith.constant 0 : index
    %c0_2 = arith.constant 0 : index
    %1 = vector.load %arg2[%c0_1, %c0_2] : memref<32x4608xf32, #tpu.memory_space<vmem>>, vector<32x4608xf32>
    %cst = arith.constant dense<0.000000e+00> : vector<16x4608xf32>
    %2 = tpu.matmul %0, %1, %cst {dimension_numbers = #tpu.dot_dimension_numbers<[1], [0], [0], [1], [0, 0, 1, 1], [], []>} : vector<16x32xf32>, vector<32x4608xf32>, vector<16x4608xf32> -> vector<16x4608xf32>
    %c0_3 = arith.constant 0 : index
    %c0_4 = arith.constant 0 : index
    %3 = vector.load %arg3[%c0_3, %c0_4] : memref<16x1xf32, #tpu.memory_space<vmem>>, vector<16x1xf32>
    %4 = vector.broadcast %3 : vector<16x1xf32> to vector<16x4608xf32>
    %5 = arith.addf %2, %4 : vector<16x4608xf32>
    %cst_5 = arith.constant 0.000000e+00 : f32
    %6 = vector.broadcast %cst_5 : f32 to vector<16x4608xf32>
    %7 = arith.maximumf %5, %6 : vector<16x4608xf32>
    %c0_6 = arith.constant 0 : index
    %c0_7 = arith.constant 0 : index
    %8 = vector.load %arg4[%c0_6, %c0_7] : memref<16x4608xf32, #tpu.memory_space<vmem>>, vector<16x4608xf32>
    tpu.vector_store %arg4[%c0_6, %c0_7], %7 {strides = array<i32>} : memref<16x4608xf32, #tpu.memory_space<vmem>>, vector<16x4608xf32>,
    return
  }
  func.func @transform_0(%arg0: i32) -> (i32, i32) {
    %c0_i32 = arith.constant 0 : i32
    %c0_i32_0 = arith.constant 0 : i32
    %c0_i32_1 = arith.constant 0 : i32
    return %c0_i32, %c0_i32_0 : i32, i32
  }
  func.func @transform_1(%arg0: i32) -> (i32, i32) {
    %c0_i32 = arith.constant 0 : i32
    %c0_i32_0 = arith.constant 0 : i32
    return %c0_i32, %arg0 : i32, i32
  }
  func.func @transform_2(%arg0: i32) -> (i32, i32) {
    %c0_i32 = arith.constant 0 : i32
    %c0_i32_0 = arith.constant 0 : i32
    %c0_i32_1 = arith.constant 0 : i32
    return %c0_i32, %c0_i32_0 : i32, i32
  }
  func.func @transform_3(%arg0: i32) -> (i32, i32) {
    %c0_i32 = arith.constant 0 : i32
    %c0_i32_0 = arith.constant 0 : i32
    return %c0_i32, %arg0 : i32, i32
  }
}

module attributes {stable_mosaic.version = 11 : i64} {
  func.func @_max4_kernel(%arg0: i32, %arg1: memref<32x2304xf32, #tpu.memory_space<vmem>>, %arg2: memref<32x2304xf32, #tpu.memory_space<vmem>>, %arg3: memref<32x2304xf32, #tpu.memory_space<vmem>>, %arg4: memref<32x2304xf32, #tpu.memory_space<vmem>>, %arg5: memref<32x2304xf32, #tpu.memory_space<vmem>>) attributes {dimension_semantics = [#tpu.dimension_semantics<arbitrary>], iteration_bounds = array<i64: 1>, scalar_prefetch = 0 : i64, scratch_operands = 0 : i64, tpu.core_type = #tpu.core_type<tc>, window_params = [{pipeline_mode = #tpu.pipeline_mode<synchronous>, transform_indices = @transform_0, window_bounds = array<i64: 32, 2304>}, {pipeline_mode = #tpu.pipeline_mode<synchronous>, transform_indices = @transform_1, window_bounds = array<i64: 32, 2304>}, {pipeline_mode = #tpu.pipeline_mode<synchronous>, transform_indices = @transform_2, window_bounds = array<i64: 32, 2304>}, {pipeline_mode = #tpu.pipeline_mode<synchronous>, transform_indices = @transform_3, window_bounds = array<i64: 32, 2304>}, {pipeline_mode = #tpu.pipeline_mode<synchronous>, transform_indices = @transform_4, window_bounds = array<i64: 32, 2304>}]} {
    %c0 = arith.constant 0 : index
    %c0_0 = arith.constant 0 : index
    %0 = vector.load %arg1[%c0, %c0_0] : memref<32x2304xf32, #tpu.memory_space<vmem>>, vector<32x2304xf32>
    %c0_1 = arith.constant 0 : index
    %c0_2 = arith.constant 0 : index
    %1 = vector.load %arg2[%c0_1, %c0_2] : memref<32x2304xf32, #tpu.memory_space<vmem>>, vector<32x2304xf32>
    %2 = arith.maximumf %0, %1 : vector<32x2304xf32>
    %c0_3 = arith.constant 0 : index
    %c0_4 = arith.constant 0 : index
    %3 = vector.load %arg3[%c0_3, %c0_4] : memref<32x2304xf32, #tpu.memory_space<vmem>>, vector<32x2304xf32>
    %c0_5 = arith.constant 0 : index
    %c0_6 = arith.constant 0 : index
    %4 = vector.load %arg4[%c0_5, %c0_6] : memref<32x2304xf32, #tpu.memory_space<vmem>>, vector<32x2304xf32>
    %5 = arith.maximumf %3, %4 : vector<32x2304xf32>
    %6 = arith.maximumf %2, %5 : vector<32x2304xf32>
    %c0_7 = arith.constant 0 : index
    %c0_8 = arith.constant 0 : index
    %7 = vector.load %arg5[%c0_7, %c0_8] : memref<32x2304xf32, #tpu.memory_space<vmem>>, vector<32x2304xf32>
    tpu.vector_store %arg5[%c0_7, %c0_8], %6 {strides = array<i32>} : memref<32x2304xf32, #tpu.memory_space<vmem>>, vector<32x2304xf32>,
    return
  }
  func.func @transform_0(%arg0: i32) -> (i32, i32) {
    %c0_i32 = arith.constant 0 : i32
    %c0_i32_0 = arith.constant 0 : i32
    %c0_i32_1 = arith.constant 0 : i32
    return %c0_i32, %c0_i32_0 : i32, i32
  }
  func.func @transform_1(%arg0: i32) -> (i32, i32) {
    %c0_i32 = arith.constant 0 : i32
    %c0_i32_0 = arith.constant 0 : i32
    %c0_i32_1 = arith.constant 0 : i32
    return %c0_i32, %c0_i32_0 : i32, i32
  }
  func.func @transform_2(%arg0: i32) -> (i32, i32) {
    %c0_i32 = arith.constant 0 : i32
    %c0_i32_0 = arith.constant 0 : i32
    %c0_i32_1 = arith.constant 0 : i32
    return %c0_i32, %c0_i32_0 : i32, i32
  }
  func.func @transform_3(%arg0: i32) -> (i32, i32) {
    %c0_i32 = arith.constant 0 : i32
    %c0_i32_0 = arith.constant 0 : i32
    %c0_i32_1 = arith.constant 0 : i32
    return %c0_i32, %c0_i32_0 : i32, i32
  }
  func.func @transform_4(%arg0: i32) -> (i32, i32) {
    %c0_i32 = arith.constant 0 : i32
    %c0_i32_0 = arith.constant 0 : i32
    %c0_i32_1 = arith.constant 0 : i32
    return %c0_i32, %c0_i32_0 : i32, i32
  }
}

module attributes {stable_mosaic.version = 11 : i64} {
  func.func @_wx_bias_act_kernel(%arg0: i32, %arg1: memref<32x144xf32, #tpu.memory_space<vmem>>, %arg2: memref<144x4232xf32, #tpu.memory_space<vmem>>, %arg3: memref<32x1xf32, #tpu.memory_space<vmem>>, %arg4: memref<32x4232xf32, #tpu.memory_space<vmem>>) attributes {dimension_semantics = [#tpu.dimension_semantics<parallel>], iteration_bounds = array<i64: 1>, scalar_prefetch = 0 : i64, scratch_operands = 0 : i64, tpu.core_type = #tpu.core_type<tc>, window_params = [{pipeline_mode = #tpu.pipeline_mode<synchronous>, transform_indices = @transform_0, window_bounds = array<i64: 32, 144>}, {transform_indices = @transform_1, window_bounds = array<i64: 144, 4232>}, {pipeline_mode = #tpu.pipeline_mode<synchronous>, transform_indices = @transform_2, window_bounds = array<i64: 32, 1>}, {transform_indices = @transform_3, window_bounds = array<i64: 32, 4232>}]} {
    %c0 = arith.constant 0 : index
    %c0_0 = arith.constant 0 : index
    %0 = vector.load %arg1[%c0, %c0_0] : memref<32x144xf32, #tpu.memory_space<vmem>>, vector<32x144xf32>
    %c0_1 = arith.constant 0 : index
    %c0_2 = arith.constant 0 : index
    %1 = vector.load %arg2[%c0_1, %c0_2] : memref<144x4232xf32, #tpu.memory_space<vmem>>, vector<144x4232xf32>
    %cst = arith.constant dense<0.000000e+00> : vector<32x4232xf32>
    %2 = tpu.matmul %0, %1, %cst {dimension_numbers = #tpu.dot_dimension_numbers<[1], [0], [0], [1], [0, 0, 1, 1], [], []>} : vector<32x144xf32>, vector<144x4232xf32>, vector<32x4232xf32> -> vector<32x4232xf32>
    %c0_3 = arith.constant 0 : index
    %c0_4 = arith.constant 0 : index
    %3 = vector.load %arg3[%c0_3, %c0_4] : memref<32x1xf32, #tpu.memory_space<vmem>>, vector<32x1xf32>
    %4 = vector.broadcast %3 : vector<32x1xf32> to vector<32x4232xf32>
    %5 = arith.addf %2, %4 : vector<32x4232xf32>
    %cst_5 = arith.constant 0.000000e+00 : f32
    %6 = vector.broadcast %cst_5 : f32 to vector<32x4232xf32>
    %7 = arith.maximumf %5, %6 : vector<32x4232xf32>
    %c0_6 = arith.constant 0 : index
    %c0_7 = arith.constant 0 : index
    %8 = vector.load %arg4[%c0_6, %c0_7] : memref<32x4232xf32, #tpu.memory_space<vmem>>, vector<32x4232xf32>
    tpu.vector_store %arg4[%c0_6, %c0_7], %7 {strides = array<i32>} : memref<32x4232xf32, #tpu.memory_space<vmem>>, vector<32x4232xf32>,
    return
  }
  func.func @transform_0(%arg0: i32) -> (i32, i32) {
    %c0_i32 = arith.constant 0 : i32
    %c0_i32_0 = arith.constant 0 : i32
    %c0_i32_1 = arith.constant 0 : i32
    return %c0_i32, %c0_i32_0 : i32, i32
  }
  func.func @transform_1(%arg0: i32) -> (i32, i32) {
    %c0_i32 = arith.constant 0 : i32
    %c0_i32_0 = arith.constant 0 : i32
    return %c0_i32, %arg0 : i32, i32
  }
  func.func @transform_2(%arg0: i32) -> (i32, i32) {
    %c0_i32 = arith.constant 0 : i32
    %c0_i32_0 = arith.constant 0 : i32
    %c0_i32_1 = arith.constant 0 : i32
    return %c0_i32, %c0_i32_0 : i32, i32
  }
  func.func @transform_3(%arg0: i32) -> (i32, i32) {
    %c0_i32 = arith.constant 0 : i32
    %c0_i32_0 = arith.constant 0 : i32
    return %c0_i32, %arg0 : i32, i32
  }
}

module attributes {stable_mosaic.version = 11 : i64} {
  func.func @_max4_kernel(%arg0: i32, %arg1: memref<64x529xf32, #tpu.memory_space<vmem>>, %arg2: memref<64x529xf32, #tpu.memory_space<vmem>>, %arg3: memref<64x529xf32, #tpu.memory_space<vmem>>, %arg4: memref<64x529xf32, #tpu.memory_space<vmem>>, %arg5: memref<64x529xf32, #tpu.memory_space<vmem>>) attributes {dimension_semantics = [#tpu.dimension_semantics<arbitrary>], iteration_bounds = array<i64: 1>, scalar_prefetch = 0 : i64, scratch_operands = 0 : i64, tpu.core_type = #tpu.core_type<tc>, window_params = [{pipeline_mode = #tpu.pipeline_mode<synchronous>, transform_indices = @transform_0, window_bounds = array<i64: 64, 529>}, {pipeline_mode = #tpu.pipeline_mode<synchronous>, transform_indices = @transform_1, window_bounds = array<i64: 64, 529>}, {pipeline_mode = #tpu.pipeline_mode<synchronous>, transform_indices = @transform_2, window_bounds = array<i64: 64, 529>}, {pipeline_mode = #tpu.pipeline_mode<synchronous>, transform_indices = @transform_3, window_bounds = array<i64: 64, 529>}, {pipeline_mode = #tpu.pipeline_mode<synchronous>, transform_indices = @transform_4, window_bounds = array<i64: 64, 529>}]} {
    %c0 = arith.constant 0 : index
    %c0_0 = arith.constant 0 : index
    %0 = vector.load %arg1[%c0, %c0_0] : memref<64x529xf32, #tpu.memory_space<vmem>>, vector<64x529xf32>
    %c0_1 = arith.constant 0 : index
    %c0_2 = arith.constant 0 : index
    %1 = vector.load %arg2[%c0_1, %c0_2] : memref<64x529xf32, #tpu.memory_space<vmem>>, vector<64x529xf32>
    %2 = arith.maximumf %0, %1 : vector<64x529xf32>
    %c0_3 = arith.constant 0 : index
    %c0_4 = arith.constant 0 : index
    %3 = vector.load %arg3[%c0_3, %c0_4] : memref<64x529xf32, #tpu.memory_space<vmem>>, vector<64x529xf32>
    %c0_5 = arith.constant 0 : index
    %c0_6 = arith.constant 0 : index
    %4 = vector.load %arg4[%c0_5, %c0_6] : memref<64x529xf32, #tpu.memory_space<vmem>>, vector<64x529xf32>
    %5 = arith.maximumf %3, %4 : vector<64x529xf32>
    %6 = arith.maximumf %2, %5 : vector<64x529xf32>
    %c0_7 = arith.constant 0 : index
    %c0_8 = arith.constant 0 : index
    %7 = vector.load %arg5[%c0_7, %c0_8] : memref<64x529xf32, #tpu.memory_space<vmem>>, vector<64x529xf32>
    tpu.vector_store %arg5[%c0_7, %c0_8], %6 {strides = array<i32>} : memref<64x529xf32, #tpu.memory_space<vmem>>, vector<64x529xf32>,
    return
  }
  func.func @transform_0(%arg0: i32) -> (i32, i32) {
    %c0_i32 = arith.constant 0 : i32
    %c0_i32_0 = arith.constant 0 : i32
    %c0_i32_1 = arith.constant 0 : i32
    return %c0_i32, %c0_i32_0 : i32, i32
  }
  func.func @transform_1(%arg0: i32) -> (i32, i32) {
    %c0_i32 = arith.constant 0 : i32
    %c0_i32_0 = arith.constant 0 : i32
    %c0_i32_1 = arith.constant 0 : i32
    return %c0_i32, %c0_i32_0 : i32, i32
  }
  func.func @transform_2(%arg0: i32) -> (i32, i32) {
    %c0_i32 = arith.constant 0 : i32
    %c0_i32_0 = arith.constant 0 : i32
    %c0_i32_1 = arith.constant 0 : i32
    return %c0_i32, %c0_i32_0 : i32, i32
  }
  func.func @transform_3(%arg0: i32) -> (i32, i32) {
    %c0_i32 = arith.constant 0 : i32
    %c0_i32_0 = arith.constant 0 : i32
    %c0_i32_1 = arith.constant 0 : i32
    return %c0_i32, %c0_i32_0 : i32, i32
  }
  func.func @transform_4(%arg0: i32) -> (i32, i32) {
    %c0_i32 = arith.constant 0 : i32
    %c0_i32_0 = arith.constant 0 : i32
    %c0_i32_1 = arith.constant 0 : i32
    return %c0_i32, %c0_i32_0 : i32, i32
  }
}

module attributes {stable_mosaic.version = 11 : i64} {
  func.func @_wx_bias_act_kernel(%arg0: i32, %arg1: memref<16x288xf32, #tpu.memory_space<vmem>>, %arg2: memref<288x882xf32, #tpu.memory_space<vmem>>, %arg3: memref<16x1xf32, #tpu.memory_space<vmem>>, %arg4: memref<16x882xf32, #tpu.memory_space<vmem>>) attributes {dimension_semantics = [#tpu.dimension_semantics<parallel>], iteration_bounds = array<i64: 1>, scalar_prefetch = 0 : i64, scratch_operands = 0 : i64, tpu.core_type = #tpu.core_type<tc>, window_params = [{pipeline_mode = #tpu.pipeline_mode<synchronous>, transform_indices = @transform_0, window_bounds = array<i64: 16, 288>}, {transform_indices = @transform_1, window_bounds = array<i64: 288, 882>}, {pipeline_mode = #tpu.pipeline_mode<synchronous>, transform_indices = @transform_2, window_bounds = array<i64: 16, 1>}, {transform_indices = @transform_3, window_bounds = array<i64: 16, 882>}]} {
    %c0 = arith.constant 0 : index
    %c0_0 = arith.constant 0 : index
    %0 = vector.load %arg1[%c0, %c0_0] : memref<16x288xf32, #tpu.memory_space<vmem>>, vector<16x288xf32>
    %c0_1 = arith.constant 0 : index
    %c0_2 = arith.constant 0 : index
    %1 = vector.load %arg2[%c0_1, %c0_2] : memref<288x882xf32, #tpu.memory_space<vmem>>, vector<288x882xf32>
    %cst = arith.constant dense<0.000000e+00> : vector<16x882xf32>
    %2 = tpu.matmul %0, %1, %cst {dimension_numbers = #tpu.dot_dimension_numbers<[1], [0], [0], [1], [0, 0, 1, 1], [], []>} : vector<16x288xf32>, vector<288x882xf32>, vector<16x882xf32> -> vector<16x882xf32>
    %c0_3 = arith.constant 0 : index
    %c0_4 = arith.constant 0 : index
    %3 = vector.load %arg3[%c0_3, %c0_4] : memref<16x1xf32, #tpu.memory_space<vmem>>, vector<16x1xf32>
    %4 = vector.broadcast %3 : vector<16x1xf32> to vector<16x882xf32>
    %5 = arith.addf %2, %4 : vector<16x882xf32>
    %cst_5 = arith.constant 0.000000e+00 : f32
    %6 = vector.broadcast %cst_5 : f32 to vector<16x882xf32>
    %7 = arith.maximumf %5, %6 : vector<16x882xf32>
    %c0_6 = arith.constant 0 : index
    %c0_7 = arith.constant 0 : index
    %8 = vector.load %arg4[%c0_6, %c0_7] : memref<16x882xf32, #tpu.memory_space<vmem>>, vector<16x882xf32>
    tpu.vector_store %arg4[%c0_6, %c0_7], %7 {strides = array<i32>} : memref<16x882xf32, #tpu.memory_space<vmem>>, vector<16x882xf32>,
    return
  }
  func.func @transform_0(%arg0: i32) -> (i32, i32) {
    %c0_i32 = arith.constant 0 : i32
    %c0_i32_0 = arith.constant 0 : i32
    %c0_i32_1 = arith.constant 0 : i32
    return %c0_i32, %c0_i32_0 : i32, i32
  }
  func.func @transform_1(%arg0: i32) -> (i32, i32) {
    %c0_i32 = arith.constant 0 : i32
    %c0_i32_0 = arith.constant 0 : i32
    return %c0_i32, %arg0 : i32, i32
  }
  func.func @transform_2(%arg0: i32) -> (i32, i32) {
    %c0_i32 = arith.constant 0 : i32
    %c0_i32_0 = arith.constant 0 : i32
    %c0_i32_1 = arith.constant 0 : i32
    return %c0_i32, %c0_i32_0 : i32, i32
  }
  func.func @transform_3(%arg0: i32) -> (i32, i32) {
    %c0_i32 = arith.constant 0 : i32
    %c0_i32_0 = arith.constant 0 : i32
    return %c0_i32, %arg0 : i32, i32
  }
}

module attributes {stable_mosaic.version = 11 : i64} {
  func.func @_fc_chain_kernel(%arg0: i32, %arg1: memref<2x7056xf32, #tpu.memory_space<vmem>>, %arg2: memref<7056x120xf32, #tpu.memory_space<vmem>>, %arg3: memref<1x120xf32, #tpu.memory_space<vmem>>, %arg4: memref<120x60xf32, #tpu.memory_space<vmem>>, %arg5: memref<1x60xf32, #tpu.memory_space<vmem>>, %arg6: memref<60x128xf32, #tpu.memory_space<vmem>>, %arg7: memref<1x128xf32, #tpu.memory_space<vmem>>, %arg8: memref<2x2xf32, #tpu.memory_space<vmem>>) attributes {dimension_semantics = [#tpu.dimension_semantics<arbitrary>], iteration_bounds = array<i64: 1>, scalar_prefetch = 0 : i64, scratch_operands = 0 : i64, tpu.core_type = #tpu.core_type<tc>, window_params = [{pipeline_mode = #tpu.pipeline_mode<synchronous>, transform_indices = @transform_0, window_bounds = array<i64: 2, 7056>}, {pipeline_mode = #tpu.pipeline_mode<synchronous>, transform_indices = @transform_1, window_bounds = array<i64: 7056, 120>}, {pipeline_mode = #tpu.pipeline_mode<synchronous>, transform_indices = @transform_2, window_bounds = array<i64: 1, 120>}, {pipeline_mode = #tpu.pipeline_mode<synchronous>, transform_indices = @transform_3, window_bounds = array<i64: 120, 60>}, {pipeline_mode = #tpu.pipeline_mode<synchronous>, transform_indices = @transform_4, window_bounds = array<i64: 1, 60>}, {pipeline_mode = #tpu.pipeline_mode<synchronous>, transform_indices = @transform_5, window_bounds = array<i64: 60, 128>}, {pipeline_mode = #tpu.pipeline_mode<synchronous>, transform_indices = @transform_6, window_bounds = array<i64: 1, 128>}, {pipeline_mode = #tpu.pipeline_mode<synchronous>, transform_indices = @transform_7, window_bounds = array<i64: 2, 2>}]} {
    %c0 = arith.constant 0 : index
    %c0_0 = arith.constant 0 : index
    %0 = vector.load %arg1[%c0, %c0_0] : memref<2x7056xf32, #tpu.memory_space<vmem>>, vector<2x7056xf32>
    %c0_1 = arith.constant 0 : index
    %c0_2 = arith.constant 0 : index
    %1 = vector.load %arg2[%c0_1, %c0_2] : memref<7056x120xf32, #tpu.memory_space<vmem>>, vector<7056x120xf32>
    %cst = arith.constant dense<0.000000e+00> : vector<2x120xf32>
    %2 = tpu.matmul %0, %1, %cst {dimension_numbers = #tpu.dot_dimension_numbers<[1], [0], [0], [1], [0, 0, 1, 1], [], []>} : vector<2x7056xf32>, vector<7056x120xf32>, vector<2x120xf32> -> vector<2x120xf32>
    %c0_3 = arith.constant 0 : index
    %c0_4 = arith.constant 0 : index
    %3 = vector.load %arg3[%c0_3, %c0_4] : memref<1x120xf32, #tpu.memory_space<vmem>>, vector<1x120xf32>
    %4 = vector.broadcast %3 : vector<1x120xf32> to vector<2x120xf32>
    %5 = arith.addf %2, %4 : vector<2x120xf32>
    %cst_5 = arith.constant 0.000000e+00 : f32
    %6 = vector.broadcast %cst_5 : f32 to vector<2x120xf32>
    %7 = arith.maximumf %5, %6 : vector<2x120xf32>
    %c0_6 = arith.constant 0 : index
    %c0_7 = arith.constant 0 : index
    %8 = vector.load %arg4[%c0_6, %c0_7] : memref<120x60xf32, #tpu.memory_space<vmem>>, vector<120x60xf32>
    %cst_8 = arith.constant dense<0.000000e+00> : vector<2x60xf32>
    %9 = tpu.matmul %7, %8, %cst_8 {dimension_numbers = #tpu.dot_dimension_numbers<[1], [0], [0], [1], [0, 0, 1, 1], [], []>} : vector<2x120xf32>, vector<120x60xf32>, vector<2x60xf32> -> vector<2x60xf32>
    %c0_9 = arith.constant 0 : index
    %c0_10 = arith.constant 0 : index
    %10 = vector.load %arg5[%c0_9, %c0_10] : memref<1x60xf32, #tpu.memory_space<vmem>>, vector<1x60xf32>
    %11 = vector.broadcast %10 : vector<1x60xf32> to vector<2x60xf32>
    %12 = arith.addf %9, %11 : vector<2x60xf32>
    %cst_11 = arith.constant 0.000000e+00 : f32
    %13 = vector.broadcast %cst_11 : f32 to vector<2x60xf32>
    %14 = arith.maximumf %12, %13 : vector<2x60xf32>
    %c0_12 = arith.constant 0 : index
    %c0_13 = arith.constant 0 : index
    %15 = vector.load %arg6[%c0_12, %c0_13] : memref<60x128xf32, #tpu.memory_space<vmem>>, vector<60x128xf32>
    %cst_14 = arith.constant dense<0.000000e+00> : vector<2x128xf32>
    %16 = tpu.matmul %14, %15, %cst_14 {dimension_numbers = #tpu.dot_dimension_numbers<[1], [0], [0], [1], [0, 0, 1, 1], [], []>} : vector<2x60xf32>, vector<60x128xf32>, vector<2x128xf32> -> vector<2x128xf32>
    %c0_15 = arith.constant 0 : index
    %c0_16 = arith.constant 0 : index
    %17 = vector.load %arg7[%c0_15, %c0_16] : memref<1x128xf32, #tpu.memory_space<vmem>>, vector<1x128xf32>
    %18 = vector.broadcast %17 : vector<1x128xf32> to vector<2x128xf32>
    %19 = arith.addf %16, %18 : vector<2x128xf32>
    %20 = vector.extract_strided_slice %19 {offsets = [0, 0], sizes = [2, 2], strides = [1, 1]} : vector<2x128xf32> to vector<2x2xf32>
    %c0_17 = arith.constant 0 : index
    %c0_18 = arith.constant 0 : index
    %21 = vector.load %arg8[%c0_17, %c0_18] : memref<2x2xf32, #tpu.memory_space<vmem>>, vector<2x2xf32>
    tpu.vector_store %arg8[%c0_17, %c0_18], %20 {strides = array<i32>} : memref<2x2xf32, #tpu.memory_space<vmem>>, vector<2x2xf32>,
    return
  }
  func.func @transform_0(%arg0: i32) -> (i32, i32) {
    %c0_i32 = arith.constant 0 : i32
    %c0_i32_0 = arith.constant 0 : i32
    %c0_i32_1 = arith.constant 0 : i32
    return %c0_i32, %c0_i32_0 : i32, i32
  }
  func.func @transform_1(%arg0: i32) -> (i32, i32) {
    %c0_i32 = arith.constant 0 : i32
    %c0_i32_0 = arith.constant 0 : i32
    %c0_i32_1 = arith.constant 0 : i32
    return %c0_i32, %c0_i32_0 : i32, i32
  }
  func.func @transform_2(%arg0: i32) -> (i32, i32) {
    %c0_i32 = arith.constant 0 : i32
    %c0_i32_0 = arith.constant 0 : i32
    %c0_i32_1 = arith.constant 0 : i32
    return %c0_i32, %c0_i32_0 : i32, i32
  }
  func.func @transform_3(%arg0: i32) -> (i32, i32) {
    %c0_i32 = arith.constant 0 : i32
    %c0_i32_0 = arith.constant 0 : i32
    %c0_i32_1 = arith.constant 0 : i32
    return %c0_i32, %c0_i32_0 : i32, i32
  }
  func.func @transform_4(%arg0: i32) -> (i32, i32) {
    %c0_i32 = arith.constant 0 : i32
    %c0_i32_0 = arith.constant 0 : i32
    %c0_i32_1 = arith.constant 0 : i32
    return %c0_i32, %c0_i32_0 : i32, i32
  }
  func.func @transform_5(%arg0: i32) -> (i32, i32) {
    %c0_i32 = arith.constant 0 : i32
    %c0_i32_0 = arith.constant 0 : i32
    %c0_i32_1 = arith.constant 0 : i32
    return %c0_i32, %c0_i32_0 : i32, i32
  }
  func.func @transform_6(%arg0: i32) -> (i32, i32) {
    %c0_i32 = arith.constant 0 : i32
    %c0_i32_0 = arith.constant 0 : i32
    %c0_i32_1 = arith.constant 0 : i32
    return %c0_i32, %c0_i32_0 : i32, i32
  }
  func.func @transform_7(%arg0: i32) -> (i32, i32) {
    %c0_i32 = arith.constant 0 : i32
    %c0_i32_0 = arith.constant 0 : i32
    %c0_i32_1 = arith.constant 0 : i32
    return %c0_i32, %c0_i32_0 : i32, i32
  }
}

</mosaic_0001>

<bundles_post_ra>
// kernel: mynet_forward.6
= control target key start
LH: loop header
LB: loop body
LE: loop exit
PB: predicated region body
PF: predicated region fallthrough
CT: control target
= control target key end

     0   :  { %s2660_s12 = smov 0   ;;  %s2662_s13 = smov 0   ;;  %s3582_s0 = inlined_call_operand.vmem [shape: f32[16,32], index: 0, kind: input, shape index: {}]   ;;  %s3583_s1 = inlined_call_operand.vmem [shape: f32[32,18432], index: 1, kind: input, shape index: {}]   ;;  %s3584_s2 = inlined_call_operand.vmem [shape: f32[16,1], index: 2, kind: input, shape index: {}]   ;;  %s3585_s3 = inlined_call_operand.vmem [shape: f32[16,18432], index: 3, kind: output, shape index: {}]  }
   0x1   :  { %s2664_s14 = smov 0  }
   0x2 LB: > { %s2393_s15 = sadd.s32 4294967295, %s2636_s14   ;;  %s2677_s16 = sadd.s32 1, %s2636_s14   ;;  %s2636_s14 = sphi %s2664_s14, %s3589_s14   ;;  %s2632_s13 = sphi %s2662_s13, %s3588_s13   ;;  %s2628_s12 = sphi %s2660_s12, %s3587_s12  }
   0x3   : > { %s38_s17 = ssub.s32 %s2636_s14, %s2677_s16  ;;  %s41_s18 = sadd.s32 1, %s2632_s13 }
   0x4   : > { %p39_p0 = scmp.eq.s32.totalorder %s38_s17, 0  ;;  %p48_p1 = scmp.ne.s32.totalorder %s2632_s13, %s2628_s12 }
   0x5   : > { %p49_p2 = scmp.eq.s32.totalorder %s2636_s14, 0  ;;  %p99_p3 = scmp.eq.s32.totalorder %s2393_s15, 3 }
   0x6   : > { %s2688_s19 = scalar_select %p39_p0, %s2632_s13, %s41_s18  }
   0x7   : > { %p50_p4 = por %p49_p2, %p48_p1  ;;  %p2690_p5 = por %p99_p3, %p48_p1 }
   0x8   : > { %p2396_p6 = scmp.ge.s32.totalorder %s2636_s14, 4 }
   0xa   : > { %127 = sbr.rel (%p2396_p6) target bundleno = 94 (0x5e), region = 24 }
  0x11   : > { %130 = sbr.rel (!%p50_p4) target bundleno = 94 (0x5e), region = 28  ;;  %s132_s21 = sand.u32 (%p50_p4), 1, %s2632_s13  }
  0x12   : > { %s2438_s22 = smul.u32 (%p50_p4), 288, %s2636_s14 }
  0x13   : > { %s2584_s23 = smul.u32 (%p50_p4), 1152, %s132_s21 }
  0x14   : > { %s2700_s26 = scalar_lea.vmem (%p50_p4), %s3583_s1, %s2438_s22 }
  0x15   : > { %v150_v0 = vld [vmem:[%s2700_s26] sm:$0xff] (%p50_p4)  ;;  %v152_v1 = vld [vmem:[%s2700_s26 + $0x8] sm:$0xff] (%p50_p4)  ;;  %v154_v2 = vld [vmem:[%s2700_s26 + $0x10] sm:$0xff] (%p50_p4)  ;;  %s2705_s27 = scalar_lea.vmem (%p50_p4), [#allocation2], %s2584_s23 }
  0x16   : > { %151 = vst [vmem:[%s2705_s27] sm:$0xff] (%p50_p4), %v150_v0  ;;  %153 = vst [vmem:[%s2705_s27 + $0x8] sm:$0xff] (%p50_p4), %v152_v1  ;;  %v156_v3 = vld [vmem:[%s2700_s26 + $0x18] sm:$0xff] (%p50_p4)  ;;  %v158_v4 = vld [vmem:[%s2700_s26 + $0x20] sm:$0xff] (%p50_p4) }
  0x17   : > { %155 = vst [vmem:[%s2705_s27 + $0x10] sm:$0xff] (%p50_p4), %v154_v2  ;;  %v160_v5 = vld [vmem:[%s2700_s26 + $0x28] sm:$0xff] (%p50_p4)  ;;  %157 = vst [vmem:[%s2705_s27 + $0x18] sm:$0xff] (%p50_p4), %v156_v3  ;;  %v162_v6 = vld [vmem:[%s2700_s26 + $0x30] sm:$0xff] (%p50_p4) }
  0x18   : > { %159 = vst [vmem:[%s2705_s27 + $0x20] sm:$0xff] %v158_v4  ;;  %161 = vst [vmem:[%s2705_s27 + $0x28] sm:$0xff] %v160_v5  ;;  %v164_v7 = vld [vmem:[%s2700_s26 + $0x38] sm:$0xff]  ;;  %v166_v8 = vld [vmem:[%s2700_s26 + $0x40] sm:$0xff] }
  0x19   : > { %163 = vst [vmem:[%s2705_s27 + $0x30] sm:$0xff] %v162_v6  ;;  %165 = vst [vmem:[%s2705_s27 + $0x38] sm:$0xff] %v164_v7  ;;  %v168_v9 = vld [vmem:[%s2700_s26 + $0x48] sm:$0xff]  ;;  %v170_v10 = vld [vmem:[%s2700_s26 + $0x50] sm:$0xff] }
  0x1a   : > { %167 = vst [vmem:[%s2705_s27 + $0x40] sm:$0xff] %v166_v8  ;;  %v172_v11 = vld [vmem:[%s2700_s26 + $0x58] sm:$0xff]  ;;  %169 = vst [vmem:[%s2705_s27 + $0x48] sm:$0xff] %v168_v9  ;;  %v174_v12 = vld [vmem:[%s2700_s26 + $0x60] sm:$0xff] }
  0x1b   : > { %171 = vst [vmem:[%s2705_s27 + $0x50] sm:$0xff] %v170_v10  ;;  %173 = vst [vmem:[%s2705_s27 + $0x58] sm:$0xff] %v172_v11  ;;  %v176_v13 = vld [vmem:[%s2700_s26 + $0x68] sm:$0xff]  ;;  %v178_v14 = vld [vmem:[%s2700_s26 + $0x70] sm:$0xff] }
  0x1c   : > { %175 = vst [vmem:[%s2705_s27 + $0x60] sm:$0xff] %v174_v12  ;;  %177 = vst [vmem:[%s2705_s27 + $0x68] sm:$0xff] %v176_v13  ;;  %v180_v15 = vld [vmem:[%s2700_s26 + $0x78] sm:$0xff]  ;;  %v182_v16 = vld [vmem:[%s2700_s26 + $0x80] sm:$0xff] }
  0x1d   : > { %179 = vst [vmem:[%s2705_s27 + $0x70] sm:$0xff] %v178_v14  ;;  %v184_v17 = vld [vmem:[%s2700_s26 + $0x88] sm:$0xff]  ;;  %181 = vst [vmem:[%s2705_s27 + $0x78] sm:$0xff] %v180_v15  ;;  %v186_v18 = vld [vmem:[%s2700_s26 + $0x90] sm:$0xff] }
  0x1e   : > { %183 = vst [vmem:[%s2705_s27 + $0x80] sm:$0xff] %v182_v16  ;;  %185 = vst [vmem:[%s2705_s27 + $0x88] sm:$0xff] %v184_v17  ;;  %v188_v19 = vld [vmem:[%s2700_s26 + $0x98] sm:$0xff]  ;;  %v190_v20 = vld [vmem:[%s2700_s26 + $0xa0] sm:$0xff] }
  0x1f   : > { %187 = vst [vmem:[%s2705_s27 + $0x90] sm:$0xff] %v186_v18  ;;  %189 = vst [vmem:[%s2705_s27 + $0x98] sm:$0xff] %v188_v19  ;;  %v192_v21 = vld [vmem:[%s2700_s26 + $0xa8] sm:$0xff]  ;;  %v194_v22 = vld [vmem:[%s2700_s26 + $0xb0] sm:$0xff] }
  0x20   : > { %191 = vst [vmem:[%s2705_s27 + $0xa0] sm:$0xff] %v190_v20  ;;  %v196_v23 = vld [vmem:[%s2700_s26 + $0xb8] sm:$0xff]  ;;  %193 = vst [vmem:[%s2705_s27 + $0xa8] sm:$0xff] %v192_v21  ;;  %v198_v24 = vld [vmem:[%s2700_s26 + $0xc0] sm:$0xff] }
  0x21   : > { %195 = vst [vmem:[%s2705_s27 + $0xb0] sm:$0xff] %v194_v22  ;;  %197 = vst [vmem:[%s2705_s27 + $0xb8] sm:$0xff] %v196_v23  ;;  %v200_v25 = vld [vmem:[%s2700_s26 + $0xc8] sm:$0xff]  ;;  %v202_v26 = vld [vmem:[%s2700_s26 + $0xd0] sm:$0xff] }
  0x22   : > { %199 = vst [vmem:[%s2705_s27 + $0xc0] sm:$0xff] %v198_v24  ;;  %201 = vst [vmem:[%s2705_s27 + $0xc8] sm:$0xff] %v200_v25  ;;  %v204_v27 = vld [vmem:[%s2700_s26 + $0xd8] sm:$0xff]  ;;  %v206_v28 = vld [vmem:[%s2700_s26 + $0xe0] sm:$0xff] }
  0x23   : > { %203 = vst [vmem:[%s2705_s27 + $0xd0] sm:$0xff] %v202_v26  ;;  %v208_v29 = vld [vmem:[%s2700_s26 + $0xe8] sm:$0xff]  ;;  %205 = vst [vmem:[%s2705_s27 + $0xd8] sm:$0xff] %v204_v27  ;;  %v210_v30 = vld [vmem:[%s2700_s26 + $0xf0] sm:$0xff] }
  0x24   : > { %207 = vst [vmem:[%s2705_s27 + $0xe0] sm:$0xff] %v206_v28  ;;  %209 = vst [vmem:[%s2705_s27 + $0xe8] sm:$0xff] %v208_v29  ;;  %v212_v31 = vld [vmem:[%s2700_s26 + $0xf8] sm:$0xff]  ;;  %v214_v32 = vld [vmem:[%s2700_s26 + $0x100] sm:$0xff] }
  0x25   : > { %211 = vst [vmem:[%s2705_s27 + $0xf0] sm:$0xff] %v210_v30  ;;  %213 = vst [vmem:[%s2705_s27 + $0xf8] sm:$0xff] %v212_v31  ;;  %v216_v33 = vld [vmem:[%s2700_s26 + $0x108] sm:$0xff]  ;;  %v218_v34 = vld [vmem:[%s2700_s26 + $0x110] sm:$0xff] }
  0x26   : > { %215 = vst [vmem:[%s2705_s27 + $0x100] sm:$0xff] %v214_v32  ;;  %v220_v35 = vld [vmem:[%s2700_s26 + $0x118] sm:$0xff]  ;;  %217 = vst [vmem:[%s2705_s27 + $0x108] sm:$0xff] %v216_v33  ;;  %v222_v36 = vld [vmem:[%s2700_s26 + $0x480] sm:$0xff] }
  0x27   : > { %219 = vst [vmem:[%s2705_s27 + $0x110] sm:$0xff] %v218_v34  ;;  %221 = vst [vmem:[%s2705_s27 + $0x118] sm:$0xff] %v220_v35  ;;  %v224_v37 = vld [vmem:[%s2700_s26 + $0x488] sm:$0xff]  ;;  %v226_v38 = vld [vmem:[%s2700_s26 + $0x490] sm:$0xff] }
  0x28   : > { %223 = vst [vmem:[%s2705_s27 + $0x120] sm:$0xff] %v222_v36  ;;  %225 = vst [vmem:[%s2705_s27 + $0x128] sm:$0xff] %v224_v37  ;;  %v228_v39 = vld [vmem:[%s2700_s26 + $0x498] sm:$0xff]  ;;  %v230_v40 = vld [vmem:[%s2700_s26 + $0x4a0] sm:$0xff] }
  0x29   : > { %227 = vst [vmem:[%s2705_s27 + $0x130] sm:$0xff] %v226_v38  ;;  %v232_v41 = vld [vmem:[%s2700_s26 + $0x4a8] sm:$0xff]  ;;  %229 = vst [vmem:[%s2705_s27 + $0x138] sm:$0xff] %v228_v39  ;;  %v234_v42 = vld [vmem:[%s2700_s26 + $0x4b0] sm:$0xff] }
  0x2a   : > { %231 = vst [vmem:[%s2705_s27 + $0x140] sm:$0xff] %v230_v40  ;;  %233 = vst [vmem:[%s2705_s27 + $0x148] sm:$0xff] %v232_v41  ;;  %v236_v43 = vld [vmem:[%s2700_s26 + $0x4b8] sm:$0xff]  ;;  %v238_v44 = vld [vmem:[%s2700_s26 + $0x4c0] sm:$0xff] }
  0x2b   : > { %235 = vst [vmem:[%s2705_s27 + $0x150] sm:$0xff] %v234_v42  ;;  %237 = vst [vmem:[%s2705_s27 + $0x158] sm:$0xff] %v236_v43  ;;  %v240_v45 = vld [vmem:[%s2700_s26 + $0x4c8] sm:$0xff]  ;;  %v242_v46 = vld [vmem:[%s2700_s26 + $0x4d0] sm:$0xff] }
  0x2c   : > { %239 = vst [vmem:[%s2705_s27 + $0x160] sm:$0xff] %v238_v44  ;;  %v244_v47 = vld [vmem:[%s2700_s26 + $0x4d8] sm:$0xff]  ;;  %241 = vst [vmem:[%s2705_s27 + $0x168] sm:$0xff] %v240_v45  ;;  %v246_v48 = vld [vmem:[%s2700_s26 + $0x4e0] sm:$0xff] }
  0x2d   : > { %243 = vst [vmem:[%s2705_s27 + $0x170] sm:$0xff] %v242_v46  ;;  %245 = vst [vmem:[%s2705_s27 + $0x178] sm:$0xff] %v244_v47  ;;  %v248_v49 = vld [vmem:[%s2700_s26 + $0x4e8] sm:$0xff]  ;;  %v250_v50 = vld [vmem:[%s2700_s26 + $0x4f0] sm:$0xff] }
  0x2e   : > { %247 = vst [vmem:[%s2705_s27 + $0x180] sm:$0xff] %v246_v48  ;;  %249 = vst [vmem:[%s2705_s27 + $0x188] sm:$0xff] %v248_v49  ;;  %v252_v51 = vld [vmem:[%s2700_s26 + $0x4f8] sm:$0xff]  ;;  %v254_v52 = vld [vmem:[%s2700_s26 + $0x500] sm:$0xff] }
  0x2f   : > { %251 = vst [vmem:[%s2705_s27 + $0x190] sm:$0xff] %v250_v50  ;;  %v256_v53 = vld [vmem:[%s2700_s26 + $0x508] sm:$0xff]  ;;  %253 = vst [vmem:[%s2705_s27 + $0x198] sm:$0xff] %v252_v51  ;;  %v258_v54 = vld [vmem:[%s2700_s26 + $0x510] sm:$0xff] }
  0x30   : > { %255 = vst [vmem:[%s2705_s27 + $0x1a0] sm:$0xff] %v254_v52  ;;  %257 = vst [vmem:[%s2705_s27 + $0x1a8] sm:$0xff] %v256_v53  ;;  %v260_v55 = vld [vmem:[%s2700_s26 + $0x518] sm:$0xff]  ;;  %v262_v56 = vld [vmem:[%s2700_s26 + $0x520] sm:$0xff] }
  0x31   : > { %259 = vst [vmem:[%s2705_s27 + $0x1b0] sm:$0xff] %v258_v54  ;;  %261 = vst [vmem:[%s2705_s27 + $0x1b8] sm:$0xff] %v260_v55  ;;  %v264_v57 = vld [vmem:[%s2700_s26 + $0x528] sm:$0xff]  ;;  %v266_v58 = vld [vmem:[%s2700_s26 + $0x530] sm:$0xff] }
  0x32   : > { %263 = vst [vmem:[%s2705_s27 + $0x1c0] sm:$0xff] %v262_v56  ;;  %v268_v59 = vld [vmem:[%s2700_s26 + $0x538] sm:$0xff]  ;;  %265 = vst [vmem:[%s2705_s27 + $0x1c8] sm:$0xff] %v264_v57  ;;  %v270_v60 = vld [vmem:[%s2700_s26 + $0x540] sm:$0xff] }
  0x33   : > { %267 = vst [vmem:[%s2705_s27 + $0x1d0] sm:$0xff] %v266_v58  ;;  %269 = vst [vmem:[%s2705_s27 + $0x1d8] sm:$0xff] %v268_v59  ;;  %v272_v61 = vld [vmem:[%s2700_s26 + $0x548] sm:$0xff]  ;;  %v274_v62 = vld [vmem:[%s2700_s26 + $0x550] sm:$0xff] }
  0x34   : > { %271 = vst [vmem:[%s2705_s27 + $0x1e0] sm:$0xff] %v270_v60  ;;  %273 = vst [vmem:[%s2705_s27 + $0x1e8] sm:$0xff] %v272_v61  ;;  %v276_v63 = vld [vmem:[%s2700_s26 + $0x558] sm:$0xff]  ;;  %v278_v0 = vld [vmem:[%s2700_s26 + $0x560] sm:$0xff] }
  0x35   : > { %275 = vst [vmem:[%s2705_s27 + $0x1f0] sm:$0xff] %v274_v62  ;;  %v280_v1 = vld [vmem:[%s2700_s26 + $0x568] sm:$0xff]  ;;  %277 = vst [vmem:[%s2705_s27 + $0x1f8] sm:$0xff] %v276_v63  ;;  %v282_v2 = vld [vmem:[%s2700_s26 + $0x570] sm:$0xff] }
  0x36   : > { %279 = vst [vmem:[%s2705_s27 + $0x200] sm:$0xff] %v278_v0  ;;  %281 = vst [vmem:[%s2705_s27 + $0x208] sm:$0xff] %v280_v1  ;;  %v284_v3 = vld [vmem:[%s2700_s26 + $0x578] sm:$0xff]  ;;  %v286_v4 = vld [vmem:[%s2700_s26 + $0x580] sm:$0xff] }
  0x37   : > { %283 = vst [vmem:[%s2705_s27 + $0x210] sm:$0xff] %v282_v2  ;;  %285 = vst [vmem:[%s2705_s27 + $0x218] sm:$0xff] %v284_v3  ;;  %v288_v5 = vld [vmem:[%s2700_s26 + $0x588] sm:$0xff]  ;;  %v290_v6 = vld [vmem:[%s2700_s26 + $0x590] sm:$0xff] }
  0x38   : > { %287 = vst [vmem:[%s2705_s27 + $0x220] sm:$0xff] %v286_v4  ;;  %v292_v7 = vld [vmem:[%s2700_s26 + $0x598] sm:$0xff]  ;;  %289 = vst [vmem:[%s2705_s27 + $0x228] sm:$0xff] %v288_v5  ;;  %v294_v8 = vld [vmem:[%s2700_s26 + $0x900] sm:$0xff] }
  0x39   : > { %291 = vst [vmem:[%s2705_s27 + $0x230] sm:$0xff] %v290_v6  ;;  %293 = vst [vmem:[%s2705_s27 + $0x238] sm:$0xff] %v292_v7  ;;  %v296_v9 = vld [vmem:[%s2700_s26 + $0x908] sm:$0xff]  ;;  %v298_v10 = vld [vmem:[%s2700_s26 + $0x910] sm:$0xff] }
  0x3a   : > { %295 = vst [vmem:[%s2705_s27 + $0x240] sm:$0xff] %v294_v8  ;;  %297 = vst [vmem:[%s2705_s27 + $0x248] sm:$0xff] %v296_v9  ;;  %v300_v11 = vld [vmem:[%s2700_s26 + $0x918] sm:$0xff]  ;;  %v302_v12 = vld [vmem:[%s2700_s26 + $0x920] sm:$0xff] }
  0x3b   : > { %299 = vst [vmem:[%s2705_s27 + $0x250] sm:$0xff] %v298_v10  ;;  %v304_v13 = vld [vmem:[%s2700_s26 + $0x928] sm:$0xff]  ;;  %301 = vst [vmem:[%s2705_s27 + $0x258] sm:$0xff] %v300_v11  ;;  %v306_v14 = vld [vmem:[%s2700_s26 + $0x930] sm:$0xff] }
  0x3c   : > { %303 = vst [vmem:[%s2705_s27 + $0x260] sm:$0xff] %v302_v12  ;;  %305 = vst [vmem:[%s2705_s27 + $0x268] sm:$0xff] %v304_v13  ;;  %v308_v15 = vld [vmem:[%s2700_s26 + $0x938] sm:$0xff]  ;;  %v310_v16 = vld [vmem:[%s2700_s26 + $0x940] sm:$0xff] }
  0x3d   : > { %307 = vst [vmem:[%s2705_s27 + $0x270] sm:$0xff] %v306_v14  ;;  %309 = vst [vmem:[%s2705_s27 + $0x278] sm:$0xff] %v308_v15  ;;  %v312_v17 = vld [vmem:[%s2700_s26 + $0x948] sm:$0xff]  ;;  %v314_v18 = vld [vmem:[%s2700_s26 + $0x950] sm:$0xff] }
  0x3e   : > { %311 = vst [vmem:[%s2705_s27 + $0x280] sm:$0xff] %v310_v16  ;;  %v316_v19 = vld [vmem:[%s2700_s26 + $0x958] sm:$0xff]  ;;  %313 = vst [vmem:[%s2705_s27 + $0x288] sm:$0xff] %v312_v17  ;;  %v318_v20 = vld [vmem:[%s2700_s26 + $0x960] sm:$0xff] }
  0x3f   : > { %315 = vst [vmem:[%s2705_s27 + $0x290] sm:$0xff] %v314_v18  ;;  %317 = vst [vmem:[%s2705_s27 + $0x298] sm:$0xff] %v316_v19  ;;  %v320_v21 = vld [vmem:[%s2700_s26 + $0x968] sm:$0xff]  ;;  %v322_v22 = vld [vmem:[%s2700_s26 + $0x970] sm:$0xff] }
  0x40   : > { %319 = vst [vmem:[%s2705_s27 + $0x2a0] sm:$0xff] %v318_v20  ;;  %321 = vst [vmem:[%s2705_s27 + $0x2a8] sm:$0xff] %v320_v21  ;;  %v324_v23 = vld [vmem:[%s2700_s26 + $0x978] sm:$0xff]  ;;  %v326_v24 = vld [vmem:[%s2700_s26 + $0x980] sm:$0xff] }
  0x41   : > { %323 = vst [vmem:[%s2705_s27 + $0x2b0] sm:$0xff] %v322_v22  ;;  %v328_v25 = vld [vmem:[%s2700_s26 + $0x988] sm:$0xff]  ;;  %325 = vst [vmem:[%s2705_s27 + $0x2b8] sm:$0xff] %v324_v23  ;;  %v330_v26 = vld [vmem:[%s2700_s26 + $0x990] sm:$0xff] }
  0x42   : > { %327 = vst [vmem:[%s2705_s27 + $0x2c0] sm:$0xff] %v326_v24  ;;  %329 = vst [vmem:[%s2705_s27 + $0x2c8] sm:$0xff] %v328_v25  ;;  %v332_v27 = vld [vmem:[%s2700_s26 + $0x998] sm:$0xff]  ;;  %v334_v28 = vld [vmem:[%s2700_s26 + $0x9a0] sm:$0xff] }
  0x43   : > { %331 = vst [vmem:[%s2705_s27 + $0x2d0] sm:$0xff] %v330_v26  ;;  %333 = vst [vmem:[%s2705_s27 + $0x2d8] sm:$0xff] %v332_v27  ;;  %v336_v29 = vld [vmem:[%s2700_s26 + $0x9a8] sm:$0xff]  ;;  %v338_v30 = vld [vmem:[%s2700_s26 + $0x9b0] sm:$0xff] }
  0x44   : > { %335 = vst [vmem:[%s2705_s27 + $0x2e0] sm:$0xff] %v334_v28  ;;  %v340_v31 = vld [vmem:[%s2700_s26 + $0x9b8] sm:$0xff]  ;;  %337 = vst [vmem:[%s2705_s27 + $0x2e8] sm:$0xff] %v336_v29  ;;  %v342_v32 = vld [vmem:[%s2700_s26 + $0x9c0] sm:$0xff] }
  0x45   : > { %339 = vst [vmem:[%s2705_s27 + $0x2f0] sm:$0xff] %v338_v30  ;;  %341 = vst [vmem:[%s2705_s27 + $0x2f8] sm:$0xff] %v340_v31  ;;  %v344_v33 = vld [vmem:[%s2700_s26 + $0x9c8] sm:$0xff]  ;;  %v346_v34 = vld [vmem:[%s2700_s26 + $0x9d0] sm:$0xff] }
  0x46   : > { %343 = vst [vmem:[%s2705_s27 + $0x300] sm:$0xff] %v342_v32  ;;  %345 = vst [vmem:[%s2705_s27 + $0x308] sm:$0xff] %v344_v33  ;;  %v348_v35 = vld [vmem:[%s2700_s26 + $0x9d8] sm:$0xff]  ;;  %v350_v36 = vld [vmem:[%s2700_s26 + $0x9e0] sm:$0xff] }
  0x47   : > { %347 = vst [vmem:[%s2705_s27 + $0x310] sm:$0xff] %v346_v34  ;;  %v352_v37 = vld [vmem:[%s2700_s26 + $0x9e8] sm:$0xff]  ;;  %349 = vst [vmem:[%s2705_s27 + $0x318] sm:$0xff] %v348_v35  ;;  %v354_v38 = vld [vmem:[%s2700_s26 + $0x9f0] sm:$0xff] }
  0x48   : > { %351 = vst [vmem:[%s2705_s27 + $0x320] sm:$0xff] %v350_v36  ;;  %353 = vst [vmem:[%s2705_s27 + $0x328] sm:$0xff] %v352_v37  ;;  %v356_v39 = vld [vmem:[%s2700_s26 + $0x9f8] sm:$0xff]  ;;  %v358_v40 = vld [vmem:[%s2700_s26 + $0xa00] sm:$0xff] }
  0x49   : > { %355 = vst [vmem:[%s2705_s27 + $0x330] sm:$0xff] %v354_v38  ;;  %357 = vst [vmem:[%s2705_s27 + $0x338] sm:$0xff] %v356_v39  ;;  %v360_v41 = vld [vmem:[%s2700_s26 + $0xa08] sm:$0xff]  ;;  %v362_v42 = vld [vmem:[%s2700_s26 + $0xa10] sm:$0xff] }
  0x4a   : > { %359 = vst [vmem:[%s2705_s27 + $0x340] sm:$0xff] %v358_v40  ;;  %v364_v43 = vld [vmem:[%s2700_s26 + $0xa18] sm:$0xff]  ;;  %361 = vst [vmem:[%s2705_s27 + $0x348] sm:$0xff] %v360_v41  ;;  %v366_v44 = vld [vmem:[%s2700_s26 + $0xd80] sm:$0xff] }
  0x4b   : > { %363 = vst [vmem:[%s2705_s27 + $0x350] sm:$0xff] %v362_v42  ;;  %365 = vst [vmem:[%s2705_s27 + $0x358] sm:$0xff] %v364_v43  ;;  %v368_v45 = vld [vmem:[%s2700_s26 + $0xd88] sm:$0xff]  ;;  %v370_v46 = vld [vmem:[%s2700_s26 + $0xd90] sm:$0xff] }
  0x4c   : > { %367 = vst [vmem:[%s2705_s27 + $0x360] sm:$0xff] %v366_v44  ;;  %369 = vst [vmem:[%s2705_s27 + $0x368] sm:$0xff] %v368_v45  ;;  %v372_v47 = vld [vmem:[%s2700_s26 + $0xd98] sm:$0xff]  ;;  %v374_v48 = vld [vmem:[%s2700_s26 + $0xda0] sm:$0xff] }
  0x4d   : > { %371 = vst [vmem:[%s2705_s27 + $0x370] sm:$0xff] %v370_v46  ;;  %v376_v49 = vld [vmem:[%s2700_s26 + $0xda8] sm:$0xff]  ;;  %373 = vst [vmem:[%s2705_s27 + $0x378] sm:$0xff] %v372_v47  ;;  %v378_v50 = vld [vmem:[%s2700_s26 + $0xdb0] sm:$0xff] }
  0x4e   : > { %375 = vst [vmem:[%s2705_s27 + $0x380] sm:$0xff] %v374_v48  ;;  %377 = vst [vmem:[%s2705_s27 + $0x388] sm:$0xff] %v376_v49  ;;  %v380_v51 = vld [vmem:[%s2700_s26 + $0xdb8] sm:$0xff]  ;;  %v382_v52 = vld [vmem:[%s2700_s26 + $0xdc0] sm:$0xff] }
  0x4f   : > { %379 = vst [vmem:[%s2705_s27 + $0x390] sm:$0xff] %v378_v50  ;;  %381 = vst [vmem:[%s2705_s27 + $0x398] sm:$0xff] %v380_v51  ;;  %v384_v53 = vld [vmem:[%s2700_s26 + $0xdc8] sm:$0xff]  ;;  %v386_v54 = vld [vmem:[%s2700_s26 + $0xdd0] sm:$0xff] }
  0x50   : > { %383 = vst [vmem:[%s2705_s27 + $0x3a0] sm:$0xff] %v382_v52  ;;  %v388_v55 = vld [vmem:[%s2700_s26 + $0xdd8] sm:$0xff]  ;;  %385 = vst [vmem:[%s2705_s27 + $0x3a8] sm:$0xff] %v384_v53  ;;  %v390_v56 = vld [vmem:[%s2700_s26 + $0xde0] sm:$0xff] }
  0x51   : > { %387 = vst [vmem:[%s2705_s27 + $0x3b0] sm:$0xff] %v386_v54  ;;  %389 = vst [vmem:[%s2705_s27 + $0x3b8] sm:$0xff] %v388_v55  ;;  %v392_v57 = vld [vmem:[%s2700_s26 + $0xde8] sm:$0xff]  ;;  %v394_v58 = vld [vmem:[%s2700_s26 + $0xdf0] sm:$0xff] }
  0x52   : > { %391 = vst [vmem:[%s2705_s27 + $0x3c0] sm:$0xff] %v390_v56  ;;  %393 = vst [vmem:[%s2705_s27 + $0x3c8] sm:$0xff] %v392_v57  ;;  %v396_v59 = vld [vmem:[%s2700_s26 + $0xdf8] sm:$0xff]  ;;  %v398_v60 = vld [vmem:[%s2700_s26 + $0xe00] sm:$0xff] }
  0x53   : > { %395 = vst [vmem:[%s2705_s27 + $0x3d0] sm:$0xff] %v394_v58  ;;  %v400_v61 = vld [vmem:[%s2700_s26 + $0xe08] sm:$0xff]  ;;  %397 = vst [vmem:[%s2705_s27 + $0x3d8] sm:$0xff] %v396_v59  ;;  %v402_v62 = vld [vmem:[%s2700_s26 + $0xe10] sm:$0xff] }
  0x54   : > { %399 = vst [vmem:[%s2705_s27 + $0x3e0] sm:$0xff] %v398_v60  ;;  %401 = vst [vmem:[%s2705_s27 + $0x3e8] sm:$0xff] %v400_v61  ;;  %v404_v63 = vld [vmem:[%s2700_s26 + $0xe18] sm:$0xff]  ;;  %v406_v0 = vld [vmem:[%s2700_s26 + $0xe20] sm:$0xff] }
  0x55   : > { %403 = vst [vmem:[%s2705_s27 + $0x3f0] sm:$0xff] %v402_v62  ;;  %405 = vst [vmem:[%s2705_s27 + $0x3f8] sm:$0xff] %v404_v63  ;;  %v408_v1 = vld [vmem:[%s2700_s26 + $0xe28] sm:$0xff]  ;;  %v410_v2 = vld [vmem:[%s2700_s26 + $0xe30] sm:$0xff] }
  0x56   : > { %407 = vst [vmem:[%s2705_s27 + $0x400] sm:$0xff] %v406_v0  ;;  %v412_v3 = vld [vmem:[%s2700_s26 + $0xe38] sm:$0xff]  ;;  %409 = vst [vmem:[%s2705_s27 + $0x408] sm:$0xff] %v408_v1  ;;  %v414_v4 = vld [vmem:[%s2700_s26 + $0xe40] sm:$0xff] }
  0x57   : > { %411 = vst [vmem:[%s2705_s27 + $0x410] sm:$0xff] %v410_v2  ;;  %413 = vst [vmem:[%s2705_s27 + $0x418] sm:$0xff] %v412_v3  ;;  %v416_v5 = vld [vmem:[%s2700_s26 + $0xe48] sm:$0xff]  ;;  %v418_v6 = vld [vmem:[%s2700_s26 + $0xe50] sm:$0xff] }
  0x58   : > { %415 = vst [vmem:[%s2705_s27 + $0x420] sm:$0xff] %v414_v4  ;;  %417 = vst [vmem:[%s2705_s27 + $0x428] sm:$0xff] %v416_v5  ;;  %v420_v7 = vld [vmem:[%s2700_s26 + $0xe58] sm:$0xff]  ;;  %v422_v8 = vld [vmem:[%s2700_s26 + $0xe60] sm:$0xff] }
  0x59   : > { %419 = vst [vmem:[%s2705_s27 + $0x430] sm:$0xff] %v418_v6  ;;  %v424_v9 = vld [vmem:[%s2700_s26 + $0xe68] sm:$0xff]  ;;  %421 = vst [vmem:[%s2705_s27 + $0x438] sm:$0xff] %v420_v7  ;;  %v426_v10 = vld [vmem:[%s2700_s26 + $0xe70] sm:$0xff] }
  0x5a   : > { %423 = vst [vmem:[%s2705_s27 + $0x440] sm:$0xff] %v422_v8  ;;  %425 = vst [vmem:[%s2705_s27 + $0x448] sm:$0xff] %v424_v9  ;;  %v428_v11 = vld [vmem:[%s2700_s26 + $0xe78] sm:$0xff]  ;;  %v430_v12 = vld [vmem:[%s2700_s26 + $0xe80] sm:$0xff] }
  0x5b   : > { %427 = vst [vmem:[%s2705_s27 + $0x450] sm:$0xff] %v426_v10  ;;  %429 = vst [vmem:[%s2705_s27 + $0x458] sm:$0xff] %v428_v11  ;;  %v432_v13 = vld [vmem:[%s2700_s26 + $0xe88] sm:$0xff]  ;;  %v434_v14 = vld [vmem:[%s2700_s26 + $0xe90] sm:$0xff] }
  0x5c   : > { %431 = vst [vmem:[%s2705_s27 + $0x460] sm:$0xff] %v430_v12  ;;  %v436_v15 = vld [vmem:[%s2700_s26 + $0xe98] sm:$0xff]  ;;  %433 = vst [vmem:[%s2705_s27 + $0x468] sm:$0xff] %v432_v13 }
  0x5d   : > { %435 = vst [vmem:[%s2705_s27 + $0x470] sm:$0xff] %v434_v14  ;;  %437 = vst [vmem:[%s2705_s27 + $0x478] sm:$0xff] %v436_v15 }
  0x5e PF: > { %p2398_p7 = scmp.ge.s32.totalorder %s2636_s14, 1  ;;  %p442_p8 = scmp.lt.s32.totalorder %s2636_s14, 5 }
  0x60   : > { %p443_p9 = pnand %p2398_p7, %p442_p8 }
  0x61   : > { %s449_s28 = sand.u32 (!%p443_p9), 1, %s2628_s12   ;;  %v2638_v16 = vmov (!%p443_p9), 0.0   ;;  %v619_v17 = vld [vmem:[%s3584_s2] sm:$0xff] (!%p443_p9)  ;;  %v2639_v18 = vmov (!%p443_p9), 0   ;;  %v620_v19 = vld [vmem:[%s3584_s2 + $0x8] sm:$0xff] (!%p443_p9)  ;;  %vm631_vm0 = vcmask (!%p443_p9), 261120  }
  0x62   : > { %446 = sbr.rel (%p443_p9) target bundleno = 428 (0x1ac), region = 51  ;;  %702 = vmatprep.mubr.f32.mxu0 (!%p443_p9), %v2638_v16  ;;  %779 = vmatprep.mubr.f32.mxu1 (!%p443_p9), %v2638_v16  ;;  %v3028_v46 = vld [vmem:[%s3582_s0] sm:$0xff] (!%p443_p9)  ;;  %v3053_v5 = vld [vmem:[%s3582_s0 + $0x8] sm:$0xff] (!%p443_p9) }
  0x63   : > { %s2585_s29 = smul.u32 (!%p443_p9), 1152, %s449_s28  ;;  %2613 = vset.pattern.permute.xlu0 (!%p443_p9), %v2639_v18 }
  0x64   : > { %623 = vperm.xlu0 (!%p443_p9), %2613, %v619_v17   ;;  %s2586_s17 = smul.u32 (!%p443_p9), 576, %s449_s28 }
  0x65   : > { %s3005_s7 = scalar_lea.vmem (!%p443_p9), [#allocation2], %s2585_s29 }
  0x66   : > { %v476_v20 = vld [vmem:[%s3005_s7 + $0x8] sm:$0xff] (!%p443_p9)  ;;  %v478_v22 = vld [vmem:[%s3005_s7 + $0x18] sm:$0xff] (!%p443_p9)  ;;  %v475_v25 = vld [vmem:[%s3005_s7] sm:$0xff] (!%p443_p9)  ;;  %s3277_s12 = scalar_lea.vmem (!%p443_p9), [#allocation3], %s2586_s17 }
  0x67   : > { %v512_v21 = vld [vmem:[%s3005_s7 + $0x128] sm:$0xff] (!%p443_p9)  ;;  %v514_v24 = vld [vmem:[%s3005_s7 + $0x138] sm:$0xff] (!%p443_p9)  ;;  %v511_v26 = vld [vmem:[%s3005_s7 + $0x120] sm:$0xff] (!%p443_p9) }
  0x68   : > { %v2440_v23 = vpack.c.bf16 (!%p443_p9), %v512_v21, %v476_v20  ;;  %v2448_v27 = vpack.c.bf16 (!%p443_p9), %v514_v24, %v478_v22  ;;  %v2442_v28 = vpack.c.bf16 (!%p443_p9), %v511_v26, %v475_v25  ;;  %v477_v29 = vld [vmem:[%s3005_s7 + $0x10] sm:$0xff] (!%p443_p9)  ;;  %v548_v31 = vld [vmem:[%s3005_s7 + $0x248] sm:$0xff] (!%p443_p9)  ;;  %v550_v34 = vld [vmem:[%s3005_s7 + $0x258] sm:$0xff] (!%p443_p9)  ;;  %628 = vperm.xlu0 (!%p443_p9), %2613, %v620_v19  }
  0x69   : > { %v513_v30 = vld [vmem:[%s3005_s7 + $0x130] sm:$0xff]  ;;  %v584_v33 = vld [vmem:[%s3005_s7 + $0x368] sm:$0xff]  ;;  %v586_v35 = vld [vmem:[%s3005_s7 + $0x378] sm:$0xff]  ;;  %s2439_s18 = smul.u32 (%p2690_p5), 288, %s2393_s15 }
  0x6a   : > { %2441 = vmatprep.subr.bf16.mxu0 %v2440_v23  ;;  %v2450_v32 = vpack.c.bf16 %v513_v30, %v477_v29  ;;  %2449 = vmatprep.subr.bf16.mxu1 %v2448_v27  ;;  %v2444_v36 = vpack.c.bf16 %v584_v33, %v548_v31  ;;  %v2452_v37 = vpack.c.bf16 %v586_v35, %v550_v34  ;;  %v547_v38 = vld [vmem:[%s3005_s7 + $0x240] sm:$0xff]  ;;  %v549_v40 = vld [vmem:[%s3005_s7 + $0x250] sm:$0xff]  ;;  %v480_v43 = vld [vmem:[%s3005_s7 + $0x28] sm:$0xff] }
  0x6b   : > { %2443 = vmatpush1.bf16.msra.mxu0 %v2442_v28  ;;  %v583_v39 = vld [vmem:[%s3005_s7 + $0x360] sm:$0xff]  ;;  %v585_v42 = vld [vmem:[%s3005_s7 + $0x370] sm:$0xff]  ;;  %v516_v44 = vld [vmem:[%s3005_s7 + $0x148] sm:$0xff]  ;;  %s3432_s21 = scalar_lea.vmem (%p2690_p5), %s3585_s3, %s2439_s18 }
  0x6c   : > { %2451 = vmatpush1.bf16.msra.mxu1 %v2450_v32  ;;  %v2446_v41 = vpack.c.bf16 %v583_v39, %v547_v38  ;;  %2445 = vmatprep.subr.bf16.mxu0 %v2444_v36  ;;  %v2454_v45 = vpack.c.bf16 %v585_v42, %v549_v40  ;;  %v2456_v47 = vpack.c.bf16 %v516_v44, %v480_v43  ;;  %v482_v48 = vld [vmem:[%s3005_s7 + $0x38] sm:$0xff]  ;;  %v479_v50 = vld [vmem:[%s3005_s7 + $0x20] sm:$0xff]  ;;  %v481_v53 = vld [vmem:[%s3005_s7 + $0x30] sm:$0xff] }
  0x6d   : > { %2453 = vmatprep.subr.bf16.mxu1 %v2452_v37  ;;  %v518_v49 = vld [vmem:[%s3005_s7 + $0x158] sm:$0xff]  ;;  %v515_v52 = vld [vmem:[%s3005_s7 + $0x140] sm:$0xff]  ;;  %v517_v54 = vld [vmem:[%s3005_s7 + $0x150] sm:$0xff] }
  0x6e   : > { %v2464_v51 = vpack.c.bf16 %v518_v49, %v482_v48  ;;  %v2458_v55 = vpack.c.bf16 %v515_v52, %v479_v50  ;;  %v552_v56 = vld [vmem:[%s3005_s7 + $0x268] sm:$0xff]  ;;  %v554_v58 = vld [vmem:[%s3005_s7 + $0x278] sm:$0xff]  ;;  %v2466_v59 = vpack.c.bf16 %v517_v54, %v481_v53  ;;  %v551_v61 = vld [vmem:[%s3005_s7 + $0x260] sm:$0xff] }
  0x6f   : > { %2447 = vmatpush1.bf16.msra.mxu0 %v2446_v41  ;;  %v588_v57 = vld [vmem:[%s3005_s7 + $0x388] sm:$0xff]  ;;  %v590_v60 = vld [vmem:[%s3005_s7 + $0x398] sm:$0xff]  ;;  %v587_v62 = vld [vmem:[%s3005_s7 + $0x380] sm:$0xff] }
  0x70   : > { %2455 = vmatpush1.bf16.msra.mxu1 %v2454_v45  ;;  %2457 = vmatprep.subr.bf16.mxu0 %v2456_v47  ;;  %v2460_v63 = vpack.c.bf16 %v588_v57, %v552_v56  ;;  %v553_v0 = vld [vmem:[%s3005_s7 + $0x270] sm:$0xff]  ;;  %v2468_v2 = vpack.c.bf16 %v590_v60, %v554_v58  ;;  %v484_v3 = vld [vmem:[%s3005_s7 + $0x48] sm:$0xff]  ;;  %v2462_v6 = vpack.c.bf16 %v587_v62, %v551_v61  ;;  %v486_v7 = vld [vmem:[%s3005_s7 + $0x58] sm:$0xff] }
  0x71   : > { %2465 = vmatprep.subr.bf16.mxu1 %v2464_v51  ;;  %v589_v1 = vld [vmem:[%s3005_s7 + $0x390] sm:$0xff]  ;;  %v520_v4 = vld [vmem:[%s3005_s7 + $0x168] sm:$0xff]  ;;  %v522_v8 = vld [vmem:[%s3005_s7 + $0x178] sm:$0xff] }
  0x72   : > { %2399 = vmatmul.mubr.msk.f32.vlgmr.msra.gmra.mrb[0].mxu0 %vm631_vm0, %v3028_v46  ;;  %v2470_v9 = vpack.c.bf16 %v589_v1, %v553_v0  ;;  %v483_v10 = vld [vmem:[%s3005_s7 + $0x40] sm:$0xff]  ;;  %v2472_v12 = vpack.c.bf16 %v520_v4, %v484_v3  ;;  %v485_v13 = vld [vmem:[%s3005_s7 + $0x50] sm:$0xff]  ;;  %v2480_v15 = vpack.c.bf16 %v522_v8, %v486_v7  ;;  %v556_v17 = vld [vmem:[%s3005_s7 + $0x288] sm:$0xff] }
  0x73   : > { %2401 = vmatmul.mubr.msk.f32.vlgmr.msra.gmra.mrb[0].mxu1 %vm631_vm0, %v3028_v46  ;;  %2459 = vmatpush1.bf16.msra.mxu0 %v2458_v55  ;;  %v519_v11 = vld [vmem:[%s3005_s7 + $0x160] sm:$0xff]  ;;  %v521_v14 = vld [vmem:[%s3005_s7 + $0x170] sm:$0xff]  ;;  %v592_v18 = vld [vmem:[%s3005_s7 + $0x3a8] sm:$0xff] }
  0x74   : > { %2467 = vmatpush1.bf16.msra.mxu1 %v2466_v59  ;;  %708 = vmatprep.mubr.f32.mxu0 %v2638_v16  ;;  %v2474_v19 = vpack.c.bf16 %v519_v11, %v483_v10  ;;  %v558_v20 = vld [vmem:[%s3005_s7 + $0x298] sm:$0xff]  ;;  %v2482_v22 = vpack.c.bf16 %v521_v14, %v485_v13  ;;  %v555_v23 = vld [vmem:[%s3005_s7 + $0x280] sm:$0xff]  ;;  %v2476_v25 = vpack.c.bf16 %v592_v18, %v556_v17  ;;  %v557_v26 = vld [vmem:[%s3005_s7 + $0x290] sm:$0xff] }
  0x75   : > { %785 = vmatprep.mubr.f32.mxu1 %v2638_v16  ;;  %2461 = vmatprep.subr.bf16.mxu0 %v2460_v63  ;;  %v594_v21 = vld [vmem:[%s3005_s7 + $0x3b8] sm:$0xff]  ;;  %v591_v24 = vld [vmem:[%s3005_s7 + $0x3a0] sm:$0xff]  ;;  %v593_v27 = vld [vmem:[%s3005_s7 + $0x3b0] sm:$0xff] }
  0x76   : > { %2400 = vmatmul.mubr.msk.f32.gmra.mrb[2].mxu0 %vm631_vm0, %v3053_v5  ;;  %2469 = vmatprep.subr.bf16.mxu1 %v2468_v2  ;;  %v2484_v28 = vpack.c.bf16 %v594_v21, %v558_v20  ;;  %v488_v29 = vld [vmem:[%s3005_s7 + $0x68] sm:$0xff]  ;;  %v2478_v31 = vpack.c.bf16 %v591_v24, %v555_v23  ;;  %v490_v32 = vld [vmem:[%s3005_s7 + $0x78] sm:$0xff]  ;;  %v2486_v34 = vpack.c.bf16 %v593_v27, %v557_v26  ;;  %v487_v35 = vld [vmem:[%s3005_s7 + $0x60] sm:$0xff] }
  0x77   : > { %2402 = vmatmul.mubr.msk.f32.gmra.mrb[2].mxu1 %vm631_vm0, %v3053_v5  ;;  %2463 = vmatpush1.bf16.msra.mxu0 %v2462_v6  ;;  %v524_v30 = vld [vmem:[%s3005_s7 + $0x188] sm:$0xff]  ;;  %v526_v33 = vld [vmem:[%s3005_s7 + $0x198] sm:$0xff]  ;;  %v523_v36 = vld [vmem:[%s3005_s7 + $0x180] sm:$0xff] }
  0x78   : > { %2471 = vmatpush1.bf16.msra.mxu1 %v2470_v9  ;;  %856 = vmatprep.mubr.f32.mxu0 %v2638_v16  ;;  %v2488_v37 = vpack.c.bf16 %v524_v30, %v488_v29  ;;  %v489_v38 = vld [vmem:[%s3005_s7 + $0x70] sm:$0xff]  ;;  %v2496_v40 = vpack.c.bf16 %v526_v33, %v490_v32  ;;  %v560_v41 = vld [vmem:[%s3005_s7 + $0x2a8] sm:$0xff]  ;;  %v2490_v43 = vpack.c.bf16 %v523_v36, %v487_v35  ;;  %v562_v44 = vld [vmem:[%s3005_s7 + $0x2b8] sm:$0xff] }
  0x79   : > { %933 = vmatprep.mubr.f32.mxu1 %v2638_v16  ;;  %2473 = vmatprep.subr.bf16.mxu0 %v2472_v12  ;;  %v525_v39 = vld [vmem:[%s3005_s7 + $0x190] sm:$0xff]  ;;  %v596_v42 = vld [vmem:[%s3005_s7 + $0x3c8] sm:$0xff]  ;;  %v598_v45 = vld [vmem:[%s3005_s7 + $0x3d8] sm:$0xff] }
  0x7a   : > { %2403 = vmatmul.mubr.msk.f32.vlgmr.msra.gmra.mrb[4].mxu0 %vm631_vm0, %v3028_v46  ;;  %2481 = vmatprep.subr.bf16.mxu1 %v2480_v15  ;;  %v2498_v47 = vpack.c.bf16 %v525_v39, %v489_v38  ;;  %v559_v48 = vld [vmem:[%s3005_s7 + $0x2a0] sm:$0xff]  ;;  %v2492_v50 = vpack.c.bf16 %v596_v42, %v560_v41  ;;  %v561_v51 = vld [vmem:[%s3005_s7 + $0x2b0] sm:$0xff]  ;;  %v2500_v53 = vpack.c.bf16 %v598_v45, %v562_v44  ;;  %v492_v54 = vld [vmem:[%s3005_s7 + $0x88] sm:$0xff] }
  0x7b   : > { %2405 = vmatmul.mubr.msk.f32.vlgmr.msra.gmra.mrb[4].mxu1 %vm631_vm0, %v3028_v46  ;;  %2475 = vmatpush1.bf16.msra.mxu0 %v2474_v19  ;;  %v595_v49 = vld [vmem:[%s3005_s7 + $0x3c0] sm:$0xff]  ;;  %v597_v52 = vld [vmem:[%s3005_s7 + $0x3d0] sm:$0xff]  ;;  %v528_v55 = vld [vmem:[%s3005_s7 + $0x1a8] sm:$0xff] }
  0x7c   : > { %2483 = vmatpush1.bf16.msra.mxu1 %v2482_v22  ;;  %862 = vmatprep.mubr.f32.mxu0 %v2638_v16  ;;  %v2494_v56 = vpack.c.bf16 %v595_v49, %v559_v48  ;;  %v494_v57 = vld [vmem:[%s3005_s7 + $0x98] sm:$0xff]  ;;  %v2502_v59 = vpack.c.bf16 %v597_v52, %v561_v51  ;;  %v491_v60 = vld [vmem:[%s3005_s7 + $0x80] sm:$0xff]  ;;  %v2504_v62 = vpack.c.bf16 %v528_v55, %v492_v54  ;;  %v493_v63 = vld [vmem:[%s3005_s7 + $0x90] sm:$0xff] }
  0x7d   : > { %939 = vmatprep.mubr.f32.mxu1 %v2638_v16  ;;  %2477 = vmatprep.subr.bf16.mxu0 %v2476_v25  ;;  %v530_v58 = vld [vmem:[%s3005_s7 + $0x1b8] sm:$0xff]  ;;  %v527_v61 = vld [vmem:[%s3005_s7 + $0x1a0] sm:$0xff]  ;;  %v529_v0 = vld [vmem:[%s3005_s7 + $0x1b0] sm:$0xff] }
  0x7e   : > { %2404 = vmatmul.mubr.msk.f32.gmra.mrb[6].mxu0 %vm631_vm0, %v3053_v5  ;;  %2485 = vmatprep.subr.bf16.mxu1 %v2484_v28  ;;  %v2512_v1 = vpack.c.bf16 %v530_v58, %v494_v57  ;;  %v564_v2 = vld [vmem:[%s3005_s7 + $0x2c8] sm:$0xff]  ;;  %v2506_v4 = vpack.c.bf16 %v527_v61, %v491_v60  ;;  %v566_v6 = vld [vmem:[%s3005_s7 + $0x2d8] sm:$0xff]  ;;  %v2514_v8 = vpack.c.bf16 %v529_v0, %v493_v63  ;;  %v563_v9 = vld [vmem:[%s3005_s7 + $0x2c0] sm:$0xff] }
  0x7f   : > { %2406 = vmatmul.mubr.msk.f32.gmra.mrb[6].mxu1 %vm631_vm0, %v3053_v5  ;;  %2479 = vmatpush1.bf16.msra.mxu0 %v2478_v31  ;;  %v600_v3 = vld [vmem:[%s3005_s7 + $0x3e8] sm:$0xff]  ;;  %v602_v7 = vld [vmem:[%s3005_s7 + $0x3f8] sm:$0xff]  ;;  %v599_v10 = vld [vmem:[%s3005_s7 + $0x3e0] sm:$0xff] }
  0x80   : > { %2487 = vmatpush1.bf16.msra.mxu1 %v2486_v34  ;;  %1010 = vmatprep.mubr.f32.mxu0 %v2638_v16  ;;  %v2508_v11 = vpack.c.bf16 %v600_v3, %v564_v2  ;;  %v565_v12 = vld [vmem:[%s3005_s7 + $0x2d0] sm:$0xff]  ;;  %v2516_v14 = vpack.c.bf16 %v602_v7, %v566_v6  ;;  %v496_v15 = vld [vmem:[%s3005_s7 + $0xa8] sm:$0xff]  ;;  %v2510_v18 = vpack.c.bf16 %v599_v10, %v563_v9  ;;  %v498_v19 = vld [vmem:[%s3005_s7 + $0xb8] sm:$0xff] }
  0x81   : > { %1087 = vmatprep.mubr.f32.mxu1 %v2638_v16  ;;  %2489 = vmatprep.subr.bf16.mxu0 %v2488_v37  ;;  %v601_v13 = vld [vmem:[%s3005_s7 + $0x3f0] sm:$0xff]  ;;  %v532_v17 = vld [vmem:[%s3005_s7 + $0x1c8] sm:$0xff]  ;;  %v534_v20 = vld [vmem:[%s3005_s7 + $0x1d8] sm:$0xff] }
  0x82   : > { %2407 = vmatmul.mubr.msk.f32.vlgmr.msra.gmra.mrb[8].mxu0 %vm631_vm0, %v3028_v46  ;;  %2497 = vmatprep.subr.bf16.mxu1 %v2496_v40  ;;  %v2518_v21 = vpack.c.bf16 %v601_v13, %v565_v12  ;;  %v495_v22 = vld [vmem:[%s3005_s7 + $0xa0] sm:$0xff]  ;;  %v2520_v24 = vpack.c.bf16 %v532_v17, %v496_v15  ;;  %v497_v25 = vld [vmem:[%s3005_s7 + $0xb0] sm:$0xff]  ;;  %v2528_v27 = vpack.c.bf16 %v534_v20, %v498_v19  ;;  %v568_v28 = vld [vmem:[%s3005_s7 + $0x2e8] sm:$0xff] }
  0x83   : > { %2409 = vmatmul.mubr.msk.f32.vlgmr.msra.gmra.mrb[8].mxu1 %vm631_vm0, %v3028_v46  ;;  %2491 = vmatpush1.bf16.msra.mxu0 %v2490_v43  ;;  %v531_v23 = vld [vmem:[%s3005_s7 + $0x1c0] sm:$0xff]  ;;  %v533_v26 = vld [vmem:[%s3005_s7 + $0x1d0] sm:$0xff]  ;;  %v604_v29 = vld [vmem:[%s3005_s7 + $0x408] sm:$0xff] }
  0x84   : > { %2499 = vmatpush1.bf16.msra.mxu1 %v2498_v47  ;;  %1016 = vmatprep.mubr.f32.mxu0 %v2638_v16  ;;  %v2522_v30 = vpack.c.bf16 %v531_v23, %v495_v22  ;;  %v570_v31 = vld [vmem:[%s3005_s7 + $0x2f8] sm:$0xff]  ;;  %v2530_v33 = vpack.c.bf16 %v533_v26, %v497_v25  ;;  %v567_v34 = vld [vmem:[%s3005_s7 + $0x2e0] sm:$0xff]  ;;  %v2524_v36 = vpack.c.bf16 %v604_v29, %v568_v28  ;;  %v569_v37 = vld [vmem:[%s3005_s7 + $0x2f0] sm:$0xff] }
  0x85   : > { %1093 = vmatprep.mubr.f32.mxu1 %v2638_v16  ;;  %2493 = vmatprep.subr.bf16.mxu0 %v2492_v50  ;;  %v606_v32 = vld [vmem:[%s3005_s7 + $0x418] sm:$0xff]  ;;  %v603_v35 = vld [vmem:[%s3005_s7 + $0x400] sm:$0xff]  ;;  %v605_v38 = vld [vmem:[%s3005_s7 + $0x410] sm:$0xff] }
  0x86   : > { %2408 = vmatmul.mubr.msk.f32.gmra.mrb[10].mxu0 %vm631_vm0, %v3053_v5  ;;  %2501 = vmatprep.subr.bf16.mxu1 %v2500_v53  ;;  %v2532_v39 = vpack.c.bf16 %v606_v32, %v570_v31  ;;  %v500_v40 = vld [vmem:[%s3005_s7 + $0xc8] sm:$0xff]  ;;  %v2526_v42 = vpack.c.bf16 %v603_v35, %v567_v34  ;;  %v502_v43 = vld [vmem:[%s3005_s7 + $0xd8] sm:$0xff]  ;;  %v2534_v45 = vpack.c.bf16 %v605_v38, %v569_v37  ;;  %v499_v47 = vld [vmem:[%s3005_s7 + $0xc0] sm:$0xff] }
  0x87   : > { %2410 = vmatmul.mubr.msk.f32.gmra.mrb[10].mxu1 %vm631_vm0, %v3053_v5  ;;  %2495 = vmatpush1.bf16.msra.mxu0 %v2494_v56  ;;  %v536_v41 = vld [vmem:[%s3005_s7 + $0x1e8] sm:$0xff]  ;;  %v538_v44 = vld [vmem:[%s3005_s7 + $0x1f8] sm:$0xff]  ;;  %v535_v48 = vld [vmem:[%s3005_s7 + $0x1e0] sm:$0xff] }
  0x88   : > { %2503 = vmatpush1.bf16.msra.mxu1 %v2502_v59  ;;  %1164 = vmatprep.mubr.f32.mxu0 %v2638_v16  ;;  %v2536_v49 = vpack.c.bf16 %v536_v41, %v500_v40  ;;  %v501_v50 = vld [vmem:[%s3005_s7 + $0xd0] sm:$0xff]  ;;  %v2544_v52 = vpack.c.bf16 %v538_v44, %v502_v43  ;;  %v572_v53 = vld [vmem:[%s3005_s7 + $0x308] sm:$0xff]  ;;  %v2538_v55 = vpack.c.bf16 %v535_v48, %v499_v47  ;;  %v574_v56 = vld [vmem:[%s3005_s7 + $0x318] sm:$0xff] }
  0x89   : > { %1241 = vmatprep.mubr.f32.mxu1 %v2638_v16  ;;  %2505 = vmatprep.subr.bf16.mxu0 %v2504_v62  ;;  %v537_v51 = vld [vmem:[%s3005_s7 + $0x1f0] sm:$0xff]  ;;  %v608_v54 = vld [vmem:[%s3005_s7 + $0x428] sm:$0xff]  ;;  %v610_v57 = vld [vmem:[%s3005_s7 + $0x438] sm:$0xff] }
  0x8a   : > { %2411 = vmatmul.mubr.msk.f32.vlgmr.msra.gmra.mrb[12].mxu0 %vm631_vm0, %v3028_v46  ;;  %2513 = vmatprep.subr.bf16.mxu1 %v2512_v1  ;;  %v2546_v58 = vpack.c.bf16 %v537_v51, %v501_v50  ;;  %v571_v59 = vld [vmem:[%s3005_s7 + $0x300] sm:$0xff]  ;;  %v2540_v61 = vpack.c.bf16 %v608_v54, %v572_v53  ;;  %v573_v62 = vld [vmem:[%s3005_s7 + $0x310] sm:$0xff]  ;;  %v2548_v0 = vpack.c.bf16 %v610_v57, %v574_v56  ;;  %v504_v1 = vld [vmem:[%s3005_s7 + $0xe8] sm:$0xff] }
  0x8b   : > { %2413 = vmatmul.mubr.msk.f32.vlgmr.msra.gmra.mrb[12].mxu1 %vm631_vm0, %v3028_v46  ;;  %2507 = vmatpush1.bf16.msra.mxu0 %v2506_v4  ;;  %v607_v60 = vld [vmem:[%s3005_s7 + $0x420] sm:$0xff]  ;;  %v609_v63 = vld [vmem:[%s3005_s7 + $0x430] sm:$0xff]  ;;  %v540_v2 = vld [vmem:[%s3005_s7 + $0x208] sm:$0xff] }
  0x8c   : > { %2515 = vmatpush1.bf16.msra.mxu1 %v2514_v8  ;;  %1170 = vmatprep.mubr.f32.mxu0 %v2638_v16  ;;  %v2542_v3 = vpack.c.bf16 %v607_v60, %v571_v59  ;;  %v506_v4 = vld [vmem:[%s3005_s7 + $0xf8] sm:$0xff]  ;;  %v2550_v7 = vpack.c.bf16 %v609_v63, %v573_v62  ;;  %v503_v8 = vld [vmem:[%s3005_s7 + $0xe0] sm:$0xff]  ;;  %v2552_v10 = vpack.c.bf16 %v540_v2, %v504_v1  ;;  %v541_v12 = vld [vmem:[%s3005_s7 + $0x210] sm:$0xff] }
  0x8d   : > { %1247 = vmatprep.mubr.f32.mxu1 %v2638_v16  ;;  %2509 = vmatprep.subr.bf16.mxu0 %v2508_v11  ;;  %v542_v6 = vld [vmem:[%s3005_s7 + $0x218] sm:$0xff]  ;;  %v539_v9 = vld [vmem:[%s3005_s7 + $0x200] sm:$0xff]  ;;  %v505_v11 = vld [vmem:[%s3005_s7 + $0xf0] sm:$0xff] }
  0x8e   : > { %2412 = vmatmul.mubr.msk.f32.gmra.mrb[14].mxu0 %vm631_vm0, %v3053_v5  ;;  %2517 = vmatprep.subr.bf16.mxu1 %v2516_v14  ;;  %v2560_v13 = vpack.c.bf16 %v542_v6, %v506_v4  ;;  %v576_v14 = vld [vmem:[%s3005_s7 + $0x328] sm:$0xff]  ;;  %v2554_v17 = vpack.c.bf16 %v539_v9, %v503_v8  ;;  %v614_v19 = vld [vmem:[%s3005_s7 + $0x458] sm:$0xff]  ;;  %v2562_v20 = vpack.c.bf16 %v541_v12, %v505_v11  ;;  %v611_v22 = vld [vmem:[%s3005_s7 + $0x440] sm:$0xff] }
  0x8f   : > { %2414 = vmatmul.mubr.msk.f32.gmra.mrb[14].mxu1 %vm631_vm0, %v3053_v5  ;;  %2511 = vmatpush1.bf16.msra.mxu0 %v2510_v18  ;;  %v612_v15 = vld [vmem:[%s3005_s7 + $0x448] sm:$0xff]  ;;  %v578_v18 = vld [vmem:[%s3005_s7 + $0x338] sm:$0xff]  ;;  %v613_v25 = vld [vmem:[%s3005_s7 + $0x450] sm:$0xff] }
  0x90   : > { %2519 = vmatpush1.bf16.msra.mxu1 %v2518_v21  ;;  %1318 = vmatprep.mubr.f32.mxu0 %v2638_v16  ;;  %v575_v21 = vld [vmem:[%s3005_s7 + $0x320] sm:$0xff]  ;;  %v2556_v23 = vpack.c.bf16 %v612_v15, %v576_v14  ;;  %v2564_v26 = vpack.c.bf16 %v614_v19, %v578_v18  ;;  %v544_v28 = vld [vmem:[%s3005_s7 + $0x228] sm:$0xff]  ;;  %v546_v31 = vld [vmem:[%s3005_s7 + $0x238] sm:$0xff] }
  0x91   : > { %1395 = vmatprep.mubr.f32.mxu1 %v2638_v16  ;;  %2521 = vmatprep.subr.bf16.mxu0 %v2520_v24  ;;  %v577_v24 = vld [vmem:[%s3005_s7 + $0x330] sm:$0xff]  ;;  %v2558_v29 = vpack.c.bf16 %v611_v22, %v575_v21  ;;  %v543_v34 = vld [vmem:[%s3005_s7 + $0x220] sm:$0xff]  ;;  %v616_v40 = vld [vmem:[%s3005_s7 + $0x468] sm:$0xff] }
  0x92   : > { %2415 = vmatmul.mubr.msk.f32.vlgmr.msra.gmra.mrb[16].mxu0 %vm631_vm0, %v3028_v46  ;;  %2529 = vmatprep.subr.bf16.mxu1 %v2528_v27  ;;  %v508_v27 = vld [vmem:[%s3005_s7 + $0x108] sm:$0xff]  ;;  %v2566_v32 = vpack.c.bf16 %v613_v25, %v577_v24  ;;  %v545_v37 = vld [vmem:[%s3005_s7 + $0x230] sm:$0xff]  ;;  %v618_v43 = vld [vmem:[%s3005_s7 + $0x478] sm:$0xff] }
  0x93   : > { %2417 = vmatmul.mubr.msk.f32.vlgmr.msra.gmra.mrb[16].mxu1 %vm631_vm0, %v3028_v46  ;;  %2523 = vmatpush1.bf16.msra.mxu0 %v2522_v30  ;;  %v510_v30 = vld [vmem:[%s3005_s7 + $0x118] sm:$0xff]  ;;  %v2568_v35 = vpack.c.bf16 %v544_v28, %v508_v27  ;;  %v615_v47 = vld [vmem:[%s3005_s7 + $0x460] sm:$0xff]  ;;  %v617_v50 = vld [vmem:[%s3005_s7 + $0x470] sm:$0xff] }
  0x94   : > { %2531 = vmatpush1.bf16.msra.mxu1 %v2530_v33  ;;  %1324 = vmatprep.mubr.f32.mxu0 %v2638_v16  ;;  %v507_v33 = vld [vmem:[%s3005_s7 + $0x100] sm:$0xff]  ;;  %v2576_v38 = vpack.c.bf16 %v546_v31, %v510_v30 }
  0x95   : > { %1401 = vmatprep.mubr.f32.mxu1 %v2638_v16  ;;  %2525 = vmatprep.subr.bf16.mxu0 %v2524_v36  ;;  %v509_v36 = vld [vmem:[%s3005_s7 + $0x110] sm:$0xff]  ;;  %v2570_v41 = vpack.c.bf16 %v543_v34, %v507_v33 }
  0x96   : > { %2416 = vmatmul.mubr.msk.f32.gmra.mrb[18].mxu0 %vm631_vm0, %v3053_v5  ;;  %2533 = vmatprep.subr.bf16.mxu1 %v2532_v39  ;;  %v580_v39 = vld [vmem:[%s3005_s7 + $0x348] sm:$0xff]  ;;  %v2578_v44 = vpack.c.bf16 %v545_v37, %v509_v36 }
  0x97   : > { %2418 = vmatmul.mubr.msk.f32.gmra.mrb[18].mxu1 %vm631_vm0, %v3053_v5  ;;  %2527 = vmatpush1.bf16.msra.mxu0 %v2526_v42  ;;  %v582_v42 = vld [vmem:[%s3005_s7 + $0x358] sm:$0xff]  ;;  %v2572_v48 = vpack.c.bf16 %v616_v40, %v580_v39 }
  0x98   : > { %2535 = vmatpush1.bf16.msra.mxu1 %v2534_v45  ;;  %1472 = vmatprep.mubr.f32.mxu0 %v2638_v16  ;;  %v579_v45 = vld [vmem:[%s3005_s7 + $0x340] sm:$0xff]  ;;  %v2580_v51 = vpack.c.bf16 %v618_v43, %v582_v42 }
  0x99   : > { %1549 = vmatprep.mubr.f32.mxu1 %v2638_v16  ;;  %2537 = vmatprep.subr.bf16.mxu0 %v2536_v49  ;;  %v581_v49 = vld [vmem:[%s3005_s7 + $0x350] sm:$0xff] }
  0x9a   : > { %2419 = vmatmul.mubr.msk.f32.vlgmr.msra.gmra.mrb[20].mxu0 %vm631_vm0, %v3028_v46  ;;  %2545 = vmatprep.subr.bf16.mxu1 %v2544_v52  ;;  %v2574_v52 = vpack.c.bf16 %v615_v47, %v579_v45  ;;  %v2582_v53 = vpack.c.bf16 %v617_v50, %v581_v49 }
  0x9b   : > { %2421 = vmatmul.mubr.msk.f32.vlgmr.msra.gmra.mrb[20].mxu1 %vm631_vm0, %v3028_v46  ;;  %2539 = vmatpush1.bf16.msra.mxu0 %v2538_v55 }
  0x9c   : > { %2547 = vmatpush1.bf16.msra.mxu1 %v2546_v58  ;;  %1478 = vmatprep.mubr.f32.mxu0 %v2638_v16 }
  0x9d   : > { %1555 = vmatprep.mubr.f32.mxu1 %v2638_v16  ;;  %2541 = vmatprep.subr.bf16.mxu0 %v2540_v61 }
  0x9e   : > { %2420 = vmatmul.mubr.msk.f32.gmra.mrb[22].mxu0 %vm631_vm0, %v3053_v5  ;;  %2549 = vmatprep.subr.bf16.mxu1 %v2548_v0 }
  0x9f   : > { %2422 = vmatmul.mubr.msk.f32.gmra.mrb[22].mxu1 %vm631_vm0, %v3053_v5  ;;  %2543 = vmatpush1.bf16.msra.mxu0 %v2542_v3 }
  0xa0   : > { %2551 = vmatpush1.bf16.msra.mxu1 %v2550_v7  ;;  %1626 = vmatprep.mubr.f32.mxu0 %v2638_v16 }
  0xa1   : > { %1703 = vmatprep.mubr.f32.mxu1 %v2638_v16  ;;  %2553 = vmatprep.subr.bf16.mxu0 %v2552_v10 }
  0xa2   : > { %2423 = vmatmul.mubr.msk.f32.vlgmr.msra.gmra.mrb[24].mxu0 %vm631_vm0, %v3028_v46  ;;  %2561 = vmatprep.subr.bf16.mxu1 %v2560_v13 }
  0xa3   : > { %2425 = vmatmul.mubr.msk.f32.vlgmr.msra.gmra.mrb[24].mxu1 %vm631_vm0, %v3028_v46  ;;  %2555 = vmatpush1.bf16.msra.mxu0 %v2554_v17 }
  0xa4   : > { %2563 = vmatpush1.bf16.msra.mxu1 %v2562_v20  ;;  %1632 = vmatprep.mubr.f32.mxu0 %v2638_v16 }
  0xa5   : > { %1709 = vmatprep.mubr.f32.mxu1 %v2638_v16  ;;  %2557 = vmatprep.subr.bf16.mxu0 %v2556_v23 }
  0xa6   : > { %2424 = vmatmul.mubr.msk.f32.gmra.mrb[26].mxu0 %vm631_vm0, %v3053_v5  ;;  %2565 = vmatprep.subr.bf16.mxu1 %v2564_v26 }
  0xa7   : > { %2426 = vmatmul.mubr.msk.f32.gmra.mrb[26].mxu1 %vm631_vm0, %v3053_v5  ;;  %2559 = vmatpush1.bf16.msra.mxu0 %v2558_v29 }
  0xa8   : > { %2567 = vmatpush1.bf16.msra.mxu1 %v2566_v32  ;;  %1780 = vmatprep.mubr.f32.mxu0 %v2638_v16 }
  0xa9   : > { %1857 = vmatprep.mubr.f32.mxu1 %v2638_v16  ;;  %2569 = vmatprep.subr.bf16.mxu0 %v2568_v35 }
  0xaa   : > { %2427 = vmatmul.mubr.msk.f32.vlgmr.msra.gmra.mrb[28].mxu0 %vm631_vm0, %v3028_v46  ;;  %2577 = vmatprep.subr.bf16.mxu1 %v2576_v38 }
  0xab   : > { %2429 = vmatmul.mubr.msk.f32.vlgmr.msra.gmra.mrb[28].mxu1 %vm631_vm0, %v3028_v46  ;;  %2571 = vmatpush1.bf16.msra.mxu0 %v2570_v41 }
  0xac   : > { %2579 = vmatpush1.bf16.msra.mxu1 %v2578_v44  ;;  %1786 = vmatprep.mubr.f32.mxu0 %v2638_v16 }
  0xad   : > { %1863 = vmatprep.mubr.f32.mxu1 %v2638_v16  ;;  %2573 = vmatprep.subr.bf16.mxu0 %v2572_v48 }
  0xae   : > { %2428 = vmatmul.mubr.msk.f32.gmra.mrb[30].mxu0 %vm631_vm0, %v3053_v5  ;;  %2581 = vmatprep.subr.bf16.mxu1 %v2580_v51 }
  0xaf   : > { %2430 = vmatmul.mubr.msk.f32.gmra.mrb[30].mxu1 %vm631_vm0, %v3053_v5  ;;  %2575 = vmatpush1.bf16.msra.mxu0 %v2574_v52 }
  0xb0   : > { %2583 = vmatpush1.bf16.msra.mxu1 %v2582_v53  ;;  %1934 = vmatprep.mubr.f32.mxu0 %v2638_v16 }
  0xb1   : > { %2011 = vmatprep.mubr.f32.mxu1 %v2638_v16 }
  0xb2   : > { %2431 = vmatmul.mubr.msk.f32.vlgmr.msra.gmra.mrb[32].mxu0 %vm631_vm0, %v3028_v46 }
  0xb3   : > { %2433 = vmatmul.mubr.msk.f32.vlgmr.msra.gmra.mrb[32].mxu1 %vm631_vm0, %v3028_v46  ;;  %1940 = vmatprep.mubr.f32.mxu0 %v2638_v16 }
  0xb4   : > { %2017 = vmatprep.mubr.f32.mxu1 %v2638_v16 }
  0xb6   : > { %2432 = vmatmul.mubr.msk.f32.gmra.mrb[34].mxu0 %vm631_vm0, %v3053_v5 }
  0xb7   : > { %2434 = vmatmul.mubr.msk.f32.gmra.mrb[34].mxu1 %vm631_vm0, %v3053_v5 }
  0xe3   : > { %v3267_v54 = vpop.permute.xlu0 %623 }
  0xe7   : > { %v3274_v60 = vpop.permute.xlu0 %628 }
 0x145   : > { %v704_v55 = vpop.f32.mrb[0].mxu0 }
 0x146   : > { %v781_v56 = vpop.f32.mrb[0].mxu1  ;;  %v705_v57 = vadd.f32 %v704_v55, %v3267_v54  ;;  %v706_v58 = vpop.f32.mrb[1].mxu0 }
 0x147   : > { %v782_v46 = vadd.f32 %v781_v56, %v3267_v54  ;;  %v707_v59 = vadd.f32 %v706_v58, %v3267_v54  ;;  %v783_v16 = vpop.f32.mrb[1].mxu1 }
 0x148   : > { %v2024_v61 = vmax.f32 %v705_v57, 0.0  ;;  %v784_v62 = vadd.f32 %v783_v16, %v3267_v54 }
 0x149   : > { %v2026_v5 = vmax.f32 %v782_v46, 0.0  ;;  %v2025_v63 = vmax.f32 %v707_v59, 0.0  ;;  %v710_v0 = vpop.f32.mrb[2].mxu0 }
 0x14a   : > { %2096 = vst [vmem:[%s3277_s12] sm:$0xff] %v2024_v61  ;;  %v2027_v1 = vmax.f32 %v784_v62, 0.0  ;;  %v787_v2 = vpop.f32.mrb[2].mxu1  ;;  %v711_v3 = vadd.f32 %v710_v0, %v3274_v60  ;;  %v712_v4 = vpop.f32.mrb[3].mxu0 }
 0x14b   : > { %2098 = vst [vmem:[%s3277_s12 + $0x10] sm:$0xff] %v2026_v5  ;;  %2097 = vst [vmem:[%s3277_s12 + $0x8] sm:$0xff] %v2025_v63  ;;  %v788_v6 = vadd.f32 %v787_v2, %v3274_v60  ;;  %v713_v7 = vadd.f32 %v712_v4, %v3274_v60  ;;  %v789_v8 = vpop.f32.mrb[3].mxu1 }
 0x14c   : > { %2099 = vst [vmem:[%s3277_s12 + $0x18] sm:$0xff] %v2027_v1  ;;  %v2060_v9 = vmax.f32 %v711_v3, 0.0  ;;  %v790_v10 = vadd.f32 %v789_v8, %v3274_v60 }
 0x14d   : > { %v2062_v11 = vmax.f32 %v788_v6, 0.0  ;;  %v2061_v12 = vmax.f32 %v713_v7, 0.0  ;;  %v858_v13 = vpop.f32.mrb[4].mxu0 }
 0x14e   : > { %2132 = vst [vmem:[%s3277_s12 + $0x120] sm:$0xff] %v2060_v9  ;;  %v2063_v14 = vmax.f32 %v790_v10, 0.0  ;;  %v859_v15 = vadd.f32 %v858_v13, %v3267_v54  ;;  %v935_v17 = vpop.f32.mrb[4].mxu1  ;;  %v860_v18 = vpop.f32.mrb[5].mxu0 }
 0x14f   : > { %2134 = vst [vmem:[%s3277_s12 + $0x130] sm:$0xff] %v2062_v11  ;;  %2133 = vst [vmem:[%s3277_s12 + $0x128] sm:$0xff] %v2061_v12  ;;  %v936_v19 = vadd.f32 %v935_v17, %v3267_v54  ;;  %v861_v20 = vadd.f32 %v860_v18, %v3267_v54  ;;  %v937_v21 = vpop.f32.mrb[5].mxu1 }
 0x150   : > { %2135 = vst [vmem:[%s3277_s12 + $0x138] sm:$0xff] %v2063_v14  ;;  %v2028_v22 = vmax.f32 %v859_v15, 0.0  ;;  %v938_v23 = vadd.f32 %v937_v21, %v3267_v54 }
 0x151   : > { %v2030_v24 = vmax.f32 %v936_v19, 0.0  ;;  %v2029_v25 = vmax.f32 %v861_v20, 0.0  ;;  %v864_v26 = vpop.f32.mrb[6].mxu0 }
 0x152   : > { %2100 = vst [vmem:[%s3277_s12 + $0x20] sm:$0xff] %v2028_v22  ;;  %v2031_v27 = vmax.f32 %v938_v23, 0.0  ;;  %v865_v28 = vadd.f32 %v864_v26, %v3274_v60  ;;  %v941_v29 = vpop.f32.mrb[6].mxu1  ;;  %v866_v30 = vpop.f32.mrb[7].mxu0 }
 0x153   : > { %2102 = vst [vmem:[%s3277_s12 + $0x30] sm:$0xff] %v2030_v24  ;;  %2101 = vst [vmem:[%s3277_s12 + $0x28] sm:$0xff] %v2029_v25  ;;  %v942_v31 = vadd.f32 %v941_v29, %v3274_v60  ;;  %v867_v32 = vadd.f32 %v866_v30, %v3274_v60  ;;  %v943_v33 = vpop.f32.mrb[7].mxu1 }
 0x154   : > { %2103 = vst [vmem:[%s3277_s12 + $0x38] sm:$0xff] %v2031_v27  ;;  %v2064_v34 = vmax.f32 %v865_v28, 0.0  ;;  %v944_v35 = vadd.f32 %v943_v33, %v3274_v60 }
 0x155   : > { %v2066_v36 = vmax.f32 %v942_v31, 0.0  ;;  %v2065_v37 = vmax.f32 %v867_v32, 0.0  ;;  %v1012_v38 = vpop.f32.mrb[8].mxu0 }
 0x156   : > { %2136 = vst [vmem:[%s3277_s12 + $0x140] sm:$0xff] %v2064_v34  ;;  %v2067_v39 = vmax.f32 %v944_v35, 0.0  ;;  %v1013_v40 = vadd.f32 %v1012_v38, %v3267_v54  ;;  %v1089_v41 = vpop.f32.mrb[8].mxu1  ;;  %v1014_v42 = vpop.f32.mrb[9].mxu0 }
 0x157   : > { %2138 = vst [vmem:[%s3277_s12 + $0x150] sm:$0xff] %v2066_v36  ;;  %2137 = vst [vmem:[%s3277_s12 + $0x148] sm:$0xff] %v2065_v37  ;;  %v1090_v43 = vadd.f32 %v1089_v41, %v3267_v54  ;;  %v1015_v44 = vadd.f32 %v1014_v42, %v3267_v54  ;;  %v1091_v45 = vpop.f32.mrb[9].mxu1 }
 0x158   : > { %2139 = vst [vmem:[%s3277_s12 + $0x158] sm:$0xff] %v2067_v39  ;;  %v2032_v47 = vmax.f32 %v1013_v40, 0.0  ;;  %v1092_v48 = vadd.f32 %v1091_v45, %v3267_v54 }
 0x159   : > { %v2034_v49 = vmax.f32 %v1090_v43, 0.0  ;;  %v2033_v50 = vmax.f32 %v1015_v44, 0.0  ;;  %v1018_v51 = vpop.f32.mrb[10].mxu0 }
 0x15a   : > { %2104 = vst [vmem:[%s3277_s12 + $0x40] sm:$0xff] %v2032_v47  ;;  %v2035_v52 = vmax.f32 %v1092_v48, 0.0  ;;  %v1019_v53 = vadd.f32 %v1018_v51, %v3274_v60  ;;  %v1095_v55 = vpop.f32.mrb[10].mxu1  ;;  %v1020_v56 = vpop.f32.mrb[11].mxu0 }
 0x15b   : > { %2106 = vst [vmem:[%s3277_s12 + $0x50] sm:$0xff] %v2034_v49  ;;  %2105 = vst [vmem:[%s3277_s12 + $0x48] sm:$0xff] %v2033_v50  ;;  %v1096_v57 = vadd.f32 %v1095_v55, %v3274_v60  ;;  %v1021_v58 = vadd.f32 %v1020_v56, %v3274_v60  ;;  %v1097_v46 = vpop.f32.mrb[11].mxu1 }
 0x15c   : > { %2107 = vst [vmem:[%s3277_s12 + $0x58] sm:$0xff] %v2035_v52  ;;  %v2068_v59 = vmax.f32 %v1019_v53, 0.0  ;;  %v1098_v16 = vadd.f32 %v1097_v46, %v3274_v60 }
 0x15d   : > { %v2070_v61 = vmax.f32 %v1096_v57, 0.0  ;;  %v2069_v62 = vmax.f32 %v1021_v58, 0.0  ;;  %v1166_v5 = vpop.f32.mrb[12].mxu0 }
 0x15e   : > { %2140 = vst [vmem:[%s3277_s12 + $0x160] sm:$0xff] %v2068_v59  ;;  %v2071_v63 = vmax.f32 %v1098_v16, 0.0  ;;  %v1167_v0 = vadd.f32 %v1166_v5, %v3267_v54  ;;  %v1243_v1 = vpop.f32.mrb[12].mxu1  ;;  %v1168_v2 = vpop.f32.mrb[13].mxu0 }
 0x15f   : > { %2142 = vst [vmem:[%s3277_s12 + $0x170] sm:$0xff] %v2070_v61  ;;  %2141 = vst [vmem:[%s3277_s12 + $0x168] sm:$0xff] %v2069_v62  ;;  %v1244_v3 = vadd.f32 %v1243_v1, %v3267_v54  ;;  %v1169_v4 = vadd.f32 %v1168_v2, %v3267_v54  ;;  %v1245_v6 = vpop.f32.mrb[13].mxu1 }
 0x160   : > { %2143 = vst [vmem:[%s3277_s12 + $0x178] sm:$0xff] %v2071_v63  ;;  %v2036_v7 = vmax.f32 %v1167_v0, 0.0  ;;  %v1246_v8 = vadd.f32 %v1245_v6, %v3267_v54 }
 0x161   : > { %v2038_v9 = vmax.f32 %v1244_v3, 0.0  ;;  %v2037_v10 = vmax.f32 %v1169_v4, 0.0  ;;  %v1172_v11 = vpop.f32.mrb[14].mxu0 }
 0x162   : > { %2108 = vst [vmem:[%s3277_s12 + $0x60] sm:$0xff] %v2036_v7  ;;  %v2039_v12 = vmax.f32 %v1246_v8, 0.0  ;;  %v1173_v13 = vadd.f32 %v1172_v11, %v3274_v60  ;;  %v1249_v14 = vpop.f32.mrb[14].mxu1  ;;  %v1174_v15 = vpop.f32.mrb[15].mxu0 }
 0x163   : > { %2110 = vst [vmem:[%s3277_s12 + $0x70] sm:$0xff] %v2038_v9  ;;  %2109 = vst [vmem:[%s3277_s12 + $0x68] sm:$0xff] %v2037_v10  ;;  %v1250_v17 = vadd.f32 %v1249_v14, %v3274_v60  ;;  %v1175_v18 = vadd.f32 %v1174_v15, %v3274_v60  ;;  %v1251_v19 = vpop.f32.mrb[15].mxu1 }
 0x164   : > { %2111 = vst [vmem:[%s3277_s12 + $0x78] sm:$0xff] %v2039_v12  ;;  %v2072_v20 = vmax.f32 %v1173_v13, 0.0  ;;  %v1252_v21 = vadd.f32 %v1251_v19, %v3274_v60 }
 0x165   : > { %v2074_v22 = vmax.f32 %v1250_v17, 0.0  ;;  %v2073_v23 = vmax.f32 %v1175_v18, 0.0  ;;  %v1320_v24 = vpop.f32.mrb[16].mxu0 }
 0x166   : > { %2144 = vst [vmem:[%s3277_s12 + $0x180] sm:$0xff] %v2072_v20  ;;  %v2075_v25 = vmax.f32 %v1252_v21, 0.0  ;;  %v1321_v26 = vadd.f32 %v1320_v24, %v3267_v54  ;;  %v1397_v27 = vpop.f32.mrb[16].mxu1  ;;  %v1322_v28 = vpop.f32.mrb[17].mxu0 }
 0x167   : > { %2146 = vst [vmem:[%s3277_s12 + $0x190] sm:$0xff] %v2074_v22  ;;  %2145 = vst [vmem:[%s3277_s12 + $0x188] sm:$0xff] %v2073_v23  ;;  %v1398_v29 = vadd.f32 %v1397_v27, %v3267_v54  ;;  %v1323_v30 = vadd.f32 %v1322_v28, %v3267_v54  ;;  %v1399_v31 = vpop.f32.mrb[17].mxu1 }
 0x168   : > { %2147 = vst [vmem:[%s3277_s12 + $0x198] sm:$0xff] %v2075_v25  ;;  %v2040_v32 = vmax.f32 %v1321_v26, 0.0  ;;  %v1400_v33 = vadd.f32 %v1399_v31, %v3267_v54 }
 0x169   : > { %v2042_v34 = vmax.f32 %v1398_v29, 0.0  ;;  %v2041_v35 = vmax.f32 %v1323_v30, 0.0  ;;  %v1326_v36 = vpop.f32.mrb[18].mxu0 }
 0x16a   : > { %2112 = vst [vmem:[%s3277_s12 + $0x80] sm:$0xff] %v2040_v32  ;;  %v2043_v37 = vmax.f32 %v1400_v33, 0.0  ;;  %v1327_v38 = vadd.f32 %v1326_v36, %v3274_v60  ;;  %v1403_v39 = vpop.f32.mrb[18].mxu1  ;;  %v1328_v40 = vpop.f32.mrb[19].mxu0 }
 0x16b   : > { %2114 = vst [vmem:[%s3277_s12 + $0x90] sm:$0xff] %v2042_v34  ;;  %2113 = vst [vmem:[%s3277_s12 + $0x88] sm:$0xff] %v2041_v35  ;;  %v1404_v41 = vadd.f32 %v1403_v39, %v3274_v60  ;;  %v1329_v42 = vadd.f32 %v1328_v40, %v3274_v60  ;;  %v1405_v43 = vpop.f32.mrb[19].mxu1 }
 0x16c   : > { %2115 = vst [vmem:[%s3277_s12 + $0x98] sm:$0xff] %v2043_v37  ;;  %v2076_v44 = vmax.f32 %v1327_v38, 0.0  ;;  %v1406_v45 = vadd.f32 %v1405_v43, %v3274_v60 }
 0x16d   : > { %v2078_v47 = vmax.f32 %v1404_v41, 0.0  ;;  %v2077_v48 = vmax.f32 %v1329_v42, 0.0  ;;  %v1474_v49 = vpop.f32.mrb[20].mxu0 }
 0x16e   : > { %2148 = vst [vmem:[%s3277_s12 + $0x1a0] sm:$0xff] %v2076_v44  ;;  %v2079_v50 = vmax.f32 %v1406_v45, 0.0  ;;  %v1475_v51 = vadd.f32 %v1474_v49, %v3267_v54  ;;  %v1551_v52 = vpop.f32.mrb[20].mxu1  ;;  %v1476_v53 = vpop.f32.mrb[21].mxu0 }
 0x16f   : > { %2150 = vst [vmem:[%s3277_s12 + $0x1b0] sm:$0xff] %v2078_v47  ;;  %2149 = vst [vmem:[%s3277_s12 + $0x1a8] sm:$0xff] %v2077_v48  ;;  %v1552_v55 = vadd.f32 %v1551_v52, %v3267_v54  ;;  %v1477_v56 = vadd.f32 %v1476_v53, %v3267_v54  ;;  %v1553_v57 = vpop.f32.mrb[21].mxu1 }
 0x170   : > { %2151 = vst [vmem:[%s3277_s12 + $0x1b8] sm:$0xff] %v2079_v50  ;;  %v2044_v58 = vmax.f32 %v1475_v51, 0.0  ;;  %v1554_v46 = vadd.f32 %v1553_v57, %v3267_v54 }
 0x171   : > { %v2046_v59 = vmax.f32 %v1552_v55, 0.0  ;;  %v2045_v16 = vmax.f32 %v1477_v56, 0.0  ;;  %v1480_v61 = vpop.f32.mrb[22].mxu0 }
 0x172   : > { %2116 = vst [vmem:[%s3277_s12 + $0xa0] sm:$0xff] %v2044_v58  ;;  %v2047_v62 = vmax.f32 %v1554_v46, 0.0  ;;  %v1481_v5 = vadd.f32 %v1480_v61, %v3274_v60  ;;  %v1557_v63 = vpop.f32.mrb[22].mxu1  ;;  %v1482_v0 = vpop.f32.mrb[23].mxu0 }
 0x173   : > { %2118 = vst [vmem:[%s3277_s12 + $0xb0] sm:$0xff] %v2046_v59  ;;  %2117 = vst [vmem:[%s3277_s12 + $0xa8] sm:$0xff] %v2045_v16  ;;  %v1558_v1 = vadd.f32 %v1557_v63, %v3274_v60  ;;  %v1483_v2 = vadd.f32 %v1482_v0, %v3274_v60  ;;  %v1559_v3 = vpop.f32.mrb[23].mxu1 }
 0x174   : > { %2119 = vst [vmem:[%s3277_s12 + $0xb8] sm:$0xff] %v2047_v62  ;;  %v2080_v4 = vmax.f32 %v1481_v5, 0.0  ;;  %v1560_v6 = vadd.f32 %v1559_v3, %v3274_v60 }
 0x175   : > { %v2082_v7 = vmax.f32 %v1558_v1, 0.0  ;;  %v2081_v8 = vmax.f32 %v1483_v2, 0.0  ;;  %v1628_v9 = vpop.f32.mrb[24].mxu0 }
 0x176   : > { %2152 = vst [vmem:[%s3277_s12 + $0x1c0] sm:$0xff] %v2080_v4  ;;  %v2083_v10 = vmax.f32 %v1560_v6, 0.0  ;;  %v1629_v11 = vadd.f32 %v1628_v9, %v3267_v54  ;;  %v1705_v12 = vpop.f32.mrb[24].mxu1  ;;  %v1630_v13 = vpop.f32.mrb[25].mxu0 }
 0x177   : > { %2154 = vst [vmem:[%s3277_s12 + $0x1d0] sm:$0xff] %v2082_v7  ;;  %2153 = vst [vmem:[%s3277_s12 + $0x1c8] sm:$0xff] %v2081_v8  ;;  %v1706_v14 = vadd.f32 %v1705_v12, %v3267_v54  ;;  %v1631_v15 = vadd.f32 %v1630_v13, %v3267_v54  ;;  %v1707_v17 = vpop.f32.mrb[25].mxu1 }
 0x178   : > { %2155 = vst [vmem:[%s3277_s12 + $0x1d8] sm:$0xff] %v2083_v10  ;;  %v2048_v18 = vmax.f32 %v1629_v11, 0.0  ;;  %v1708_v19 = vadd.f32 %v1707_v17, %v3267_v54 }
 0x179   : > { %v2050_v20 = vmax.f32 %v1706_v14, 0.0  ;;  %v2049_v21 = vmax.f32 %v1631_v15, 0.0  ;;  %v1634_v22 = vpop.f32.mrb[26].mxu0 }
 0x17a   : > { %2120 = vst [vmem:[%s3277_s12 + $0xc0] sm:$0xff] %v2048_v18  ;;  %v2051_v23 = vmax.f32 %v1708_v19, 0.0  ;;  %v1635_v24 = vadd.f32 %v1634_v22, %v3274_v60  ;;  %v1711_v25 = vpop.f32.mrb[26].mxu1  ;;  %v1636_v26 = vpop.f32.mrb[27].mxu0  ;;  %v2196_v22 = vld [vmem:[%s3277_s12 + $0x18] sm:$0xff] (%p2690_p5) }
 0x17b   : > { %2122 = vst [vmem:[%s3277_s12 + $0xd0] sm:$0xff] %v2050_v20  ;;  %2121 = vst [vmem:[%s3277_s12 + $0xc8] sm:$0xff] %v2049_v21  ;;  %v1712_v27 = vadd.f32 %v1711_v25, %v3274_v60  ;;  %v1637_v28 = vadd.f32 %v1636_v26, %v3274_v60  ;;  %v1713_v29 = vpop.f32.mrb[27].mxu1  ;;  %v2192_v20 = vld [vmem:[%s3277_s12 + $0x8] sm:$0xff] (%p2690_p5)  ;;  %v2194_v21 = vld [vmem:[%s3277_s12 + $0x10] sm:$0xff] (%p2690_p5) }
 0x17c   : > { %2123 = vst [vmem:[%s3277_s12 + $0xd8] sm:$0xff] %v2051_v23  ;;  %v2084_v30 = vmax.f32 %v1635_v24, 0.0  ;;  %v1714_v31 = vadd.f32 %v1713_v29, %v3274_v60  ;;  %v2198_v23 = vld [vmem:[%s3277_s12 + $0x20] sm:$0xff] (%p2690_p5)  ;;  %v2200_v24 = vld [vmem:[%s3277_s12 + $0x28] sm:$0xff] (%p2690_p5)  ;;  %v2202_v25 = vld [vmem:[%s3277_s12 + $0x30] sm:$0xff] (%p2690_p5) }
 0x17d   : > { %v2086_v32 = vmax.f32 %v1712_v27, 0.0  ;;  %v2085_v33 = vmax.f32 %v1637_v28, 0.0  ;;  %v1782_v34 = vpop.f32.mrb[28].mxu0  ;;  %v2204_v26 = vld [vmem:[%s3277_s12 + $0x38] sm:$0xff] (%p2690_p5)  ;;  %v2206_v27 = vld [vmem:[%s3277_s12 + $0x40] sm:$0xff] (%p2690_p5)  ;;  %2193 = vst [vmem:[%s3432_s21 + $0x8] sm:$0xff] (%p2690_p5), %v2192_v20 }
 0x17e   : > { %2156 = vst [vmem:[%s3277_s12 + $0x1e0] sm:$0xff] %v2084_v30  ;;  %v2087_v35 = vmax.f32 %v1714_v31, 0.0  ;;  %v1783_v36 = vadd.f32 %v1782_v34, %v3267_v54  ;;  %v1859_v37 = vpop.f32.mrb[28].mxu1  ;;  %v1784_v38 = vpop.f32.mrb[29].mxu0  ;;  %2195 = vst [vmem:[%s3432_s21 + $0x10] sm:$0xff] (%p2690_p5), %v2194_v21  ;;  %v2208_v28 = vld [vmem:[%s3277_s12 + $0x48] sm:$0xff] (%p2690_p5) }
 0x17f   : > { %2158 = vst [vmem:[%s3277_s12 + $0x1f0] sm:$0xff] %v2086_v32  ;;  %2157 = vst [vmem:[%s3277_s12 + $0x1e8] sm:$0xff] %v2085_v33  ;;  %v1860_v39 = vadd.f32 %v1859_v37, %v3267_v54  ;;  %v1785_v40 = vadd.f32 %v1784_v38, %v3267_v54  ;;  %v1861_v41 = vpop.f32.mrb[29].mxu1  ;;  %v2210_v29 = vld [vmem:[%s3277_s12 + $0x50] sm:$0xff] (%p2690_p5)  ;;  %v2212_v30 = vld [vmem:[%s3277_s12 + $0x58] sm:$0xff] (%p2690_p5) }
 0x180   : > { %2159 = vst [vmem:[%s3277_s12 + $0x1f8] sm:$0xff] %v2087_v35  ;;  %v2052_v42 = vmax.f32 %v1783_v36, 0.0  ;;  %v1862_v43 = vadd.f32 %v1861_v41, %v3267_v54  ;;  %2197 = vst [vmem:[%s3432_s21 + $0x18] sm:$0xff] (%p2690_p5), %v2196_v22  ;;  %v2214_v31 = vld [vmem:[%s3277_s12 + $0x60] sm:$0xff] (%p2690_p5)  ;;  %v2216_v32 = vld [vmem:[%s3277_s12 + $0x68] sm:$0xff] (%p2690_p5) }
 0x181   : > { %v2054_v44 = vmax.f32 %v1860_v39, 0.0  ;;  %v2053_v45 = vmax.f32 %v1785_v40, 0.0  ;;  %v1788_v47 = vpop.f32.mrb[30].mxu0  ;;  %2199 = vst [vmem:[%s3432_s21 + $0x20] sm:$0xff] (%p2690_p5), %v2198_v23  ;;  %2201 = vst [vmem:[%s3432_s21 + $0x28] sm:$0xff] (%p2690_p5), %v2200_v24  ;;  %v2218_v33 = vld [vmem:[%s3277_s12 + $0x70] sm:$0xff] (%p2690_p5) }
 0x182   : > { %2124 = vst [vmem:[%s3277_s12 + $0xe0] sm:$0xff] %v2052_v42  ;;  %v2055_v48 = vmax.f32 %v1862_v43, 0.0  ;;  %v1789_v49 = vadd.f32 %v1788_v47, %v3274_v60  ;;  %v1865_v50 = vpop.f32.mrb[30].mxu1  ;;  %v1790_v51 = vpop.f32.mrb[31].mxu0  ;;  %2203 = vst [vmem:[%s3432_s21 + $0x30] sm:$0xff] (%p2690_p5), %v2202_v25  ;;  %v2220_v34 = vld [vmem:[%s3277_s12 + $0x78] sm:$0xff] (%p2690_p5) }
 0x183   : > { %2126 = vst [vmem:[%s3277_s12 + $0xf0] sm:$0xff] %v2054_v44  ;;  %2125 = vst [vmem:[%s3277_s12 + $0xe8] sm:$0xff] %v2053_v45  ;;  %v1866_v52 = vadd.f32 %v1865_v50, %v3274_v60  ;;  %v1791_v53 = vadd.f32 %v1790_v51, %v3274_v60  ;;  %v1867_v55 = vpop.f32.mrb[31].mxu1  ;;  %v2222_v35 = vld [vmem:[%s3277_s12 + $0x80] sm:$0xff] (%p2690_p5)  ;;  %v2224_v36 = vld [vmem:[%s3277_s12 + $0x88] sm:$0xff] (%p2690_p5) }
 0x184   : > { %2127 = vst [vmem:[%s3277_s12 + $0xf8] sm:$0xff] %v2055_v48  ;;  %v2088_v56 = vmax.f32 %v1789_v49, 0.0  ;;  %v1868_v57 = vadd.f32 %v1867_v55, %v3274_v60  ;;  %2205 = vst [vmem:[%s3432_s21 + $0x38] sm:$0xff] (%p2690_p5), %v2204_v26  ;;  %v2226_v37 = vld [vmem:[%s3277_s12 + $0x90] sm:$0xff] (%p2690_p5)  ;;  %v2228_v38 = vld [vmem:[%s3277_s12 + $0x98] sm:$0xff] (%p2690_p5) }
 0x185   : > { %v2090_v58 = vmax.f32 %v1866_v52, 0.0  ;;  %v2089_v46 = vmax.f32 %v1791_v53, 0.0  ;;  %v1936_v59 = vpop.f32.mrb[32].mxu0  ;;  %2207 = vst [vmem:[%s3432_s21 + $0x40] sm:$0xff] (%p2690_p5), %v2206_v27  ;;  %2209 = vst [vmem:[%s3432_s21 + $0x48] sm:$0xff] (%p2690_p5), %v2208_v28  ;;  %v2230_v39 = vld [vmem:[%s3277_s12 + $0xa0] sm:$0xff] (%p2690_p5) }
 0x186   : > { %2160 = vst [vmem:[%s3277_s12 + $0x200] sm:$0xff] %v2088_v56  ;;  %v2091_v16 = vmax.f32 %v1868_v57, 0.0  ;;  %v1937_v61 = vadd.f32 %v1936_v59, %v3267_v54  ;;  %v2013_v62 = vpop.f32.mrb[32].mxu1  ;;  %v1938_v5 = vpop.f32.mrb[33].mxu0  ;;  %2211 = vst [vmem:[%s3432_s21 + $0x50] sm:$0xff] (%p2690_p5), %v2210_v29  ;;  %v2232_v40 = vld [vmem:[%s3277_s12 + $0xa8] sm:$0xff] (%p2690_p5) }
 0x187   : > { %2162 = vst [vmem:[%s3277_s12 + $0x210] sm:$0xff] %v2090_v58  ;;  %2161 = vst [vmem:[%s3277_s12 + $0x208] sm:$0xff] %v2089_v46  ;;  %v2014_v63 = vadd.f32 %v2013_v62, %v3267_v54  ;;  %v1939_v0 = vadd.f32 %v1938_v5, %v3267_v54  ;;  %v2015_v1 = vpop.f32.mrb[33].mxu1  ;;  %v2234_v41 = vld [vmem:[%s3277_s12 + $0xb0] sm:$0xff] (%p2690_p5)  ;;  %v2236_v42 = vld [vmem:[%s3277_s12 + $0xb8] sm:$0xff] (%p2690_p5) }
 0x188   : > { %2163 = vst [vmem:[%s3277_s12 + $0x218] sm:$0xff] %v2091_v16  ;;  %v2056_v2 = vmax.f32 %v1937_v61, 0.0  ;;  %v2016_v3 = vadd.f32 %v2015_v1, %v3267_v54  ;;  %2213 = vst [vmem:[%s3432_s21 + $0x58] sm:$0xff] (%p2690_p5), %v2212_v30  ;;  %v2238_v43 = vld [vmem:[%s3277_s12 + $0xc0] sm:$0xff] (%p2690_p5)  ;;  %v2240_v44 = vld [vmem:[%s3277_s12 + $0xc8] sm:$0xff] (%p2690_p5) }
 0x189   : > { %v2058_v4 = vmax.f32 %v2014_v63, 0.0  ;;  %v2057_v6 = vmax.f32 %v1939_v0, 0.0  ;;  %v1942_v7 = vpop.f32.mrb[34].mxu0  ;;  %2215 = vst [vmem:[%s3432_s21 + $0x60] sm:$0xff] (%p2690_p5), %v2214_v31  ;;  %2217 = vst [vmem:[%s3432_s21 + $0x68] sm:$0xff] (%p2690_p5), %v2216_v32  ;;  %v2242_v45 = vld [vmem:[%s3277_s12 + $0xd0] sm:$0xff] (%p2690_p5) }
 0x18a   : > { %2128 = vst [vmem:[%s3277_s12 + $0x100] sm:$0xff] %v2056_v2  ;;  %v2059_v8 = vmax.f32 %v2016_v3, 0.0  ;;  %v1943_v9 = vadd.f32 %v1942_v7, %v3274_v60  ;;  %v2019_v10 = vpop.f32.mrb[34].mxu1  ;;  %v1944_v11 = vpop.f32.mrb[35].mxu0  ;;  %2174 = sbr.rel (!%p2690_p5) target bundleno = 428 (0x1ac), region = 59  ;;  %2219 = vst [vmem:[%s3432_s21 + $0x70] sm:$0xff] (%p2690_p5), %v2218_v33 }
 0x18b   : > { %2130 = vst [vmem:[%s3277_s12 + $0x110] sm:$0xff] %v2058_v4  ;;  %2129 = vst [vmem:[%s3277_s12 + $0x108] sm:$0xff] %v2057_v6  ;;  %v2020_v12 = vadd.f32 %v2019_v10, %v3274_v60  ;;  %v1945_v13 = vadd.f32 %v1944_v11, %v3274_v60  ;;  %v2021_v54 = vpop.f32.mrb[35].mxu1  ;;  %v2244_v47 = vld [vmem:[%s3277_s12 + $0xd8] sm:$0xff] (%p2690_p5)  ;;  %v2246_v48 = vld [vmem:[%s3277_s12 + $0xe0] sm:$0xff] (%p2690_p5) }
 0x18c   : > { %2131 = vst [vmem:[%s3277_s12 + $0x118] sm:$0xff] %v2059_v8  ;;  %v2092_v14 = vmax.f32 %v1943_v9, 0.0  ;;  %v2022_v15 = vadd.f32 %v2021_v54, %v3274_v60  ;;  %v2190_v60 = vld [vmem:[%s3277_s12] sm:$0xff] (%p2690_p5)  ;;  %2221 = vst [vmem:[%s3432_s21 + $0x78] sm:$0xff] (%p2690_p5), %v2220_v34  ;;  %v2248_v49 = vld [vmem:[%s3277_s12 + $0xe8] sm:$0xff] (%p2690_p5) }
 0x18d   : > { %v2094_v17 = vmax.f32 %v2020_v12, 0.0  ;;  %v2093_v18 = vmax.f32 %v1945_v13, 0.0  ;;  %2191 = vst [vmem:[%s3432_s21] sm:$0xff] (%p2690_p5), %v2190_v60  ;;  %2223 = vst [vmem:[%s3432_s21 + $0x80] sm:$0xff] (%p2690_p5), %v2222_v35  ;;  %v2250_v50 = vld [vmem:[%s3277_s12 + $0xf0] sm:$0xff] (%p2690_p5)  ;;  %v2252_v51 = vld [vmem:[%s3277_s12 + $0xf8] sm:$0xff] (%p2690_p5) }
 0x18e   : > { %2164 = vst [vmem:[%s3277_s12 + $0x220] sm:$0xff] %v2092_v14  ;;  %v2095_v19 = vmax.f32 %v2022_v15, 0.0  ;;  %2225 = vst [vmem:[%s3432_s21 + $0x88] sm:$0xff] (%p2690_p5), %v2224_v36  ;;  %v2262_v57 = vld [vmem:[%s3277_s12 + $0x120] sm:$0xff] (%p2690_p5)  ;;  %v2264_v58 = vld [vmem:[%s3277_s12 + $0x128] sm:$0xff] (%p2690_p5) }
 0x18f   : > { %2166 = vst [vmem:[%s3277_s12 + $0x230] sm:$0xff] %v2094_v17  ;;  %2165 = vst [vmem:[%s3277_s12 + $0x228] sm:$0xff] %v2093_v18  ;;  %v2266_v46 = vld [vmem:[%s3277_s12 + $0x130] sm:$0xff] (%p2690_p5)  ;;  %v2268_v59 = vld [vmem:[%s3277_s12 + $0x138] sm:$0xff] (%p2690_p5) }
 0x190   : > { %2167 = vst [vmem:[%s3277_s12 + $0x238] sm:$0xff] %v2095_v19  ;;  %2227 = vst [vmem:[%s3432_s21 + $0x90] sm:$0xff] (%p2690_p5), %v2226_v37  ;;  %v2270_v16 = vld [vmem:[%s3277_s12 + $0x140] sm:$0xff] (%p2690_p5)  ;;  %v2272_v61 = vld [vmem:[%s3277_s12 + $0x148] sm:$0xff] (%p2690_p5) }
 0x191   : > { %2229 = vst [vmem:[%s3432_s21 + $0x98] sm:$0xff] %v2228_v38  ;;  %2231 = vst [vmem:[%s3432_s21 + $0xa0] sm:$0xff] %v2230_v39  ;;  %v2254_v52 = vld [vmem:[%s3277_s12 + $0x100] sm:$0xff]  ;;  %v2274_v62 = vld [vmem:[%s3277_s12 + $0x150] sm:$0xff] }
 0x192   : > { %2233 = vst [vmem:[%s3432_s21 + $0xa8] sm:$0xff] %v2232_v40  ;;  %2235 = vst [vmem:[%s3432_s21 + $0xb0] sm:$0xff] %v2234_v41  ;;  %v2256_v53 = vld [vmem:[%s3277_s12 + $0x108] sm:$0xff]  ;;  %v2258_v55 = vld [vmem:[%s3277_s12 + $0x110] sm:$0xff] }
 0x193   : > { %2237 = vst [vmem:[%s3432_s21 + $0xb8] sm:$0xff] %v2236_v42  ;;  %2239 = vst [vmem:[%s3432_s21 + $0xc0] sm:$0xff] %v2238_v43  ;;  %v2260_v56 = vld [vmem:[%s3277_s12 + $0x118] sm:$0xff]  ;;  %v2278_v63 = vld [vmem:[%s3277_s12 + $0x160] sm:$0xff] }
 0x194   : > { %2241 = vst [vmem:[%s3432_s21 + $0xc8] sm:$0xff] %v2240_v44  ;;  %2243 = vst [vmem:[%s3432_s21 + $0xd0] sm:$0xff] %v2242_v45  ;;  %v2276_v5 = vld [vmem:[%s3277_s12 + $0x158] sm:$0xff]  ;;  %v2280_v0 = vld [vmem:[%s3277_s12 + $0x168] sm:$0xff] }
 0x195   : > { %2245 = vst [vmem:[%s3432_s21 + $0xd8] sm:$0xff] %v2244_v47  ;;  %2247 = vst [vmem:[%s3432_s21 + $0xe0] sm:$0xff] %v2246_v48  ;;  %v2282_v1 = vld [vmem:[%s3277_s12 + $0x170] sm:$0xff]  ;;  %v2284_v2 = vld [vmem:[%s3277_s12 + $0x178] sm:$0xff] }
 0x196   : > { %2249 = vst [vmem:[%s3432_s21 + $0xe8] sm:$0xff] %v2248_v49  ;;  %2251 = vst [vmem:[%s3432_s21 + $0xf0] sm:$0xff] %v2250_v50  ;;  %v2286_v3 = vld [vmem:[%s3277_s12 + $0x180] sm:$0xff]  ;;  %v2288_v4 = vld [vmem:[%s3277_s12 + $0x188] sm:$0xff] }
 0x197   : > { %2253 = vst [vmem:[%s3432_s21 + $0xf8] sm:$0xff] %v2252_v51  ;;  %2255 = vst [vmem:[%s3432_s21 + $0x100] sm:$0xff] %v2254_v52  ;;  %v2290_v6 = vld [vmem:[%s3277_s12 + $0x190] sm:$0xff]  ;;  %v2292_v7 = vld [vmem:[%s3277_s12 + $0x198] sm:$0xff] }
 0x198   : > { %2257 = vst [vmem:[%s3432_s21 + $0x108] sm:$0xff] %v2256_v53  ;;  %2259 = vst [vmem:[%s3432_s21 + $0x110] sm:$0xff] %v2258_v55  ;;  %v2294_v8 = vld [vmem:[%s3277_s12 + $0x1a0] sm:$0xff]  ;;  %v2296_v9 = vld [vmem:[%s3277_s12 + $0x1a8] sm:$0xff] }
 0x199   : > { %2261 = vst [vmem:[%s3432_s21 + $0x118] sm:$0xff] %v2260_v56  ;;  %2263 = vst [vmem:[%s3432_s21 + $0x480] sm:$0xff] %v2262_v57  ;;  %v2298_v10 = vld [vmem:[%s3277_s12 + $0x1b0] sm:$0xff]  ;;  %v2300_v11 = vld [vmem:[%s3277_s12 + $0x1b8] sm:$0xff] }
 0x19a   : > { %2265 = vst [vmem:[%s3432_s21 + $0x488] sm:$0xff] %v2264_v58  ;;  %2267 = vst [vmem:[%s3432_s21 + $0x490] sm:$0xff] %v2266_v46  ;;  %v2302_v12 = vld [vmem:[%s3277_s12 + $0x1c0] sm:$0xff]  ;;  %v2304_v13 = vld [vmem:[%s3277_s12 + $0x1c8] sm:$0xff] }
 0x19b   : > { %2269 = vst [vmem:[%s3432_s21 + $0x498] sm:$0xff] %v2268_v59  ;;  %2271 = vst [vmem:[%s3432_s21 + $0x4a0] sm:$0xff] %v2270_v16  ;;  %v2306_v54 = vld [vmem:[%s3277_s12 + $0x1d0] sm:$0xff]  ;;  %v2308_v14 = vld [vmem:[%s3277_s12 + $0x1d8] sm:$0xff] }
 0x19c   : > { %2273 = vst [vmem:[%s3432_s21 + $0x4a8] sm:$0xff] %v2272_v61  ;;  %2275 = vst [vmem:[%s3432_s21 + $0x4b0] sm:$0xff] %v2274_v62  ;;  %v2310_v15 = vld [vmem:[%s3277_s12 + $0x1e0] sm:$0xff]  ;;  %v2312_v17 = vld [vmem:[%s3277_s12 + $0x1e8] sm:$0xff] }
 0x19d   : > { %2277 = vst [vmem:[%s3432_s21 + $0x4b8] sm:$0xff] %v2276_v5  ;;  %2279 = vst [vmem:[%s3432_s21 + $0x4c0] sm:$0xff] %v2278_v63  ;;  %v2314_v18 = vld [vmem:[%s3277_s12 + $0x1f0] sm:$0xff]  ;;  %v2316_v19 = vld [vmem:[%s3277_s12 + $0x1f8] sm:$0xff] }
 0x19e   : > { %2281 = vst [vmem:[%s3432_s21 + $0x4c8] sm:$0xff] %v2280_v0  ;;  %2283 = vst [vmem:[%s3432_s21 + $0x4d0] sm:$0xff] %v2282_v1  ;;  %v2318_v60 = vld [vmem:[%s3277_s12 + $0x200] sm:$0xff]  ;;  %v2320_v20 = vld [vmem:[%s3277_s12 + $0x208] sm:$0xff] }
 0x19f   : > { %2285 = vst [vmem:[%s3432_s21 + $0x4d8] sm:$0xff] %v2284_v2  ;;  %2287 = vst [vmem:[%s3432_s21 + $0x4e0] sm:$0xff] %v2286_v3  ;;  %v2322_v21 = vld [vmem:[%s3277_s12 + $0x210] sm:$0xff]  ;;  %v2324_v22 = vld [vmem:[%s3277_s12 + $0x218] sm:$0xff] }
 0x1a0   : > { %2289 = vst [vmem:[%s3432_s21 + $0x4e8] sm:$0xff] %v2288_v4  ;;  %2291 = vst [vmem:[%s3432_s21 + $0x4f0] sm:$0xff] %v2290_v6  ;;  %v2326_v23 = vld [vmem:[%s3277_s12 + $0x220] sm:$0xff]  ;;  %v2328_v24 = vld [vmem:[%s3277_s12 + $0x228] sm:$0xff] }
 0x1a1   : > { %2293 = vst [vmem:[%s3432_s21 + $0x4f8] sm:$0xff] %v2292_v7  ;;  %2295 = vst [vmem:[%s3432_s21 + $0x500] sm:$0xff] %v2294_v8  ;;  %v2330_v25 = vld [vmem:[%s3277_s12 + $0x230] sm:$0xff]  ;;  %v2332_v26 = vld [vmem:[%s3277_s12 + $0x238] sm:$0xff] }
 0x1a2   : > { %2297 = vst [vmem:[%s3432_s21 + $0x508] sm:$0xff] %v2296_v9  ;;  %2299 = vst [vmem:[%s3432_s21 + $0x510] sm:$0xff] %v2298_v10 }
 0x1a3   : > { %2301 = vst [vmem:[%s3432_s21 + $0x518] sm:$0xff] %v2300_v11  ;;  %2303 = vst [vmem:[%s3432_s21 + $0x520] sm:$0xff] %v2302_v12 }
 0x1a4   : > { %2305 = vst [vmem:[%s3432_s21 + $0x528] sm:$0xff] %v2304_v13  ;;  %2307 = vst [vmem:[%s3432_s21 + $0x530] sm:$0xff] %v2306_v54 }
 0x1a5   : > { %2309 = vst [vmem:[%s3432_s21 + $0x538] sm:$0xff] %v2308_v14  ;;  %2311 = vst [vmem:[%s3432_s21 + $0x540] sm:$0xff] %v2310_v15 }
 0x1a6   : > { %2313 = vst [vmem:[%s3432_s21 + $0x548] sm:$0xff] %v2312_v17  ;;  %2315 = vst [vmem:[%s3432_s21 + $0x550] sm:$0xff] %v2314_v18 }
 0x1a7   : > { %2317 = vst [vmem:[%s3432_s21 + $0x558] sm:$0xff] %v2316_v19  ;;  %2319 = vst [vmem:[%s3432_s21 + $0x560] sm:$0xff] %v2318_v60 }
 0x1a8   : > { %2321 = vst [vmem:[%s3432_s21 + $0x568] sm:$0xff] %v2320_v20  ;;  %2323 = vst [vmem:[%s3432_s21 + $0x570] sm:$0xff] %v2322_v21 }
 0x1a9   : > { %2325 = vst [vmem:[%s3432_s21 + $0x578] sm:$0xff] %v2324_v22  ;;  %2327 = vst [vmem:[%s3432_s21 + $0x580] sm:$0xff] %v2326_v23 }
 0x1aa   : > { %2329 = vst [vmem:[%s3432_s21 + $0x588] sm:$0xff] %v2328_v24  ;;  %2331 = vst [vmem:[%s3432_s21 + $0x590] sm:$0xff] %v2330_v25 }
 0x1ab   : > { %2333 = vst [vmem:[%s3432_s21 + $0x598] sm:$0xff] %v2332_v26 }
 0x1ac PF: > { %p10_p10 = scmp.ge.s32.totalorder %s2677_s16, 6   ;;  %s3587_s12 = smov %s2632_s13 }
 0x1ad   : > { %s3588_s13 = smov %s2688_s19  ;;  %s3589_s14 = smov %s2677_s16 }
 0x1ae   :  { %12 = sbr.rel (!%p10_p10) target bundleno = 2 (0x2), region = 113 }

// kernel: mynet_forward.7
= control target key start
LH: loop header
LB: loop body
LE: loop exit
PB: predicated region body
PF: predicated region fallthrough
CT: control target
= control target key end

     0   :  { %s1702_s0 = inlined_call_operand.vmem [shape: f32[32,2304], index: 0, kind: input, shape index: {}]   ;;  %s1703_s1 = inlined_call_operand.vmem [shape: f32[32,2304], index: 1, kind: input, shape index: {}]   ;;  %s1704_s2 = inlined_call_operand.vmem [shape: f32[32,2304], index: 2, kind: input, shape index: {}]   ;;  %s1705_s3 = inlined_call_operand.vmem [shape: f32[32,2304], index: 3, kind: input, shape index: {}]   ;;  %s1706_s4 = inlined_call_operand.vmem [shape: f32[32,2304], index: 4, kind: output, shape index: {}]  }
   0x1   :  { %v17_v0 = vld [vmem:[%s1702_s0] sm:$0xff]  ;;  %v18_v5 = vld [vmem:[%s1702_s0 + $0x8] sm:$0xff]  ;;  %v19_v11 = vld [vmem:[%s1702_s0 + $0x10] sm:$0xff] }
   0x2   :  { %v89_v1 = vld [vmem:[%s1703_s1] sm:$0xff]  ;;  %v90_v6 = vld [vmem:[%s1703_s1 + $0x8] sm:$0xff]  ;;  %v91_v13 = vld [vmem:[%s1703_s1 + $0x10] sm:$0xff] }
   0x3   :  { %v233_v2 = vld [vmem:[%s1704_s2] sm:$0xff]  ;;  %v161_v3 = vmax.f32 %v17_v0, %v89_v1  ;;  %v162_v8 = vmax.f32 %v18_v5, %v90_v6  ;;  %v234_v9 = vld [vmem:[%s1704_s2 + $0x8] sm:$0xff]  ;;  %v235_v14 = vld [vmem:[%s1704_s2 + $0x10] sm:$0xff]  ;;  %v163_v17 = vmax.f32 %v19_v11, %v91_v13 }
   0x4   :  { %v305_v4 = vld [vmem:[%s1705_s3] sm:$0xff]  ;;  %v306_v10 = vld [vmem:[%s1705_s3 + $0x8] sm:$0xff]  ;;  %v307_v15 = vld [vmem:[%s1705_s3 + $0x10] sm:$0xff] }
   0x5   :  { %v377_v7 = vmax.f32 %v233_v2, %v305_v4  ;;  %v378_v12 = vmax.f32 %v234_v9, %v306_v10  ;;  %v379_v18 = vmax.f32 %v235_v14, %v307_v15  ;;  %v20_v19 = vld [vmem:[%s1702_s0 + $0x18] sm:$0xff]  ;;  %v21_v25 = vld [vmem:[%s1702_s0 + $0x20] sm:$0xff]  ;;  %v22_v32 = vld [vmem:[%s1702_s0 + $0x28] sm:$0xff] }
   0x6   :  { %v92_v20 = vld [vmem:[%s1703_s1 + $0x18] sm:$0xff]  ;;  %v93_v26 = vld [vmem:[%s1703_s1 + $0x20] sm:$0xff]  ;;  %v94_v34 = vld [vmem:[%s1703_s1 + $0x28] sm:$0xff] }
   0x7   :  { %v449_v16 = vmax.f32 %v161_v3, %v377_v7  ;;  %v236_v21 = vld [vmem:[%s1704_s2 + $0x18] sm:$0xff]  ;;  %v450_v22 = vmax.f32 %v162_v8, %v378_v12  ;;  %v164_v23 = vmax.f32 %v20_v19, %v92_v20  ;;  %v451_v27 = vmax.f32 %v163_v17, %v379_v18  ;;  %v237_v30 = vld [vmem:[%s1704_s2 + $0x20] sm:$0xff]  ;;  %v238_v35 = vld [vmem:[%s1704_s2 + $0x28] sm:$0xff] }
   0x8   :  { %v308_v24 = vld [vmem:[%s1705_s3 + $0x18] sm:$0xff]  ;;  %v165_v29 = vmax.f32 %v21_v25, %v93_v26  ;;  %v309_v31 = vld [vmem:[%s1705_s3 + $0x20] sm:$0xff]  ;;  %v310_v36 = vld [vmem:[%s1705_s3 + $0x28] sm:$0xff]  ;;  %v166_v38 = vmax.f32 %v22_v32, %v94_v34 }
   0x9   :  { %521 = vst [vmem:[%s1706_s4] sm:$0xff] %v449_v16  ;;  %v380_v28 = vmax.f32 %v236_v21, %v308_v24  ;;  %522 = vst [vmem:[%s1706_s4 + $0x8] sm:$0xff] %v450_v22  ;;  %v381_v33 = vmax.f32 %v237_v30, %v309_v31  ;;  %v382_v39 = vmax.f32 %v238_v35, %v310_v36  ;;  %v23_v40 = vld [vmem:[%s1702_s0 + $0x30] sm:$0xff]  ;;  %v24_v46 = vld [vmem:[%s1702_s0 + $0x38] sm:$0xff] }
   0xa   :  { %523 = vst [vmem:[%s1706_s4 + $0x10] sm:$0xff] %v451_v27  ;;  %v95_v41 = vld [vmem:[%s1703_s1 + $0x30] sm:$0xff]  ;;  %v96_v47 = vld [vmem:[%s1703_s1 + $0x38] sm:$0xff]  ;;  %v25_v53 = vld [vmem:[%s1702_s0 + $0x40] sm:$0xff] }
   0xb   :  { %v452_v37 = vmax.f32 %v164_v23, %v380_v28  ;;  %v239_v42 = vld [vmem:[%s1704_s2 + $0x30] sm:$0xff]  ;;  %v453_v43 = vmax.f32 %v165_v29, %v381_v33  ;;  %v167_v44 = vmax.f32 %v23_v40, %v95_v41  ;;  %v454_v48 = vmax.f32 %v166_v38, %v382_v39  ;;  %v240_v51 = vld [vmem:[%s1704_s2 + $0x38] sm:$0xff]  ;;  %v97_v55 = vld [vmem:[%s1703_s1 + $0x40] sm:$0xff] }
   0xc   :  { %v311_v45 = vld [vmem:[%s1705_s3 + $0x30] sm:$0xff]  ;;  %v168_v50 = vmax.f32 %v24_v46, %v96_v47  ;;  %v312_v52 = vld [vmem:[%s1705_s3 + $0x38] sm:$0xff]  ;;  %v241_v56 = vld [vmem:[%s1704_s2 + $0x40] sm:$0xff]  ;;  %v169_v59 = vmax.f32 %v25_v53, %v97_v55 }
   0xd   :  { %524 = vst [vmem:[%s1706_s4 + $0x18] sm:$0xff] %v452_v37  ;;  %v383_v49 = vmax.f32 %v239_v42, %v311_v45  ;;  %525 = vst [vmem:[%s1706_s4 + $0x20] sm:$0xff] %v453_v43  ;;  %v384_v54 = vmax.f32 %v240_v51, %v312_v52  ;;  %v313_v57 = vld [vmem:[%s1705_s3 + $0x40] sm:$0xff]  ;;  %v26_v61 = vld [vmem:[%s1702_s0 + $0x48] sm:$0xff] }
   0xe   :  { %526 = vst [vmem:[%s1706_s4 + $0x28] sm:$0xff] %v454_v48  ;;  %v385_v60 = vmax.f32 %v241_v56, %v313_v57  ;;  %v98_v62 = vld [vmem:[%s1703_s1 + $0x48] sm:$0xff]  ;;  %v27_v3 = vld [vmem:[%s1702_s0 + $0x50] sm:$0xff]  ;;  %v28_v10 = vld [vmem:[%s1702_s0 + $0x58] sm:$0xff] }
   0xf   :  { %v455_v58 = vmax.f32 %v167_v44, %v383_v49  ;;  %v242_v63 = vld [vmem:[%s1704_s2 + $0x48] sm:$0xff]  ;;  %v456_v0 = vmax.f32 %v168_v50, %v384_v54  ;;  %v170_v1 = vmax.f32 %v26_v61, %v98_v62  ;;  %v99_v4 = vld [vmem:[%s1703_s1 + $0x50] sm:$0xff]  ;;  %v100_v12 = vld [vmem:[%s1703_s1 + $0x58] sm:$0xff] }
  0x10   :  { %v314_v2 = vld [vmem:[%s1705_s3 + $0x48] sm:$0xff]  ;;  %v457_v5 = vmax.f32 %v169_v59, %v385_v60  ;;  %v171_v7 = vmax.f32 %v27_v3, %v99_v4  ;;  %v243_v8 = vld [vmem:[%s1704_s2 + $0x50] sm:$0xff]  ;;  %v244_v13 = vld [vmem:[%s1704_s2 + $0x58] sm:$0xff]  ;;  %v172_v16 = vmax.f32 %v28_v10, %v100_v12 }
  0x11   :  { %527 = vst [vmem:[%s1706_s4 + $0x30] sm:$0xff] %v455_v58  ;;  %v386_v6 = vmax.f32 %v242_v63, %v314_v2  ;;  %v315_v9 = vld [vmem:[%s1705_s3 + $0x50] sm:$0xff]  ;;  %528 = vst [vmem:[%s1706_s4 + $0x38] sm:$0xff] %v456_v0  ;;  %v316_v14 = vld [vmem:[%s1705_s3 + $0x58] sm:$0xff] }
  0x12   :  { %v387_v11 = vmax.f32 %v243_v8, %v315_v9  ;;  %529 = vst [vmem:[%s1706_s4 + $0x40] sm:$0xff] %v457_v5  ;;  %v388_v17 = vmax.f32 %v244_v13, %v316_v14  ;;  %v29_v18 = vld [vmem:[%s1702_s0 + $0x60] sm:$0xff]  ;;  %v30_v24 = vld [vmem:[%s1702_s0 + $0x68] sm:$0xff]  ;;  %v31_v31 = vld [vmem:[%s1702_s0 + $0x70] sm:$0xff] }
  0x13   :  { %v458_v15 = vmax.f32 %v170_v1, %v386_v6  ;;  %v101_v19 = vld [vmem:[%s1703_s1 + $0x60] sm:$0xff]  ;;  %v102_v25 = vld [vmem:[%s1703_s1 + $0x68] sm:$0xff]  ;;  %v103_v33 = vld [vmem:[%s1703_s1 + $0x70] sm:$0xff] }
  0x14   :  { %v245_v20 = vld [vmem:[%s1704_s2 + $0x60] sm:$0xff]  ;;  %v459_v21 = vmax.f32 %v171_v7, %v387_v11  ;;  %v173_v22 = vmax.f32 %v29_v18, %v101_v19  ;;  %v460_v26 = vmax.f32 %v172_v16, %v388_v17  ;;  %v174_v28 = vmax.f32 %v30_v24, %v102_v25  ;;  %v246_v29 = vld [vmem:[%s1704_s2 + $0x68] sm:$0xff]  ;;  %v247_v34 = vld [vmem:[%s1704_s2 + $0x70] sm:$0xff] }
  0x15   :  { %v317_v23 = vld [vmem:[%s1705_s3 + $0x60] sm:$0xff]  ;;  %530 = vst [vmem:[%s1706_s4 + $0x48] sm:$0xff] %v458_v15  ;;  %v318_v30 = vld [vmem:[%s1705_s3 + $0x68] sm:$0xff]  ;;  %v319_v35 = vld [vmem:[%s1705_s3 + $0x70] sm:$0xff]  ;;  %v175_v37 = vmax.f32 %v31_v31, %v103_v33 }
  0x16   :  { %v389_v27 = vmax.f32 %v245_v20, %v317_v23  ;;  %531 = vst [vmem:[%s1706_s4 + $0x50] sm:$0xff] %v459_v21  ;;  %v390_v32 = vmax.f32 %v246_v29, %v318_v30  ;;  %532 = vst [vmem:[%s1706_s4 + $0x58] sm:$0xff] %v460_v26  ;;  %v391_v38 = vmax.f32 %v247_v34, %v319_v35  ;;  %v32_v39 = vld [vmem:[%s1702_s0 + $0x78] sm:$0xff]  ;;  %v33_v45 = vld [vmem:[%s1702_s0 + $0x80] sm:$0xff] }
  0x17   :  { %v104_v40 = vld [vmem:[%s1703_s1 + $0x78] sm:$0xff]  ;;  %v105_v46 = vld [vmem:[%s1703_s1 + $0x80] sm:$0xff]  ;;  %v34_v52 = vld [vmem:[%s1702_s0 + $0x88] sm:$0xff] }
  0x18   :  { %v461_v36 = vmax.f32 %v173_v22, %v389_v27  ;;  %v248_v41 = vld [vmem:[%s1704_s2 + $0x78] sm:$0xff]  ;;  %v462_v42 = vmax.f32 %v174_v28, %v390_v32  ;;  %v176_v43 = vmax.f32 %v32_v39, %v104_v40  ;;  %v463_v47 = vmax.f32 %v175_v37, %v391_v38  ;;  %v249_v50 = vld [vmem:[%s1704_s2 + $0x80] sm:$0xff]  ;;  %v106_v54 = vld [vmem:[%s1703_s1 + $0x88] sm:$0xff] }
  0x19   :  { %v320_v44 = vld [vmem:[%s1705_s3 + $0x78] sm:$0xff]  ;;  %v177_v49 = vmax.f32 %v33_v45, %v105_v46  ;;  %v321_v51 = vld [vmem:[%s1705_s3 + $0x80] sm:$0xff]  ;;  %v250_v55 = vld [vmem:[%s1704_s2 + $0x88] sm:$0xff]  ;;  %v178_v58 = vmax.f32 %v34_v52, %v106_v54 }
  0x1a   :  { %533 = vst [vmem:[%s1706_s4 + $0x60] sm:$0xff] %v461_v36  ;;  %v392_v48 = vmax.f32 %v248_v41, %v320_v44  ;;  %534 = vst [vmem:[%s1706_s4 + $0x68] sm:$0xff] %v462_v42  ;;  %v393_v53 = vmax.f32 %v249_v50, %v321_v51  ;;  %v322_v56 = vld [vmem:[%s1705_s3 + $0x88] sm:$0xff]  ;;  %v35_v60 = vld [vmem:[%s1702_s0 + $0x90] sm:$0xff] }
  0x1b   :  { %535 = vst [vmem:[%s1706_s4 + $0x70] sm:$0xff] %v463_v47  ;;  %v394_v59 = vmax.f32 %v250_v55, %v322_v56  ;;  %v107_v61 = vld [vmem:[%s1703_s1 + $0x90] sm:$0xff]  ;;  %v36_v2 = vld [vmem:[%s1702_s0 + $0x98] sm:$0xff]  ;;  %v37_v9 = vld [vmem:[%s1702_s0 + $0xa0] sm:$0xff] }
  0x1c   :  { %v464_v57 = vmax.f32 %v176_v43, %v392_v48  ;;  %v251_v62 = vld [vmem:[%s1704_s2 + $0x90] sm:$0xff]  ;;  %v465_v63 = vmax.f32 %v177_v49, %v393_v53  ;;  %v179_v0 = vmax.f32 %v35_v60, %v107_v61  ;;  %v108_v3 = vld [vmem:[%s1703_s1 + $0x98] sm:$0xff]  ;;  %v109_v11 = vld [vmem:[%s1703_s1 + $0xa0] sm:$0xff] }
  0x1d   :  { %v323_v1 = vld [vmem:[%s1705_s3 + $0x90] sm:$0xff]  ;;  %v466_v4 = vmax.f32 %v178_v58, %v394_v59  ;;  %v180_v6 = vmax.f32 %v36_v2, %v108_v3  ;;  %v252_v7 = vld [vmem:[%s1704_s2 + $0x98] sm:$0xff]  ;;  %v253_v12 = vld [vmem:[%s1704_s2 + $0xa0] sm:$0xff]  ;;  %v181_v15 = vmax.f32 %v37_v9, %v109_v11 }
  0x1e   :  { %536 = vst [vmem:[%s1706_s4 + $0x78] sm:$0xff] %v464_v57  ;;  %v395_v5 = vmax.f32 %v251_v62, %v323_v1  ;;  %v324_v8 = vld [vmem:[%s1705_s3 + $0x98] sm:$0xff]  ;;  %537 = vst [vmem:[%s1706_s4 + $0x80] sm:$0xff] %v465_v63  ;;  %v325_v13 = vld [vmem:[%s1705_s3 + $0xa0] sm:$0xff] }
  0x1f   :  { %v396_v10 = vmax.f32 %v252_v7, %v324_v8  ;;  %538 = vst [vmem:[%s1706_s4 + $0x88] sm:$0xff] %v466_v4  ;;  %v397_v16 = vmax.f32 %v253_v12, %v325_v13  ;;  %v38_v17 = vld [vmem:[%s1702_s0 + $0xa8] sm:$0xff]  ;;  %v39_v23 = vld [vmem:[%s1702_s0 + $0xb0] sm:$0xff]  ;;  %v40_v30 = vld [vmem:[%s1702_s0 + $0xb8] sm:$0xff] }
  0x20   :  { %v467_v14 = vmax.f32 %v179_v0, %v395_v5  ;;  %v110_v18 = vld [vmem:[%s1703_s1 + $0xa8] sm:$0xff]  ;;  %v111_v24 = vld [vmem:[%s1703_s1 + $0xb0] sm:$0xff]  ;;  %v112_v32 = vld [vmem:[%s1703_s1 + $0xb8] sm:$0xff] }
  0x21   :  { %v254_v19 = vld [vmem:[%s1704_s2 + $0xa8] sm:$0xff]  ;;  %v468_v20 = vmax.f32 %v180_v6, %v396_v10  ;;  %v182_v21 = vmax.f32 %v38_v17, %v110_v18  ;;  %v469_v25 = vmax.f32 %v181_v15, %v397_v16  ;;  %v183_v27 = vmax.f32 %v39_v23, %v111_v24  ;;  %v255_v28 = vld [vmem:[%s1704_s2 + $0xb0] sm:$0xff]  ;;  %v256_v33 = vld [vmem:[%s1704_s2 + $0xb8] sm:$0xff] }
  0x22   :  { %v326_v22 = vld [vmem:[%s1705_s3 + $0xa8] sm:$0xff]  ;;  %539 = vst [vmem:[%s1706_s4 + $0x90] sm:$0xff] %v467_v14  ;;  %v327_v29 = vld [vmem:[%s1705_s3 + $0xb0] sm:$0xff]  ;;  %v328_v34 = vld [vmem:[%s1705_s3 + $0xb8] sm:$0xff]  ;;  %v184_v36 = vmax.f32 %v40_v30, %v112_v32 }
  0x23   :  { %v398_v26 = vmax.f32 %v254_v19, %v326_v22  ;;  %540 = vst [vmem:[%s1706_s4 + $0x98] sm:$0xff] %v468_v20  ;;  %v399_v31 = vmax.f32 %v255_v28, %v327_v29  ;;  %541 = vst [vmem:[%s1706_s4 + $0xa0] sm:$0xff] %v469_v25  ;;  %v400_v37 = vmax.f32 %v256_v33, %v328_v34  ;;  %v41_v38 = vld [vmem:[%s1702_s0 + $0xc0] sm:$0xff]  ;;  %v42_v44 = vld [vmem:[%s1702_s0 + $0xc8] sm:$0xff] }
  0x24   :  { %v113_v39 = vld [vmem:[%s1703_s1 + $0xc0] sm:$0xff]  ;;  %v114_v45 = vld [vmem:[%s1703_s1 + $0xc8] sm:$0xff]  ;;  %v43_v51 = vld [vmem:[%s1702_s0 + $0xd0] sm:$0xff] }
  0x25   :  { %v470_v35 = vmax.f32 %v182_v21, %v398_v26  ;;  %v257_v40 = vld [vmem:[%s1704_s2 + $0xc0] sm:$0xff]  ;;  %v471_v41 = vmax.f32 %v183_v27, %v399_v31  ;;  %v185_v42 = vmax.f32 %v41_v38, %v113_v39  ;;  %v472_v46 = vmax.f32 %v184_v36, %v400_v37  ;;  %v258_v49 = vld [vmem:[%s1704_s2 + $0xc8] sm:$0xff]  ;;  %v115_v53 = vld [vmem:[%s1703_s1 + $0xd0] sm:$0xff] }
  0x26   :  { %v329_v43 = vld [vmem:[%s1705_s3 + $0xc0] sm:$0xff]  ;;  %v186_v48 = vmax.f32 %v42_v44, %v114_v45  ;;  %v330_v50 = vld [vmem:[%s1705_s3 + $0xc8] sm:$0xff]  ;;  %v259_v54 = vld [vmem:[%s1704_s2 + $0xd0] sm:$0xff]  ;;  %v187_v57 = vmax.f32 %v43_v51, %v115_v53 }
  0x27   :  { %542 = vst [vmem:[%s1706_s4 + $0xa8] sm:$0xff] %v470_v35  ;;  %v401_v47 = vmax.f32 %v257_v40, %v329_v43  ;;  %543 = vst [vmem:[%s1706_s4 + $0xb0] sm:$0xff] %v471_v41  ;;  %v402_v52 = vmax.f32 %v258_v49, %v330_v50  ;;  %v331_v55 = vld [vmem:[%s1705_s3 + $0xd0] sm:$0xff]  ;;  %v44_v59 = vld [vmem:[%s1702_s0 + $0xd8] sm:$0xff] }
  0x28   :  { %544 = vst [vmem:[%s1706_s4 + $0xb8] sm:$0xff] %v472_v46  ;;  %v403_v58 = vmax.f32 %v259_v54, %v331_v55  ;;  %v116_v60 = vld [vmem:[%s1703_s1 + $0xd8] sm:$0xff]  ;;  %v45_v1 = vld [vmem:[%s1702_s0 + $0xe0] sm:$0xff]  ;;  %v46_v8 = vld [vmem:[%s1702_s0 + $0xe8] sm:$0xff] }
  0x29   :  { %v473_v56 = vmax.f32 %v185_v42, %v401_v47  ;;  %v260_v61 = vld [vmem:[%s1704_s2 + $0xd8] sm:$0xff]  ;;  %v474_v62 = vmax.f32 %v186_v48, %v402_v52  ;;  %v188_v63 = vmax.f32 %v44_v59, %v116_v60  ;;  %v117_v2 = vld [vmem:[%s1703_s1 + $0xe0] sm:$0xff]  ;;  %v118_v10 = vld [vmem:[%s1703_s1 + $0xe8] sm:$0xff] }
  0x2a   :  { %v332_v0 = vld [vmem:[%s1705_s3 + $0xd8] sm:$0xff]  ;;  %v475_v3 = vmax.f32 %v187_v57, %v403_v58  ;;  %v189_v5 = vmax.f32 %v45_v1, %v117_v2  ;;  %v261_v6 = vld [vmem:[%s1704_s2 + $0xe0] sm:$0xff]  ;;  %v262_v11 = vld [vmem:[%s1704_s2 + $0xe8] sm:$0xff]  ;;  %v190_v14 = vmax.f32 %v46_v8, %v118_v10 }
  0x2b   :  { %545 = vst [vmem:[%s1706_s4 + $0xc0] sm:$0xff] %v473_v56  ;;  %v404_v4 = vmax.f32 %v260_v61, %v332_v0  ;;  %v333_v7 = vld [vmem:[%s1705_s3 + $0xe0] sm:$0xff]  ;;  %546 = vst [vmem:[%s1706_s4 + $0xc8] sm:$0xff] %v474_v62  ;;  %v334_v12 = vld [vmem:[%s1705_s3 + $0xe8] sm:$0xff] }
  0x2c   :  { %v405_v9 = vmax.f32 %v261_v6, %v333_v7  ;;  %547 = vst [vmem:[%s1706_s4 + $0xd0] sm:$0xff] %v475_v3  ;;  %v406_v15 = vmax.f32 %v262_v11, %v334_v12  ;;  %v47_v16 = vld [vmem:[%s1702_s0 + $0xf0] sm:$0xff]  ;;  %v48_v22 = vld [vmem:[%s1702_s0 + $0xf8] sm:$0xff]  ;;  %v49_v29 = vld [vmem:[%s1702_s0 + $0x100] sm:$0xff] }
  0x2d   :  { %v476_v13 = vmax.f32 %v188_v63, %v404_v4  ;;  %v119_v17 = vld [vmem:[%s1703_s1 + $0xf0] sm:$0xff]  ;;  %v120_v23 = vld [vmem:[%s1703_s1 + $0xf8] sm:$0xff]  ;;  %v121_v31 = vld [vmem:[%s1703_s1 + $0x100] sm:$0xff] }
  0x2e   :  { %v263_v18 = vld [vmem:[%s1704_s2 + $0xf0] sm:$0xff]  ;;  %v477_v19 = vmax.f32 %v189_v5, %v405_v9  ;;  %v191_v20 = vmax.f32 %v47_v16, %v119_v17  ;;  %v478_v24 = vmax.f32 %v190_v14, %v406_v15  ;;  %v192_v26 = vmax.f32 %v48_v22, %v120_v23  ;;  %v264_v27 = vld [vmem:[%s1704_s2 + $0xf8] sm:$0xff]  ;;  %v265_v32 = vld [vmem:[%s1704_s2 + $0x100] sm:$0xff] }
  0x2f   :  { %v335_v21 = vld [vmem:[%s1705_s3 + $0xf0] sm:$0xff]  ;;  %548 = vst [vmem:[%s1706_s4 + $0xd8] sm:$0xff] %v476_v13  ;;  %v336_v28 = vld [vmem:[%s1705_s3 + $0xf8] sm:$0xff]  ;;  %v337_v33 = vld [vmem:[%s1705_s3 + $0x100] sm:$0xff]  ;;  %v193_v35 = vmax.f32 %v49_v29, %v121_v31 }
  0x30   :  { %v407_v25 = vmax.f32 %v263_v18, %v335_v21  ;;  %549 = vst [vmem:[%s1706_s4 + $0xe0] sm:$0xff] %v477_v19  ;;  %v408_v30 = vmax.f32 %v264_v27, %v336_v28  ;;  %550 = vst [vmem:[%s1706_s4 + $0xe8] sm:$0xff] %v478_v24  ;;  %v409_v36 = vmax.f32 %v265_v32, %v337_v33  ;;  %v50_v37 = vld [vmem:[%s1702_s0 + $0x108] sm:$0xff]  ;;  %v51_v43 = vld [vmem:[%s1702_s0 + $0x110] sm:$0xff] }
  0x31   :  { %v122_v38 = vld [vmem:[%s1703_s1 + $0x108] sm:$0xff]  ;;  %v123_v44 = vld [vmem:[%s1703_s1 + $0x110] sm:$0xff]  ;;  %v52_v50 = vld [vmem:[%s1702_s0 + $0x118] sm:$0xff] }
  0x32   :  { %v479_v34 = vmax.f32 %v191_v20, %v407_v25  ;;  %v266_v39 = vld [vmem:[%s1704_s2 + $0x108] sm:$0xff]  ;;  %v480_v40 = vmax.f32 %v192_v26, %v408_v30  ;;  %v194_v41 = vmax.f32 %v50_v37, %v122_v38  ;;  %v481_v45 = vmax.f32 %v193_v35, %v409_v36  ;;  %v267_v48 = vld [vmem:[%s1704_s2 + $0x110] sm:$0xff]  ;;  %v124_v52 = vld [vmem:[%s1703_s1 + $0x118] sm:$0xff] }
  0x33   :  { %v338_v42 = vld [vmem:[%s1705_s3 + $0x108] sm:$0xff]  ;;  %v195_v47 = vmax.f32 %v51_v43, %v123_v44  ;;  %v339_v49 = vld [vmem:[%s1705_s3 + $0x110] sm:$0xff]  ;;  %v268_v53 = vld [vmem:[%s1704_s2 + $0x118] sm:$0xff]  ;;  %v196_v56 = vmax.f32 %v52_v50, %v124_v52 }
  0x34   :  { %551 = vst [vmem:[%s1706_s4 + $0xf0] sm:$0xff] %v479_v34  ;;  %v410_v46 = vmax.f32 %v266_v39, %v338_v42  ;;  %552 = vst [vmem:[%s1706_s4 + $0xf8] sm:$0xff] %v480_v40  ;;  %v411_v51 = vmax.f32 %v267_v48, %v339_v49  ;;  %v340_v54 = vld [vmem:[%s1705_s3 + $0x118] sm:$0xff]  ;;  %v53_v58 = vld [vmem:[%s1702_s0 + $0x120] sm:$0xff] }
  0x35   :  { %553 = vst [vmem:[%s1706_s4 + $0x100] sm:$0xff] %v481_v45  ;;  %v412_v57 = vmax.f32 %v268_v53, %v340_v54  ;;  %v125_v59 = vld [vmem:[%s1703_s1 + $0x120] sm:$0xff]  ;;  %v54_v0 = vld [vmem:[%s1702_s0 + $0x128] sm:$0xff]  ;;  %v55_v7 = vld [vmem:[%s1702_s0 + $0x130] sm:$0xff] }
  0x36   :  { %v482_v55 = vmax.f32 %v194_v41, %v410_v46  ;;  %v269_v60 = vld [vmem:[%s1704_s2 + $0x120] sm:$0xff]  ;;  %v483_v61 = vmax.f32 %v195_v47, %v411_v51  ;;  %v197_v62 = vmax.f32 %v53_v58, %v125_v59  ;;  %v126_v1 = vld [vmem:[%s1703_s1 + $0x128] sm:$0xff]  ;;  %v127_v9 = vld [vmem:[%s1703_s1 + $0x130] sm:$0xff] }
  0x37   :  { %v341_v63 = vld [vmem:[%s1705_s3 + $0x120] sm:$0xff]  ;;  %v484_v2 = vmax.f32 %v196_v56, %v412_v57  ;;  %v198_v4 = vmax.f32 %v54_v0, %v126_v1  ;;  %v270_v5 = vld [vmem:[%s1704_s2 + $0x128] sm:$0xff]  ;;  %v271_v10 = vld [vmem:[%s1704_s2 + $0x130] sm:$0xff]  ;;  %v199_v13 = vmax.f32 %v55_v7, %v127_v9 }
  0x38   :  { %554 = vst [vmem:[%s1706_s4 + $0x108] sm:$0xff] %v482_v55  ;;  %v413_v3 = vmax.f32 %v269_v60, %v341_v63  ;;  %v342_v6 = vld [vmem:[%s1705_s3 + $0x128] sm:$0xff]  ;;  %555 = vst [vmem:[%s1706_s4 + $0x110] sm:$0xff] %v483_v61  ;;  %v343_v11 = vld [vmem:[%s1705_s3 + $0x130] sm:$0xff] }
  0x39   :  { %v414_v8 = vmax.f32 %v270_v5, %v342_v6  ;;  %556 = vst [vmem:[%s1706_s4 + $0x118] sm:$0xff] %v484_v2  ;;  %v415_v14 = vmax.f32 %v271_v10, %v343_v11  ;;  %v56_v15 = vld [vmem:[%s1702_s0 + $0x138] sm:$0xff]  ;;  %v57_v21 = vld [vmem:[%s1702_s0 + $0x140] sm:$0xff]  ;;  %v58_v28 = vld [vmem:[%s1702_s0 + $0x148] sm:$0xff] }
  0x3a   :  { %v485_v12 = vmax.f32 %v197_v62, %v413_v3  ;;  %v128_v16 = vld [vmem:[%s1703_s1 + $0x138] sm:$0xff]  ;;  %v129_v22 = vld [vmem:[%s1703_s1 + $0x140] sm:$0xff]  ;;  %v130_v30 = vld [vmem:[%s1703_s1 + $0x148] sm:$0xff] }
  0x3b   :  { %v272_v17 = vld [vmem:[%s1704_s2 + $0x138] sm:$0xff]  ;;  %v486_v18 = vmax.f32 %v198_v4, %v414_v8  ;;  %v200_v19 = vmax.f32 %v56_v15, %v128_v16  ;;  %v487_v23 = vmax.f32 %v199_v13, %v415_v14  ;;  %v201_v25 = vmax.f32 %v57_v21, %v129_v22  ;;  %v273_v26 = vld [vmem:[%s1704_s2 + $0x140] sm:$0xff]  ;;  %v274_v31 = vld [vmem:[%s1704_s2 + $0x148] sm:$0xff] }
  0x3c   :  { %v344_v20 = vld [vmem:[%s1705_s3 + $0x138] sm:$0xff]  ;;  %557 = vst [vmem:[%s1706_s4 + $0x120] sm:$0xff] %v485_v12  ;;  %v345_v27 = vld [vmem:[%s1705_s3 + $0x140] sm:$0xff]  ;;  %v346_v32 = vld [vmem:[%s1705_s3 + $0x148] sm:$0xff]  ;;  %v202_v34 = vmax.f32 %v58_v28, %v130_v30 }
  0x3d   :  { %v416_v24 = vmax.f32 %v272_v17, %v344_v20  ;;  %558 = vst [vmem:[%s1706_s4 + $0x128] sm:$0xff] %v486_v18  ;;  %v417_v29 = vmax.f32 %v273_v26, %v345_v27  ;;  %559 = vst [vmem:[%s1706_s4 + $0x130] sm:$0xff] %v487_v23  ;;  %v418_v35 = vmax.f32 %v274_v31, %v346_v32  ;;  %v59_v36 = vld [vmem:[%s1702_s0 + $0x150] sm:$0xff]  ;;  %v60_v42 = vld [vmem:[%s1702_s0 + $0x158] sm:$0xff] }
  0x3e   :  { %v131_v37 = vld [vmem:[%s1703_s1 + $0x150] sm:$0xff]  ;;  %v132_v43 = vld [vmem:[%s1703_s1 + $0x158] sm:$0xff]  ;;  %v61_v49 = vld [vmem:[%s1702_s0 + $0x160] sm:$0xff] }
  0x3f   :  { %v488_v33 = vmax.f32 %v200_v19, %v416_v24  ;;  %v275_v38 = vld [vmem:[%s1704_s2 + $0x150] sm:$0xff]  ;;  %v489_v39 = vmax.f32 %v201_v25, %v417_v29  ;;  %v203_v40 = vmax.f32 %v59_v36, %v131_v37  ;;  %v490_v44 = vmax.f32 %v202_v34, %v418_v35  ;;  %v276_v47 = vld [vmem:[%s1704_s2 + $0x158] sm:$0xff]  ;;  %v133_v51 = vld [vmem:[%s1703_s1 + $0x160] sm:$0xff] }
  0x40   :  { %v347_v41 = vld [vmem:[%s1705_s3 + $0x150] sm:$0xff]  ;;  %v204_v46 = vmax.f32 %v60_v42, %v132_v43  ;;  %v348_v48 = vld [vmem:[%s1705_s3 + $0x158] sm:$0xff]  ;;  %v277_v52 = vld [vmem:[%s1704_s2 + $0x160] sm:$0xff]  ;;  %v205_v55 = vmax.f32 %v61_v49, %v133_v51 }
  0x41   :  { %560 = vst [vmem:[%s1706_s4 + $0x138] sm:$0xff] %v488_v33  ;;  %v419_v45 = vmax.f32 %v275_v38, %v347_v41  ;;  %561 = vst [vmem:[%s1706_s4 + $0x140] sm:$0xff] %v489_v39  ;;  %v420_v50 = vmax.f32 %v276_v47, %v348_v48  ;;  %v349_v53 = vld [vmem:[%s1705_s3 + $0x160] sm:$0xff]  ;;  %v62_v57 = vld [vmem:[%s1702_s0 + $0x168] sm:$0xff] }
  0x42   :  { %562 = vst [vmem:[%s1706_s4 + $0x148] sm:$0xff] %v490_v44  ;;  %v421_v56 = vmax.f32 %v277_v52, %v349_v53  ;;  %v134_v58 = vld [vmem:[%s1703_s1 + $0x168] sm:$0xff]  ;;  %v63_v63 = vld [vmem:[%s1702_s0 + $0x170] sm:$0xff]  ;;  %v64_v6 = vld [vmem:[%s1702_s0 + $0x178] sm:$0xff] }
  0x43   :  { %v491_v54 = vmax.f32 %v203_v40, %v419_v45  ;;  %v278_v59 = vld [vmem:[%s1704_s2 + $0x168] sm:$0xff]  ;;  %v492_v60 = vmax.f32 %v204_v46, %v420_v50  ;;  %v206_v61 = vmax.f32 %v62_v57, %v134_v58  ;;  %v135_v0 = vld [vmem:[%s1703_s1 + $0x170] sm:$0xff]  ;;  %v136_v8 = vld [vmem:[%s1703_s1 + $0x178] sm:$0xff] }
  0x44   :  { %v350_v62 = vld [vmem:[%s1705_s3 + $0x168] sm:$0xff]  ;;  %v493_v1 = vmax.f32 %v205_v55, %v421_v56  ;;  %v207_v3 = vmax.f32 %v63_v63, %v135_v0  ;;  %v279_v4 = vld [vmem:[%s1704_s2 + $0x170] sm:$0xff]  ;;  %v280_v9 = vld [vmem:[%s1704_s2 + $0x178] sm:$0xff]  ;;  %v208_v12 = vmax.f32 %v64_v6, %v136_v8 }
  0x45   :  { %563 = vst [vmem:[%s1706_s4 + $0x150] sm:$0xff] %v491_v54  ;;  %v422_v2 = vmax.f32 %v278_v59, %v350_v62  ;;  %v351_v5 = vld [vmem:[%s1705_s3 + $0x170] sm:$0xff]  ;;  %564 = vst [vmem:[%s1706_s4 + $0x158] sm:$0xff] %v492_v60  ;;  %v352_v10 = vld [vmem:[%s1705_s3 + $0x178] sm:$0xff] }
  0x46   :  { %v423_v7 = vmax.f32 %v279_v4, %v351_v5  ;;  %565 = vst [vmem:[%s1706_s4 + $0x160] sm:$0xff] %v493_v1  ;;  %v424_v13 = vmax.f32 %v280_v9, %v352_v10  ;;  %v65_v14 = vld [vmem:[%s1702_s0 + $0x180] sm:$0xff]  ;;  %v66_v20 = vld [vmem:[%s1702_s0 + $0x188] sm:$0xff]  ;;  %v67_v27 = vld [vmem:[%s1702_s0 + $0x190] sm:$0xff] }
  0x47   :  { %v494_v11 = vmax.f32 %v206_v61, %v422_v2  ;;  %v137_v15 = vld [vmem:[%s1703_s1 + $0x180] sm:$0xff]  ;;  %v138_v21 = vld [vmem:[%s1703_s1 + $0x188] sm:$0xff]  ;;  %v139_v29 = vld [vmem:[%s1703_s1 + $0x190] sm:$0xff] }
  0x48   :  { %v281_v16 = vld [vmem:[%s1704_s2 + $0x180] sm:$0xff]  ;;  %v495_v17 = vmax.f32 %v207_v3, %v423_v7  ;;  %v209_v18 = vmax.f32 %v65_v14, %v137_v15  ;;  %v496_v22 = vmax.f32 %v208_v12, %v424_v13  ;;  %v210_v24 = vmax.f32 %v66_v20, %v138_v21  ;;  %v282_v25 = vld [vmem:[%s1704_s2 + $0x188] sm:$0xff]  ;;  %v283_v30 = vld [vmem:[%s1704_s2 + $0x190] sm:$0xff] }
  0x49   :  { %v353_v19 = vld [vmem:[%s1705_s3 + $0x180] sm:$0xff]  ;;  %566 = vst [vmem:[%s1706_s4 + $0x168] sm:$0xff] %v494_v11  ;;  %v354_v26 = vld [vmem:[%s1705_s3 + $0x188] sm:$0xff]  ;;  %v355_v31 = vld [vmem:[%s1705_s3 + $0x190] sm:$0xff]  ;;  %v211_v33 = vmax.f32 %v67_v27, %v139_v29 }
  0x4a   :  { %v425_v23 = vmax.f32 %v281_v16, %v353_v19  ;;  %567 = vst [vmem:[%s1706_s4 + $0x170] sm:$0xff] %v495_v17  ;;  %v426_v28 = vmax.f32 %v282_v25, %v354_v26  ;;  %568 = vst [vmem:[%s1706_s4 + $0x178] sm:$0xff] %v496_v22  ;;  %v427_v34 = vmax.f32 %v283_v30, %v355_v31  ;;  %v68_v35 = vld [vmem:[%s1702_s0 + $0x198] sm:$0xff]  ;;  %v69_v41 = vld [vmem:[%s1702_s0 + $0x1a0] sm:$0xff] }
  0x4b   :  { %v140_v36 = vld [vmem:[%s1703_s1 + $0x198] sm:$0xff]  ;;  %v141_v42 = vld [vmem:[%s1703_s1 + $0x1a0] sm:$0xff]  ;;  %v70_v48 = vld [vmem:[%s1702_s0 + $0x1a8] sm:$0xff] }
  0x4c   :  { %v497_v32 = vmax.f32 %v209_v18, %v425_v23  ;;  %v284_v37 = vld [vmem:[%s1704_s2 + $0x198] sm:$0xff]  ;;  %v498_v38 = vmax.f32 %v210_v24, %v426_v28  ;;  %v212_v39 = vmax.f32 %v68_v35, %v140_v36  ;;  %v499_v43 = vmax.f32 %v211_v33, %v427_v34  ;;  %v285_v46 = vld [vmem:[%s1704_s2 + $0x1a0] sm:$0xff]  ;;  %v142_v50 = vld [vmem:[%s1703_s1 + $0x1a8] sm:$0xff] }
  0x4d   :  { %v356_v40 = vld [vmem:[%s1705_s3 + $0x198] sm:$0xff]  ;;  %v213_v45 = vmax.f32 %v69_v41, %v141_v42  ;;  %v357_v47 = vld [vmem:[%s1705_s3 + $0x1a0] sm:$0xff]  ;;  %v286_v51 = vld [vmem:[%s1704_s2 + $0x1a8] sm:$0xff]  ;;  %v214_v54 = vmax.f32 %v70_v48, %v142_v50 }
  0x4e   :  { %569 = vst [vmem:[%s1706_s4 + $0x180] sm:$0xff] %v497_v32  ;;  %v428_v44 = vmax.f32 %v284_v37, %v356_v40  ;;  %570 = vst [vmem:[%s1706_s4 + $0x188] sm:$0xff] %v498_v38  ;;  %v429_v49 = vmax.f32 %v285_v46, %v357_v47  ;;  %v358_v52 = vld [vmem:[%s1705_s3 + $0x1a8] sm:$0xff]  ;;  %v71_v56 = vld [vmem:[%s1702_s0 + $0x1b0] sm:$0xff] }
  0x4f   :  { %571 = vst [vmem:[%s1706_s4 + $0x190] sm:$0xff] %v499_v43  ;;  %v430_v55 = vmax.f32 %v286_v51, %v358_v52  ;;  %v143_v57 = vld [vmem:[%s1703_s1 + $0x1b0] sm:$0xff]  ;;  %v72_v62 = vld [vmem:[%s1702_s0 + $0x1b8] sm:$0xff]  ;;  %v73_v5 = vld [vmem:[%s1702_s0 + $0x1c0] sm:$0xff] }
  0x50   :  { %v500_v53 = vmax.f32 %v212_v39, %v428_v44  ;;  %v287_v58 = vld [vmem:[%s1704_s2 + $0x1b0] sm:$0xff]  ;;  %v501_v59 = vmax.f32 %v213_v45, %v429_v49  ;;  %v215_v60 = vmax.f32 %v71_v56, %v143_v57  ;;  %v144_v63 = vld [vmem:[%s1703_s1 + $0x1b8] sm:$0xff]  ;;  %v145_v7 = vld [vmem:[%s1703_s1 + $0x1c0] sm:$0xff] }
  0x51   :  { %v359_v61 = vld [vmem:[%s1705_s3 + $0x1b0] sm:$0xff]  ;;  %v502_v0 = vmax.f32 %v214_v54, %v430_v55  ;;  %v216_v2 = vmax.f32 %v72_v62, %v144_v63  ;;  %v288_v3 = vld [vmem:[%s1704_s2 + $0x1b8] sm:$0xff]  ;;  %v289_v8 = vld [vmem:[%s1704_s2 + $0x1c0] sm:$0xff]  ;;  %v217_v11 = vmax.f32 %v73_v5, %v145_v7 }
  0x52   :  { %572 = vst [vmem:[%s1706_s4 + $0x198] sm:$0xff] %v500_v53  ;;  %v431_v1 = vmax.f32 %v287_v58, %v359_v61  ;;  %v360_v4 = vld [vmem:[%s1705_s3 + $0x1b8] sm:$0xff]  ;;  %573 = vst [vmem:[%s1706_s4 + $0x1a0] sm:$0xff] %v501_v59  ;;  %v361_v9 = vld [vmem:[%s1705_s3 + $0x1c0] sm:$0xff] }
  0x53   :  { %v432_v6 = vmax.f32 %v288_v3, %v360_v4  ;;  %574 = vst [vmem:[%s1706_s4 + $0x1a8] sm:$0xff] %v502_v0  ;;  %v433_v12 = vmax.f32 %v289_v8, %v361_v9  ;;  %v74_v13 = vld [vmem:[%s1702_s0 + $0x1c8] sm:$0xff]  ;;  %v75_v19 = vld [vmem:[%s1702_s0 + $0x1d0] sm:$0xff]  ;;  %v76_v26 = vld [vmem:[%s1702_s0 + $0x1d8] sm:$0xff] }
  0x54   :  { %v503_v10 = vmax.f32 %v215_v60, %v431_v1  ;;  %v146_v14 = vld [vmem:[%s1703_s1 + $0x1c8] sm:$0xff]  ;;  %v147_v20 = vld [vmem:[%s1703_s1 + $0x1d0] sm:$0xff]  ;;  %v148_v28 = vld [vmem:[%s1703_s1 + $0x1d8] sm:$0xff] }
  0x55   :  { %v290_v15 = vld [vmem:[%s1704_s2 + $0x1c8] sm:$0xff]  ;;  %v504_v16 = vmax.f32 %v216_v2, %v432_v6  ;;  %v218_v17 = vmax.f32 %v74_v13, %v146_v14  ;;  %v505_v21 = vmax.f32 %v217_v11, %v433_v12  ;;  %v219_v23 = vmax.f32 %v75_v19, %v147_v20  ;;  %v291_v24 = vld [vmem:[%s1704_s2 + $0x1d0] sm:$0xff]  ;;  %v292_v29 = vld [vmem:[%s1704_s2 + $0x1d8] sm:$0xff] }
  0x56   :  { %v362_v18 = vld [vmem:[%s1705_s3 + $0x1c8] sm:$0xff]  ;;  %575 = vst [vmem:[%s1706_s4 + $0x1b0] sm:$0xff] %v503_v10  ;;  %v363_v25 = vld [vmem:[%s1705_s3 + $0x1d0] sm:$0xff]  ;;  %v364_v30 = vld [vmem:[%s1705_s3 + $0x1d8] sm:$0xff]  ;;  %v220_v32 = vmax.f32 %v76_v26, %v148_v28 }
  0x57   :  { %v434_v22 = vmax.f32 %v290_v15, %v362_v18  ;;  %576 = vst [vmem:[%s1706_s4 + $0x1b8] sm:$0xff] %v504_v16  ;;  %v435_v27 = vmax.f32 %v291_v24, %v363_v25  ;;  %577 = vst [vmem:[%s1706_s4 + $0x1c0] sm:$0xff] %v505_v21  ;;  %v436_v33 = vmax.f32 %v292_v29, %v364_v30  ;;  %v77_v34 = vld [vmem:[%s1702_s0 + $0x1e0] sm:$0xff]  ;;  %v78_v40 = vld [vmem:[%s1702_s0 + $0x1e8] sm:$0xff] }
  0x58   :  { %v149_v35 = vld [vmem:[%s1703_s1 + $0x1e0] sm:$0xff]  ;;  %v150_v41 = vld [vmem:[%s1703_s1 + $0x1e8] sm:$0xff]  ;;  %v79_v47 = vld [vmem:[%s1702_s0 + $0x1f0] sm:$0xff] }
  0x59   :  { %v506_v31 = vmax.f32 %v218_v17, %v434_v22  ;;  %v293_v36 = vld [vmem:[%s1704_s2 + $0x1e0] sm:$0xff]  ;;  %v507_v37 = vmax.f32 %v219_v23, %v435_v27  ;;  %v221_v38 = vmax.f32 %v77_v34, %v149_v35  ;;  %v508_v42 = vmax.f32 %v220_v32, %v436_v33  ;;  %v294_v45 = vld [vmem:[%s1704_s2 + $0x1e8] sm:$0xff]  ;;  %v151_v49 = vld [vmem:[%s1703_s1 + $0x1f0] sm:$0xff] }
  0x5a   :  { %v365_v39 = vld [vmem:[%s1705_s3 + $0x1e0] sm:$0xff]  ;;  %v222_v44 = vmax.f32 %v78_v40, %v150_v41  ;;  %v366_v46 = vld [vmem:[%s1705_s3 + $0x1e8] sm:$0xff]  ;;  %v295_v50 = vld [vmem:[%s1704_s2 + $0x1f0] sm:$0xff]  ;;  %v223_v53 = vmax.f32 %v79_v47, %v151_v49 }
  0x5b   :  { %578 = vst [vmem:[%s1706_s4 + $0x1c8] sm:$0xff] %v506_v31  ;;  %v437_v43 = vmax.f32 %v293_v36, %v365_v39  ;;  %579 = vst [vmem:[%s1706_s4 + $0x1d0] sm:$0xff] %v507_v37  ;;  %v438_v48 = vmax.f32 %v294_v45, %v366_v46  ;;  %v367_v51 = vld [vmem:[%s1705_s3 + $0x1f0] sm:$0xff]  ;;  %v80_v55 = vld [vmem:[%s1702_s0 + $0x1f8] sm:$0xff] }
  0x5c   :  { %580 = vst [vmem:[%s1706_s4 + $0x1d8] sm:$0xff] %v508_v42  ;;  %v439_v54 = vmax.f32 %v295_v50, %v367_v51  ;;  %v152_v56 = vld [vmem:[%s1703_s1 + $0x1f8] sm:$0xff]  ;;  %v81_v61 = vld [vmem:[%s1702_s0 + $0x200] sm:$0xff]  ;;  %v82_v4 = vld [vmem:[%s1702_s0 + $0x208] sm:$0xff] }
  0x5d   :  { %v509_v52 = vmax.f32 %v221_v38, %v437_v43  ;;  %v296_v57 = vld [vmem:[%s1704_s2 + $0x1f8] sm:$0xff]  ;;  %v510_v58 = vmax.f32 %v222_v44, %v438_v48  ;;  %v224_v59 = vmax.f32 %v80_v55, %v152_v56  ;;  %v153_v62 = vld [vmem:[%s1703_s1 + $0x200] sm:$0xff]  ;;  %v154_v6 = vld [vmem:[%s1703_s1 + $0x208] sm:$0xff] }
  0x5e   :  { %v368_v60 = vld [vmem:[%s1705_s3 + $0x1f8] sm:$0xff]  ;;  %v511_v63 = vmax.f32 %v223_v53, %v439_v54  ;;  %v225_v1 = vmax.f32 %v81_v61, %v153_v62  ;;  %v297_v2 = vld [vmem:[%s1704_s2 + $0x200] sm:$0xff]  ;;  %v298_v7 = vld [vmem:[%s1704_s2 + $0x208] sm:$0xff]  ;;  %v226_v10 = vmax.f32 %v82_v4, %v154_v6 }
  0x5f   :  { %581 = vst [vmem:[%s1706_s4 + $0x1e0] sm:$0xff] %v509_v52  ;;  %v440_v0 = vmax.f32 %v296_v57, %v368_v60  ;;  %v369_v3 = vld [vmem:[%s1705_s3 + $0x200] sm:$0xff]  ;;  %582 = vst [vmem:[%s1706_s4 + $0x1e8] sm:$0xff] %v510_v58  ;;  %v370_v8 = vld [vmem:[%s1705_s3 + $0x208] sm:$0xff] }
  0x60   :  { %v441_v5 = vmax.f32 %v297_v2, %v369_v3  ;;  %583 = vst [vmem:[%s1706_s4 + $0x1f0] sm:$0xff] %v511_v63  ;;  %v442_v11 = vmax.f32 %v298_v7, %v370_v8  ;;  %v83_v12 = vld [vmem:[%s1702_s0 + $0x210] sm:$0xff]  ;;  %v84_v18 = vld [vmem:[%s1702_s0 + $0x218] sm:$0xff]  ;;  %v85_v25 = vld [vmem:[%s1702_s0 + $0x220] sm:$0xff] }
  0x61   :  { %v512_v9 = vmax.f32 %v224_v59, %v440_v0  ;;  %v155_v13 = vld [vmem:[%s1703_s1 + $0x210] sm:$0xff]  ;;  %v156_v19 = vld [vmem:[%s1703_s1 + $0x218] sm:$0xff]  ;;  %v157_v27 = vld [vmem:[%s1703_s1 + $0x220] sm:$0xff] }
  0x62   :  { %v299_v14 = vld [vmem:[%s1704_s2 + $0x210] sm:$0xff]  ;;  %v513_v15 = vmax.f32 %v225_v1, %v441_v5  ;;  %v227_v16 = vmax.f32 %v83_v12, %v155_v13  ;;  %v514_v20 = vmax.f32 %v226_v10, %v442_v11  ;;  %v228_v22 = vmax.f32 %v84_v18, %v156_v19  ;;  %v300_v23 = vld [vmem:[%s1704_s2 + $0x218] sm:$0xff]  ;;  %v301_v28 = vld [vmem:[%s1704_s2 + $0x220] sm:$0xff] }
  0x63   :  { %v371_v17 = vld [vmem:[%s1705_s3 + $0x210] sm:$0xff]  ;;  %584 = vst [vmem:[%s1706_s4 + $0x1f8] sm:$0xff] %v512_v9  ;;  %v372_v24 = vld [vmem:[%s1705_s3 + $0x218] sm:$0xff]  ;;  %v373_v29 = vld [vmem:[%s1705_s3 + $0x220] sm:$0xff]  ;;  %v229_v31 = vmax.f32 %v85_v25, %v157_v27 }
  0x64   :  { %v443_v21 = vmax.f32 %v299_v14, %v371_v17  ;;  %585 = vst [vmem:[%s1706_s4 + $0x200] sm:$0xff] %v513_v15  ;;  %v444_v26 = vmax.f32 %v300_v23, %v372_v24  ;;  %586 = vst [vmem:[%s1706_s4 + $0x208] sm:$0xff] %v514_v20  ;;  %v445_v32 = vmax.f32 %v301_v28, %v373_v29  ;;  %v86_v33 = vld [vmem:[%s1702_s0 + $0x228] sm:$0xff]  ;;  %v87_v39 = vld [vmem:[%s1702_s0 + $0x230] sm:$0xff] }
  0x65   :  { %v158_v34 = vld [vmem:[%s1703_s1 + $0x228] sm:$0xff]  ;;  %v159_v40 = vld [vmem:[%s1703_s1 + $0x230] sm:$0xff]  ;;  %v88_v46 = vld [vmem:[%s1702_s0 + $0x238] sm:$0xff] }
  0x66   :  { %v515_v30 = vmax.f32 %v227_v16, %v443_v21  ;;  %v302_v35 = vld [vmem:[%s1704_s2 + $0x228] sm:$0xff]  ;;  %v516_v36 = vmax.f32 %v228_v22, %v444_v26  ;;  %v230_v37 = vmax.f32 %v86_v33, %v158_v34  ;;  %v517_v41 = vmax.f32 %v229_v31, %v445_v32  ;;  %v303_v44 = vld [vmem:[%s1704_s2 + $0x230] sm:$0xff]  ;;  %v160_v48 = vld [vmem:[%s1703_s1 + $0x238] sm:$0xff] }
  0x67   :  { %v374_v38 = vld [vmem:[%s1705_s3 + $0x228] sm:$0xff]  ;;  %v231_v43 = vmax.f32 %v87_v39, %v159_v40  ;;  %v375_v45 = vld [vmem:[%s1705_s3 + $0x230] sm:$0xff]  ;;  %v304_v49 = vld [vmem:[%s1704_s2 + $0x238] sm:$0xff]  ;;  %v232_v52 = vmax.f32 %v88_v46, %v160_v48 }
  0x68   :  { %587 = vst [vmem:[%s1706_s4 + $0x210] sm:$0xff] %v515_v30  ;;  %v446_v42 = vmax.f32 %v302_v35, %v374_v38  ;;  %588 = vst [vmem:[%s1706_s4 + $0x218] sm:$0xff] %v516_v36  ;;  %v447_v47 = vmax.f32 %v303_v44, %v375_v45  ;;  %v376_v50 = vld [vmem:[%s1705_s3 + $0x238] sm:$0xff] }
  0x69   :  { %589 = vst [vmem:[%s1706_s4 + $0x220] sm:$0xff] %v517_v41  ;;  %v448_v53 = vmax.f32 %v304_v49, %v376_v50 }
  0x6a   :  { %v518_v51 = vmax.f32 %v230_v37, %v446_v42  ;;  %v519_v54 = vmax.f32 %v231_v43, %v447_v47 }
  0x6b   :  { %v520_v55 = vmax.f32 %v232_v52, %v448_v53 }
  0x6c   :  { %590 = vst [vmem:[%s1706_s4 + $0x228] sm:$0xff] %v518_v51  ;;  %591 = vst [vmem:[%s1706_s4 + $0x230] sm:$0xff] %v519_v54 }
  0x6d   :  { %592 = vst [vmem:[%s1706_s4 + $0x238] sm:$0xff] %v520_v55 }

// kernel: mynet_forward.8
= control target key start
LH: loop header
LB: loop body
LE: loop exit
PB: predicated region body
PF: predicated region fallthrough
CT: control target
= control target key end

     0   :  { %v3178_v3 = vmov 0   ;;  %vm658_vm0 = vcmask 130048   ;;  %vm2353_vm1 = vcmask 64512   ;;  %s5934_s1 = inlined_call_operand.vmem [shape: f32[144,4232], index: 1, kind: input, shape index: {}]   ;;  %s5935_s0 = inlined_call_operand.vmem [shape: f32[32,144], index: 0, kind: input, shape index: {}]   ;;  %s5936_s2 = inlined_call_operand.vmem [shape: f32[32,1], index: 2, kind: input, shape index: {}]   ;;  %s5937_s3 = inlined_call_operand.vmem [shape: f32[32,4232], index: 3, kind: output, shape index: {}]  }
   0x1   :  { %v23_v0 = vld [vmem:[%s5934_s1 + $0x8] sm:$0xff]  ;;  %v57_v1 = vld [vmem:[%s5934_s1 + $0x118] sm:$0xff]  ;;  %3160 = vset.pattern.permute.xlu0 %v3178_v3  ;;  %3161 = vset.pattern.permute.xlu1 %v3178_v3  ;;  %v22_v6 = vld [vmem:[%s5934_s1] sm:$0xff] }
   0x2   :  { %v25_v2 = vld [vmem:[%s5934_s1 + $0x18] sm:$0xff]  ;;  %v2529_v4 = vpack.c.bf16 %v57_v1, %v23_v0  ;;  %v59_v5 = vld [vmem:[%s5934_s1 + $0x128] sm:$0xff]  ;;  %v56_v7 = vld [vmem:[%s5934_s1 + $0x110] sm:$0xff] }
   0x3   :  { %v2565_v8 = vpack.c.bf16 %v59_v5, %v25_v2  ;;  %v2531_v9 = vpack.c.bf16 %v56_v7, %v22_v6  ;;  %v24_v10 = vld [vmem:[%s5934_s1 + $0x10] sm:$0xff]  ;;  %v58_v11 = vld [vmem:[%s5934_s1 + $0x120] sm:$0xff]  ;;  %v91_v12 = vld [vmem:[%s5934_s1 + $0x228] sm:$0xff] }
   0x4   :  { %2530 = vmatprep.subr.bf16.mxu0 %v2529_v4  ;;  %v2567_v13 = vpack.c.bf16 %v58_v11, %v24_v10  ;;  %v125_v14 = vld [vmem:[%s5934_s1 + $0x338] sm:$0xff]  ;;  %v127_v16 = vld [vmem:[%s5934_s1 + $0x348] sm:$0xff]  ;;  %v90_v19 = vld [vmem:[%s5934_s1 + $0x220] sm:$0xff] }
   0x5   :  { %v93_v15 = vld [vmem:[%s5934_s1 + $0x238] sm:$0xff]  ;;  %2566 = vmatprep.subr.bf16.mxu1 %v2565_v8  ;;  %2532 = vmatpush1.bf16.msra.mxu0 %v2531_v9  ;;  %v2533_v17 = vpack.c.bf16 %v125_v14, %v91_v12  ;;  %v124_v20 = vld [vmem:[%s5934_s1 + $0x330] sm:$0xff]  ;;  %v126_v23 = vld [vmem:[%s5934_s1 + $0x340] sm:$0xff] }
   0x6   :  { %v2569_v18 = vpack.c.bf16 %v127_v16, %v93_v15  ;;  %v92_v21 = vld [vmem:[%s5934_s1 + $0x230] sm:$0xff]  ;;  %2568 = vmatpush1.bf16.msra.mxu1 %v2567_v13  ;;  %v2535_v22 = vpack.c.bf16 %v124_v20, %v90_v19  ;;  %v159_v24 = vld [vmem:[%s5934_s1 + $0x448] sm:$0xff]  ;;  %v193_v25 = vld [vmem:[%s5934_s1 + $0x558] sm:$0xff] }
   0x7   :  { %2534 = vmatprep.subr.bf16.mxu0 %v2533_v17  ;;  %v2571_v26 = vpack.c.bf16 %v126_v23, %v92_v21  ;;  %v2537_v27 = vpack.c.bf16 %v193_v25, %v159_v24  ;;  %v161_v28 = vld [vmem:[%s5934_s1 + $0x458] sm:$0xff]  ;;  %v195_v29 = vld [vmem:[%s5934_s1 + $0x568] sm:$0xff]  ;;  %v158_v30 = vld [vmem:[%s5934_s1 + $0x440] sm:$0xff] }
   0x8   :  { %2570 = vmatprep.subr.bf16.mxu1 %v2569_v18  ;;  %v2573_v31 = vpack.c.bf16 %v195_v29, %v161_v28  ;;  %v192_v32 = vld [vmem:[%s5934_s1 + $0x550] sm:$0xff]  ;;  %v194_v34 = vld [vmem:[%s5934_s1 + $0x560] sm:$0xff]  ;;  %v227_v36 = vld [vmem:[%s5934_s1 + $0x668] sm:$0xff] }
   0x9   :  { %v160_v33 = vld [vmem:[%s5934_s1 + $0x450] sm:$0xff]  ;;  %2536 = vmatpush1.bf16.msra.mxu0 %v2535_v22  ;;  %v2539_v35 = vpack.c.bf16 %v192_v32, %v158_v30  ;;  %v261_v37 = vld [vmem:[%s5934_s1 + $0x778] sm:$0xff]  ;;  %v263_v41 = vld [vmem:[%s5934_s1 + $0x788] sm:$0xff] }
   0xa   :  { %v229_v38 = vld [vmem:[%s5934_s1 + $0x678] sm:$0xff]  ;;  %2572 = vmatpush1.bf16.msra.mxu1 %v2571_v26  ;;  %2538 = vmatprep.subr.bf16.mxu0 %v2537_v27  ;;  %v2575_v39 = vpack.c.bf16 %v194_v34, %v160_v33  ;;  %v2541_v40 = vpack.c.bf16 %v261_v37, %v227_v36  ;;  %v226_v42 = vld [vmem:[%s5934_s1 + $0x660] sm:$0xff]  ;;  %v260_v43 = vld [vmem:[%s5934_s1 + $0x770] sm:$0xff] }
   0xb   :  { %2574 = vmatprep.subr.bf16.mxu1 %v2573_v31  ;;  %v2577_v44 = vpack.c.bf16 %v263_v41, %v229_v38  ;;  %v228_v45 = vld [vmem:[%s5934_s1 + $0x670] sm:$0xff]  ;;  %v262_v46 = vld [vmem:[%s5934_s1 + $0x780] sm:$0xff]  ;;  %v295_v47 = vld [vmem:[%s5934_s1 + $0x888] sm:$0xff]  ;;  %v2543_v51 = vpack.c.bf16 %v260_v43, %v226_v42 }
   0xc   :  { %v329_v48 = vld [vmem:[%s5934_s1 + $0x998] sm:$0xff]  ;;  %v331_v50 = vld [vmem:[%s5934_s1 + $0x9a8] sm:$0xff]  ;;  %v2579_v52 = vpack.c.bf16 %v262_v46, %v228_v45  ;;  %v294_v54 = vld [vmem:[%s5934_s1 + $0x880] sm:$0xff] }
   0xd   :  { %v297_v49 = vld [vmem:[%s5934_s1 + $0x898] sm:$0xff]  ;;  %2540 = vmatpush1.bf16.msra.mxu0 %v2539_v35  ;;  %v2545_v53 = vpack.c.bf16 %v329_v48, %v295_v47  ;;  %v328_v55 = vld [vmem:[%s5934_s1 + $0x990] sm:$0xff]  ;;  %v330_v58 = vld [vmem:[%s5934_s1 + $0x9a0] sm:$0xff] }
   0xe   :  { %2576 = vmatpush1.bf16.msra.mxu1 %v2575_v39  ;;  %2542 = vmatprep.subr.bf16.mxu0 %v2541_v40  ;;  %v296_v56 = vld [vmem:[%s5934_s1 + $0x890] sm:$0xff]  ;;  %v2581_v57 = vpack.c.bf16 %v331_v50, %v297_v49  ;;  %v363_v59 = vld [vmem:[%s5934_s1 + $0xaa8] sm:$0xff]  ;;  %v397_v60 = vld [vmem:[%s5934_s1 + $0xbb8] sm:$0xff]  ;;  %v2547_v63 = vpack.c.bf16 %v328_v55, %v294_v54 }
   0xf   :  { %2578 = vmatprep.subr.bf16.mxu1 %v2577_v44  ;;  %v365_v61 = vld [vmem:[%s5934_s1 + $0xab8] sm:$0xff]  ;;  %v399_v62 = vld [vmem:[%s5934_s1 + $0xbc8] sm:$0xff]  ;;  %v2583_v0 = vpack.c.bf16 %v330_v58, %v296_v56  ;;  %v2549_v1 = vpack.c.bf16 %v397_v60, %v363_v59  ;;  %v362_v2 = vld [vmem:[%s5934_s1 + $0xaa0] sm:$0xff] }
  0x10   :  { %v396_v3 = vld [vmem:[%s5934_s1 + $0xbb0] sm:$0xff]  ;;  %v2585_v5 = vpack.c.bf16 %v399_v62, %v365_v61  ;;  %v398_v6 = vld [vmem:[%s5934_s1 + $0xbc0] sm:$0xff]  ;;  %v431_v7 = vld [vmem:[%s5934_s1 + $0xcc8] sm:$0xff] }
  0x11   :  { %2544 = vmatpush1.bf16.msra.mxu0 %v2543_v51  ;;  %v364_v4 = vld [vmem:[%s5934_s1 + $0xab0] sm:$0xff]  ;;  %v465_v8 = vld [vmem:[%s5934_s1 + $0xdd8] sm:$0xff]  ;;  %v467_v10 = vld [vmem:[%s5934_s1 + $0xde8] sm:$0xff]  ;;  %v2551_v11 = vpack.c.bf16 %v396_v3, %v362_v2 }
  0x12   :  { %2580 = vmatpush1.bf16.msra.mxu1 %v2579_v52  ;;  %2546 = vmatprep.subr.bf16.mxu0 %v2545_v53  ;;  %v433_v9 = vld [vmem:[%s5934_s1 + $0xcd8] sm:$0xff]  ;;  %v2587_v12 = vpack.c.bf16 %v398_v6, %v364_v4  ;;  %v2553_v13 = vpack.c.bf16 %v465_v8, %v431_v7  ;;  %v430_v14 = vld [vmem:[%s5934_s1 + $0xcc0] sm:$0xff]  ;;  %v464_v15 = vld [vmem:[%s5934_s1 + $0xdd0] sm:$0xff] }
  0x13   :  { %2582 = vmatprep.subr.bf16.mxu1 %v2581_v57  ;;  %v432_v16 = vld [vmem:[%s5934_s1 + $0xcd0] sm:$0xff]  ;;  %v2589_v17 = vpack.c.bf16 %v467_v10, %v433_v9  ;;  %v466_v18 = vld [vmem:[%s5934_s1 + $0xde0] sm:$0xff]  ;;  %v499_v19 = vld [vmem:[%s5934_s1 + $0xee8] sm:$0xff]  ;;  %v2555_v23 = vpack.c.bf16 %v464_v15, %v430_v14 }
  0x14   :  { %v533_v20 = vld [vmem:[%s5934_s1 + $0xff8] sm:$0xff]  ;;  %v535_v22 = vld [vmem:[%s5934_s1 + $0x1008] sm:$0xff]  ;;  %v2591_v25 = vpack.c.bf16 %v466_v18, %v432_v16  ;;  %v498_v27 = vld [vmem:[%s5934_s1 + $0xee0] sm:$0xff] }
  0x15   :  { %2548 = vmatpush1.bf16.msra.mxu0 %v2547_v63  ;;  %v501_v21 = vld [vmem:[%s5934_s1 + $0xef8] sm:$0xff]  ;;  %v3382_v24 = vld [vmem:[%s5935_s0 + $0x8] sm:$0xff]  ;;  %v2557_v26 = vpack.c.bf16 %v533_v20, %v499_v19  ;;  %v532_v28 = vld [vmem:[%s5934_s1 + $0xff0] sm:$0xff] }
  0x16   :  { %2584 = vmatpush1.bf16.msra.mxu1 %v2583_v0  ;;  %2550 = vmatprep.subr.bf16.mxu0 %v2549_v1  ;;  %v500_v29 = vld [vmem:[%s5934_s1 + $0xef0] sm:$0xff]  ;;  %v2593_v30 = vpack.c.bf16 %v535_v22, %v501_v21  ;;  %v534_v31 = vld [vmem:[%s5934_s1 + $0x1000] sm:$0xff]  ;;  %v567_v32 = vld [vmem:[%s5934_s1 + $0x1108] sm:$0xff]  ;;  %v2559_v36 = vpack.c.bf16 %v532_v28, %v498_v27 }
  0x17   :  { %2586 = vmatprep.subr.bf16.mxu1 %v2585_v5  ;;  %v601_v33 = vld [vmem:[%s5934_s1 + $0x1218] sm:$0xff]  ;;  %2461 = vmatprep.mubr.msk.f32.mxu0 %vm658_vm0, %v3382_v24  ;;  %v603_v35 = vld [vmem:[%s5934_s1 + $0x1228] sm:$0xff]  ;;  %v2595_v37 = vpack.c.bf16 %v534_v31, %v500_v29  ;;  %v566_v39 = vld [vmem:[%s5934_s1 + $0x1100] sm:$0xff] }
  0x18   :  { %v569_v34 = vld [vmem:[%s5934_s1 + $0x1118] sm:$0xff]  ;;  %2465 = vmatprep.mubr.msk.f32.mxu1 %vm658_vm0, %v3382_v24  ;;  %v2561_v38 = vpack.c.bf16 %v601_v33, %v567_v32  ;;  %v600_v40 = vld [vmem:[%s5934_s1 + $0x1210] sm:$0xff]  ;;  %v602_v43 = vld [vmem:[%s5934_s1 + $0x1220] sm:$0xff] }
  0x19   :  { %2552 = vmatpush1.bf16.msra.mxu0 %v2551_v11  ;;  %v568_v41 = vld [vmem:[%s5934_s1 + $0x1110] sm:$0xff]  ;;  %v2597_v42 = vpack.c.bf16 %v603_v35, %v569_v34  ;;  %v27_v44 = vld [vmem:[%s5934_s1 + $0x28] sm:$0xff]  ;;  %v61_v45 = vld [vmem:[%s5934_s1 + $0x138] sm:$0xff]  ;;  %v2563_v48 = vpack.c.bf16 %v600_v40, %v566_v39 }
  0x1a   :  { %2588 = vmatpush1.bf16.msra.mxu1 %v2587_v12  ;;  %2554 = vmatprep.subr.bf16.mxu0 %v2553_v13  ;;  %v29_v46 = vld [vmem:[%s5934_s1 + $0x38] sm:$0xff]  ;;  %v63_v47 = vld [vmem:[%s5934_s1 + $0x148] sm:$0xff]  ;;  %v2599_v49 = vpack.c.bf16 %v602_v43, %v568_v41  ;;  %v2601_v50 = vpack.c.bf16 %v61_v45, %v27_v44  ;;  %v26_v51 = vld [vmem:[%s5934_s1 + $0x20] sm:$0xff] }
  0x1b   :  { %2590 = vmatprep.subr.bf16.mxu1 %v2589_v17  ;;  %v60_v52 = vld [vmem:[%s5934_s1 + $0x130] sm:$0xff]  ;;  %v2637_v54 = vpack.c.bf16 %v63_v47, %v29_v46  ;;  %v62_v55 = vld [vmem:[%s5934_s1 + $0x140] sm:$0xff]  ;;  %v95_v56 = vld [vmem:[%s5934_s1 + $0x248] sm:$0xff] }
  0x1c   :  { %v28_v53 = vld [vmem:[%s5934_s1 + $0x30] sm:$0xff]  ;;  %v129_v57 = vld [vmem:[%s5934_s1 + $0x358] sm:$0xff]  ;;  %v131_v59 = vld [vmem:[%s5934_s1 + $0x368] sm:$0xff]  ;;  %v2603_v61 = vpack.c.bf16 %v60_v52, %v26_v51 }
  0x1d   :  { %2556 = vmatpush1.bf16.msra.mxu0 %v2555_v23  ;;  %v97_v58 = vld [vmem:[%s5934_s1 + $0x258] sm:$0xff]  ;;  %v3463_v60 = vld [vmem:[%s5935_s0] sm:$0xff]  ;;  %v2639_v62 = vpack.c.bf16 %v62_v55, %v28_v53  ;;  %v2605_v63 = vpack.c.bf16 %v129_v57, %v95_v56  ;;  %v128_v1 = vld [vmem:[%s5934_s1 + $0x350] sm:$0xff] }
  0x1e   :  { %2592 = vmatpush1.bf16.msra.mxu1 %v2591_v25  ;;  %2558 = vmatprep.subr.bf16.mxu0 %v2557_v26  ;;  %v94_v0 = vld [vmem:[%s5934_s1 + $0x240] sm:$0xff]  ;;  %v96_v2 = vld [vmem:[%s5934_s1 + $0x250] sm:$0xff]  ;;  %v2641_v3 = vpack.c.bf16 %v131_v59, %v97_v58  ;;  %v163_v5 = vld [vmem:[%s5934_s1 + $0x468] sm:$0xff] }
  0x1f   :  { %2594 = vmatprep.subr.bf16.mxu1 %v2593_v30  ;;  %v130_v4 = vld [vmem:[%s5934_s1 + $0x360] sm:$0xff]  ;;  %v197_v6 = vld [vmem:[%s5934_s1 + $0x578] sm:$0xff]  ;;  %v199_v8 = vld [vmem:[%s5934_s1 + $0x588] sm:$0xff]  ;;  %v2607_v9 = vpack.c.bf16 %v128_v1, %v94_v0 }
  0x20   :  { %v165_v7 = vld [vmem:[%s5934_s1 + $0x478] sm:$0xff]  ;;  %v162_v10 = vld [vmem:[%s5934_s1 + $0x460] sm:$0xff]  ;;  %v2643_v12 = vpack.c.bf16 %v130_v4, %v96_v2  ;;  %v2609_v13 = vpack.c.bf16 %v197_v6, %v163_v5  ;;  %v196_v14 = vld [vmem:[%s5934_s1 + $0x570] sm:$0xff] }
  0x21   :  { %2560 = vmatpush1.bf16.msra.mxu0 %v2559_v36  ;;  %v3497_v11 = vld [vmem:[%s5935_s0 + $0x18] sm:$0xff]  ;;  %v164_v15 = vld [vmem:[%s5934_s1 + $0x470] sm:$0xff]  ;;  %v2645_v17 = vpack.c.bf16 %v199_v8, %v165_v7  ;;  %v198_v18 = vld [vmem:[%s5934_s1 + $0x580] sm:$0xff]  ;;  %v2611_v23 = vpack.c.bf16 %v196_v14, %v162_v10 }
  0x22   :  { %2596 = vmatpush1.bf16.msra.mxu1 %v2595_v37  ;;  %2562 = vmatprep.subr.bf16.mxu0 %v2561_v38  ;;  %v3508_v16 = vld [vmem:[%s5935_s0 + $0x10] sm:$0xff]  ;;  %v231_v19 = vld [vmem:[%s5934_s1 + $0x688] sm:$0xff]  ;;  %v265_v20 = vld [vmem:[%s5934_s1 + $0x798] sm:$0xff]  ;;  %v2647_v27 = vpack.c.bf16 %v198_v18, %v164_v15 }
  0x23   :  { %2598 = vmatprep.subr.bf16.mxu1 %v2597_v42  ;;  %v233_v21 = vld [vmem:[%s5934_s1 + $0x698] sm:$0xff]  ;;  %v267_v22 = vld [vmem:[%s5934_s1 + $0x7a8] sm:$0xff]  ;;  %v3539_v26 = vld [vmem:[%s5935_s0 + $0x20] sm:$0xff]  ;;  %v2613_v28 = vpack.c.bf16 %v265_v20, %v231_v19 }
  0x24   :  { %v3534_v25 = vld [vmem:[%s5935_s0 + $0x28] sm:$0xff]  ;;  %v230_v29 = vld [vmem:[%s5934_s1 + $0x680] sm:$0xff]  ;;  %v264_v30 = vld [vmem:[%s5934_s1 + $0x790] sm:$0xff]  ;;  %v2649_v32 = vpack.c.bf16 %v267_v22, %v233_v21 }
  0x25   :  { %2564 = vmatpush1.bf16.msra.mxu0 %v2563_v48  ;;  %v232_v31 = vld [vmem:[%s5934_s1 + $0x690] sm:$0xff]  ;;  %v266_v33 = vld [vmem:[%s5934_s1 + $0x7a0] sm:$0xff]  ;;  %v299_v34 = vld [vmem:[%s5934_s1 + $0x8a8] sm:$0xff]  ;;  %v2615_v39 = vpack.c.bf16 %v264_v30, %v230_v29 }
  0x26   :  { %2600 = vmatpush1.bf16.msra.mxu1 %v2599_v49  ;;  %2602 = vmatprep.subr.bf16.mxu0 %v2601_v50  ;;  %v333_v35 = vld [vmem:[%s5934_s1 + $0x9b8] sm:$0xff]  ;;  %v335_v37 = vld [vmem:[%s5934_s1 + $0x9c8] sm:$0xff]  ;;  %v3579_v40 = vld [vmem:[%s5935_s0 + $0x30] sm:$0xff]  ;;  %v2651_v41 = vpack.c.bf16 %v266_v33, %v232_v31 }
  0x27   :  { %2638 = vmatprep.subr.bf16.mxu1 %v2637_v54  ;;  %v301_v36 = vld [vmem:[%s5934_s1 + $0x8b8] sm:$0xff]  ;;  %v2617_v42 = vpack.c.bf16 %v333_v35, %v299_v34  ;;  %v298_v43 = vld [vmem:[%s5934_s1 + $0x8a0] sm:$0xff]  ;;  %v332_v44 = vld [vmem:[%s5934_s1 + $0x9b0] sm:$0xff] }
  0x28   :  { %736 = vmatmul.mubr.f32.vlgmr.msra.gmra.mrb[0].mxu0 %v3463_v60  ;;  %v3573_v38 = vld [vmem:[%s5935_s0 + $0x38] sm:$0xff]  ;;  %v300_v45 = vld [vmem:[%s5934_s1 + $0x8b0] sm:$0xff]  ;;  %v2653_v46 = vpack.c.bf16 %v335_v37, %v301_v36  ;;  %v334_v47 = vld [vmem:[%s5934_s1 + $0x9c0] sm:$0xff]  ;;  %v2619_v52 = vpack.c.bf16 %v332_v44, %v298_v43 }
  0x29   :  { %825 = vmatmul.mubr.f32.vlgmr.msra.gmra.mrb[0].mxu1 %v3463_v60  ;;  %2604 = vmatpush1.bf16.msra.mxu0 %v2603_v61  ;;  %v367_v48 = vld [vmem:[%s5934_s1 + $0xac8] sm:$0xff]  ;;  %v401_v49 = vld [vmem:[%s5934_s1 + $0xbd8] sm:$0xff]  ;;  %v2655_v53 = vpack.c.bf16 %v334_v47, %v300_v45  ;;  %v366_v55 = vld [vmem:[%s5934_s1 + $0xac0] sm:$0xff] }
  0x2a   :  { %2640 = vmatpush1.bf16.msra.mxu1 %v2639_v62  ;;  %2606 = vmatprep.subr.bf16.mxu0 %v2605_v63  ;;  %v369_v50 = vld [vmem:[%s5934_s1 + $0xad8] sm:$0xff]  ;;  %v403_v51 = vld [vmem:[%s5934_s1 + $0xbe8] sm:$0xff]  ;;  %v2621_v54 = vpack.c.bf16 %v401_v49, %v367_v48  ;;  %v400_v56 = vld [vmem:[%s5934_s1 + $0xbd0] sm:$0xff] }
  0x2b   :  { %2642 = vmatprep.subr.bf16.mxu1 %v2641_v3  ;;  %2462 = vmatprep.mubr.msk.f32.mxu0 %vm658_vm0, %v3497_v11  ;;  %v368_v57 = vld [vmem:[%s5934_s1 + $0xad0] sm:$0xff]  ;;  %v2657_v58 = vpack.c.bf16 %v403_v51, %v369_v50  ;;  %v402_v59 = vld [vmem:[%s5934_s1 + $0xbe0] sm:$0xff]  ;;  %v435_v61 = vld [vmem:[%s5934_s1 + $0xce8] sm:$0xff]  ;;  %v2623_v1 = vpack.c.bf16 %v400_v56, %v366_v55 }
  0x2c   :  { %2466 = vmatprep.mubr.msk.f32.mxu1 %vm658_vm0, %v3497_v11  ;;  %742 = vmatmul.mubr.f32.gmra.mrb[2].mxu0 %v3508_v16  ;;  %v469_v62 = vld [vmem:[%s5934_s1 + $0xdf8] sm:$0xff]  ;;  %v471_v0 = vld [vmem:[%s5934_s1 + $0xe08] sm:$0xff]  ;;  %v2659_v2 = vpack.c.bf16 %v402_v59, %v368_v57  ;;  %v434_v4 = vld [vmem:[%s5934_s1 + $0xce0] sm:$0xff] }
  0x2d   :  { %2608 = vmatpush1.bf16.msra.mxu0 %v2607_v9  ;;  %831 = vmatmul.mubr.f32.gmra.mrb[2].mxu1 %v3508_v16  ;;  %v437_v63 = vld [vmem:[%s5934_s1 + $0xcf8] sm:$0xff]  ;;  %v2625_v3 = vpack.c.bf16 %v469_v62, %v435_v61  ;;  %v468_v5 = vld [vmem:[%s5934_s1 + $0xdf0] sm:$0xff]  ;;  %v470_v8 = vld [vmem:[%s5934_s1 + $0xe00] sm:$0xff] }
  0x2e   :  { %2644 = vmatpush1.bf16.msra.mxu1 %v2643_v12  ;;  %2610 = vmatprep.subr.bf16.mxu0 %v2609_v13  ;;  %v436_v6 = vld [vmem:[%s5934_s1 + $0xcf0] sm:$0xff]  ;;  %v2661_v7 = vpack.c.bf16 %v471_v0, %v437_v63  ;;  %v503_v9 = vld [vmem:[%s5934_s1 + $0xf08] sm:$0xff]  ;;  %v537_v10 = vld [vmem:[%s5934_s1 + $0x1018] sm:$0xff]  ;;  %v2627_v14 = vpack.c.bf16 %v468_v5, %v434_v4 }
  0x2f   :  { %2646 = vmatprep.subr.bf16.mxu1 %v2645_v17  ;;  %2463 = vmatprep.mubr.msk.f32.mxu0 %vm658_vm0, %v3534_v25  ;;  %v505_v12 = vld [vmem:[%s5934_s1 + $0xf18] sm:$0xff]  ;;  %v539_v13 = vld [vmem:[%s5934_s1 + $0x1028] sm:$0xff]  ;;  %v2663_v15 = vpack.c.bf16 %v470_v8, %v436_v6  ;;  %v2629_v17 = vpack.c.bf16 %v537_v10, %v503_v9  ;;  %v502_v18 = vld [vmem:[%s5934_s1 + $0xf00] sm:$0xff] }
  0x30   :  { %2467 = vmatprep.mubr.msk.f32.mxu1 %vm658_vm0, %v3534_v25  ;;  %748 = vmatmul.mubr.f32.gmra.mrb[4].mxu0 %v3539_v26  ;;  %v536_v19 = vld [vmem:[%s5934_s1 + $0x1010] sm:$0xff]  ;;  %v2665_v21 = vpack.c.bf16 %v539_v13, %v505_v12  ;;  %v538_v22 = vld [vmem:[%s5934_s1 + $0x1020] sm:$0xff]  ;;  %v607_v29 = vld [vmem:[%s5934_s1 + $0x1248] sm:$0xff] }
  0x31   :  { %2612 = vmatpush1.bf16.msra.mxu0 %v2611_v23  ;;  %837 = vmatmul.mubr.f32.gmra.mrb[4].mxu1 %v3539_v26  ;;  %v504_v20 = vld [vmem:[%s5934_s1 + $0xf10] sm:$0xff]  ;;  %v571_v23 = vld [vmem:[%s5934_s1 + $0x1128] sm:$0xff]  ;;  %v2631_v30 = vpack.c.bf16 %v536_v19, %v502_v18  ;;  %v570_v33 = vld [vmem:[%s5934_s1 + $0x1120] sm:$0xff] }
  0x32   :  { %2648 = vmatpush1.bf16.msra.mxu1 %v2647_v27  ;;  %2614 = vmatprep.subr.bf16.mxu0 %v2613_v28  ;;  %v605_v27 = vld [vmem:[%s5934_s1 + $0x1238] sm:$0xff]  ;;  %v2667_v31 = vpack.c.bf16 %v538_v22, %v504_v20  ;;  %v604_v34 = vld [vmem:[%s5934_s1 + $0x1230] sm:$0xff]  ;;  %v606_v37 = vld [vmem:[%s5934_s1 + $0x1240] sm:$0xff] }
  0x33   :  { %2650 = vmatprep.subr.bf16.mxu1 %v2649_v32  ;;  %2464 = vmatprep.mubr.msk.f32.mxu0 %vm658_vm0, %v3573_v38  ;;  %v573_v28 = vld [vmem:[%s5934_s1 + $0x1138] sm:$0xff]  ;;  %v2633_v32 = vpack.c.bf16 %v605_v27, %v571_v23  ;;  %v572_v35 = vld [vmem:[%s5934_s1 + $0x1130] sm:$0xff]  ;;  %v67_v43 = vld [vmem:[%s5934_s1 + $0x168] sm:$0xff]  ;;  %v2635_v44 = vpack.c.bf16 %v604_v34, %v570_v33 }
  0x34   :  { %2468 = vmatprep.mubr.msk.f32.mxu1 %vm658_vm0, %v3573_v38  ;;  %754 = vmatmul.mubr.f32.gmra.mrb[6].mxu0 %v3579_v40  ;;  %v2669_v36 = vpack.c.bf16 %v607_v29, %v573_v28  ;;  %v2671_v45 = vpack.c.bf16 %v606_v37, %v572_v35  ;;  %v30_v47 = vld [vmem:[%s5934_s1 + $0x40] sm:$0xff]  ;;  %v64_v48 = vld [vmem:[%s5934_s1 + $0x150] sm:$0xff]  ;;  %v135_v55 = vld [vmem:[%s5934_s1 + $0x388] sm:$0xff] }
  0x35   :  { %2616 = vmatpush1.bf16.msra.mxu0 %v2615_v39  ;;  %843 = vmatmul.mubr.f32.gmra.mrb[6].mxu1 %v3579_v40  ;;  %v31_v39 = vld [vmem:[%s5934_s1 + $0x48] sm:$0xff]  ;;  %v32_v49 = vld [vmem:[%s5934_s1 + $0x50] sm:$0xff]  ;;  %v66_v51 = vld [vmem:[%s5934_s1 + $0x160] sm:$0xff]  ;;  %v2675_v56 = vpack.c.bf16 %v64_v48, %v30_v47 }
  0x36   :  { %2652 = vmatpush1.bf16.msra.mxu1 %v2651_v41  ;;  %2618 = vmatprep.subr.bf16.mxu0 %v2617_v42  ;;  %v65_v41 = vld [vmem:[%s5934_s1 + $0x158] sm:$0xff]  ;;  %v2711_v57 = vpack.c.bf16 %v66_v51, %v32_v49  ;;  %v98_v59 = vld [vmem:[%s5934_s1 + $0x260] sm:$0xff]  ;;  %v132_v61 = vld [vmem:[%s5934_s1 + $0x370] sm:$0xff] }
  0x37   :  { %2654 = vmatprep.subr.bf16.mxu1 %v2653_v46  ;;  %2469 = vmatprep.mubr.msk.f32.mxu0 %vm658_vm0, %v3382_v24  ;;  %v33_v42 = vld [vmem:[%s5934_s1 + $0x58] sm:$0xff]  ;;  %v2673_v46 = vpack.c.bf16 %v65_v41, %v31_v39  ;;  %v100_v62 = vld [vmem:[%s5934_s1 + $0x270] sm:$0xff]  ;;  %v134_v0 = vld [vmem:[%s5934_s1 + $0x380] sm:$0xff]  ;;  %v2679_v5 = vpack.c.bf16 %v132_v61, %v98_v59 }
  0x38   :  { %2473 = vmatprep.mubr.msk.f32.mxu1 %vm658_vm0, %v3382_v24  ;;  %v2709_v50 = vpack.c.bf16 %v67_v43, %v33_v42  ;;  %v203_v4 = vld [vmem:[%s5934_s1 + $0x5a8] sm:$0xff]  ;;  %v2715_v6 = vpack.c.bf16 %v134_v0, %v100_v62  ;;  %v166_v8 = vld [vmem:[%s5934_s1 + $0x480] sm:$0xff]  ;;  %v200_v9 = vld [vmem:[%s5934_s1 + $0x590] sm:$0xff] }
  0x39   :  { %2620 = vmatpush1.bf16.msra.mxu0 %v2619_v52  ;;  %v99_v52 = vld [vmem:[%s5934_s1 + $0x268] sm:$0xff]  ;;  %v168_v10 = vld [vmem:[%s5934_s1 + $0x490] sm:$0xff]  ;;  %v202_v13 = vld [vmem:[%s5934_s1 + $0x5a0] sm:$0xff]  ;;  %v2683_v19 = vpack.c.bf16 %v200_v9, %v166_v8 }
  0x3a   :  { %2656 = vmatpush1.bf16.msra.mxu1 %v2655_v53  ;;  %2622 = vmatprep.subr.bf16.mxu0 %v2621_v54  ;;  %v133_v53 = vld [vmem:[%s5934_s1 + $0x378] sm:$0xff]  ;;  %v271_v18 = vld [vmem:[%s5934_s1 + $0x7c8] sm:$0xff]  ;;  %v2719_v20 = vpack.c.bf16 %v202_v13, %v168_v10  ;;  %v234_v22 = vld [vmem:[%s5934_s1 + $0x6a0] sm:$0xff] }
  0x3b   :  { %2658 = vmatprep.subr.bf16.mxu1 %v2657_v58  ;;  %v101_v54 = vld [vmem:[%s5934_s1 + $0x278] sm:$0xff]  ;;  %v2677_v58 = vpack.c.bf16 %v133_v53, %v99_v52  ;;  %v268_v23 = vld [vmem:[%s5934_s1 + $0x7b0] sm:$0xff]  ;;  %v270_v29 = vld [vmem:[%s5934_s1 + $0x7c0] sm:$0xff] }
  0x3c   :  { %v2713_v63 = vpack.c.bf16 %v135_v55, %v101_v54  ;;  %v236_v27 = vld [vmem:[%s5934_s1 + $0x6b0] sm:$0xff]  ;;  %v339_v33 = vld [vmem:[%s5934_s1 + $0x9e8] sm:$0xff]  ;;  %v2687_v34 = vpack.c.bf16 %v268_v23, %v234_v22  ;;  %v302_v37 = vld [vmem:[%s5934_s1 + $0x8c0] sm:$0xff] }
  0x3d   :  { %2624 = vmatpush1.bf16.msra.mxu0 %v2623_v1  ;;  %v167_v1 = vld [vmem:[%s5934_s1 + $0x488] sm:$0xff]  ;;  %v2723_v35 = vpack.c.bf16 %v270_v29, %v236_v27  ;;  %v336_v39 = vld [vmem:[%s5934_s1 + $0x9d0] sm:$0xff]  ;;  %v338_v43 = vld [vmem:[%s5934_s1 + $0x9e0] sm:$0xff] }
  0x3e   :  { %2660 = vmatpush1.bf16.msra.mxu1 %v2659_v2  ;;  %2626 = vmatprep.subr.bf16.mxu0 %v2625_v3  ;;  %v201_v2 = vld [vmem:[%s5934_s1 + $0x598] sm:$0xff]  ;;  %v304_v41 = vld [vmem:[%s5934_s1 + $0x8d0] sm:$0xff]  ;;  %v407_v47 = vld [vmem:[%s5934_s1 + $0xc08] sm:$0xff]  ;;  %v2691_v48 = vpack.c.bf16 %v336_v39, %v302_v37 }
  0x3f   :  { %2662 = vmatprep.subr.bf16.mxu1 %v2661_v7  ;;  %v169_v3 = vld [vmem:[%s5934_s1 + $0x498] sm:$0xff]  ;;  %v2681_v7 = vpack.c.bf16 %v201_v2, %v167_v1  ;;  %v634_v49 = vld [vmem:[%s5936_s2] sm:$0xff]  ;;  %v404_v53 = vld [vmem:[%s5934_s1 + $0xbf0] sm:$0xff] }
  0x40   :  { %v2717_v12 = vpack.c.bf16 %v203_v4, %v169_v3  ;;  %v370_v52 = vld [vmem:[%s5934_s1 + $0xae0] sm:$0xff]  ;;  %v372_v54 = vld [vmem:[%s5934_s1 + $0xaf0] sm:$0xff]  ;;  %v441_v59 = vld [vmem:[%s5934_s1 + $0xd18] sm:$0xff]  ;;  %640 = vperm.xlu0 %3160, %v634_v49  }
  0x41   :  { %2628 = vmatpush1.bf16.msra.mxu0 %v2627_v14  ;;  %v235_v14 = vld [vmem:[%s5934_s1 + $0x6a8] sm:$0xff]  ;;  %v2695_v62 = vpack.c.bf16 %v404_v53, %v370_v52  ;;  %v438_v1 = vld [vmem:[%s5934_s1 + $0xd00] sm:$0xff]  ;;  %v472_v2 = vld [vmem:[%s5934_s1 + $0xe10] sm:$0xff] }
  0x42   :  { %2664 = vmatpush1.bf16.msra.mxu1 %v2663_v15  ;;  %2630 = vmatprep.subr.bf16.mxu0 %v2629_v17  ;;  %v269_v15 = vld [vmem:[%s5934_s1 + $0x7b8] sm:$0xff]  ;;  %v475_v61 = vld [vmem:[%s5934_s1 + $0xe28] sm:$0xff]  ;;  %v440_v3 = vld [vmem:[%s5934_s1 + $0xd10] sm:$0xff]  ;;  %v2699_v10 = vpack.c.bf16 %v472_v2, %v438_v1 }
  0x43   :  { %2666 = vmatprep.subr.bf16.mxu1 %v2665_v21  ;;  %v237_v17 = vld [vmem:[%s5934_s1 + $0x6b8] sm:$0xff]  ;;  %v2685_v21 = vpack.c.bf16 %v269_v15, %v235_v14  ;;  %v2733_v4 = vpack.c.bf16 %v475_v61, %v441_v59  ;;  %v543_v9 = vld [vmem:[%s5934_s1 + $0x1048] sm:$0xff]  ;;  %v506_v14 = vld [vmem:[%s5934_s1 + $0xf20] sm:$0xff] }
  0x44   :  { %v2721_v28 = vpack.c.bf16 %v271_v18, %v237_v17  ;;  %v509_v8 = vld [vmem:[%s5934_s1 + $0xf38] sm:$0xff]  ;;  %v540_v15 = vld [vmem:[%s5934_s1 + $0x1030] sm:$0xff]  ;;  %v611_v23 = vld [vmem:[%s5934_s1 + $0x1268] sm:$0xff] }
  0x45   :  { %2632 = vmatpush1.bf16.msra.mxu0 %v2631_v30  ;;  %v303_v30 = vld [vmem:[%s5934_s1 + $0x8c8] sm:$0xff]  ;;  %v508_v17 = vld [vmem:[%s5934_s1 + $0xf30] sm:$0xff]  ;;  %v2737_v18 = vpack.c.bf16 %v543_v9, %v509_v8  ;;  %v577_v22 = vld [vmem:[%s5934_s1 + $0x1158] sm:$0xff]  ;;  %v2703_v27 = vpack.c.bf16 %v540_v15, %v506_v14 }
  0x46   :  { %2668 = vmatpush1.bf16.msra.mxu1 %v2667_v31  ;;  %2634 = vmatprep.subr.bf16.mxu0 %v2633_v32  ;;  %v337_v31 = vld [vmem:[%s5934_s1 + $0x9d8] sm:$0xff]  ;;  %v70_v49 = vld [vmem:[%s5934_s1 + $0x180] sm:$0xff]  ;;  %v136_v61 = vld [vmem:[%s5934_s1 + $0x390] sm:$0xff] }
  0x47   :  { %2670 = vmatprep.subr.bf16.mxu1 %v2669_v36  ;;  %v305_v32 = vld [vmem:[%s5934_s1 + $0x8d8] sm:$0xff]  ;;  %v2689_v36 = vpack.c.bf16 %v337_v31, %v303_v30  ;;  %v574_v31 = vld [vmem:[%s5934_s1 + $0x1140] sm:$0xff]  ;;  %v171_v1 = vld [vmem:[%s5934_s1 + $0x4a8] sm:$0xff] }
  0x48   :  { %v2725_v42 = vpack.c.bf16 %v339_v33, %v305_v32  ;;  %v608_v32 = vld [vmem:[%s5934_s1 + $0x1250] sm:$0xff]  ;;  %v69_v37 = vld [vmem:[%s5934_s1 + $0x178] sm:$0xff]  ;;  %v102_v59 = vld [vmem:[%s5934_s1 + $0x280] sm:$0xff] }
  0x49   :  { %2636 = vmatpush1.bf16.msra.mxu0 %v2635_v44  ;;  %v371_v44 = vld [vmem:[%s5934_s1 + $0xae8] sm:$0xff]  ;;  %v576_v33 = vld [vmem:[%s5934_s1 + $0x1150] sm:$0xff]  ;;  %v37_v39 = vld [vmem:[%s5934_s1 + $0x78] sm:$0xff] }
  0x4a   :  { %2672 = vmatpush1.bf16.msra.mxu1 %v2671_v45  ;;  %2674 = vmatprep.subr.bf16.mxu0 %v2673_v46  ;;  %v405_v45 = vld [vmem:[%s5934_s1 + $0xbf8] sm:$0xff]  ;;  %v170_v8 = vld [vmem:[%s5934_s1 + $0x4a0] sm:$0xff]  ;;  %v204_v9 = vld [vmem:[%s5934_s1 + $0x5b0] sm:$0xff] }
  0x4b   :  { %2710 = vmatprep.subr.bf16.mxu1 %v2709_v50  ;;  %v373_v46 = vld [vmem:[%s5934_s1 + $0xaf8] sm:$0xff]  ;;  %v2727_v50 = vpack.c.bf16 %v338_v43, %v304_v41  ;;  %v2693_v51 = vpack.c.bf16 %v405_v45, %v371_v44  ;;  %v71_v41 = vld [vmem:[%s5934_s1 + $0x188] sm:$0xff]  ;;  %v2707_v43 = vpack.c.bf16 %v608_v32, %v574_v31  ;;  %v34_v44 = vld [vmem:[%s5934_s1 + $0x60] sm:$0xff] }
  0x4c   :  { %914 = vmatmul.mubr.f32.vlgmr.msra.gmra.mrb[8].mxu0 %v3463_v60  ;;  %v2729_v55 = vpack.c.bf16 %v407_v47, %v373_v46  ;;  %v68_v47 = vld [vmem:[%s5934_s1 + $0x170] sm:$0xff]  ;;  %v137_v52 = vld [vmem:[%s5934_s1 + $0x398] sm:$0xff]  ;;  %v239_v14 = vld [vmem:[%s5934_s1 + $0x6c8] sm:$0xff] }
  0x4d   :  { %1003 = vmatmul.mubr.f32.vlgmr.msra.gmra.mrb[8].mxu1 %v3463_v60  ;;  %2676 = vmatpush1.bf16.msra.mxu0 %v2675_v56  ;;  %v406_v56 = vld [vmem:[%s5934_s1 + $0xc00] sm:$0xff]  ;;  %v637_v53 = vld [vmem:[%s5936_s2 + $0x18] sm:$0xff] }
  0x4e   :  { %2712 = vmatpush1.bf16.msra.mxu1 %v2711_v57  ;;  %2678 = vmatprep.subr.bf16.mxu0 %v2677_v58  ;;  %v439_v57 = vld [vmem:[%s5934_s1 + $0xd08] sm:$0xff]  ;;  %v473_v58 = vld [vmem:[%s5934_s1 + $0xe18] sm:$0xff] }
  0x4f   :  { %2714 = vmatprep.subr.bf16.mxu1 %v2713_v63  ;;  %2470 = vmatprep.mubr.msk.f32.mxu0 %vm658_vm0, %v3497_v11  ;;  %v2731_v63 = vpack.c.bf16 %v406_v56, %v372_v54  ;;  %v2697_v0 = vpack.c.bf16 %v473_v58, %v439_v57  ;;  %v105_v54 = vld [vmem:[%s5934_s1 + $0x298] sm:$0xff]  ;;  %v2747_v56 = vpack.c.bf16 %v68_v47, %v34_v44  ;;  %v375_v44 = vld [vmem:[%s5934_s1 + $0xb08] sm:$0xff] }
  0x50   :  { %2474 = vmatprep.mubr.msk.f32.mxu1 %vm658_vm0, %v3497_v11  ;;  %920 = vmatmul.mubr.f32.gmra.mrb[10].mxu0 %v3508_v16  ;;  %v205_v2 = vld [vmem:[%s5934_s1 + $0x5b8] sm:$0xff]  ;;  %v411_v47 = vld [vmem:[%s5934_s1 + $0xc28] sm:$0xff] }
  0x51   :  { %2680 = vmatpush1.bf16.msra.mxu0 %v2679_v5  ;;  %1009 = vmatmul.mubr.f32.gmra.mrb[10].mxu1 %v3508_v16  ;;  %v474_v5 = vld [vmem:[%s5934_s1 + $0xe20] sm:$0xff]  ;;  %v273_v15 = vld [vmem:[%s5934_s1 + $0x7d8] sm:$0xff] }
  0x52   :  { %2716 = vmatpush1.bf16.msra.mxu1 %v2715_v6  ;;  %2682 = vmatprep.subr.bf16.mxu0 %v2681_v7  ;;  %v507_v6 = vld [vmem:[%s5934_s1 + $0xf28] sm:$0xff]  ;;  %v541_v7 = vld [vmem:[%s5934_s1 + $0x1038] sm:$0xff] }
  0x53   :  { %2718 = vmatprep.subr.bf16.mxu1 %v2717_v12  ;;  %2471 = vmatprep.mubr.msk.f32.mxu0 %vm658_vm0, %v3534_v25  ;;  %v2735_v12 = vpack.c.bf16 %v474_v5, %v440_v3  ;;  %v2701_v13 = vpack.c.bf16 %v541_v7, %v507_v6  ;;  %v173_v3 = vld [vmem:[%s5934_s1 + $0x4b8] sm:$0xff]  ;;  %v2751_v5 = vpack.c.bf16 %v136_v61, %v102_v59  ;;  %v479_v59 = vld [vmem:[%s5934_s1 + $0xe48] sm:$0xff] }
  0x54   :  { %2475 = vmatprep.mubr.msk.f32.mxu1 %vm658_vm0, %v3534_v25  ;;  %926 = vmatmul.mubr.f32.gmra.mrb[12].mxu0 %v3539_v26  ;;  %v2753_v7 = vpack.c.bf16 %v205_v2, %v171_v1  ;;  %v341_v31 = vld [vmem:[%s5934_s1 + $0x9f8] sm:$0xff]  ;;  %v476_v1 = vld [vmem:[%s5934_s1 + $0xe30] sm:$0xff] }
  0x55   :  { %2684 = vmatpush1.bf16.msra.mxu0 %v2683_v19  ;;  %1015 = vmatmul.mubr.f32.gmra.mrb[12].mxu1 %v3539_v26  ;;  %v542_v19 = vld [vmem:[%s5934_s1 + $0x1040] sm:$0xff]  ;;  %v309_v32 = vld [vmem:[%s5934_s1 + $0x8f8] sm:$0xff]  ;;  %v444_v2 = vld [vmem:[%s5934_s1 + $0xd30] sm:$0xff] }
  0x56   :  { %2720 = vmatpush1.bf16.msra.mxu1 %v2719_v20  ;;  %2686 = vmatprep.subr.bf16.mxu0 %v2685_v21  ;;  %v575_v20 = vld [vmem:[%s5934_s1 + $0x1148] sm:$0xff]  ;;  %v609_v21 = vld [vmem:[%s5934_s1 + $0x1258] sm:$0xff]  ;;  %v2739_v29 = vpack.c.bf16 %v542_v19, %v508_v17  ;;  %v2755_v19 = vpack.c.bf16 %v204_v9, %v170_v8 }
  0x57   :  { %2722 = vmatprep.subr.bf16.mxu1 %v2721_v28  ;;  %2472 = vmatprep.mubr.msk.f32.mxu0 %vm658_vm0, %v3573_v38  ;;  %v635_v28 = vld [vmem:[%s5936_s2 + $0x8] sm:$0xff]  ;;  %v2705_v30 = vpack.c.bf16 %v609_v21, %v575_v20  ;;  %v241_v17 = vld [vmem:[%s5934_s1 + $0x6d8] sm:$0xff]  ;;  %v2757_v21 = vpack.c.bf16 %v273_v15, %v239_v14  ;;  %v512_v14 = vld [vmem:[%s5934_s1 + $0xf50] sm:$0xff] }
  0x58   :  { %2476 = vmatprep.mubr.msk.f32.mxu1 %vm658_vm0, %v3573_v38  ;;  %932 = vmatmul.mubr.f32.gmra.mrb[14].mxu0 %v3579_v40 }
  0x59   :  { %2688 = vmatpush1.bf16.msra.mxu0 %v2687_v34  ;;  %1021 = vmatmul.mubr.f32.gmra.mrb[14].mxu1 %v3579_v40  ;;  %v2741_v34 = vpack.c.bf16 %v611_v23, %v577_v22  ;;  %v238_v22 = vld [vmem:[%s5934_s1 + $0x6c0] sm:$0xff]  ;;  %v272_v23 = vld [vmem:[%s5934_s1 + $0x7d0] sm:$0xff] }
  0x5a   :  { %2724 = vmatpush1.bf16.msra.mxu1 %v2723_v35  ;;  %2690 = vmatprep.subr.bf16.mxu0 %v2689_v36  ;;  %v610_v35 = vld [vmem:[%s5934_s1 + $0x1260] sm:$0xff]  ;;  %v35_v36 = vld [vmem:[%s5934_s1 + $0x68] sm:$0xff] }
  0x5b   :  { %2726 = vmatprep.subr.bf16.mxu1 %v2725_v42  ;;  %2477 = vmatprep.mubr.msk.f32.mxu0 %vm658_vm0, %v3382_v24  ;;  %v636_v42 = vld [vmem:[%s5936_s2 + $0x10] sm:$0xff]  ;;  %v2743_v45 = vpack.c.bf16 %v610_v35, %v576_v33  ;;  %v2745_v46 = vpack.c.bf16 %v69_v37, %v35_v36  ;;  %v343_v33 = vld [vmem:[%s5934_s1 + $0xa08] sm:$0xff]  ;;  %v306_v37 = vld [vmem:[%s5934_s1 + $0x8e0] sm:$0xff] }
  0x5c   :  { %2481 = vmatprep.mubr.msk.f32.mxu1 %vm658_vm0, %v3382_v24  ;;  %645 = vperm.xlu0 %3160, %v635_v28  }
  0x5d   :  { %2692 = vmatpush1.bf16.msra.mxu0 %v2691_v48  ;;  %650 = vperm.xlu1 %3161, %v636_v42   ;;  %v36_v48 = vld [vmem:[%s5934_s1 + $0x70] sm:$0xff]  ;;  %v2797_v42 = vpack.c.bf16 %v343_v33, %v309_v32  ;;  %v614_v32 = vld [vmem:[%s5934_s1 + $0x1280] sm:$0xff]  ;;  %v39_v33 = vld [vmem:[%s5934_s1 + $0x88] sm:$0xff] }
  0x5e   :  { %2728 = vmatpush1.bf16.msra.mxu1 %v2727_v50  ;;  %2694 = vmatprep.subr.bf16.mxu0 %v2693_v51  ;;  %v2781_v50 = vpack.c.bf16 %v71_v41, %v37_v39  ;;  %v103_v51 = vld [vmem:[%s5934_s1 + $0x288] sm:$0xff]  ;;  %v2783_v57 = vpack.c.bf16 %v70_v49, %v36_v48  ;;  %v340_v39 = vld [vmem:[%s5934_s1 + $0x9f0] sm:$0xff] }
  0x5f   :  { %2730 = vmatprep.subr.bf16.mxu1 %v2729_v55  ;;  %v139_v55 = vld [vmem:[%s5934_s1 + $0x3a8] sm:$0xff]  ;;  %v2749_v58 = vpack.c.bf16 %v137_v52, %v103_v51  ;;  %v308_v41 = vld [vmem:[%s5934_s1 + $0x8f0] sm:$0xff]  ;;  %v2763_v48 = vpack.c.bf16 %v340_v39, %v306_v37  ;;  %v374_v51 = vld [vmem:[%s5934_s1 + $0xb00] sm:$0xff] }
  0x60   :  { %v408_v52 = vld [vmem:[%s5934_s1 + $0xc10] sm:$0xff] }
  0x61   :  { %2696 = vmatpush1.bf16.msra.mxu0 %v2695_v62  ;;  %655 = vperm.xlu1 %3161, %v637_v53   ;;  %v104_v62 = vld [vmem:[%s5934_s1 + $0x290] sm:$0xff]  ;;  %v2767_v61 = vpack.c.bf16 %v408_v52, %v374_v51 }
  0x62   :  { %2732 = vmatpush1.bf16.msra.mxu1 %v2731_v63  ;;  %2698 = vmatprep.subr.bf16.mxu0 %v2697_v0  ;;  %v2785_v63 = vpack.c.bf16 %v139_v55, %v105_v54  ;;  %v138_v0 = vld [vmem:[%s5934_s1 + $0x3a0] sm:$0xff]  ;;  %v376_v53 = vld [vmem:[%s5934_s1 + $0xb10] sm:$0xff] }
  0x63   :  { %2734 = vmatprep.subr.bf16.mxu1 %v2733_v4  ;;  %v207_v4 = vld [vmem:[%s5934_s1 + $0x5c8] sm:$0xff]  ;;  %v2787_v6 = vpack.c.bf16 %v138_v0, %v104_v62  ;;  %v410_v55 = vld [vmem:[%s5934_s1 + $0xc20] sm:$0xff] }
  0x64   :  { %v2803_v62 = vpack.c.bf16 %v410_v55, %v376_v53  ;;  %v442_v0 = vld [vmem:[%s5934_s1 + $0xd20] sm:$0xff]  ;;  %v140_v55 = vld [vmem:[%s5934_s1 + $0x3b0] sm:$0xff] }
  0x65   :  { %2700 = vmatpush1.bf16.msra.mxu0 %v2699_v10  ;;  %v172_v10 = vld [vmem:[%s5934_s1 + $0x4b0] sm:$0xff]  ;;  %v2771_v8 = vpack.c.bf16 %v476_v1, %v442_v0  ;;  %v4255_v0 = vld [vmem:[%s5935_s0] sm:$0xff] }
  0x66   :  { %2736 = vmatpush1.bf16.msra.mxu1 %v2735_v12  ;;  %2702 = vmatprep.subr.bf16.mxu0 %v2701_v13  ;;  %v2789_v12 = vpack.c.bf16 %v207_v4, %v173_v3  ;;  %v206_v13 = vld [vmem:[%s5934_s1 + $0x5c0] sm:$0xff]  ;;  %v511_v4 = vld [vmem:[%s5934_s1 + $0xf48] sm:$0xff] }
  0x67   :  { %2738 = vmatprep.subr.bf16.mxu1 %v2737_v18  ;;  %v275_v18 = vld [vmem:[%s5934_s1 + $0x7e8] sm:$0xff]  ;;  %v2791_v20 = vpack.c.bf16 %v206_v13, %v172_v10  ;;  %v478_v3 = vld [vmem:[%s5934_s1 + $0xe40] sm:$0xff]  ;;  %v544_v13 = vld [vmem:[%s5934_s1 + $0x1050] sm:$0xff] }
  0x68   :  { %v2793_v28 = vpack.c.bf16 %v275_v18, %v241_v17  ;;  %v2807_v9 = vpack.c.bf16 %v478_v3, %v444_v2  ;;  %v546_v17 = vld [vmem:[%s5934_s1 + $0x1060] sm:$0xff]  ;;  %v579_v18 = vld [vmem:[%s5934_s1 + $0x1168] sm:$0xff]  ;;  %v208_v3 = vld [vmem:[%s5934_s1 + $0x5d0] sm:$0xff] }
  0x69   :  { %2704 = vmatpush1.bf16.msra.mxu0 %v2703_v27  ;;  %v240_v27 = vld [vmem:[%s5934_s1 + $0x6d0] sm:$0xff] }
  0x6a   :  { %2740 = vmatpush1.bf16.msra.mxu1 %v2739_v29  ;;  %2706 = vmatprep.subr.bf16.mxu0 %v2705_v30  ;;  %v274_v29 = vld [vmem:[%s5934_s1 + $0x7e0] sm:$0xff]  ;;  %v307_v30 = vld [vmem:[%s5934_s1 + $0x8e8] sm:$0xff] }
  0x6b   :  { %2742 = vmatprep.subr.bf16.mxu1 %v2741_v34  ;;  %v2759_v34 = vpack.c.bf16 %v272_v23, %v238_v22  ;;  %v2795_v35 = vpack.c.bf16 %v274_v29, %v240_v27  ;;  %v2761_v36 = vpack.c.bf16 %v341_v31, %v307_v30  ;;  %v2811_v23 = vpack.c.bf16 %v546_v17, %v512_v14  ;;  %v612_v29 = vld [vmem:[%s5934_s1 + $0x1270] sm:$0xff] }
  0x6c   :  { %v580_v30 = vld [vmem:[%s5934_s1 + $0x1170] sm:$0xff] }
  0x6d   :  { %2708 = vmatpush1.bf16.msra.mxu0 %v2707_v43  ;;  %v342_v43 = vld [vmem:[%s5934_s1 + $0xa00] sm:$0xff]  ;;  %v2815_v39 = vpack.c.bf16 %v614_v32, %v580_v30  ;;  %v276_v17 = vld [vmem:[%s5934_s1 + $0x7f0] sm:$0xff]  ;;  %v379_v32 = vld [vmem:[%s5934_s1 + $0xb28] sm:$0xff] }
  0x6e   :  { %2744 = vmatpush1.bf16.msra.mxu1 %v2743_v45  ;;  %2746 = vmatprep.subr.bf16.mxu0 %v2745_v46  ;;  %v409_v45 = vld [vmem:[%s5934_s1 + $0xc18] sm:$0xff]  ;;  %v2799_v49 = vpack.c.bf16 %v342_v43, %v308_v41  ;;  %v72_v43 = vld [vmem:[%s5934_s1 + $0x190] sm:$0xff] }
  0x6f   :  { %2782 = vmatprep.subr.bf16.mxu1 %v2781_v50  ;;  %v377_v46 = vld [vmem:[%s5934_s1 + $0xb18] sm:$0xff]  ;;  %v2765_v50 = vpack.c.bf16 %v409_v45, %v375_v44  ;;  %v40_v44 = vld [vmem:[%s5934_s1 + $0x90] sm:$0xff] }
  0x70   :  { %1092 = vmatmul.mubr.f32.vlgmr.msra.gmra.mrb[16].mxu0 %v3463_v60  ;;  %v2801_v54 = vpack.c.bf16 %v411_v47, %v377_v46  ;;  %v74_v46 = vld [vmem:[%s5934_s1 + $0x1a0] sm:$0xff]  ;;  %v107_v47 = vld [vmem:[%s5934_s1 + $0x2a8] sm:$0xff]  ;;  %v344_v30 = vld [vmem:[%s5934_s1 + $0xa10] sm:$0xff] }
  0x71   :  { %1181 = vmatmul.mubr.f32.vlgmr.msra.gmra.mrb[16].mxu1 %v3463_v60  ;;  %2748 = vmatpush1.bf16.msra.mxu0 %v2747_v56  ;;  %v443_v56 = vld [vmem:[%s5934_s1 + $0xd28] sm:$0xff]  ;;  %v2855_v52 = vpack.c.bf16 %v74_v46, %v40_v44 }
  0x72   :  { %2784 = vmatpush1.bf16.msra.mxu1 %v2783_v57  ;;  %2750 = vmatprep.subr.bf16.mxu0 %v2749_v58  ;;  %v477_v57 = vld [vmem:[%s5934_s1 + $0xe38] sm:$0xff]  ;;  %v447_v44 = vld [vmem:[%s5934_s1 + $0xd48] sm:$0xff] }
  0x73   :  { %2786 = vmatprep.subr.bf16.mxu1 %v2785_v63  ;;  %2478 = vmatprep.mubr.msk.f32.mxu0 %vm658_vm0, %v3497_v11  ;;  %v445_v58 = vld [vmem:[%s5934_s1 + $0xd38] sm:$0xff]  ;;  %v2769_v63 = vpack.c.bf16 %v477_v57, %v443_v56  ;;  %v108_v56 = vld [vmem:[%s5934_s1 + $0x2b0] sm:$0xff]  ;;  %v4369_v46 = vld [vmem:[%s5935_s0 + $0x8] sm:$0xff] }
  0x74   :  { %2482 = vmatprep.mubr.msk.f32.mxu1 %vm658_vm0, %v3497_v11  ;;  %1098 = vmatmul.mubr.f32.gmra.mrb[18].mxu0 %v3508_v16 }
  0x75   :  { %2752 = vmatpush1.bf16.msra.mxu0 %v2751_v5  ;;  %1187 = vmatmul.mubr.f32.gmra.mrb[18].mxu1 %v3508_v16  ;;  %v545_v5 = vld [vmem:[%s5934_s1 + $0x1058] sm:$0xff] }
  0x76   :  { %2788 = vmatpush1.bf16.msra.mxu1 %v2787_v6  ;;  %2754 = vmatprep.subr.bf16.mxu0 %v2753_v7  ;;  %v513_v6 = vld [vmem:[%s5934_s1 + $0xf58] sm:$0xff]  ;;  %v547_v7 = vld [vmem:[%s5934_s1 + $0x1068] sm:$0xff]  ;;  %v2773_v10 = vpack.c.bf16 %v545_v5, %v511_v4  ;;  %v176_v4 = vld [vmem:[%s5934_s1 + $0x4d0] sm:$0xff] }
  0x77   :  { %2790 = vmatprep.subr.bf16.mxu1 %v2789_v12  ;;  %2479 = vmatprep.mubr.msk.f32.mxu0 %vm658_vm0, %v3534_v25  ;;  %v510_v12 = vld [vmem:[%s5934_s1 + $0xf40] sm:$0xff]  ;;  %v2809_v15 = vpack.c.bf16 %v547_v7, %v513_v6  ;;  %v243_v7 = vld [vmem:[%s5934_s1 + $0x6e8] sm:$0xff] }
  0x78   :  { %2483 = vmatprep.mubr.msk.f32.mxu1 %vm658_vm0, %v3534_v25  ;;  %1104 = vmatmul.mubr.f32.gmra.mrb[20].mxu0 %v3539_v26  ;;  %v2775_v22 = vpack.c.bf16 %v544_v13, %v510_v12  ;;  %v210_v6 = vld [vmem:[%s5934_s1 + $0x5e0] sm:$0xff] }
  0x79   :  { %2756 = vmatpush1.bf16.msra.mxu0 %v2755_v19  ;;  %1193 = vmatmul.mubr.f32.gmra.mrb[20].mxu1 %v3539_v26  ;;  %v613_v19 = vld [vmem:[%s5934_s1 + $0x1278] sm:$0xff]  ;;  %v2863_v13 = vpack.c.bf16 %v210_v6, %v176_v4  ;;  %v550_v4 = vld [vmem:[%s5934_s1 + $0x1080] sm:$0xff] }
  0x7a   :  { %2792 = vmatpush1.bf16.msra.mxu1 %v2791_v20  ;;  %2758 = vmatprep.subr.bf16.mxu0 %v2757_v21  ;;  %v581_v20 = vld [vmem:[%s5934_s1 + $0x1178] sm:$0xff]  ;;  %v615_v21 = vld [vmem:[%s5934_s1 + $0x1288] sm:$0xff]  ;;  %v2777_v27 = vpack.c.bf16 %v613_v19, %v579_v18 }
  0x7b   :  { %2794 = vmatprep.subr.bf16.mxu1 %v2793_v28  ;;  %2480 = vmatprep.mubr.msk.f32.mxu0 %vm658_vm0, %v3573_v38  ;;  %v578_v28 = vld [vmem:[%s5934_s1 + $0x1160] sm:$0xff]  ;;  %v2813_v31 = vpack.c.bf16 %v615_v21, %v581_v20  ;;  %v311_v19 = vld [vmem:[%s5934_s1 + $0x908] sm:$0xff]  ;;  %v345_v20 = vld [vmem:[%s5934_s1 + $0xa18] sm:$0xff] }
  0x7c   :  { %2484 = vmatprep.mubr.msk.f32.mxu1 %vm658_vm0, %v3573_v38  ;;  %1110 = vmatmul.mubr.f32.gmra.mrb[22].mxu0 %v3579_v40  ;;  %v2779_v37 = vpack.c.bf16 %v612_v29, %v578_v28  ;;  %v313_v21 = vld [vmem:[%s5934_s1 + $0x918] sm:$0xff]  ;;  %v2833_v28 = vpack.c.bf16 %v345_v20, %v311_v19  ;;  %v310_v29 = vld [vmem:[%s5934_s1 + $0x900] sm:$0xff]  ;;  %v79_v20 = vld [vmem:[%s5934_s1 + $0x1c8] sm:$0xff] }
  0x7d   :  { %2760 = vmatpush1.bf16.msra.mxu0 %v2759_v34  ;;  %1199 = vmatmul.mubr.f32.gmra.mrb[22].mxu1 %v3579_v40  ;;  %v73_v34 = vld [vmem:[%s5934_s1 + $0x198] sm:$0xff] }
  0x7e   :  { %2796 = vmatpush1.bf16.msra.mxu1 %v2795_v35  ;;  %2762 = vmatprep.subr.bf16.mxu0 %v2761_v36  ;;  %v41_v35 = vld [vmem:[%s5934_s1 + $0x98] sm:$0xff]  ;;  %v75_v36 = vld [vmem:[%s5934_s1 + $0x1a8] sm:$0xff]  ;;  %v2817_v41 = vpack.c.bf16 %v73_v34, %v39_v33 }
  0x7f   :  { %2798 = vmatprep.subr.bf16.mxu1 %v2797_v42  ;;  %2485 = vmatprep.mubr.msk.f32.mxu0 %vm658_vm0, %v3382_v24  ;;  %v38_v42 = vld [vmem:[%s5934_s1 + $0x80] sm:$0xff]  ;;  %v2853_v45 = vpack.c.bf16 %v75_v36, %v41_v35  ;;  %v413_v33 = vld [vmem:[%s5934_s1 + $0xc38] sm:$0xff]  ;;  %v415_v35 = vld [vmem:[%s5934_s1 + $0xc48] sm:$0xff]  ;;  %v2835_v36 = vpack.c.bf16 %v344_v30, %v310_v29 }
  0x80   :  { %2489 = vmatprep.mubr.msk.f32.mxu1 %vm658_vm0, %v3382_v24  ;;  %v2805_v24 = vpack.c.bf16 %v479_v59, %v445_v58  ;;  %v2819_v51 = vpack.c.bf16 %v72_v43, %v38_v42  ;;  %v142_v58 = vld [vmem:[%s5934_s1 + $0x3c0] sm:$0xff]  ;;  %v175_v59 = vld [vmem:[%s5934_s1 + $0x4c8] sm:$0xff]  ;;  %v381_v34 = vld [vmem:[%s5934_s1 + $0xb38] sm:$0xff] }
  0x81   :  { %2764 = vmatpush1.bf16.msra.mxu0 %v2763_v48  ;;  %v141_v48 = vld [vmem:[%s5934_s1 + $0x3b8] sm:$0xff]  ;;  %v412_v42 = vld [vmem:[%s5934_s1 + $0xc30] sm:$0xff]  ;;  %v2873_v43 = vpack.c.bf16 %v415_v35, %v381_v34 }
  0x82   :  { %2800 = vmatpush1.bf16.msra.mxu1 %v2799_v49  ;;  %2766 = vmatprep.subr.bf16.mxu0 %v2765_v50  ;;  %v109_v49 = vld [vmem:[%s5934_s1 + $0x2b8] sm:$0xff]  ;;  %v143_v50 = vld [vmem:[%s5934_s1 + $0x3c8] sm:$0xff]  ;;  %v2821_v53 = vpack.c.bf16 %v141_v48, %v107_v47  ;;  %v44_v29 = vld [vmem:[%s5934_s1 + $0xb0] sm:$0xff] }
  0x83   :  { %2802 = vmatprep.subr.bf16.mxu1 %v2801_v54  ;;  %v106_v54 = vld [vmem:[%s5934_s1 + $0x2a0] sm:$0xff]  ;;  %v2857_v57 = vpack.c.bf16 %v143_v50, %v109_v49  ;;  %v449_v47 = vld [vmem:[%s5934_s1 + $0xd58] sm:$0xff]  ;;  %v483_v48 = vld [vmem:[%s5934_s1 + $0xe68] sm:$0xff] }
  0x84   :  { %v2823_v1 = vpack.c.bf16 %v140_v55, %v106_v54  ;;  %v448_v54 = vld [vmem:[%s5934_s1 + $0xd50] sm:$0xff]  ;;  %v2877_v55 = vpack.c.bf16 %v483_v48, %v449_v47  ;;  %v617_v6 = vld [vmem:[%s5934_s1 + $0x1298] sm:$0xff] }
  0x85   :  { %2768 = vmatpush1.bf16.msra.mxu0 %v2767_v61  ;;  %v209_v61 = vld [vmem:[%s5934_s1 + $0x5d8] sm:$0xff] }
  0x86   :  { %2804 = vmatpush1.bf16.msra.mxu1 %v2803_v62  ;;  %2770 = vmatprep.subr.bf16.mxu0 %v2769_v63  ;;  %v177_v62 = vld [vmem:[%s5934_s1 + $0x4d8] sm:$0xff]  ;;  %v211_v63 = vld [vmem:[%s5934_s1 + $0x5e8] sm:$0xff]  ;;  %v2825_v2 = vpack.c.bf16 %v209_v61, %v175_v59 }
  0x87   :  { %2806 = vmatprep.subr.bf16.mxu1 %v2805_v24  ;;  %v174_v24 = vld [vmem:[%s5934_s1 + $0x4c0] sm:$0xff]  ;;  %v2861_v5 = vpack.c.bf16 %v211_v63, %v177_v62  ;;  %v517_v59 = vld [vmem:[%s5934_s1 + $0xf78] sm:$0xff]  ;;  %v551_v61 = vld [vmem:[%s5934_s1 + $0x1088] sm:$0xff] }
  0x88   :  { %v2827_v12 = vpack.c.bf16 %v208_v3, %v174_v24  ;;  %v516_v24 = vld [vmem:[%s5934_s1 + $0xf70] sm:$0xff]  ;;  %v2881_v3 = vpack.c.bf16 %v551_v61, %v517_v59  ;;  %v45_v19 = vld [vmem:[%s5934_s1 + $0xb8] sm:$0xff]  ;;  %v283_v59 = vld [vmem:[%s5934_s1 + $0x828] sm:$0xff] }
  0x89   :  { %2772 = vmatpush1.bf16.msra.mxu0 %v2771_v8  ;;  %v277_v8 = vld [vmem:[%s5934_s1 + $0x7f8] sm:$0xff]  ;;  %v2925_v30 = vpack.c.bf16 %v79_v20, %v45_v19  ;;  %v4539_v61 = vld [vmem:[%s5935_s0 + $0x10] sm:$0xff]  ;;  %v383_v19 = vld [vmem:[%s5934_s1 + $0xb48] sm:$0xff] }
  0x8a   :  { %2808 = vmatpush1.bf16.msra.mxu1 %v2807_v9  ;;  %2774 = vmatprep.subr.bf16.mxu0 %v2773_v10  ;;  %v245_v9 = vld [vmem:[%s5934_s1 + $0x6f8] sm:$0xff]  ;;  %v279_v10 = vld [vmem:[%s5934_s1 + $0x808] sm:$0xff]  ;;  %v2829_v14 = vpack.c.bf16 %v277_v8, %v243_v7 }
  0x8b   :  { %2810 = vmatprep.subr.bf16.mxu1 %v2809_v15  ;;  %v242_v15 = vld [vmem:[%s5934_s1 + $0x6e0] sm:$0xff]  ;;  %v2865_v18 = vpack.c.bf16 %v279_v10, %v245_v9  ;;  %v585_v7 = vld [vmem:[%s5934_s1 + $0x1198] sm:$0xff]  ;;  %v619_v8 = vld [vmem:[%s5934_s1 + $0x12a8] sm:$0xff]  ;;  %v2883_v10 = vpack.c.bf16 %v550_v4, %v516_v24 }
  0x8c   :  { %v248_v24 = vld [vmem:[%s5934_s1 + $0x710] sm:$0xff]  ;;  %v282_v4 = vld [vmem:[%s5934_s1 + $0x820] sm:$0xff]  ;;  %v417_v20 = vld [vmem:[%s5934_s1 + $0xc58] sm:$0xff] }
  0x8d   :  { %2776 = vmatpush1.bf16.msra.mxu0 %v2775_v22  ;;  %v347_v22 = vld [vmem:[%s5934_s1 + $0xa28] sm:$0xff] }
  0x8e   :  { %2812 = vmatpush1.bf16.msra.mxu1 %v2811_v23  ;;  %2778 = vmatprep.subr.bf16.mxu0 %v2777_v27  ;;  %v2831_v23 = vpack.c.bf16 %v276_v17, %v242_v15  ;;  %v584_v15 = vld [vmem:[%s5934_s1 + $0x1190] sm:$0xff]  ;;  %v2885_v17 = vpack.c.bf16 %v619_v8, %v585_v7  ;;  %v4564_v7 = vld [vmem:[%s5935_s0 + $0x28] sm:$0xff]  ;;  %v317_v8 = vld [vmem:[%s5934_s1 + $0x938] sm:$0xff] }
  0x8f   :  { %2814 = vmatprep.subr.bf16.mxu1 %v2813_v31  ;;  %v2869_v31 = vpack.c.bf16 %v347_v22, %v313_v21 }
  0x91   :  { %2780 = vmatpush1.bf16.msra.mxu0 %v2779_v37 }
  0x92   :  { %2816 = vmatpush1.bf16.msra.mxu1 %v2815_v39  ;;  %2818 = vmatprep.subr.bf16.mxu0 %v2817_v41  ;;  %v2837_v39 = vpack.c.bf16 %v413_v33, %v379_v32  ;;  %v378_v41 = vld [vmem:[%s5934_s1 + $0xb20] sm:$0xff]  ;;  %v113_v32 = vld [vmem:[%s5934_s1 + $0x2d8] sm:$0xff]  ;;  %v147_v33 = vld [vmem:[%s5934_s1 + $0x3e8] sm:$0xff] }
  0x93   :  { %2854 = vmatprep.subr.bf16.mxu1 %v2853_v45  ;;  %v481_v45 = vld [vmem:[%s5934_s1 + $0xe58] sm:$0xff]  ;;  %v2839_v49 = vpack.c.bf16 %v412_v42, %v378_v41  ;;  %v112_v41 = vld [vmem:[%s5934_s1 + $0x2d0] sm:$0xff]  ;;  %v2929_v42 = vpack.c.bf16 %v147_v33, %v113_v32  ;;  %v418_v33 = vld [vmem:[%s5934_s1 + $0xc60] sm:$0xff] }
  0x94   :  { %1270 = vmatmul.mubr.f32.vlgmr.msra.gmra.mrb[24].mxu0 %v3463_v60  ;;  %v2859_v60 = vpack.c.bf16 %v142_v58, %v108_v56  ;;  %v482_v56 = vld [vmem:[%s5934_s1 + $0xe60] sm:$0xff]  ;;  %v549_v58 = vld [vmem:[%s5934_s1 + $0x1078] sm:$0xff] }
  0x95   :  { %1359 = vmatmul.mubr.f32.vlgmr.msra.gmra.mrb[24].mxu1 %v4255_v0  ;;  %2820 = vmatpush1.bf16.msra.mxu0 %v2819_v51  ;;  %v2841_v51 = vpack.c.bf16 %v481_v45, %v447_v44  ;;  %v2879_v63 = vpack.c.bf16 %v482_v56, %v448_v54  ;;  %v181_v44 = vld [vmem:[%s5934_s1 + $0x4f8] sm:$0xff]  ;;  %v215_v45 = vld [vmem:[%s5934_s1 + $0x608] sm:$0xff]  ;;  %v214_v54 = vld [vmem:[%s5934_s1 + $0x600] sm:$0xff] }
  0x96   :  { %2856 = vmatpush1.bf16.msra.mxu1 %v2855_v52  ;;  %2822 = vmatprep.subr.bf16.mxu0 %v2821_v53  ;;  %v446_v52 = vld [vmem:[%s5934_s1 + $0xd40] sm:$0xff]  ;;  %v480_v53 = vld [vmem:[%s5934_s1 + $0xe50] sm:$0xff]  ;;  %v281_v56 = vld [vmem:[%s5934_s1 + $0x818] sm:$0xff] }
  0x97   :  { %2858 = vmatprep.subr.bf16.mxu1 %v2857_v57  ;;  %2486 = vmatprep.mubr.msk.f32.mxu0 %vm658_vm0, %v3497_v11  ;;  %v515_v57 = vld [vmem:[%s5934_s1 + $0xf68] sm:$0xff]  ;;  %v2843_v62 = vpack.c.bf16 %v480_v53, %v446_v52  ;;  %v180_v52 = vld [vmem:[%s5934_s1 + $0x4f0] sm:$0xff]  ;;  %v2933_v53 = vpack.c.bf16 %v215_v45, %v181_v44  ;;  %v486_v45 = vld [vmem:[%s5934_s1 + $0xe80] sm:$0xff] }
  0x98   :  { %2490 = vmatprep.mubr.msk.f32.mxu1 %vm658_vm0, %v3497_v11  ;;  %1276 = vmatmul.mubr.f32.gmra.mrb[26].mxu0 %v3508_v16  ;;  %v244_v11 = vld [vmem:[%s5934_s1 + $0x6f0] sm:$0xff] }
  0x99   :  { %2824 = vmatpush1.bf16.msra.mxu0 %v2823_v1  ;;  %1365 = vmatmul.mubr.f32.gmra.mrb[26].mxu1 %v3508_v16  ;;  %v278_v16 = vld [vmem:[%s5934_s1 + $0x800] sm:$0xff]  ;;  %v2845_v1 = vpack.c.bf16 %v549_v58, %v515_v57  ;;  %v4524_v57 = vld [vmem:[%s5935_s0 + $0x18] sm:$0xff] }
  0x9a   :  { %2860 = vmatpush1.bf16.msra.mxu1 %v2859_v60  ;;  %2826 = vmatprep.subr.bf16.mxu0 %v2825_v2  ;;  %v2867_v27 = vpack.c.bf16 %v278_v16, %v244_v11  ;;  %v514_v60 = vld [vmem:[%s5934_s1 + $0xf60] sm:$0xff]  ;;  %v548_v2 = vld [vmem:[%s5934_s1 + $0x1070] sm:$0xff]  ;;  %v77_v16 = vld [vmem:[%s5934_s1 + $0x1b8] sm:$0xff] }
  0x9b   :  { %2862 = vmatprep.subr.bf16.mxu1 %v2861_v5  ;;  %2487 = vmatprep.mubr.msk.f32.mxu0 %vm658_vm0, %v3534_v25  ;;  %v583_v5 = vld [vmem:[%s5934_s1 + $0x1188] sm:$0xff]  ;;  %v2847_v9 = vpack.c.bf16 %v548_v2, %v514_v60  ;;  %v618_v11 = vld [vmem:[%s5934_s1 + $0x12a0] sm:$0xff]  ;;  %v249_v58 = vld [vmem:[%s5934_s1 + $0x718] sm:$0xff] }
  0x9c   :  { %2491 = vmatprep.mubr.msk.f32.mxu1 %vm658_vm0, %v3534_v25  ;;  %1282 = vmatmul.mubr.f32.gmra.mrb[28].mxu0 %v3539_v26  ;;  %v312_v25 = vld [vmem:[%s5934_s1 + $0x910] sm:$0xff]  ;;  %v2887_v22 = vpack.c.bf16 %v618_v11, %v584_v15  ;;  %v246_v60 = vld [vmem:[%s5934_s1 + $0x700] sm:$0xff] }
  0x9d   :  { %2828 = vmatpush1.bf16.msra.mxu0 %v2827_v12  ;;  %1371 = vmatmul.mubr.f32.gmra.mrb[28].mxu1 %v3539_v26  ;;  %v346_v26 = vld [vmem:[%s5934_s1 + $0xa20] sm:$0xff]  ;;  %v2849_v12 = vpack.c.bf16 %v617_v6, %v583_v5  ;;  %v280_v2 = vld [vmem:[%s5934_s1 + $0x810] sm:$0xff]  ;;  %v315_v5 = vld [vmem:[%s5934_s1 + $0x928] sm:$0xff] }
  0x9e   :  { %2864 = vmatpush1.bf16.msra.mxu1 %v2863_v13  ;;  %2830 = vmatprep.subr.bf16.mxu0 %v2829_v14  ;;  %v2871_v37 = vpack.c.bf16 %v346_v26, %v312_v25  ;;  %v582_v13 = vld [vmem:[%s5934_s1 + $0x1180] sm:$0xff]  ;;  %v616_v14 = vld [vmem:[%s5934_s1 + $0x1290] sm:$0xff]  ;;  %v145_v26 = vld [vmem:[%s5934_s1 + $0x3d8] sm:$0xff] }
  0x9f   :  { %2866 = vmatprep.subr.bf16.mxu1 %v2865_v18  ;;  %2488 = vmatprep.mubr.msk.f32.mxu0 %vm658_vm0, %v3573_v38  ;;  %v43_v18 = vld [vmem:[%s5934_s1 + $0xa8] sm:$0xff]  ;;  %v2851_v21 = vpack.c.bf16 %v616_v14, %v582_v13  ;;  %v78_v25 = vld [vmem:[%s5934_s1 + $0x1c0] sm:$0xff]  ;;  %v349_v6 = vld [vmem:[%s5934_s1 + $0xa38] sm:$0xff]  ;;  %v2939_v13 = vpack.c.bf16 %v282_v4, %v248_v24 }
  0xa0   :  { %2492 = vmatprep.mubr.msk.f32.mxu1 %vm658_vm0, %v3573_v38  ;;  %1288 = vmatmul.mubr.f32.gmra.mrb[30].mxu0 %v3579_v40  ;;  %v380_v38 = vld [vmem:[%s5934_s1 + $0xb30] sm:$0xff]  ;;  %v2927_v35 = vpack.c.bf16 %v78_v25, %v44_v29  ;;  %v2905_v14 = vpack.c.bf16 %v349_v6, %v315_v5  ;;  %v314_v15 = vld [vmem:[%s5934_s1 + $0x920] sm:$0xff] }
  0xa1   :  { %2832 = vmatpush1.bf16.msra.mxu0 %v2831_v23  ;;  %1377 = vmatmul.mubr.f32.gmra.mrb[30].mxu1 %v3579_v40  ;;  %v414_v40 = vld [vmem:[%s5934_s1 + $0xc40] sm:$0xff]  ;;  %v2889_v23 = vpack.c.bf16 %v77_v16, %v43_v18  ;;  %v316_v11 = vld [vmem:[%s5934_s1 + $0x930] sm:$0xff] }
  0xa2   :  { %2868 = vmatpush1.bf16.msra.mxu1 %v2867_v27  ;;  %2834 = vmatprep.subr.bf16.mxu0 %v2833_v28  ;;  %v2875_v50 = vpack.c.bf16 %v414_v40, %v380_v38  ;;  %v42_v27 = vld [vmem:[%s5934_s1 + $0xa0] sm:$0xff]  ;;  %v76_v28 = vld [vmem:[%s5934_s1 + $0x1b0] sm:$0xff]  ;;  %v213_v40 = vld [vmem:[%s5934_s1 + $0x5f8] sm:$0xff] }
  0xa3   :  { %2870 = vmatprep.subr.bf16.mxu1 %v2869_v31  ;;  %2493 = vmatprep.mubr.msk.f32.mxu0 %vm658_vm0, %v4369_v46  ;;  %v111_v31 = vld [vmem:[%s5934_s1 + $0x2c8] sm:$0xff]  ;;  %v2891_v34 = vpack.c.bf16 %v76_v28, %v42_v27  ;;  %v146_v38 = vld [vmem:[%s5934_s1 + $0x3e0] sm:$0xff]  ;;  %v4619_v27 = vld [vmem:[%s5935_s0 + $0x30] sm:$0xff] }
  0xa4   :  { %2497 = vmatprep.mubr.msk.f32.mxu1 %vm658_vm0, %v4369_v46  ;;  %v2931_v48 = vpack.c.bf16 %v146_v38, %v112_v41  ;;  %v350_v16 = vld [vmem:[%s5934_s1 + $0xa40] sm:$0xff]  ;;  %v620_v5 = vld [vmem:[%s5934_s1 + $0x12b0] sm:$0xff] }
  0xa5   :  { %2836 = vmatpush1.bf16.msra.mxu0 %v2835_v36  ;;  %v2893_v36 = vpack.c.bf16 %v145_v26, %v111_v31  ;;  %v2943_v29 = vpack.c.bf16 %v350_v16, %v316_v11  ;;  %v382_v25 = vld [vmem:[%s5934_s1 + $0xb40] sm:$0xff]  ;;  %v416_v31 = vld [vmem:[%s5934_s1 + $0xc50] sm:$0xff] }
  0xa6   :  { %2872 = vmatpush1.bf16.msra.mxu1 %v2871_v37  ;;  %2838 = vmatprep.subr.bf16.mxu0 %v2837_v39  ;;  %v110_v37 = vld [vmem:[%s5934_s1 + $0x2c0] sm:$0xff]  ;;  %v144_v39 = vld [vmem:[%s5934_s1 + $0x3d0] sm:$0xff] }
  0xa7   :  { %2874 = vmatprep.subr.bf16.mxu1 %v2873_v43  ;;  %v179_v43 = vld [vmem:[%s5934_s1 + $0x4e8] sm:$0xff]  ;;  %v2895_v47 = vpack.c.bf16 %v144_v39, %v110_v37  ;;  %v384_v26 = vld [vmem:[%s5934_s1 + $0xb50] sm:$0xff]  ;;  %v2911_v39 = vpack.c.bf16 %v416_v31, %v382_v25  ;;  %v450_v38 = vld [vmem:[%s5934_s1 + $0xd60] sm:$0xff] }
  0xa8   :  { %v487_v37 = vld [vmem:[%s5934_s1 + $0xe88] sm:$0xff]  ;;  %v2947_v41 = vpack.c.bf16 %v418_v33, %v384_v26  ;;  %v586_v4 = vld [vmem:[%s5934_s1 + $0x11a0] sm:$0xff]  ;;  %v588_v6 = vld [vmem:[%s5934_s1 + $0x11b0] sm:$0xff] }
  0xa9   :  { %2840 = vmatpush1.bf16.msra.mxu0 %v2839_v49  ;;  %v2897_v49 = vpack.c.bf16 %v213_v40, %v179_v43  ;;  %v484_v43 = vld [vmem:[%s5934_s1 + $0xe70] sm:$0xff]  ;;  %v46_v16 = vld [vmem:[%s5934_s1 + $0xc0] sm:$0xff]  ;;  %v151_v25 = vld [vmem:[%s5934_s1 + $0x408] sm:$0xff] }
  0xaa   :  { %2876 = vmatpush1.bf16.msra.mxu1 %v2875_v50  ;;  %2842 = vmatprep.subr.bf16.mxu0 %v2841_v51  ;;  %v178_v50 = vld [vmem:[%s5934_s1 + $0x4e0] sm:$0xff]  ;;  %v212_v51 = vld [vmem:[%s5934_s1 + $0x5f0] sm:$0xff] }
  0xab   :  { %2878 = vmatprep.subr.bf16.mxu1 %v2877_v55  ;;  %v247_v55 = vld [vmem:[%s5934_s1 + $0x708] sm:$0xff]  ;;  %v452_v40 = vld [vmem:[%s5934_s1 + $0xd70] sm:$0xff]  ;;  %v114_v33 = vld [vmem:[%s5934_s1 + $0x2e0] sm:$0xff] }
  0xad   :  { %2844 = vmatpush1.bf16.msra.mxu0 %v2843_v62  ;;  %v2899_v62 = vpack.c.bf16 %v212_v51, %v178_v50  ;;  %v555_v50 = vld [vmem:[%s5934_s1 + $0x10a8] sm:$0xff]  ;;  %v2915_v51 = vpack.c.bf16 %v484_v43, %v450_v38 }
  0xae   :  { %2880 = vmatpush1.bf16.msra.mxu1 %v2879_v63  ;;  %2846 = vmatprep.subr.bf16.mxu0 %v2845_v1  ;;  %v2935_v63 = vpack.c.bf16 %v214_v54, %v180_v52  ;;  %v2901_v1 = vpack.c.bf16 %v281_v56, %v247_v55  ;;  %v2951_v52 = vpack.c.bf16 %v486_v45, %v452_v40  ;;  %v518_v54 = vld [vmem:[%s5934_s1 + $0xf80] sm:$0xff]  ;;  %v552_v55 = vld [vmem:[%s5934_s1 + $0x1090] sm:$0xff]  ;;  %v219_v38 = vld [vmem:[%s5934_s1 + $0x628] sm:$0xff] }
  0xaf   :  { %2882 = vmatprep.subr.bf16.mxu1 %v2881_v3  ;;  %v2937_v3 = vpack.c.bf16 %v283_v59, %v249_v58  ;;  %v520_v56 = vld [vmem:[%s5934_s1 + $0xf90] sm:$0xff]  ;;  %v554_v59 = vld [vmem:[%s5934_s1 + $0x10a0] sm:$0xff] }
  0xb0   :  { %v2955_v24 = vpack.c.bf16 %v554_v59, %v520_v56  ;;  %v182_v45 = vld [vmem:[%s5934_s1 + $0x500] sm:$0xff] }
  0xb1   :  { %2848 = vmatpush1.bf16.msra.mxu0 %v2847_v9  ;;  %v351_v9 = vld [vmem:[%s5934_s1 + $0xa48] sm:$0xff]  ;;  %v250_v59 = vld [vmem:[%s5934_s1 + $0x720] sm:$0xff] }
  0xb2   :  { %2884 = vmatpush1.bf16.msra.mxu1 %v2883_v10  ;;  %2850 = vmatprep.subr.bf16.mxu0 %v2849_v12  ;;  %v4579_v10 = vld [vmem:[%s5935_s0 + $0x20] sm:$0xff]  ;;  %v2903_v12 = vpack.c.bf16 %v280_v2, %v246_v60  ;;  %v2941_v18 = vpack.c.bf16 %v351_v9, %v317_v8  ;;  %v623_v60 = vld [vmem:[%s5934_s1 + $0x12c8] sm:$0xff]  ;;  %v2919_v2 = vpack.c.bf16 %v552_v55, %v518_v54 }
  0xb3   :  { %2886 = vmatprep.subr.bf16.mxu1 %v2885_v17  ;;  %v348_v17 = vld [vmem:[%s5934_s1 + $0xa30] sm:$0xff]  ;;  %v622_v9 = vld [vmem:[%s5934_s1 + $0x12c0] sm:$0xff]  ;;  %v287_v54 = vld [vmem:[%s5934_s1 + $0x848] sm:$0xff] }
  0xb4   :  { %v2907_v28 = vpack.c.bf16 %v348_v17, %v314_v15  ;;  %v83_v15 = vld [vmem:[%s5934_s1 + $0x1e8] sm:$0xff]  ;;  %v2923_v17 = vpack.c.bf16 %v620_v5, %v586_v4  ;;  %v2959_v11 = vpack.c.bf16 %v622_v9, %v588_v6  ;;  %v318_v9 = vld [vmem:[%s5934_s1 + $0x940] sm:$0xff] }
  0xb5   :  { %2852 = vmatpush1.bf16.msra.mxu0 %v2851_v21  ;;  %v4604_v21 = vld [vmem:[%s5935_s0 + $0x38] sm:$0xff]  ;;  %v355_v4 = vld [vmem:[%s5934_s1 + $0xa68] sm:$0xff] }
  0xb6   :  { %2888 = vmatpush1.bf16.msra.mxu1 %v2887_v22  ;;  %2890 = vmatprep.subr.bf16.mxu0 %v2889_v23  ;;  %v385_v22 = vld [vmem:[%s5934_s1 + $0xb58] sm:$0xff]  ;;  %v419_v23 = vld [vmem:[%s5934_s1 + $0xc68] sm:$0xff] }
  0xb7   :  { %2926 = vmatprep.subr.bf16.mxu1 %v2925_v30  ;;  %v2909_v30 = vpack.c.bf16 %v417_v20, %v383_v19  ;;  %v2945_v32 = vpack.c.bf16 %v419_v23, %v385_v22  ;;  %v80_v19 = vld [vmem:[%s5934_s1 + $0x1d0] sm:$0xff]  ;;  %v82_v23 = vld [vmem:[%s5934_s1 + $0x1e0] sm:$0xff] }
  0xb8   :  { %1448 = vmatmul.mubr.f32.vlgmr.msra.gmra.mrb[32].mxu0 %v4255_v0  ;;  %v48_v20 = vld [vmem:[%s5934_s1 + $0xd0] sm:$0xff]  ;;  %v2963_v31 = vpack.c.bf16 %v80_v19, %v46_v16  ;;  %v423_v16 = vld [vmem:[%s5934_s1 + $0xc88] sm:$0xff] }
  0xb9   :  { %1537 = vmatmul.mubr.f32.vlgmr.msra.gmra.mrb[32].mxu1 %v4255_v0  ;;  %2892 = vmatpush1.bf16.msra.mxu0 %v2891_v34  ;;  %v451_v34 = vld [vmem:[%s5934_s1 + $0xd68] sm:$0xff]  ;;  %v2999_v26 = vpack.c.bf16 %v82_v23, %v48_v20  ;;  %v386_v23 = vld [vmem:[%s5934_s1 + $0xb60] sm:$0xff] }
  0xba   :  { %2928 = vmatpush1.bf16.msra.mxu1 %v2927_v35  ;;  %2894 = vmatprep.subr.bf16.mxu0 %v2893_v36  ;;  %v485_v35 = vld [vmem:[%s5934_s1 + $0xe78] sm:$0xff] }
  0xbb   :  { %2930 = vmatprep.subr.bf16.mxu1 %v2929_v42  ;;  %2494 = vmatprep.mubr.msk.f32.mxu0 %vm658_vm0, %v4524_v57  ;;  %v453_v36 = vld [vmem:[%s5934_s1 + $0xd78] sm:$0xff]  ;;  %v2913_v42 = vpack.c.bf16 %v485_v35, %v451_v34  ;;  %v148_v34 = vld [vmem:[%s5934_s1 + $0x3f0] sm:$0xff] }
  0xbc   :  { %2498 = vmatprep.mubr.msk.f32.mxu1 %vm658_vm0, %v4524_v57  ;;  %1454 = vmatmul.mubr.f32.gmra.mrb[34].mxu0 %v4539_v61  ;;  %v2949_v44 = vpack.c.bf16 %v487_v37, %v453_v36  ;;  %v116_v35 = vld [vmem:[%s5934_s1 + $0x2f0] sm:$0xff]  ;;  %v150_v37 = vld [vmem:[%s5934_s1 + $0x400] sm:$0xff]  ;;  %v2967_v43 = vpack.c.bf16 %v148_v34, %v114_v33  ;;  %v491_v33 = vld [vmem:[%s5934_s1 + $0xea8] sm:$0xff] }
  0xbd   :  { %2896 = vmatpush1.bf16.msra.mxu0 %v2895_v47  ;;  %1543 = vmatmul.mubr.f32.gmra.mrb[34].mxu1 %v4539_v61  ;;  %v519_v47 = vld [vmem:[%s5934_s1 + $0xf88] sm:$0xff]  ;;  %v3003_v40 = vpack.c.bf16 %v150_v37, %v116_v35  ;;  %v454_v37 = vld [vmem:[%s5934_s1 + $0xd80] sm:$0xff] }
  0xbe   :  { %2932 = vmatpush1.bf16.msra.mxu1 %v2931_v48  ;;  %2898 = vmatprep.subr.bf16.mxu0 %v2897_v49  ;;  %v553_v48 = vld [vmem:[%s5934_s1 + $0x1098] sm:$0xff] }
  0xbf   :  { %2934 = vmatprep.subr.bf16.mxu1 %v2933_v53  ;;  %2495 = vmatprep.mubr.msk.f32.mxu0 %vm658_vm0, %v4564_v7  ;;  %v521_v49 = vld [vmem:[%s5934_s1 + $0xf98] sm:$0xff]  ;;  %v2917_v53 = vpack.c.bf16 %v553_v48, %v519_v47  ;;  %v216_v47 = vld [vmem:[%s5934_s1 + $0x610] sm:$0xff] }
  0xc0   :  { %2499 = vmatprep.mubr.msk.f32.mxu1 %vm658_vm0, %v4564_v7  ;;  %1460 = vmatmul.mubr.f32.gmra.mrb[36].mxu0 %v4579_v10  ;;  %v2953_v58 = vpack.c.bf16 %v555_v50, %v521_v49  ;;  %v184_v48 = vld [vmem:[%s5934_s1 + $0x510] sm:$0xff]  ;;  %v218_v50 = vld [vmem:[%s5934_s1 + $0x620] sm:$0xff]  ;;  %v2971_v55 = vpack.c.bf16 %v216_v47, %v182_v45 }
  0xc1   :  { %2900 = vmatpush1.bf16.msra.mxu0 %v2899_v62  ;;  %1549 = vmatmul.mubr.f32.gmra.mrb[36].mxu1 %v4579_v10  ;;  %v587_v62 = vld [vmem:[%s5934_s1 + $0x11a8] sm:$0xff]  ;;  %v3007_v56 = vpack.c.bf16 %v218_v50, %v184_v48  ;;  %v556_v50 = vld [vmem:[%s5934_s1 + $0x10b0] sm:$0xff] }
  0xc2   :  { %2936 = vmatpush1.bf16.msra.mxu1 %v2935_v63  ;;  %2902 = vmatprep.subr.bf16.mxu0 %v2901_v1  ;;  %v621_v63 = vld [vmem:[%s5934_s1 + $0x12b8] sm:$0xff] }
  0xc3   :  { %2938 = vmatprep.subr.bf16.mxu1 %v2937_v3  ;;  %2496 = vmatprep.mubr.msk.f32.mxu0 %vm658_vm0, %v4604_v21  ;;  %v589_v1 = vld [vmem:[%s5934_s1 + $0x11b8] sm:$0xff]  ;;  %v2921_v3 = vpack.c.bf16 %v621_v63, %v587_v62  ;;  %v284_v62 = vld [vmem:[%s5934_s1 + $0x830] sm:$0xff] }
  0xc4   :  { %2500 = vmatprep.mubr.msk.f32.mxu1 %vm658_vm0, %v4604_v21  ;;  %1466 = vmatmul.mubr.f32.gmra.mrb[38].mxu0 %v4619_v27  ;;  %v2957_v8 = vpack.c.bf16 %v623_v60, %v589_v1  ;;  %v252_v63 = vld [vmem:[%s5934_s1 + $0x730] sm:$0xff]  ;;  %v286_v60 = vld [vmem:[%s5934_s1 + $0x840] sm:$0xff]  ;;  %v2975_v5 = vpack.c.bf16 %v284_v62, %v250_v59 }
  0xc5   :  { %2904 = vmatpush1.bf16.msra.mxu0 %v2903_v12  ;;  %1555 = vmatmul.mubr.f32.gmra.mrb[38].mxu1 %v4619_v27  ;;  %v47_v12 = vld [vmem:[%s5934_s1 + $0xc8] sm:$0xff]  ;;  %v3011_v6 = vpack.c.bf16 %v286_v60, %v252_v63  ;;  %v624_v60 = vld [vmem:[%s5934_s1 + $0x12d0] sm:$0xff] }
  0xc6   :  { %2940 = vmatpush1.bf16.msra.mxu1 %v2939_v13  ;;  %2906 = vmatprep.subr.bf16.mxu0 %v2905_v14  ;;  %v81_v13 = vld [vmem:[%s5934_s1 + $0x1d8] sm:$0xff] }
  0xc7   :  { %2942 = vmatprep.subr.bf16.mxu1 %v2941_v18  ;;  %2501 = vmatprep.mubr.msk.f32.mxu0 %vm658_vm0, %v4369_v46  ;;  %v49_v14 = vld [vmem:[%s5934_s1 + $0xd8] sm:$0xff]  ;;  %v2961_v18 = vpack.c.bf16 %v81_v13, %v47_v12  ;;  %v352_v12 = vld [vmem:[%s5934_s1 + $0xa50] sm:$0xff] }
  0xc8   :  { %2505 = vmatprep.mubr.msk.f32.mxu1 %vm658_vm0, %v4369_v46  ;;  %v2997_v22 = vpack.c.bf16 %v83_v15, %v49_v14  ;;  %v320_v13 = vld [vmem:[%s5934_s1 + $0x950] sm:$0xff]  ;;  %v354_v15 = vld [vmem:[%s5934_s1 + $0xa60] sm:$0xff]  ;;  %v2979_v19 = vpack.c.bf16 %v352_v12, %v318_v9  ;;  %v4963_v9 = vpop.permute.xlu0 %640 }
  0xc9   :  { %2908 = vmatpush1.bf16.msra.mxu0 %v2907_v28  ;;  %v115_v28 = vld [vmem:[%s5934_s1 + $0x2e8] sm:$0xff]  ;;  %v3015_v20 = vpack.c.bf16 %v354_v15, %v320_v13  ;;  %v50_v15 = vld [vmem:[%s5934_s1 + $0xe0] sm:$0xff] }
  0xca   :  { %2944 = vmatpush1.bf16.msra.mxu1 %v2943_v29  ;;  %2910 = vmatprep.subr.bf16.mxu0 %v2909_v30  ;;  %v149_v29 = vld [vmem:[%s5934_s1 + $0x3f8] sm:$0xff] }
  0xcb   :  { %2946 = vmatprep.subr.bf16.mxu1 %v2945_v32  ;;  %v117_v30 = vld [vmem:[%s5934_s1 + $0x2f8] sm:$0xff]  ;;  %v2965_v32 = vpack.c.bf16 %v149_v29, %v115_v28  ;;  %v420_v28 = vld [vmem:[%s5934_s1 + $0xc70] sm:$0xff] }
  0xcc   :  { %v3001_v36 = vpack.c.bf16 %v151_v25, %v117_v30  ;;  %v388_v29 = vld [vmem:[%s5934_s1 + $0xb70] sm:$0xff]  ;;  %v422_v25 = vld [vmem:[%s5934_s1 + $0xc80] sm:$0xff]  ;;  %v2983_v34 = vpack.c.bf16 %v420_v28, %v386_v23 }
  0xcd   :  { %2912 = vmatpush1.bf16.msra.mxu0 %v2911_v39  ;;  %v183_v39 = vld [vmem:[%s5934_s1 + $0x508] sm:$0xff]  ;;  %v3019_v35 = vpack.c.bf16 %v422_v25, %v388_v29 }
  0xce   :  { %2948 = vmatpush1.bf16.msra.mxu1 %v2947_v41  ;;  %2914 = vmatprep.subr.bf16.mxu0 %v2913_v42  ;;  %v217_v41 = vld [vmem:[%s5934_s1 + $0x618] sm:$0xff]  ;;  %v155_v25 = vld [vmem:[%s5934_s1 + $0x428] sm:$0xff] }
  0xcf   :  { %2950 = vmatprep.subr.bf16.mxu1 %v2949_v44  ;;  %v185_v42 = vld [vmem:[%s5934_s1 + $0x518] sm:$0xff]  ;;  %v2969_v44 = vpack.c.bf16 %v217_v41, %v183_v39  ;;  %v488_v39 = vld [vmem:[%s5934_s1 + $0xe90] sm:$0xff] }
  0xd0   :  { %v3005_v49 = vpack.c.bf16 %v219_v38, %v185_v42  ;;  %v456_v41 = vld [vmem:[%s5934_s1 + $0xd90] sm:$0xff]  ;;  %v490_v42 = vld [vmem:[%s5934_s1 + $0xea0] sm:$0xff]  ;;  %v523_v38 = vld [vmem:[%s5934_s1 + $0xfa8] sm:$0xff]  ;;  %v2987_v45 = vpack.c.bf16 %v488_v39, %v454_v37 }
  0xd1   :  { %2916 = vmatpush1.bf16.msra.mxu0 %v2915_v51  ;;  %v251_v51 = vld [vmem:[%s5934_s1 + $0x728] sm:$0xff]  ;;  %v3023_v47 = vpack.c.bf16 %v490_v42, %v456_v41  ;;  %v118_v41 = vld [vmem:[%s5934_s1 + $0x300] sm:$0xff]  ;;  %v5004_v42 = vld [vmem:[%s5934_s1 + $0x310] sm:$0xff] }
  0xd2   :  { %2952 = vmatpush1.bf16.msra.mxu1 %v2951_v52  ;;  %2918 = vmatprep.subr.bf16.mxu0 %v2917_v53  ;;  %v285_v52 = vld [vmem:[%s5934_s1 + $0x838] sm:$0xff] }
  0xd3   :  { %2954 = vmatprep.subr.bf16.mxu1 %v2953_v58  ;;  %v253_v53 = vld [vmem:[%s5934_s1 + $0x738] sm:$0xff]  ;;  %v2973_v58 = vpack.c.bf16 %v285_v52, %v251_v51  ;;  %v524_v51 = vld [vmem:[%s5934_s1 + $0xfb0] sm:$0xff] }
  0xd4   :  { %v3009_v1 = vpack.c.bf16 %v287_v54, %v253_v53  ;;  %v558_v53 = vld [vmem:[%s5934_s1 + $0x10c0] sm:$0xff]  ;;  %v591_v54 = vld [vmem:[%s5934_s1 + $0x11c8] sm:$0xff] }
  0xd5   :  { %2920 = vmatpush1.bf16.msra.mxu0 %v2919_v2  ;;  %v319_v2 = vld [vmem:[%s5934_s1 + $0x948] sm:$0xff]  ;;  %v3027_v62 = vpack.c.bf16 %v558_v53, %v524_v51  ;;  %v189_v51 = vld [vmem:[%s5934_s1 + $0x538] sm:$0xff] }
  0xd6   :  { %2956 = vmatpush1.bf16.msra.mxu1 %v2955_v24  ;;  %2922 = vmatprep.subr.bf16.mxu0 %v2921_v3  ;;  %v353_v24 = vld [vmem:[%s5934_s1 + $0xa58] sm:$0xff] }
  0xd7   :  { %2958 = vmatprep.subr.bf16.mxu1 %v2957_v8  ;;  %v321_v3 = vld [vmem:[%s5934_s1 + $0x958] sm:$0xff]  ;;  %v2977_v8 = vpack.c.bf16 %v353_v24, %v319_v2  ;;  %v592_v2 = vld [vmem:[%s5934_s1 + $0x11d0] sm:$0xff] }
  0xd8   :  { %v3013_v14 = vpack.c.bf16 %v355_v4, %v321_v3  ;;  %v626_v3 = vld [vmem:[%s5934_s1 + $0x12e0] sm:$0xff]  ;;  %v51_v4 = vld [vmem:[%s5934_s1 + $0xe8] sm:$0xff] }
  0xd9   :  { %2924 = vmatpush1.bf16.msra.mxu0 %v2923_v17  ;;  %v387_v17 = vld [vmem:[%s5934_s1 + $0xb68] sm:$0xff]  ;;  %v3031_v13 = vpack.c.bf16 %v626_v3, %v592_v2  ;;  %v5050_v2 = vld [vmem:[%s5934_s1 + $0x530] sm:$0xff] }
  0xda   :  { %2960 = vmatpush1.bf16.msra.mxu1 %v2959_v11  ;;  %2962 = vmatprep.subr.bf16.mxu0 %v2961_v18  ;;  %v421_v11 = vld [vmem:[%s5934_s1 + $0xc78] sm:$0xff] }
  0xdb   :  { %2998 = vmatprep.subr.bf16.mxu1 %v2997_v22  ;;  %v389_v18 = vld [vmem:[%s5934_s1 + $0xb78] sm:$0xff]  ;;  %v2981_v22 = vpack.c.bf16 %v421_v11, %v387_v17  ;;  %v84_v17 = vld [vmem:[%s5934_s1 + $0x1f0] sm:$0xff] }
  0xdc   :  { %1626 = vmatmul.mubr.f32.vlgmr.msra.gmra.mrb[40].mxu0 %v4255_v0  ;;  %v3017_v30 = vpack.c.bf16 %v423_v16, %v389_v18  ;;  %v52_v11 = vld [vmem:[%s5934_s1 + $0xf0] sm:$0xff] }
  0xdd   :  { %1715 = vmatmul.mubr.f32.vlgmr.msra.gmra.mrb[40].mxu1 %v4255_v0  ;;  %2964 = vmatpush1.bf16.msra.mxu0 %v2963_v31  ;;  %v455_v31 = vld [vmem:[%s5934_s1 + $0xd88] sm:$0xff] }
  0xde   :  { %3000 = vmatpush1.bf16.msra.mxu1 %v2999_v26  ;;  %2966 = vmatprep.subr.bf16.mxu0 %v2965_v32  ;;  %v489_v26 = vld [vmem:[%s5934_s1 + $0xe98] sm:$0xff] }
  0xdf   :  { %3002 = vmatprep.subr.bf16.mxu1 %v3001_v36  ;;  %2502 = vmatprep.mubr.msk.f32.mxu0 %vm658_vm0, %v4524_v57  ;;  %v457_v32 = vld [vmem:[%s5934_s1 + $0xd98] sm:$0xff]  ;;  %v2985_v36 = vpack.c.bf16 %v489_v26, %v455_v31 }
  0xe0   :  { %2506 = vmatprep.mubr.msk.f32.mxu1 %vm658_vm0, %v4524_v57  ;;  %1632 = vmatmul.mubr.f32.gmra.mrb[42].mxu0 %v4539_v61 }
  0xe1   :  { %2968 = vmatpush1.bf16.msra.mxu0 %v2967_v43  ;;  %1721 = vmatmul.mubr.f32.gmra.mrb[42].mxu1 %v4539_v61  ;;  %v557_v43 = vld [vmem:[%s5934_s1 + $0x10b8] sm:$0xff] }
  0xe2   :  { %3004 = vmatpush1.bf16.msra.mxu1 %v3003_v40  ;;  %2970 = vmatprep.subr.bf16.mxu0 %v2969_v44  ;;  %v525_v40 = vld [vmem:[%s5934_s1 + $0xfb8] sm:$0xff]  ;;  %v559_v44 = vld [vmem:[%s5934_s1 + $0x10c8] sm:$0xff]  ;;  %v2989_v48 = vpack.c.bf16 %v557_v43, %v523_v38 }
  0xe3   :  { %3006 = vmatprep.subr.bf16.mxu1 %v3005_v49  ;;  %2503 = vmatprep.mubr.msk.f32.mxu0 %vm658_vm0, %v4564_v7  ;;  %v522_v49 = vld [vmem:[%s5934_s1 + $0xfa0] sm:$0xff]  ;;  %v3025_v52 = vpack.c.bf16 %v559_v44, %v525_v40 }
  0xe4   :  { %2507 = vmatprep.mubr.msk.f32.mxu1 %vm658_vm0, %v4564_v7  ;;  %1638 = vmatmul.mubr.f32.gmra.mrb[44].mxu0 %v4579_v10  ;;  %v2991_v59 = vpack.c.bf16 %v556_v50, %v522_v49  ;;  %v154_v44 = vld [vmem:[%s5934_s1 + $0x420] sm:$0xff]  ;;  %v5015_v49 = vpop.permute.xlu1 %650 }
  0xe5   :  { %2972 = vmatpush1.bf16.msra.mxu0 %v2971_v55  ;;  %1727 = vmatmul.mubr.f32.gmra.mrb[44].mxu1 %v4579_v10  ;;  %v625_v55 = vld [vmem:[%s5934_s1 + $0x12d8] sm:$0xff] }
  0xe6   :  { %3008 = vmatpush1.bf16.msra.mxu1 %v3007_v56  ;;  %2974 = vmatprep.subr.bf16.mxu0 %v2973_v58  ;;  %v593_v56 = vld [vmem:[%s5934_s1 + $0x11d8] sm:$0xff]  ;;  %v627_v58 = vld [vmem:[%s5934_s1 + $0x12e8] sm:$0xff]  ;;  %v2993_v63 = vpack.c.bf16 %v625_v55, %v591_v54 }
  0xe7   :  { %3010 = vmatprep.subr.bf16.mxu1 %v3009_v1  ;;  %2504 = vmatprep.mubr.msk.f32.mxu0 %vm658_vm0, %v4604_v21  ;;  %v590_v1 = vld [vmem:[%s5934_s1 + $0x11c0] sm:$0xff]  ;;  %v3029_v24 = vpack.c.bf16 %v627_v58, %v593_v56 }
  0xe8   :  { %2508 = vmatprep.mubr.msk.f32.mxu1 %vm658_vm0, %v4604_v21  ;;  %1644 = vmatmul.mubr.f32.gmra.mrb[46].mxu0 %v4619_v27  ;;  %v2995_v12 = vpack.c.bf16 %v624_v60, %v590_v1  ;;  %v220_v60 = vld [vmem:[%s5934_s1 + $0x630] sm:$0xff] }
  0xe9   :  { %2976 = vmatpush1.bf16.msra.mxu0 %v2975_v5  ;;  %1733 = vmatmul.mubr.f32.gmra.mrb[46].mxu1 %v4619_v27  ;;  %v85_v5 = vld [vmem:[%s5934_s1 + $0x1f8] sm:$0xff] }
  0xea   :  { %3012 = vmatpush1.bf16.msra.mxu1 %v3011_v6  ;;  %2978 = vmatprep.subr.bf16.mxu0 %v2977_v8  ;;  %v53_v6 = vld [vmem:[%s5934_s1 + $0xf8] sm:$0xff]  ;;  %v87_v8 = vld [vmem:[%s5934_s1 + $0x208] sm:$0xff] }
  0xeb   :  { %3014 = vmatprep.subr.bf16.mxu1 %v3013_v14  ;;  %2509 = vmatprep.mubr.msk.f32.mxu0 %vm658_vm0, %v4369_v46  ;;  %v3033_v14 = vpack.c.bf16 %v85_v5, %v51_v4  ;;  %v3069_v16 = vpack.c.bf16 %v87_v8, %v53_v6  ;;  %v222_v5 = vld [vmem:[%s5934_s1 + $0x640] sm:$0xff]  ;;  %v255_v6 = vld [vmem:[%s5934_s1 + $0x748] sm:$0xff]  ;;  %v289_v8 = vld [vmem:[%s5934_s1 + $0x858] sm:$0xff] }
  0xec   :  { %2513 = vmatprep.mubr.msk.f32.mxu1 %vm658_vm0, %v4369_v46  ;;  %v3021_v46 = vpack.c.bf16 %v491_v33, %v457_v32  ;;  %v3035_v33 = vpack.c.bf16 %v84_v17, %v50_v15  ;;  %v5067_v15 = vld [vmem:[%s5934_s1 + $0x758] sm:$0xff]  ;;  %v5072_v17 = vld [vmem:[%s5934_s1 + $0x868] sm:$0xff] }
  0xed   :  { %2980 = vmatpush1.bf16.msra.mxu0 %v2979_v19  ;;  %v86_v19 = vld [vmem:[%s5934_s1 + $0x200] sm:$0xff] }
  0xee   :  { %3016 = vmatpush1.bf16.msra.mxu1 %v3015_v20  ;;  %2982 = vmatprep.subr.bf16.mxu0 %v2981_v22  ;;  %v119_v20 = vld [vmem:[%s5934_s1 + $0x308] sm:$0xff]  ;;  %v153_v22 = vld [vmem:[%s5934_s1 + $0x418] sm:$0xff]  ;;  %v3071_v37 = vpack.c.bf16 %v86_v19, %v52_v11 }
  0xef   :  { %3018 = vmatprep.subr.bf16.mxu1 %v3017_v30  ;;  %v121_v30 = vld [vmem:[%s5934_s1 + $0x318] sm:$0xff]  ;;  %v3037_v39 = vpack.c.bf16 %v153_v22, %v119_v20 }
  0xf0   :  { %v3073_v40 = vpack.c.bf16 %v155_v25, %v121_v30  ;;  %v3045_v30 = vpack.c.bf16 %v289_v8, %v255_v6  ;;  %v254_v25 = vld [vmem:[%s5934_s1 + $0x740] sm:$0xff]  ;;  %v424_v6 = vld [vmem:[%s5934_s1 + $0xc90] sm:$0xff] }
  0xf1   :  { %2984 = vmatpush1.bf16.msra.mxu0 %v2983_v34  ;;  %v4992_v34 = vpop.permute.xlu0 %645  ;;  %v392_v8 = vld [vmem:[%s5934_s1 + $0xb90] sm:$0xff] }
  0xf2   :  { %3020 = vmatpush1.bf16.msra.mxu1 %v3019_v35  ;;  %2986 = vmatprep.subr.bf16.mxu0 %v2985_v36 }
  0xf3   :  { %3022 = vmatprep.subr.bf16.mxu1 %v3021_v46  ;;  %v152_v46 = vld [vmem:[%s5934_s1 + $0x410] sm:$0xff] }
  0xf4   :  { %v3039_v56 = vpack.c.bf16 %v152_v46, %v118_v41 }
  0xf5   :  { %2988 = vmatpush1.bf16.msra.mxu0 %v2987_v45  ;;  %v187_v45 = vld [vmem:[%s5934_s1 + $0x528] sm:$0xff] }
  0xf6   :  { %3024 = vmatpush1.bf16.msra.mxu1 %v3023_v47  ;;  %2990 = vmatprep.subr.bf16.mxu0 %v2989_v48  ;;  %v221_v47 = vld [vmem:[%s5934_s1 + $0x638] sm:$0xff] }
  0xf7   :  { %3026 = vmatprep.subr.bf16.mxu1 %v3025_v52  ;;  %v223_v52 = vld [vmem:[%s5934_s1 + $0x648] sm:$0xff]  ;;  %v3041_v1 = vpack.c.bf16 %v221_v47, %v187_v45 }
  0xf8   :  { %v3077_v4 = vpack.c.bf16 %v223_v52, %v189_v51 }
  0xf9   :  { %2992 = vmatpush1.bf16.msra.mxu0 %v2991_v59 }
  0xfa   :  { %3028 = vmatpush1.bf16.msra.mxu1 %v3027_v62  ;;  %2994 = vmatprep.subr.bf16.mxu0 %v2993_v63  ;;  %v3075_v63 = vpack.c.bf16 %v154_v44, %v5004_v42  ;;  %v325_v42 = vld [vmem:[%s5934_s1 + $0x978] sm:$0xff] }
  0xfb   :  { %v737_v18 = vpop.f32.mrb[0].mxu0  ;;  %3030 = vmatprep.subr.bf16.mxu1 %v3029_v24 }
  0xfc   :  { %v826_v23 = vpop.f32.mrb[0].mxu1  ;;  %v738_v28 = vadd.f32 %v737_v18, %v4963_v9  ;;  %v739_v29 = vpop.f32.mrb[1].mxu0 }
  0xfd   :  { %v827_v31 = vadd.f32 %v826_v23, %v4963_v9  ;;  %v740_v26 = vadd.f32 %v739_v29, %v4963_v9  ;;  %v828_v32 = vpop.f32.mrb[1].mxu1  ;;  %2996 = vmatpush1.bf16.msra.mxu0 %v2995_v12  ;;  %v3079_v29 = vpack.c.bf16 %v222_v5, %v5050_v2  ;;  %v427_v2 = vld [vmem:[%s5934_s1 + $0xca8] sm:$0xff] }
  0xfe   :  { %v2184_v35 = vmax.f32 %v738_v28, 0.0  ;;  %v829_v36 = vadd.f32 %v828_v32, %v4963_v9  ;;  %3032 = vmatpush1.bf16.msra.mxu1 %v3031_v13  ;;  %3034 = vmatprep.subr.bf16.mxu0 %v3033_v14  ;;  %v5090_v28 = vpop.permute.xlu1 %655 }
  0xff   :  { %v2186_v38 = vmax.f32 %v827_v31, 0.0  ;;  %v2185_v43 = vmax.f32 %v740_v26, 0.0  ;;  %3070 = vmatprep.subr.bf16.mxu1 %v3069_v16  ;;  %v743_v48 = vpop.f32.mrb[2].mxu0  ;;  %v288_v31 = vld [vmem:[%s5934_s1 + $0x850] sm:$0xff] }
 0x100   :  { %2320 = vst [vmem:[%s5937_s3] sm:$0xff] %v2184_v35  ;;  %v2187_v50 = vmax.f32 %v829_v36, 0.0  ;;  %1804 = vmatmul.mubr.f32.vlgmr.msra.gmra.mrb[48].mxu0 %v4255_v0  ;;  %v832_v53 = vpop.f32.mrb[2].mxu1  ;;  %v744_v54 = vadd.f32 %v743_v48, %v4992_v34  ;;  %v745_v55 = vpop.f32.mrb[3].mxu0  ;;  %v256_v26 = vld [vmem:[%s5934_s1 + $0x750] sm:$0xff]  ;;  %v290_v35 = vld [vmem:[%s5934_s1 + $0x860] sm:$0xff]  ;;  %v323_v36 = vld [vmem:[%s5934_s1 + $0x968] sm:$0xff]  ;;  %v3047_v47 = vpack.c.bf16 %v288_v31, %v254_v25 }
 0x101   :  { %2322 = vst [vmem:[%s5937_s3 + $0x10] sm:$0xff] %v2186_v38  ;;  %2321 = vst [vmem:[%s5937_s3 + $0x8] sm:$0xff] %v2185_v43  ;;  %1893 = vmatmul.mubr.f32.vlgmr.msra.gmra.mrb[48].mxu1 %v4255_v0  ;;  %3036 = vmatpush1.bf16.msra.mxu0 %v3035_v33  ;;  %v833_v58 = vadd.f32 %v832_v53, %v4992_v34  ;;  %v746_v59 = vadd.f32 %v745_v55, %v4992_v34  ;;  %v834_v62 = vpop.f32.mrb[3].mxu1  ;;  %v186_v0 = vld [vmem:[%s5934_s1 + $0x520] sm:$0xff]  ;;  %v359_v38 = vld [vmem:[%s5934_s1 + $0xa88] sm:$0xff] }
 0x102   :  { %2323 = vst [vmem:[%s5937_s3 + $0x18] sm:$0xff] %v2187_v50  ;;  %3072 = vmatpush1.bf16.msra.mxu1 %v3071_v37  ;;  %3038 = vmatprep.subr.bf16.mxu0 %v3037_v39  ;;  %v2218_v24 = vmax.f32 %v744_v54, 0.0  ;;  %v835_v3 = vadd.f32 %v834_v62, %v4992_v34  ;;  %v3043_v20 = vpack.c.bf16 %v220_v60, %v186_v0  ;;  %v357_v37 = vld [vmem:[%s5934_s1 + $0xa78] sm:$0xff]  ;;  %v322_v53 = vld [vmem:[%s5934_s1 + $0x960] sm:$0xff]  ;;  %v356_v54 = vld [vmem:[%s5934_s1 + $0xa70] sm:$0xff] }
 0x103   :  { %3074 = vmatprep.subr.bf16.mxu1 %v3073_v40  ;;  %v2220_v12 = vmax.f32 %v833_v58, 0.0  ;;  %v2219_v13 = vmax.f32 %v746_v59, 0.0  ;;  %v749_v14 = vpop.f32.mrb[4].mxu0  ;;  %2510 = vmatprep.mubr.msk.f32.mxu0 %vm658_vm0, %v4524_v57  ;;  %v3081_v33 = vpack.c.bf16 %v5072_v17, %v5067_v15  ;;  %v3083_v51 = vpack.c.bf16 %v290_v35, %v256_v26  ;;  %v324_v55 = vld [vmem:[%s5934_s1 + $0x970] sm:$0xff]  ;;  %v358_v59 = vld [vmem:[%s5934_s1 + $0xa80] sm:$0xff]  ;;  %v391_v62 = vld [vmem:[%s5934_s1 + $0xb88] sm:$0xff] }
 0x104   :  { %2355 = vst [vmem:[%s5937_s3 + $0x110] sm:$0xff] %v2218_v24  ;;  %v2221_v11 = vmax.f32 %v835_v3, 0.0  ;;  %v838_v18 = vpop.f32.mrb[4].mxu1  ;;  %2514 = vmatprep.mubr.msk.f32.mxu1 %vm658_vm0, %v4524_v57  ;;  %v750_v16 = vadd.f32 %v749_v14, %v5015_v49  ;;  %v751_v19 = vpop.f32.mrb[5].mxu0  ;;  %1810 = vmatmul.mubr.f32.gmra.mrb[50].mxu0 %v4539_v61  ;;  %v3049_v52 = vpack.c.bf16 %v357_v37, %v323_v36  ;;  %v393_v60 = vld [vmem:[%s5934_s1 + $0xb98] sm:$0xff]  ;;  %v5208_v15 = vld [vmem:[%s5935_s0 + $0x8] sm:$0xff] }
 0x105   :  { %3040 = vmatpush1.bf16.msra.mxu0 %v3039_v56  ;;  %2357 = vst [vmem:[%s5937_s3 + $0x120] sm:$0xff] %v2220_v12  ;;  %2356 = vst [vmem:[%s5937_s3 + $0x118] sm:$0xff] %v2219_v13  ;;  %v839_v22 = vadd.f32 %v838_v18, %v5015_v49  ;;  %v752_v23 = vadd.f32 %v751_v19, %v5015_v49  ;;  %v840_v57 = vpop.f32.mrb[5].mxu1  ;;  %1899 = vmatmul.mubr.f32.gmra.mrb[50].mxu1 %v4539_v61  ;;  %v426_v12 = vld [vmem:[%s5934_s1 + $0xca0] sm:$0xff]  ;;  %v459_v13 = vld [vmem:[%s5934_s1 + $0xda8] sm:$0xff] }
 0x106   :  { %3076 = vmatpush1.bf16.msra.mxu1 %v3075_v63  ;;  %3042 = vmatprep.subr.bf16.mxu0 %v3041_v1  ;;  %2358 = vst [vmem:[%s5937_s3 + $0x128] sm:$0xff] %v2221_v11  ;;  %v2252_v61 = vmax.f32 %v750_v16, 0.0  ;;  %v841_v32 = vadd.f32 %v840_v57, %v5015_v49  ;;  %v3085_v58 = vpack.c.bf16 %v359_v38, %v325_v42  ;;  %v425_v63 = vld [vmem:[%s5934_s1 + $0xc98] sm:$0xff]  ;;  %v495_v11 = vld [vmem:[%s5934_s1 + $0xec8] sm:$0xff]  ;;  %v526_v35 = vld [vmem:[%s5934_s1 + $0xfc0] sm:$0xff] }
 0x107   :  { %3078 = vmatprep.subr.bf16.mxu1 %v3077_v4  ;;  %v2254_v39 = vmax.f32 %v839_v22, 0.0  ;;  %v2253_v41 = vmax.f32 %v752_v23, 0.0  ;;  %v755_v46 = vpop.f32.mrb[6].mxu0  ;;  %2511 = vmatprep.mubr.msk.f32.mxu0 %vm658_vm0, %v4564_v7  ;;  %v3051_v3 = vpack.c.bf16 %v356_v54, %v322_v53  ;;  %v3087_v4 = vpack.c.bf16 %v358_v59, %v324_v55  ;;  %v493_v14 = vld [vmem:[%s5934_s1 + $0xeb8] sm:$0xff]  ;;  %v492_v22 = vld [vmem:[%s5934_s1 + $0xeb0] sm:$0xff]  ;;  %v563_v26 = vld [vmem:[%s5934_s1 + $0x10e8] sm:$0xff] }
 0x108   :  { %2389 = vst [vmem:[%s5937_s3 + $0x220] sm:$0xff] %v2252_v61  ;;  %v2255_v43 = vmax.f32 %v841_v32, 0.0  ;;  %v844_v40 = vpop.f32.mrb[6].mxu1  ;;  %2515 = vmatprep.mubr.msk.f32.mxu1 %vm658_vm0, %v4564_v7  ;;  %v756_v44 = vadd.f32 %v755_v46, %v5090_v28  ;;  %v757_v45 = vpop.f32.mrb[7].mxu0  ;;  %1816 = vmatmul.mubr.f32.gmra.mrb[52].mxu0 %v4579_v10  ;;  %v3053_v5 = vpack.c.bf16 %v425_v63, %v391_v62  ;;  %v461_v17 = vld [vmem:[%s5934_s1 + $0xdb8] sm:$0xff]  ;;  %v460_v23 = vld [vmem:[%s5934_s1 + $0xdb0] sm:$0xff] }
 0x109   :  { %3044 = vmatpush1.bf16.msra.mxu0 %v3043_v20  ;;  %2391 = vst [vmem:[%s5937_s3 + $0x230] sm:$0xff] %v2254_v39  ;;  %2390 = vst [vmem:[%s5937_s3 + $0x228] sm:$0xff] %v2253_v41  ;;  %v845_v48 = vadd.f32 %v844_v40, %v5090_v28  ;;  %v758_v50 = vadd.f32 %v757_v45, %v5090_v28  ;;  %v846_v7 = vpop.f32.mrb[7].mxu1  ;;  %1905 = vmatmul.mubr.f32.gmra.mrb[52].mxu1 %v4579_v10  ;;  %v458_v20 = vld [vmem:[%s5934_s1 + $0xda0] sm:$0xff]  ;;  %v561_v25 = vld [vmem:[%s5934_s1 + $0x10d8] sm:$0xff] }
 0x10a   :  { %3080 = vmatpush1.bf16.msra.mxu1 %v3079_v29  ;;  %3046 = vmatprep.subr.bf16.mxu0 %v3045_v30  ;;  %2392 = vst [vmem:[%s5937_s3 + $0x238] sm:$0xff] %v2255_v43  ;;  %v2286_v10 = vmax.f32 %v756_v44, 0.0  ;;  %v847_v56 = vadd.f32 %v846_v7, %v5090_v28  ;;  %v3091_v16 = vpack.c.bf16 %v426_v12, %v392_v8  ;;  %v494_v29 = vld [vmem:[%s5934_s1 + $0xec0] sm:$0xff]  ;;  %v527_v30 = vld [vmem:[%s5934_s1 + $0xfc8] sm:$0xff]  ;;  %v529_v31 = vld [vmem:[%s5934_s1 + $0xfd8] sm:$0xff] }
 0x10b   :  { %3082 = vmatprep.subr.bf16.mxu1 %v3081_v33  ;;  %v2288_v1 = vmax.f32 %v845_v48, 0.0  ;;  %v2287_v0 = vmax.f32 %v758_v50, 0.0  ;;  %2512 = vmatprep.mubr.msk.f32.mxu0 %vm658_vm0, %v4604_v21  ;;  %v3057_v19 = vpack.c.bf16 %v493_v14, %v459_v13  ;;  %v3093_v57 = vpack.c.bf16 %v495_v11, %v461_v17  ;;  %v560_v36 = vld [vmem:[%s5934_s1 + $0x10d0] sm:$0xff]  ;;  %v562_v41 = vld [vmem:[%s5934_s1 + $0x10e0] sm:$0xff]  ;;  %v595_v46 = vld [vmem:[%s5934_s1 + $0x11e8] sm:$0xff] }
 0x10c   :  { %2423 = vst [vmem:[%s5937_s3 + $0x330] sm:$0xff] %v2286_v10  ;;  %v2289_v24 = vmax.f32 %v847_v56, 0.0  ;;  %2516 = vmatprep.mubr.msk.f32.mxu1 %vm658_vm0, %v4604_v21  ;;  %1822 = vmatmul.mubr.f32.gmra.mrb[54].mxu0 %v4619_v27  ;;  %v390_v21 = vld [vmem:[%s5934_s1 + $0xb80] sm:$0xff]  ;;  %v3059_v61 = vpack.c.bf16 %v492_v22, %v458_v20  ;;  %v3095_v32 = vpack.c.bf16 %v494_v29, %v460_v23  ;;  %v528_v37 = vld [vmem:[%s5934_s1 + $0xfd0] sm:$0xff]  ;;  %v629_v42 = vld [vmem:[%s5934_s1 + $0x12f8] sm:$0xff] }
 0x10d   :  { %3048 = vmatpush1.bf16.msra.mxu0 %v3047_v47  ;;  %2425 = vst [vmem:[%s5937_s3 + $0x340] sm:$0xff] %v2288_v1  ;;  %2424 = vst [vmem:[%s5937_s3 + $0x338] sm:$0xff] %v2287_v0  ;;  %1911 = vmatmul.mubr.f32.gmra.mrb[54].mxu1 %v4619_v27  ;;  %v3089_v27 = vpack.c.bf16 %v427_v2, %v393_v60  ;;  %v3055_v18 = vpack.c.bf16 %v424_v6, %v390_v21  ;;  %v597_v38 = vld [vmem:[%s5934_s1 + $0x11f8] sm:$0xff]  ;;  %v631_v43 = vld [vmem:[%s5934_s1 + $0x1308] sm:$0xff] }
 0x10e   :  { %3084 = vmatpush1.bf16.msra.mxu1 %v3083_v51  ;;  %3050 = vmatprep.subr.bf16.mxu0 %v3049_v52  ;;  %2426 = vst [vmem:[%s5937_s3 + $0x348] sm:$0xff] %v2289_v24  ;;  %v3061_v33 = vpack.c.bf16 %v561_v25, %v527_v30  ;;  %v3097_v39 = vpack.c.bf16 %v563_v26, %v529_v31  ;;  %v594_v47 = vld [vmem:[%s5934_s1 + $0x11e0] sm:$0xff]  ;;  %v628_v48 = vld [vmem:[%s5934_s1 + $0x12f0] sm:$0xff]  ;;  %v55_v52 = vld [vmem:[%s5934_s1 + $0x108] sm:$0xff] }
 0x10f   :  { %3086 = vmatprep.subr.bf16.mxu1 %v3085_v58  ;;  %2517 = vmatprep.mubr.msk.f32.mxu0 %vm658_vm0, %v5208_v15  ;;  %v3063_v40 = vpack.c.bf16 %v560_v36, %v526_v35  ;;  %v3099_v44 = vpack.c.bf16 %v562_v41, %v528_v37  ;;  %v3065_v45 = vpack.c.bf16 %v629_v42, %v595_v46  ;;  %v596_v50 = vld [vmem:[%s5934_s1 + $0x11f0] sm:$0xff]  ;;  %v630_v51 = vld [vmem:[%s5934_s1 + $0x1300] sm:$0xff]  ;;  %v89_v53 = vld [vmem:[%s5934_s1 + $0x218] sm:$0xff] }
 0x110   :  { %2521 = vmatprep.mubr.msk.f32.mxu1 %vm658_vm0, %v5208_v15  ;;  %v3101_v7 = vpack.c.bf16 %v631_v43, %v597_v38  ;;  %v3067_v54 = vpack.c.bf16 %v628_v48, %v594_v47  ;;  %v3103_v55 = vpack.c.bf16 %v630_v51, %v596_v50  ;;  %v3105_v10 = vpack.c.bf16 %v89_v53, %v55_v52  ;;  %v54_v56 = vld [vmem:[%s5934_s1 + $0x100] sm:$0xff]  ;;  %v88_v58 = vld [vmem:[%s5934_s1 + $0x210] sm:$0xff]  ;;  %v123_v62 = vld [vmem:[%s5934_s1 + $0x328] sm:$0xff] }
 0x111   :  { %3052 = vmatpush1.bf16.msra.mxu0 %v3051_v3  ;;  %v157_v63 = vld [vmem:[%s5934_s1 + $0x438] sm:$0xff]  ;;  %v122_v8 = vld [vmem:[%s5934_s1 + $0x320] sm:$0xff]  ;;  %v191_v14 = vld [vmem:[%s5934_s1 + $0x548] sm:$0xff] }
 0x112   :  { %3088 = vmatpush1.bf16.msra.mxu1 %v3087_v4  ;;  %3054 = vmatprep.subr.bf16.mxu0 %v3053_v5  ;;  %v3107_v4 = vpack.c.bf16 %v88_v58, %v54_v56  ;;  %v3109_v6 = vpack.c.bf16 %v157_v63, %v123_v62  ;;  %v225_v17 = vld [vmem:[%s5934_s1 + $0x658] sm:$0xff]  ;;  %v190_v31 = vld [vmem:[%s5934_s1 + $0x540] sm:$0xff]  ;;  %v224_v26 = vld [vmem:[%s5934_s1 + $0x650] sm:$0xff] }
 0x113   :  { %3090 = vmatprep.subr.bf16.mxu1 %v3089_v27  ;;  %v156_v27 = vld [vmem:[%s5934_s1 + $0x430] sm:$0xff]  ;;  %v3113_v25 = vpack.c.bf16 %v225_v17, %v191_v14  ;;  %v293_v35 = vld [vmem:[%s5934_s1 + $0x878] sm:$0xff]  ;;  %v3174_v58 = vld [vmem:[%s5935_s0 + $0x28] sm:$0xff] }
 0x114   :  { %v3111_v23 = vpack.c.bf16 %v156_v27, %v122_v8  ;;  %v5365_v43 = vld [vmem:[%s5935_s0 + $0x10] sm:$0xff] }
 0x115   :  { %3056 = vmatpush1.bf16.msra.mxu0 %v3055_v18  ;;  %v292_v51 = vld [vmem:[%s5934_s1 + $0x870] sm:$0xff] }
 0x116   :  { %3092 = vmatpush1.bf16.msra.mxu1 %v3091_v16  ;;  %3058 = vmatprep.subr.bf16.mxu0 %v3057_v19  ;;  %v5320_v16 = vld [vmem:[%s5935_s0] sm:$0xff] }
 0x117   :  { %3094 = vmatprep.subr.bf16.mxu1 %v3093_v57 }
 0x119   :  { %3060 = vmatpush1.bf16.msra.mxu0 %v3059_v61 }
 0x11a   :  { %3096 = vmatpush1.bf16.msra.mxu1 %v3095_v32  ;;  %3062 = vmatprep.subr.bf16.mxu0 %v3061_v33  ;;  %v259_v33 = vld [vmem:[%s5934_s1 + $0x768] sm:$0xff] }
 0x11b   :  { %3098 = vmatprep.subr.bf16.mxu1 %v3097_v39  ;;  %v5352_v39 = vld [vmem:[%s5935_s0 + $0x18] sm:$0xff]  ;;  %v3117_v50 = vpack.c.bf16 %v293_v35, %v259_v33 }
 0x11d   :  { %3064 = vmatpush1.bf16.msra.mxu0 %v3063_v40 }
 0x11e   :  { %3100 = vmatpush1.bf16.msra.mxu1 %v3099_v44  ;;  %3066 = vmatprep.subr.bf16.mxu0 %v3065_v45  ;;  %v3115_v44 = vpack.c.bf16 %v224_v26, %v190_v31  ;;  %v462_v26 = vld [vmem:[%s5934_s1 + $0xdc0] sm:$0xff] }
 0x11f   :  { %v915_v59 = vpop.f32.mrb[8].mxu0  ;;  %3102 = vmatprep.subr.bf16.mxu1 %v3101_v7  ;;  %v258_v7 = vld [vmem:[%s5934_s1 + $0x760] sm:$0xff] }
 0x120   :  { %v916_v1 = vadd.f32 %v915_v59, %v4963_v9  ;;  %v1004_v0 = vpop.f32.mrb[8].mxu1  ;;  %v917_v60 = vpop.f32.mrb[9].mxu0 }
 0x121   :  { %v1005_v2 = vadd.f32 %v1004_v0, %v4963_v9  ;;  %v918_v24 = vadd.f32 %v917_v60, %v4963_v9  ;;  %v1006_v3 = vpop.f32.mrb[9].mxu1  ;;  %3068 = vmatpush1.bf16.msra.mxu0 %v3067_v54  ;;  %v327_v54 = vld [vmem:[%s5934_s1 + $0x988] sm:$0xff]  ;;  %v5405_v0 = vld [vmem:[%s5935_s0 + $0x20] sm:$0xff] }
 0x122   :  { %v2188_v5 = vmax.f32 %v916_v1, 0.0  ;;  %v1007_v21 = vadd.f32 %v1006_v3, %v4963_v9  ;;  %3104 = vmatpush1.bf16.msra.mxu1 %v3103_v55  ;;  %3106 = vmatprep.subr.bf16.mxu0 %v3105_v10  ;;  %v361_v55 = vld [vmem:[%s5934_s1 + $0xa98] sm:$0xff] }
 0x123   :  { %v2190_v12 = vmax.f32 %v1005_v2, 0.0  ;;  %v2189_v13 = vmax.f32 %v918_v24, 0.0  ;;  %3141 = vmatprep.subr.bf16.mxu1 %v3105_v10  ;;  %v921_v11 = vpop.f32.mrb[10].mxu0  ;;  %v3119_v2 = vpack.c.bf16 %v292_v51, %v258_v7 }
 0x124   :  { %2324 = vst [vmem:[%s5937_s3 + $0x20] sm:$0xff] %v2188_v5  ;;  %v2191_v18 = vmax.f32 %v1007_v21, 0.0  ;;  %1982 = vmatmul.mubr.f32.vlgmr.msra.gmra.mrb[56].mxu0 %v5320_v16  ;;  %v922_v19 = vadd.f32 %v921_v11, %v4992_v34  ;;  %v1010_v20 = vpop.f32.mrb[10].mxu1  ;;  %v923_v22 = vpop.f32.mrb[11].mxu0  ;;  %v3121_v5 = vpack.c.bf16 %v361_v55, %v327_v54  ;;  %v326_v21 = vld [vmem:[%s5934_s1 + $0x980] sm:$0xff]  ;;  %v5436_v11 = vld [vmem:[%s5935_s0 + $0x38] sm:$0xff] }
 0x125   :  { %2326 = vst [vmem:[%s5937_s3 + $0x30] sm:$0xff] %v2190_v12  ;;  %2325 = vst [vmem:[%s5937_s3 + $0x28] sm:$0xff] %v2189_v13  ;;  %2071 = vmatmul.mubr.f32.vlgmr.msra.gmra.mrb[56].mxu1 %v5320_v16  ;;  %3108 = vmatpush1.bf16.msra.mxu0 %v3107_v4  ;;  %v1011_v57 = vadd.f32 %v1010_v20, %v4992_v34  ;;  %v924_v29 = vadd.f32 %v923_v22, %v4992_v34  ;;  %v1012_v30 = vpop.f32.mrb[11].mxu1  ;;  %v395_v12 = vld [vmem:[%s5934_s1 + $0xba8] sm:$0xff]  ;;  %v429_v13 = vld [vmem:[%s5934_s1 + $0xcb8] sm:$0xff] }
 0x126   :  { %2327 = vst [vmem:[%s5937_s3 + $0x38] sm:$0xff] %v2191_v18  ;;  %3150 = vmatpush1.bf16.msra.mxu1 %v3107_v4  ;;  %3110 = vmatprep.subr.bf16.mxu0 %v3109_v6  ;;  %v2222_v61 = vmax.f32 %v922_v19, 0.0  ;;  %v1013_v32 = vadd.f32 %v1012_v30, %v4992_v34  ;;  %v5448_v19 = vld [vmem:[%s5935_s0 + $0x30] sm:$0xff]  ;;  %v3125_v22 = vpack.c.bf16 %v429_v13, %v395_v12  ;;  %v497_v30 = vld [vmem:[%s5934_s1 + $0xed8] sm:$0xff] }
 0x127   :  { %3142 = vmatprep.subr.bf16.mxu1 %v3109_v6  ;;  %v2224_v36 = vmax.f32 %v1011_v57, 0.0  ;;  %v2223_v37 = vmax.f32 %v924_v29, 0.0  ;;  %2518 = vmatprep.mubr.msk.f32.mxu0 %vm658_vm0, %v5352_v39  ;;  %v927_v41 = vpop.f32.mrb[12].mxu0  ;;  %v360_v6 = vld [vmem:[%s5934_s1 + $0xa90] sm:$0xff]  ;;  %v463_v29 = vld [vmem:[%s5934_s1 + $0xdc8] sm:$0xff] }
 0x128   :  { %2359 = vst [vmem:[%s5937_s3 + $0x130] sm:$0xff] %v2222_v61  ;;  %v2225_v46 = vmax.f32 %v1013_v32, 0.0  ;;  %2522 = vmatprep.mubr.msk.f32.mxu1 %vm658_vm0, %v5352_v39  ;;  %v928_v42 = vadd.f32 %v927_v41, %v5015_v49  ;;  %v1016_v38 = vpop.f32.mrb[12].mxu1  ;;  %1988 = vmatmul.mubr.f32.gmra.mrb[58].mxu0 %v5365_v43  ;;  %v929_v40 = vpop.f32.mrb[13].mxu0  ;;  %v3123_v20 = vpack.c.bf16 %v360_v6, %v326_v21  ;;  %v428_v57 = vld [vmem:[%s5934_s1 + $0xcb0] sm:$0xff]  ;;  %v565_v32 = vld [vmem:[%s5934_s1 + $0x10f8] sm:$0xff] }
 0x129   :  { %3112 = vmatpush1.bf16.msra.mxu0 %v3111_v23  ;;  %2361 = vst [vmem:[%s5937_s3 + $0x140] sm:$0xff] %v2224_v36  ;;  %2360 = vst [vmem:[%s5937_s3 + $0x138] sm:$0xff] %v2223_v37  ;;  %v1017_v45 = vadd.f32 %v1016_v38, %v5015_v49  ;;  %2077 = vmatmul.mubr.f32.gmra.mrb[58].mxu1 %v5365_v43  ;;  %v930_v47 = vadd.f32 %v929_v40, %v5015_v49  ;;  %v1018_v48 = vpop.f32.mrb[13].mxu1  ;;  %v496_v61 = vld [vmem:[%s5934_s1 + $0xed0] sm:$0xff]  ;;  %v530_v36 = vld [vmem:[%s5934_s1 + $0xfe0] sm:$0xff] }
 0x12a   :  { %3151 = vmatpush1.bf16.msra.mxu1 %v3111_v23  ;;  %3114 = vmatprep.subr.bf16.mxu0 %v3113_v25  ;;  %2362 = vst [vmem:[%s5937_s3 + $0x148] sm:$0xff] %v2225_v46  ;;  %v2256_v52 = vmax.f32 %v928_v42, 0.0  ;;  %v1019_v53 = vadd.f32 %v1018_v48, %v5015_v49  ;;  %v394_v23 = vld [vmem:[%s5934_s1 + $0xba0] sm:$0xff]  ;;  %v3129_v31 = vpack.c.bf16 %v497_v30, %v463_v29  ;;  %v564_v37 = vld [vmem:[%s5934_s1 + $0x10f0] sm:$0xff]  ;;  %v599_v41 = vld [vmem:[%s5934_s1 + $0x1208] sm:$0xff] }
 0x12b   :  { %3143 = vmatprep.subr.bf16.mxu1 %v3113_v25  ;;  %v2258_v10 = vmax.f32 %v1017_v45, 0.0  ;;  %v2257_v56 = vmax.f32 %v930_v47, 0.0  ;;  %2519 = vmatprep.mubr.msk.f32.mxu0 %vm658_vm0, %v3174_v58  ;;  %v933_v59 = vpop.f32.mrb[14].mxu0  ;;  %v3127_v25 = vpack.c.bf16 %v428_v57, %v394_v23  ;;  %v3131_v33 = vpack.c.bf16 %v496_v61, %v462_v26  ;;  %v633_v46 = vld [vmem:[%s5934_s1 + $0x1318] sm:$0xff]  ;;  %v598_v40 = vld [vmem:[%s5934_s1 + $0x1200] sm:$0xff] }
 0x12c   :  { %2393 = vst [vmem:[%s5937_s3 + $0x240] sm:$0xff] %v2256_v52  ;;  %v2259_v62 = vmax.f32 %v1019_v53, 0.0  ;;  %2523 = vmatprep.mubr.msk.f32.mxu1 %vm658_vm0, %v3174_v58  ;;  %v934_v63 = vadd.f32 %v933_v59, %v5090_v28  ;;  %v1022_v1 = vpop.f32.mrb[14].mxu1  ;;  %1994 = vmatmul.mubr.f32.gmra.mrb[60].mxu0 %v5405_v0  ;;  %v935_v60 = vpop.f32.mrb[15].mxu0  ;;  %v3135_v42 = vpack.c.bf16 %v564_v37, %v530_v36 }
 0x12d   :  { %3116 = vmatpush1.bf16.msra.mxu0 %v3115_v44  ;;  %2395 = vst [vmem:[%s5937_s3 + $0x250] sm:$0xff] %v2258_v10  ;;  %2394 = vst [vmem:[%s5937_s3 + $0x248] sm:$0xff] %v2257_v56  ;;  %v1023_v24 = vadd.f32 %v1022_v1, %v5090_v28  ;;  %2083 = vmatmul.mubr.f32.gmra.mrb[60].mxu1 %v5405_v0  ;;  %v936_v3 = vadd.f32 %v935_v60, %v5090_v28  ;;  %v1024_v4 = vpop.f32.mrb[15].mxu1 }
 0x12e   :  { %3152 = vmatpush1.bf16.msra.mxu1 %v3115_v44  ;;  %3118 = vmatprep.subr.bf16.mxu0 %v3117_v50  ;;  %2396 = vst [vmem:[%s5937_s3 + $0x258] sm:$0xff] %v2259_v62  ;;  %v2290_v8 = vmax.f32 %v934_v63, 0.0  ;;  %v1025_v27 = vadd.f32 %v1024_v4, %v5090_v28  ;;  %v3137_v38 = vpack.c.bf16 %v633_v46, %v599_v41  ;;  %v632_v44 = vld [vmem:[%s5934_s1 + $0x1310] sm:$0xff] }
 0x12f   :  { %3144 = vmatprep.subr.bf16.mxu1 %v3117_v50  ;;  %v2292_v14 = vmax.f32 %v1023_v24, 0.0  ;;  %v2291_v17 = vmax.f32 %v936_v3, 0.0  ;;  %2520 = vmatprep.mubr.msk.f32.mxu0 %vm658_vm0, %v5436_v11  ;;  %v3139_v45 = vpack.c.bf16 %v632_v44, %v598_v40 }
 0x130   :  { %2427 = vst [vmem:[%s5937_s3 + $0x350] sm:$0xff] %v2290_v8  ;;  %v2293_v18 = vmax.f32 %v1025_v27, 0.0  ;;  %2524 = vmatprep.mubr.msk.f32.mxu1 %vm658_vm0, %v5436_v11  ;;  %2000 = vmatmul.mubr.f32.gmra.mrb[62].mxu0 %v5448_v19 }
 0x131   :  { %3120 = vmatpush1.bf16.msra.mxu0 %v3119_v2  ;;  %2429 = vst [vmem:[%s5937_s3 + $0x360] sm:$0xff] %v2292_v14  ;;  %2428 = vst [vmem:[%s5937_s3 + $0x358] sm:$0xff] %v2291_v17  ;;  %2089 = vmatmul.mubr.f32.gmra.mrb[62].mxu1 %v5448_v19 }
 0x132   :  { %3153 = vmatpush1.bf16.msra.mxu1 %v3119_v2  ;;  %3122 = vmatprep.subr.bf16.mxu0 %v3121_v5  ;;  %2430 = vst [vmem:[%s5937_s3 + $0x368] sm:$0xff] %v2293_v18 }
 0x133   :  { %3145 = vmatprep.subr.bf16.mxu1 %v3121_v5  ;;  %2525 = vmatprep.mubr.msk.f32.mxu0 %vm658_vm0, %v5208_v15  ;;  %v531_v15 = vld [vmem:[%s5934_s1 + $0xfe8] sm:$0xff] }
 0x134   :  { %2527 = vmatprep.mubr.msk.f32.mxu1 %vm658_vm0, %v3174_v58  ;;  %v3133_v35 = vpack.c.bf16 %v565_v32, %v531_v15 }
 0x135   :  { %3124 = vmatpush1.bf16.msra.mxu0 %v3123_v20 }
 0x136   :  { %3154 = vmatpush1.bf16.msra.mxu1 %v3123_v20  ;;  %3126 = vmatprep.subr.bf16.mxu0 %v3125_v22 }
 0x137   :  { %3146 = vmatprep.subr.bf16.mxu1 %v3125_v22 }
 0x139   :  { %3128 = vmatpush1.bf16.msra.mxu0 %v3127_v25 }
 0x13a   :  { %3155 = vmatpush1.bf16.msra.mxu1 %v3127_v25  ;;  %3130 = vmatprep.subr.bf16.mxu0 %v3129_v31 }
 0x13b   :  { %3147 = vmatprep.subr.bf16.mxu1 %v3129_v31 }
 0x13d   :  { %3132 = vmatpush1.bf16.msra.mxu0 %v3131_v33 }
 0x13e   :  { %3156 = vmatpush1.bf16.msra.mxu1 %v3131_v33  ;;  %3134 = vmatprep.subr.bf16.mxu0 %v3133_v35 }
 0x13f   :  { %3148 = vmatprep.subr.bf16.mxu1 %v3133_v35 }
 0x141   :  { %3136 = vmatpush1.bf16.msra.mxu0 %v3135_v42 }
 0x142   :  { %3157 = vmatpush1.bf16.msra.mxu1 %v3135_v42  ;;  %3138 = vmatprep.subr.bf16.mxu0 %v3137_v38 }
 0x143   :  { %v1093_v47 = vpop.f32.mrb[16].mxu0  ;;  %3149 = vmatprep.subr.bf16.mxu1 %v3137_v38 }
 0x144   :  { %v1094_v48 = vadd.f32 %v1093_v47, %v4963_v9  ;;  %v1182_v50 = vpop.f32.mrb[16].mxu1  ;;  %v1095_v7 = vpop.f32.mrb[17].mxu0 }
 0x145   :  { %v1183_v51 = vadd.f32 %v1182_v50, %v4963_v9  ;;  %v1096_v52 = vadd.f32 %v1095_v7, %v4963_v9  ;;  %v1184_v53 = vpop.f32.mrb[17].mxu1  ;;  %3140 = vmatpush1.bf16.msra.mxu0 %v3139_v45 }
 0x146   :  { %v2192_v54 = vmax.f32 %v1094_v48, 0.0  ;;  %v1185_v55 = vadd.f32 %v1184_v53, %v4963_v9  ;;  %3158 = vmatpush1.bf16.msra.mxu1 %v3139_v45 }
 0x147   :  { %v2194_v10 = vmax.f32 %v1183_v51, 0.0  ;;  %v2193_v56 = vmax.f32 %v1096_v52, 0.0  ;;  %v1099_v58 = vpop.f32.mrb[18].mxu0 }
 0x148   :  { %2328 = vst [vmem:[%s5937_s3 + $0x40] sm:$0xff] %v2192_v54  ;;  %v2195_v59 = vmax.f32 %v1185_v55, 0.0  ;;  %2160 = vmatmul.mubr.f32.vlgmr.msra.gmra.mrb[64].mxu0 %v5320_v16  ;;  %v1100_v62 = vadd.f32 %v1099_v58, %v4992_v34  ;;  %v1188_v63 = vpop.f32.mrb[18].mxu1  ;;  %v1101_v1 = vpop.f32.mrb[19].mxu0 }
 0x149   :  { %2330 = vst [vmem:[%s5937_s3 + $0x50] sm:$0xff] %v2194_v10  ;;  %2329 = vst [vmem:[%s5937_s3 + $0x48] sm:$0xff] %v2193_v56  ;;  %2172 = vmatmul.mubr.f32.vlgmr.msra.gmra.mrb[64].mxu1 %v5405_v0  ;;  %2526 = vmatprep.mubr.msk.f32.mxu0 %vm658_vm0, %v5352_v39  ;;  %v1189_v60 = vadd.f32 %v1188_v63, %v4992_v34  ;;  %v1102_v16 = vadd.f32 %v1101_v1, %v4992_v34  ;;  %v1190_v2 = vpop.f32.mrb[19].mxu1 }
 0x14a   :  { %2331 = vst [vmem:[%s5937_s3 + $0x58] sm:$0xff] %v2195_v59  ;;  %2528 = vmatprep.mubr.msk.f32.mxu1 %vm658_vm0, %v5436_v11  ;;  %v2226_v24 = vmax.f32 %v1100_v62, 0.0  ;;  %v1191_v3 = vadd.f32 %v1190_v2, %v4992_v34 }
 0x14b   :  { %v2228_v4 = vmax.f32 %v1189_v60, 0.0  ;;  %v2227_v0 = vmax.f32 %v1102_v16, 0.0  ;;  %v1105_v5 = vpop.f32.mrb[20].mxu0 }
 0x14c   :  { %2166 = vmatmul.mubr.f32.gmra.mrb[66].mxu0 %v5365_v43  ;;  %2363 = vst [vmem:[%s5937_s3 + $0x150] sm:$0xff] %v2226_v24  ;;  %v2229_v39 = vmax.f32 %v1191_v3, 0.0  ;;  %v1106_v21 = vadd.f32 %v1105_v5, %v5015_v49  ;;  %v1194_v6 = vpop.f32.mrb[20].mxu1  ;;  %v1107_v8 = vpop.f32.mrb[21].mxu0 }
 0x14d   :  { %2178 = vmatmul.mubr.f32.gmra.mrb[66].mxu1 %v5448_v19  ;;  %2365 = vst [vmem:[%s5937_s3 + $0x160] sm:$0xff] %v2228_v4  ;;  %2364 = vst [vmem:[%s5937_s3 + $0x158] sm:$0xff] %v2227_v0  ;;  %v1195_v43 = vadd.f32 %v1194_v6, %v5015_v49  ;;  %v1108_v27 = vadd.f32 %v1107_v8, %v5015_v49  ;;  %v1196_v12 = vpop.f32.mrb[21].mxu1 }
 0x14e   :  { %2366 = vst [vmem:[%s5937_s3 + $0x168] sm:$0xff] %v2229_v39  ;;  %v2260_v13 = vmax.f32 %v1106_v21, 0.0  ;;  %v1197_v14 = vadd.f32 %v1196_v12, %v5015_v49 }
 0x14f   :  { %v2262_v17 = vmax.f32 %v1195_v43, 0.0  ;;  %v2261_v11 = vmax.f32 %v1108_v27, 0.0  ;;  %v1111_v18 = vpop.f32.mrb[22].mxu0 }
 0x150   :  { %2397 = vst [vmem:[%s5937_s3 + $0x260] sm:$0xff] %v2260_v13  ;;  %v2263_v19 = vmax.f32 %v1197_v14, 0.0  ;;  %v1112_v20 = vadd.f32 %v1111_v18, %v5090_v28  ;;  %v1200_v22 = vpop.f32.mrb[22].mxu1  ;;  %v1113_v23 = vpop.f32.mrb[23].mxu0 }
 0x151   :  { %2399 = vst [vmem:[%s5937_s3 + $0x270] sm:$0xff] %v2262_v17  ;;  %2398 = vst [vmem:[%s5937_s3 + $0x268] sm:$0xff] %v2261_v11  ;;  %v1201_v57 = vadd.f32 %v1200_v22, %v5090_v28  ;;  %v1114_v29 = vadd.f32 %v1113_v23, %v5090_v28  ;;  %v1202_v30 = vpop.f32.mrb[23].mxu1 }
 0x152   :  { %2400 = vst [vmem:[%s5937_s3 + $0x278] sm:$0xff] %v2263_v19  ;;  %v2294_v25 = vmax.f32 %v1112_v20, 0.0  ;;  %v1203_v31 = vadd.f32 %v1202_v30, %v5090_v28 }
 0x153   :  { %v2296_v26 = vmax.f32 %v1201_v57, 0.0  ;;  %v2295_v61 = vmax.f32 %v1114_v29, 0.0 }
 0x154   :  { %2431 = vst [vmem:[%s5937_s3 + $0x370] sm:$0xff] %v2294_v25  ;;  %v2297_v15 = vmax.f32 %v1203_v31, 0.0 }
 0x155   :  { %2433 = vst [vmem:[%s5937_s3 + $0x380] sm:$0xff] %v2296_v26  ;;  %2432 = vst [vmem:[%s5937_s3 + $0x378] sm:$0xff] %v2295_v61 }
 0x156   :  { %2434 = vst [vmem:[%s5937_s3 + $0x388] sm:$0xff] %v2297_v15 }
 0x167   :  { %v1271_v32 = vpop.f32.mrb[24].mxu0 }
 0x168   :  { %v1272_v33 = vadd.f32 %v1271_v32, %v4963_v9  ;;  %v1360_v35 = vpop.f32.mrb[24].mxu1  ;;  %v1273_v36 = vpop.f32.mrb[25].mxu0 }
 0x169   :  { %v1361_v37 = vadd.f32 %v1360_v35, %v4963_v9  ;;  %v1274_v41 = vadd.f32 %v1273_v36, %v4963_v9  ;;  %v1362_v46 = vpop.f32.mrb[25].mxu1 }
 0x16a   :  { %v2196_v42 = vmax.f32 %v1272_v33, 0.0  ;;  %v1363_v38 = vadd.f32 %v1362_v46, %v4963_v9 }
 0x16b   :  { %v2198_v40 = vmax.f32 %v1361_v37, 0.0  ;;  %v2197_v44 = vmax.f32 %v1274_v41, 0.0  ;;  %v1277_v45 = vpop.f32.mrb[26].mxu0 }
 0x16c   :  { %2332 = vst [vmem:[%s5937_s3 + $0x60] sm:$0xff] %v2196_v42  ;;  %v2199_v47 = vmax.f32 %v1363_v38, 0.0  ;;  %v1278_v48 = vadd.f32 %v1277_v45, %v4992_v34  ;;  %v1366_v50 = vpop.f32.mrb[26].mxu1  ;;  %v1279_v7 = vpop.f32.mrb[27].mxu0 }
 0x16d   :  { %2334 = vst [vmem:[%s5937_s3 + $0x70] sm:$0xff] %v2198_v40  ;;  %2333 = vst [vmem:[%s5937_s3 + $0x68] sm:$0xff] %v2197_v44  ;;  %v1367_v51 = vadd.f32 %v1366_v50, %v4992_v34  ;;  %v1280_v52 = vadd.f32 %v1279_v7, %v4992_v34  ;;  %v1368_v53 = vpop.f32.mrb[27].mxu1 }
 0x16e   :  { %2335 = vst [vmem:[%s5937_s3 + $0x78] sm:$0xff] %v2199_v47  ;;  %v2230_v54 = vmax.f32 %v1278_v48, 0.0  ;;  %v1369_v55 = vadd.f32 %v1368_v53, %v4992_v34 }
 0x16f   :  { %v2232_v10 = vmax.f32 %v1367_v51, 0.0  ;;  %v2231_v56 = vmax.f32 %v1280_v52, 0.0  ;;  %v1283_v58 = vpop.f32.mrb[28].mxu0 }
 0x170   :  { %2367 = vst [vmem:[%s5937_s3 + $0x170] sm:$0xff] %v2230_v54  ;;  %v2233_v59 = vmax.f32 %v1369_v55, 0.0  ;;  %v1284_v62 = vadd.f32 %v1283_v58, %v5015_v49  ;;  %v1372_v63 = vpop.f32.mrb[28].mxu1  ;;  %v1285_v1 = vpop.f32.mrb[29].mxu0 }
 0x171   :  { %2369 = vst [vmem:[%s5937_s3 + $0x180] sm:$0xff] %v2232_v10  ;;  %2368 = vst [vmem:[%s5937_s3 + $0x178] sm:$0xff] %v2231_v56  ;;  %v1373_v60 = vadd.f32 %v1372_v63, %v5015_v49  ;;  %v1286_v16 = vadd.f32 %v1285_v1, %v5015_v49  ;;  %v1374_v2 = vpop.f32.mrb[29].mxu1 }
 0x172   :  { %2370 = vst [vmem:[%s5937_s3 + $0x188] sm:$0xff] %v2233_v59  ;;  %v2264_v24 = vmax.f32 %v1284_v62, 0.0  ;;  %v1375_v3 = vadd.f32 %v1374_v2, %v5015_v49 }
 0x173   :  { %v2266_v4 = vmax.f32 %v1373_v60, 0.0  ;;  %v2265_v0 = vmax.f32 %v1286_v16, 0.0  ;;  %v1289_v5 = vpop.f32.mrb[30].mxu0 }
 0x174   :  { %2401 = vst [vmem:[%s5937_s3 + $0x280] sm:$0xff] %v2264_v24  ;;  %v2267_v39 = vmax.f32 %v1375_v3, 0.0  ;;  %v1290_v21 = vadd.f32 %v1289_v5, %v5090_v28  ;;  %v1378_v6 = vpop.f32.mrb[30].mxu1  ;;  %v1291_v8 = vpop.f32.mrb[31].mxu0 }
 0x175   :  { %2403 = vst [vmem:[%s5937_s3 + $0x290] sm:$0xff] %v2266_v4  ;;  %2402 = vst [vmem:[%s5937_s3 + $0x288] sm:$0xff] %v2265_v0  ;;  %v1379_v43 = vadd.f32 %v1378_v6, %v5090_v28  ;;  %v1292_v27 = vadd.f32 %v1291_v8, %v5090_v28  ;;  %v1380_v12 = vpop.f32.mrb[31].mxu1 }
 0x176   :  { %2404 = vst [vmem:[%s5937_s3 + $0x298] sm:$0xff] %v2267_v39  ;;  %v2298_v13 = vmax.f32 %v1290_v21, 0.0  ;;  %v1381_v14 = vadd.f32 %v1380_v12, %v5090_v28 }
 0x177   :  { %v2300_v17 = vmax.f32 %v1379_v43, 0.0  ;;  %v2299_v11 = vmax.f32 %v1292_v27, 0.0 }
 0x178   :  { %2435 = vst [vmem:[%s5937_s3 + $0x390] sm:$0xff] %v2298_v13  ;;  %v2301_v18 = vmax.f32 %v1381_v14, 0.0 }
 0x179   :  { %2437 = vst [vmem:[%s5937_s3 + $0x3a0] sm:$0xff] %v2300_v17  ;;  %2436 = vst [vmem:[%s5937_s3 + $0x398] sm:$0xff] %v2299_v11 }
 0x17a   :  { %2438 = vst [vmem:[%s5937_s3 + $0x3a8] sm:$0xff] %v2301_v18 }
 0x18b   :  { %v1449_v19 = vpop.f32.mrb[32].mxu0 }
 0x18c   :  { %v1450_v20 = vadd.f32 %v1449_v19, %v4963_v9  ;;  %v1538_v22 = vpop.f32.mrb[32].mxu1  ;;  %v1451_v23 = vpop.f32.mrb[33].mxu0 }
 0x18d   :  { %v1539_v57 = vadd.f32 %v1538_v22, %v4963_v9  ;;  %v1452_v29 = vadd.f32 %v1451_v23, %v4963_v9  ;;  %v1540_v30 = vpop.f32.mrb[33].mxu1 }
 0x18e   :  { %v2200_v25 = vmax.f32 %v1450_v20, 0.0  ;;  %v1541_v31 = vadd.f32 %v1540_v30, %v4963_v9 }
 0x18f   :  { %v2202_v26 = vmax.f32 %v1539_v57, 0.0  ;;  %v2201_v61 = vmax.f32 %v1452_v29, 0.0  ;;  %v1455_v15 = vpop.f32.mrb[34].mxu0 }
 0x190   :  { %2336 = vst [vmem:[%s5937_s3 + $0x80] sm:$0xff] %v2200_v25  ;;  %v2203_v32 = vmax.f32 %v1541_v31, 0.0  ;;  %v1456_v33 = vadd.f32 %v1455_v15, %v4992_v34  ;;  %v1544_v35 = vpop.f32.mrb[34].mxu1  ;;  %v1457_v36 = vpop.f32.mrb[35].mxu0 }
 0x191   :  { %2338 = vst [vmem:[%s5937_s3 + $0x90] sm:$0xff] %v2202_v26  ;;  %2337 = vst [vmem:[%s5937_s3 + $0x88] sm:$0xff] %v2201_v61  ;;  %v1545_v37 = vadd.f32 %v1544_v35, %v4992_v34  ;;  %v1458_v41 = vadd.f32 %v1457_v36, %v4992_v34  ;;  %v1546_v46 = vpop.f32.mrb[35].mxu1 }
 0x192   :  { %2339 = vst [vmem:[%s5937_s3 + $0x98] sm:$0xff] %v2203_v32  ;;  %v2234_v42 = vmax.f32 %v1456_v33, 0.0  ;;  %v1547_v38 = vadd.f32 %v1546_v46, %v4992_v34 }
 0x193   :  { %v2236_v40 = vmax.f32 %v1545_v37, 0.0  ;;  %v2235_v44 = vmax.f32 %v1458_v41, 0.0  ;;  %v1461_v45 = vpop.f32.mrb[36].mxu0 }
 0x194   :  { %2371 = vst [vmem:[%s5937_s3 + $0x190] sm:$0xff] %v2234_v42  ;;  %v2237_v47 = vmax.f32 %v1547_v38, 0.0  ;;  %v1462_v48 = vadd.f32 %v1461_v45, %v5015_v49  ;;  %v1550_v50 = vpop.f32.mrb[36].mxu1  ;;  %v1463_v7 = vpop.f32.mrb[37].mxu0 }
 0x195   :  { %2373 = vst [vmem:[%s5937_s3 + $0x1a0] sm:$0xff] %v2236_v40  ;;  %2372 = vst [vmem:[%s5937_s3 + $0x198] sm:$0xff] %v2235_v44  ;;  %v1551_v51 = vadd.f32 %v1550_v50, %v5015_v49  ;;  %v1464_v52 = vadd.f32 %v1463_v7, %v5015_v49  ;;  %v1552_v53 = vpop.f32.mrb[37].mxu1 }
 0x196   :  { %2374 = vst [vmem:[%s5937_s3 + $0x1a8] sm:$0xff] %v2237_v47  ;;  %v2268_v54 = vmax.f32 %v1462_v48, 0.0  ;;  %v1553_v55 = vadd.f32 %v1552_v53, %v5015_v49 }
 0x197   :  { %v2270_v10 = vmax.f32 %v1551_v51, 0.0  ;;  %v2269_v56 = vmax.f32 %v1464_v52, 0.0  ;;  %v1467_v58 = vpop.f32.mrb[38].mxu0 }
 0x198   :  { %2405 = vst [vmem:[%s5937_s3 + $0x2a0] sm:$0xff] %v2268_v54  ;;  %v2271_v59 = vmax.f32 %v1553_v55, 0.0  ;;  %v1468_v62 = vadd.f32 %v1467_v58, %v5090_v28  ;;  %v1556_v63 = vpop.f32.mrb[38].mxu1  ;;  %v1469_v1 = vpop.f32.mrb[39].mxu0 }
 0x199   :  { %2407 = vst [vmem:[%s5937_s3 + $0x2b0] sm:$0xff] %v2270_v10  ;;  %2406 = vst [vmem:[%s5937_s3 + $0x2a8] sm:$0xff] %v2269_v56  ;;  %v1557_v60 = vadd.f32 %v1556_v63, %v5090_v28  ;;  %v1470_v16 = vadd.f32 %v1469_v1, %v5090_v28  ;;  %v1558_v2 = vpop.f32.mrb[39].mxu1 }
 0x19a   :  { %2408 = vst [vmem:[%s5937_s3 + $0x2b8] sm:$0xff] %v2271_v59  ;;  %v2302_v24 = vmax.f32 %v1468_v62, 0.0  ;;  %v1559_v3 = vadd.f32 %v1558_v2, %v5090_v28 }
 0x19b   :  { %v2304_v4 = vmax.f32 %v1557_v60, 0.0  ;;  %v2303_v0 = vmax.f32 %v1470_v16, 0.0 }
 0x19c   :  { %2439 = vst [vmem:[%s5937_s3 + $0x3b0] sm:$0xff] %v2302_v24  ;;  %v2305_v5 = vmax.f32 %v1559_v3, 0.0 }
 0x19d   :  { %2441 = vst [vmem:[%s5937_s3 + $0x3c0] sm:$0xff] %v2304_v4  ;;  %2440 = vst [vmem:[%s5937_s3 + $0x3b8] sm:$0xff] %v2303_v0 }
 0x19e   :  { %2442 = vst [vmem:[%s5937_s3 + $0x3c8] sm:$0xff] %v2305_v5 }
 0x1af   :  { %v1627_v39 = vpop.f32.mrb[40].mxu0 }
 0x1b0   :  { %v1628_v21 = vadd.f32 %v1627_v39, %v4963_v9  ;;  %v1716_v6 = vpop.f32.mrb[40].mxu1  ;;  %v1629_v8 = vpop.f32.mrb[41].mxu0 }
 0x1b1   :  { %v1717_v43 = vadd.f32 %v1716_v6, %v4963_v9  ;;  %v1630_v27 = vadd.f32 %v1629_v8, %v4963_v9  ;;  %v1718_v12 = vpop.f32.mrb[41].mxu1 }
 0x1b2   :  { %v2204_v13 = vmax.f32 %v1628_v21, 0.0  ;;  %v1719_v14 = vadd.f32 %v1718_v12, %v4963_v9 }
 0x1b3   :  { %v2206_v17 = vmax.f32 %v1717_v43, 0.0  ;;  %v2205_v11 = vmax.f32 %v1630_v27, 0.0  ;;  %v1633_v18 = vpop.f32.mrb[42].mxu0 }
 0x1b4   :  { %2340 = vst [vmem:[%s5937_s3 + $0xa0] sm:$0xff] %v2204_v13  ;;  %v2207_v19 = vmax.f32 %v1719_v14, 0.0  ;;  %v1634_v20 = vadd.f32 %v1633_v18, %v4992_v34  ;;  %v1722_v22 = vpop.f32.mrb[42].mxu1  ;;  %v1635_v23 = vpop.f32.mrb[43].mxu0 }
 0x1b5   :  { %2342 = vst [vmem:[%s5937_s3 + $0xb0] sm:$0xff] %v2206_v17  ;;  %2341 = vst [vmem:[%s5937_s3 + $0xa8] sm:$0xff] %v2205_v11  ;;  %v1723_v57 = vadd.f32 %v1722_v22, %v4992_v34  ;;  %v1636_v29 = vadd.f32 %v1635_v23, %v4992_v34  ;;  %v1724_v30 = vpop.f32.mrb[43].mxu1 }
 0x1b6   :  { %2343 = vst [vmem:[%s5937_s3 + $0xb8] sm:$0xff] %v2207_v19  ;;  %v2238_v25 = vmax.f32 %v1634_v20, 0.0  ;;  %v1725_v31 = vadd.f32 %v1724_v30, %v4992_v34 }
 0x1b7   :  { %v2240_v26 = vmax.f32 %v1723_v57, 0.0  ;;  %v2239_v61 = vmax.f32 %v1636_v29, 0.0  ;;  %v1639_v15 = vpop.f32.mrb[44].mxu0 }
 0x1b8   :  { %2375 = vst [vmem:[%s5937_s3 + $0x1b0] sm:$0xff] %v2238_v25  ;;  %v2241_v32 = vmax.f32 %v1725_v31, 0.0  ;;  %v1640_v33 = vadd.f32 %v1639_v15, %v5015_v49  ;;  %v1728_v35 = vpop.f32.mrb[44].mxu1  ;;  %v1641_v36 = vpop.f32.mrb[45].mxu0 }
 0x1b9   :  { %2377 = vst [vmem:[%s5937_s3 + $0x1c0] sm:$0xff] %v2240_v26  ;;  %2376 = vst [vmem:[%s5937_s3 + $0x1b8] sm:$0xff] %v2239_v61  ;;  %v1729_v37 = vadd.f32 %v1728_v35, %v5015_v49  ;;  %v1642_v41 = vadd.f32 %v1641_v36, %v5015_v49  ;;  %v1730_v46 = vpop.f32.mrb[45].mxu1 }
 0x1ba   :  { %2378 = vst [vmem:[%s5937_s3 + $0x1c8] sm:$0xff] %v2241_v32  ;;  %v2272_v42 = vmax.f32 %v1640_v33, 0.0  ;;  %v1731_v38 = vadd.f32 %v1730_v46, %v5015_v49 }
 0x1bb   :  { %v2274_v40 = vmax.f32 %v1729_v37, 0.0  ;;  %v2273_v44 = vmax.f32 %v1642_v41, 0.0  ;;  %v1645_v45 = vpop.f32.mrb[46].mxu0 }
 0x1bc   :  { %2409 = vst [vmem:[%s5937_s3 + $0x2c0] sm:$0xff] %v2272_v42  ;;  %v2275_v47 = vmax.f32 %v1731_v38, 0.0  ;;  %v1646_v48 = vadd.f32 %v1645_v45, %v5090_v28  ;;  %v1734_v50 = vpop.f32.mrb[46].mxu1  ;;  %v1647_v7 = vpop.f32.mrb[47].mxu0 }
 0x1bd   :  { %2411 = vst [vmem:[%s5937_s3 + $0x2d0] sm:$0xff] %v2274_v40  ;;  %2410 = vst [vmem:[%s5937_s3 + $0x2c8] sm:$0xff] %v2273_v44  ;;  %v1735_v51 = vadd.f32 %v1734_v50, %v5090_v28  ;;  %v1648_v52 = vadd.f32 %v1647_v7, %v5090_v28  ;;  %v1736_v53 = vpop.f32.mrb[47].mxu1 }
 0x1be   :  { %2412 = vst [vmem:[%s5937_s3 + $0x2d8] sm:$0xff] %v2275_v47  ;;  %v2306_v54 = vmax.f32 %v1646_v48, 0.0  ;;  %v1737_v55 = vadd.f32 %v1736_v53, %v5090_v28 }
 0x1bf   :  { %v2308_v10 = vmax.f32 %v1735_v51, 0.0  ;;  %v2307_v56 = vmax.f32 %v1648_v52, 0.0 }
 0x1c0   :  { %2443 = vst [vmem:[%s5937_s3 + $0x3d0] sm:$0xff] %v2306_v54  ;;  %v2309_v58 = vmax.f32 %v1737_v55, 0.0 }
 0x1c1   :  { %2445 = vst [vmem:[%s5937_s3 + $0x3e0] sm:$0xff] %v2308_v10  ;;  %2444 = vst [vmem:[%s5937_s3 + $0x3d8] sm:$0xff] %v2307_v56 }
 0x1c2   :  { %2446 = vst [vmem:[%s5937_s3 + $0x3e8] sm:$0xff] %v2309_v58 }
 0x1d3   :  { %v1805_v59 = vpop.f32.mrb[48].mxu0 }
 0x1d4   :  { %v1806_v62 = vadd.f32 %v1805_v59, %v4963_v9  ;;  %v1894_v63 = vpop.f32.mrb[48].mxu1  ;;  %v1807_v1 = vpop.f32.mrb[49].mxu0 }
 0x1d5   :  { %v1895_v60 = vadd.f32 %v1894_v63, %v4963_v9  ;;  %v1808_v16 = vadd.f32 %v1807_v1, %v4963_v9  ;;  %v1896_v2 = vpop.f32.mrb[49].mxu1 }
 0x1d6   :  { %v2208_v24 = vmax.f32 %v1806_v62, 0.0  ;;  %v1897_v3 = vadd.f32 %v1896_v2, %v4963_v9 }
 0x1d7   :  { %v2210_v4 = vmax.f32 %v1895_v60, 0.0  ;;  %v2209_v0 = vmax.f32 %v1808_v16, 0.0  ;;  %v1811_v5 = vpop.f32.mrb[50].mxu0 }
 0x1d8   :  { %2344 = vst [vmem:[%s5937_s3 + $0xc0] sm:$0xff] %v2208_v24  ;;  %v2211_v39 = vmax.f32 %v1897_v3, 0.0  ;;  %v1812_v21 = vadd.f32 %v1811_v5, %v4992_v34  ;;  %v1900_v6 = vpop.f32.mrb[50].mxu1  ;;  %v1813_v8 = vpop.f32.mrb[51].mxu0 }
 0x1d9   :  { %2346 = vst [vmem:[%s5937_s3 + $0xd0] sm:$0xff] %v2210_v4  ;;  %2345 = vst [vmem:[%s5937_s3 + $0xc8] sm:$0xff] %v2209_v0  ;;  %v1901_v43 = vadd.f32 %v1900_v6, %v4992_v34  ;;  %v1814_v27 = vadd.f32 %v1813_v8, %v4992_v34  ;;  %v1902_v12 = vpop.f32.mrb[51].mxu1 }
 0x1da   :  { %2347 = vst [vmem:[%s5937_s3 + $0xd8] sm:$0xff] %v2211_v39  ;;  %v2242_v13 = vmax.f32 %v1812_v21, 0.0  ;;  %v1903_v14 = vadd.f32 %v1902_v12, %v4992_v34 }
 0x1db   :  { %v2244_v17 = vmax.f32 %v1901_v43, 0.0  ;;  %v2243_v11 = vmax.f32 %v1814_v27, 0.0  ;;  %v1817_v18 = vpop.f32.mrb[52].mxu0 }
 0x1dc   :  { %2379 = vst [vmem:[%s5937_s3 + $0x1d0] sm:$0xff] %v2242_v13  ;;  %v2245_v19 = vmax.f32 %v1903_v14, 0.0  ;;  %v1818_v20 = vadd.f32 %v1817_v18, %v5015_v49  ;;  %v1906_v22 = vpop.f32.mrb[52].mxu1  ;;  %v1819_v23 = vpop.f32.mrb[53].mxu0 }
 0x1dd   :  { %2381 = vst [vmem:[%s5937_s3 + $0x1e0] sm:$0xff] %v2244_v17  ;;  %2380 = vst [vmem:[%s5937_s3 + $0x1d8] sm:$0xff] %v2243_v11  ;;  %v1907_v57 = vadd.f32 %v1906_v22, %v5015_v49  ;;  %v1820_v29 = vadd.f32 %v1819_v23, %v5015_v49  ;;  %v1908_v30 = vpop.f32.mrb[53].mxu1 }
 0x1de   :  { %2382 = vst [vmem:[%s5937_s3 + $0x1e8] sm:$0xff] %v2245_v19  ;;  %v2276_v25 = vmax.f32 %v1818_v20, 0.0  ;;  %v1909_v31 = vadd.f32 %v1908_v30, %v5015_v49 }
 0x1df   :  { %v2278_v26 = vmax.f32 %v1907_v57, 0.0  ;;  %v2277_v61 = vmax.f32 %v1820_v29, 0.0  ;;  %v1823_v15 = vpop.f32.mrb[54].mxu0 }
 0x1e0   :  { %2413 = vst [vmem:[%s5937_s3 + $0x2e0] sm:$0xff] %v2276_v25  ;;  %v2279_v32 = vmax.f32 %v1909_v31, 0.0  ;;  %v1824_v33 = vadd.f32 %v1823_v15, %v5090_v28  ;;  %v1912_v35 = vpop.f32.mrb[54].mxu1  ;;  %v1825_v36 = vpop.f32.mrb[55].mxu0 }
 0x1e1   :  { %2415 = vst [vmem:[%s5937_s3 + $0x2f0] sm:$0xff] %v2278_v26  ;;  %2414 = vst [vmem:[%s5937_s3 + $0x2e8] sm:$0xff] %v2277_v61  ;;  %v1913_v37 = vadd.f32 %v1912_v35, %v5090_v28  ;;  %v1826_v41 = vadd.f32 %v1825_v36, %v5090_v28  ;;  %v1914_v46 = vpop.f32.mrb[55].mxu1 }
 0x1e2   :  { %2416 = vst [vmem:[%s5937_s3 + $0x2f8] sm:$0xff] %v2279_v32  ;;  %v2310_v42 = vmax.f32 %v1824_v33, 0.0  ;;  %v1915_v38 = vadd.f32 %v1914_v46, %v5090_v28 }
 0x1e3   :  { %v2312_v40 = vmax.f32 %v1913_v37, 0.0  ;;  %v2311_v44 = vmax.f32 %v1826_v41, 0.0 }
 0x1e4   :  { %2447 = vst [vmem:[%s5937_s3 + $0x3f0] sm:$0xff] %v2310_v42  ;;  %v2313_v45 = vmax.f32 %v1915_v38, 0.0 }
 0x1e5   :  { %2449 = vst [vmem:[%s5937_s3 + $0x400] sm:$0xff] %v2312_v40  ;;  %2448 = vst [vmem:[%s5937_s3 + $0x3f8] sm:$0xff] %v2311_v44 }
 0x1e6   :  { %2450 = vst [vmem:[%s5937_s3 + $0x408] sm:$0xff] %v2313_v45 }
 0x1f7   :  { %v1983_v47 = vpop.f32.mrb[56].mxu0 }
 0x1f8   :  { %v1984_v48 = vadd.f32 %v1983_v47, %v4963_v9  ;;  %v2072_v50 = vpop.f32.mrb[56].mxu1  ;;  %v1985_v7 = vpop.f32.mrb[57].mxu0 }
 0x1f9   :  { %v2073_v51 = vadd.f32 %v2072_v50, %v4963_v9  ;;  %v1986_v52 = vadd.f32 %v1985_v7, %v4963_v9  ;;  %v2074_v53 = vpop.f32.mrb[57].mxu1 }
 0x1fa   :  { %v2212_v54 = vmax.f32 %v1984_v48, 0.0  ;;  %v2075_v55 = vadd.f32 %v2074_v53, %v4963_v9 }
 0x1fb   :  { %v2214_v10 = vmax.f32 %v2073_v51, 0.0  ;;  %v2213_v56 = vmax.f32 %v1986_v52, 0.0  ;;  %v1989_v58 = vpop.f32.mrb[58].mxu0 }
 0x1fc   :  { %2348 = vst [vmem:[%s5937_s3 + $0xe0] sm:$0xff] %v2212_v54  ;;  %v2215_v59 = vmax.f32 %v2075_v55, 0.0  ;;  %v1990_v62 = vadd.f32 %v1989_v58, %v4992_v34  ;;  %v2078_v63 = vpop.f32.mrb[58].mxu1  ;;  %v1991_v1 = vpop.f32.mrb[59].mxu0 }
 0x1fd   :  { %2350 = vst [vmem:[%s5937_s3 + $0xf0] sm:$0xff] %v2214_v10  ;;  %2349 = vst [vmem:[%s5937_s3 + $0xe8] sm:$0xff] %v2213_v56  ;;  %v2079_v60 = vadd.f32 %v2078_v63, %v4992_v34  ;;  %v1992_v16 = vadd.f32 %v1991_v1, %v4992_v34  ;;  %v2080_v2 = vpop.f32.mrb[59].mxu1 }
 0x1fe   :  { %2351 = vst [vmem:[%s5937_s3 + $0xf8] sm:$0xff] %v2215_v59  ;;  %v2246_v24 = vmax.f32 %v1990_v62, 0.0  ;;  %v2081_v3 = vadd.f32 %v2080_v2, %v4992_v34 }
 0x1ff   :  { %v2248_v4 = vmax.f32 %v2079_v60, 0.0  ;;  %v2247_v0 = vmax.f32 %v1992_v16, 0.0  ;;  %v1995_v5 = vpop.f32.mrb[60].mxu0 }
 0x200   :  { %2383 = vst [vmem:[%s5937_s3 + $0x1f0] sm:$0xff] %v2246_v24  ;;  %v2249_v39 = vmax.f32 %v2081_v3, 0.0  ;;  %v1996_v21 = vadd.f32 %v1995_v5, %v5015_v49  ;;  %v2084_v6 = vpop.f32.mrb[60].mxu1  ;;  %v1997_v8 = vpop.f32.mrb[61].mxu0 }
 0x201   :  { %2385 = vst [vmem:[%s5937_s3 + $0x200] sm:$0xff] %v2248_v4  ;;  %2384 = vst [vmem:[%s5937_s3 + $0x1f8] sm:$0xff] %v2247_v0  ;;  %v2085_v43 = vadd.f32 %v2084_v6, %v5015_v49  ;;  %v1998_v27 = vadd.f32 %v1997_v8, %v5015_v49  ;;  %v2086_v12 = vpop.f32.mrb[61].mxu1 }
 0x202   :  { %2386 = vst [vmem:[%s5937_s3 + $0x208] sm:$0xff] %v2249_v39  ;;  %v2280_v13 = vmax.f32 %v1996_v21, 0.0  ;;  %v2087_v14 = vadd.f32 %v2086_v12, %v5015_v49 }
 0x203   :  { %v2282_v17 = vmax.f32 %v2085_v43, 0.0  ;;  %v2281_v11 = vmax.f32 %v1998_v27, 0.0  ;;  %v2001_v18 = vpop.f32.mrb[62].mxu0 }
 0x204   :  { %2417 = vst [vmem:[%s5937_s3 + $0x300] sm:$0xff] %v2280_v13  ;;  %v2283_v19 = vmax.f32 %v2087_v14, 0.0  ;;  %v2002_v20 = vadd.f32 %v2001_v18, %v5090_v28  ;;  %v2090_v22 = vpop.f32.mrb[62].mxu1  ;;  %v2003_v23 = vpop.f32.mrb[63].mxu0 }
 0x205   :  { %2419 = vst [vmem:[%s5937_s3 + $0x310] sm:$0xff] %v2282_v17  ;;  %2418 = vst [vmem:[%s5937_s3 + $0x308] sm:$0xff] %v2281_v11  ;;  %v2091_v57 = vadd.f32 %v2090_v22, %v5090_v28  ;;  %v2004_v29 = vadd.f32 %v2003_v23, %v5090_v28  ;;  %v2092_v30 = vpop.f32.mrb[63].mxu1 }
 0x206   :  { %2420 = vst [vmem:[%s5937_s3 + $0x318] sm:$0xff] %v2283_v19  ;;  %v2314_v25 = vmax.f32 %v2002_v20, 0.0  ;;  %v2093_v31 = vadd.f32 %v2092_v30, %v5090_v28 }
 0x207   :  { %v2316_v26 = vmax.f32 %v2091_v57, 0.0  ;;  %v2315_v61 = vmax.f32 %v2004_v29, 0.0 }
 0x208   :  { %2451 = vst [vmem:[%s5937_s3 + $0x410] sm:$0xff] %v2314_v25  ;;  %v2317_v15 = vmax.f32 %v2093_v31, 0.0 }
 0x209   :  { %2453 = vst [vmem:[%s5937_s3 + $0x420] sm:$0xff] %v2316_v26  ;;  %2452 = vst [vmem:[%s5937_s3 + $0x418] sm:$0xff] %v2315_v61 }
 0x20a   :  { %2454 = vst [vmem:[%s5937_s3 + $0x428] sm:$0xff] %v2317_v15 }
 0x21b   :  { %v2161_v32 = vpop.f32.mrb[64].mxu0 }
 0x21c   :  { %v2162_v33 = vadd.f32 %v2161_v32, %v4963_v9  ;;  %v2173_v35 = vpop.f32.mrb[64].mxu1  ;;  %v2163_v36 = vpop.f32.mrb[65].mxu0 }
 0x21d   :  { %v2174_v37 = vadd.f32 %v2173_v35, %v5015_v49  ;;  %v2164_v41 = vadd.f32 %v2163_v36, %v4963_v9  ;;  %v2175_v46 = vpop.f32.mrb[65].mxu1 }
 0x21e   :  { %v2216_v42 = vmax.f32 %v2162_v33, 0.0  ;;  %v2176_v38 = vadd.f32 %v2175_v46, %v5015_v49 }
 0x21f   :  { %v2284_v40 = vmax.f32 %v2174_v37, 0.0  ;;  %v2217_v44 = vmax.f32 %v2164_v41, 0.0  ;;  %v2167_v45 = vpop.f32.mrb[66].mxu0 }
 0x220   :  { %2352 = vst [vmem:[%s5937_s3 + $0x100] sm:$0xff] %v2216_v42  ;;  %v2285_v47 = vmax.f32 %v2176_v38, 0.0  ;;  %v2168_v48 = vadd.f32 %v2167_v45, %v4992_v34  ;;  %v2179_v50 = vpop.f32.mrb[66].mxu1  ;;  %v2169_v7 = vpop.f32.mrb[67].mxu0 }
 0x221   :  { %2421 = vst [vmem:[%s5937_s3 + $0x320] sm:$0xff] %v2284_v40  ;;  %2354 = vst.msk [vmem:[%s5937_s3 + $0x108] sm:$0xff] %vm2353_vm1, %v2217_v44  ;;  %v2180_v9 = vadd.f32 %v2179_v50, %v5090_v28  ;;  %v2170_v49 = vadd.f32 %v2169_v7, %v4992_v34  ;;  %v2181_v51 = vpop.f32.mrb[67].mxu1 }
 0x222   :  { %2422 = vst.msk [vmem:[%s5937_s3 + $0x328] sm:$0xff] %vm2353_vm1, %v2285_v47  ;;  %v2250_v52 = vmax.f32 %v2168_v48, 0.0  ;;  %v2182_v53 = vadd.f32 %v2181_v51, %v5090_v28 }
 0x223   :  { %v2318_v54 = vmax.f32 %v2180_v9, 0.0  ;;  %v2251_v55 = vmax.f32 %v2170_v49, 0.0 }
 0x224   :  { %2387 = vst [vmem:[%s5937_s3 + $0x210] sm:$0xff] %v2250_v52  ;;  %v2319_v10 = vmax.f32 %v2182_v53, 0.0 }
 0x225   :  { %2455 = vst [vmem:[%s5937_s3 + $0x430] sm:$0xff] %v2318_v54  ;;  %2388 = vst.msk [vmem:[%s5937_s3 + $0x218] sm:$0xff] %vm2353_vm1, %v2251_v55 }
 0x226   :  { %2456 = vst.msk [vmem:[%s5937_s3 + $0x438] sm:$0xff] %vm2353_vm1, %v2319_v10 }

// kernel: mynet_forward.9
= control target key start
LH: loop header
LB: loop body
LE: loop exit
PB: predicated region body
PF: predicated region fallthrough
CT: control target
= control target key end

     0   :  { %vm301_vm0 = vcmask 138240   ;;  %s975_s0 = inlined_call_operand.vmem [shape: f32[64,529], index: 0, kind: input, shape index: {}]   ;;  %s976_s1 = inlined_call_operand.vmem [shape: f32[64,529], index: 1, kind: input, shape index: {}]   ;;  %s977_s2 = inlined_call_operand.vmem [shape: f32[64,529], index: 2, kind: input, shape index: {}]   ;;  %s978_s3 = inlined_call_operand.vmem [shape: f32[64,529], index: 3, kind: input, shape index: {}]   ;;  %s979_s4 = inlined_call_operand.vmem [shape: f32[64,529], index: 4, kind: output, shape index: {}]  }
   0x1   :  { %v17_v0 = vld [vmem:[%s975_s0] sm:$0xff]  ;;  %v18_v5 = vld [vmem:[%s975_s0 + $0x8] sm:$0xff]  ;;  %v19_v11 = vld [vmem:[%s975_s0 + $0x10] sm:$0xff] }
   0x2   :  { %v57_v1 = vld [vmem:[%s976_s1] sm:$0xff]  ;;  %v58_v6 = vld [vmem:[%s976_s1 + $0x8] sm:$0xff]  ;;  %v59_v13 = vld [vmem:[%s976_s1 + $0x10] sm:$0xff] }
   0x3   :  { %v137_v2 = vld [vmem:[%s977_s2] sm:$0xff]  ;;  %v97_v3 = vmax.f32 %v17_v0, %v57_v1  ;;  %v98_v8 = vmax.f32 %v18_v5, %v58_v6  ;;  %v138_v9 = vld [vmem:[%s977_s2 + $0x8] sm:$0xff]  ;;  %v139_v14 = vld [vmem:[%s977_s2 + $0x10] sm:$0xff]  ;;  %v99_v17 = vmax.f32 %v19_v11, %v59_v13 }
   0x4   :  { %v177_v4 = vld [vmem:[%s978_s3] sm:$0xff]  ;;  %v178_v10 = vld [vmem:[%s978_s3 + $0x8] sm:$0xff]  ;;  %v179_v15 = vld [vmem:[%s978_s3 + $0x10] sm:$0xff] }
   0x5   :  { %v217_v7 = vmax.f32 %v137_v2, %v177_v4  ;;  %v218_v12 = vmax.f32 %v138_v9, %v178_v10  ;;  %v219_v18 = vmax.f32 %v139_v14, %v179_v15  ;;  %v20_v19 = vld [vmem:[%s975_s0 + $0x18] sm:$0xff]  ;;  %v21_v25 = vld [vmem:[%s975_s0 + $0x20] sm:$0xff]  ;;  %v22_v32 = vld [vmem:[%s975_s0 + $0x28] sm:$0xff] }
   0x6   :  { %v60_v20 = vld [vmem:[%s976_s1 + $0x18] sm:$0xff]  ;;  %v61_v26 = vld [vmem:[%s976_s1 + $0x20] sm:$0xff]  ;;  %v62_v34 = vld [vmem:[%s976_s1 + $0x28] sm:$0xff] }
   0x7   :  { %v257_v16 = vmax.f32 %v97_v3, %v217_v7  ;;  %v140_v21 = vld [vmem:[%s977_s2 + $0x18] sm:$0xff]  ;;  %v258_v22 = vmax.f32 %v98_v8, %v218_v12  ;;  %v100_v23 = vmax.f32 %v20_v19, %v60_v20  ;;  %v259_v27 = vmax.f32 %v99_v17, %v219_v18  ;;  %v141_v30 = vld [vmem:[%s977_s2 + $0x20] sm:$0xff]  ;;  %v142_v35 = vld [vmem:[%s977_s2 + $0x28] sm:$0xff] }
   0x8   :  { %v180_v24 = vld [vmem:[%s978_s3 + $0x18] sm:$0xff]  ;;  %v101_v29 = vmax.f32 %v21_v25, %v61_v26  ;;  %v181_v31 = vld [vmem:[%s978_s3 + $0x20] sm:$0xff]  ;;  %v182_v36 = vld [vmem:[%s978_s3 + $0x28] sm:$0xff]  ;;  %v102_v38 = vmax.f32 %v22_v32, %v62_v34 }
   0x9   :  { %297 = vst [vmem:[%s979_s4] sm:$0xff] %v257_v16  ;;  %v220_v28 = vmax.f32 %v140_v21, %v180_v24  ;;  %298 = vst [vmem:[%s979_s4 + $0x8] sm:$0xff] %v258_v22  ;;  %v221_v33 = vmax.f32 %v141_v30, %v181_v31  ;;  %v222_v39 = vmax.f32 %v142_v35, %v182_v36  ;;  %v23_v40 = vld [vmem:[%s975_s0 + $0x30] sm:$0xff]  ;;  %v24_v46 = vld [vmem:[%s975_s0 + $0x38] sm:$0xff] }
   0xa   :  { %299 = vst [vmem:[%s979_s4 + $0x10] sm:$0xff] %v259_v27  ;;  %v63_v41 = vld [vmem:[%s976_s1 + $0x30] sm:$0xff]  ;;  %v64_v47 = vld [vmem:[%s976_s1 + $0x38] sm:$0xff]  ;;  %v25_v53 = vld [vmem:[%s975_s0 + $0x40] sm:$0xff] }
   0xb   :  { %v260_v37 = vmax.f32 %v100_v23, %v220_v28  ;;  %v143_v42 = vld [vmem:[%s977_s2 + $0x30] sm:$0xff]  ;;  %v261_v43 = vmax.f32 %v101_v29, %v221_v33  ;;  %v103_v44 = vmax.f32 %v23_v40, %v63_v41  ;;  %v262_v48 = vmax.f32 %v102_v38, %v222_v39  ;;  %v144_v51 = vld [vmem:[%s977_s2 + $0x38] sm:$0xff]  ;;  %v65_v55 = vld [vmem:[%s976_s1 + $0x40] sm:$0xff] }
   0xc   :  { %v183_v45 = vld [vmem:[%s978_s3 + $0x30] sm:$0xff]  ;;  %v104_v50 = vmax.f32 %v24_v46, %v64_v47  ;;  %v184_v52 = vld [vmem:[%s978_s3 + $0x38] sm:$0xff]  ;;  %v145_v56 = vld [vmem:[%s977_s2 + $0x40] sm:$0xff]  ;;  %v105_v59 = vmax.f32 %v25_v53, %v65_v55 }
   0xd   :  { %300 = vst [vmem:[%s979_s4 + $0x18] sm:$0xff] %v260_v37  ;;  %v223_v49 = vmax.f32 %v143_v42, %v183_v45  ;;  %302 = vst.msk [vmem:[%s979_s4 + $0x20] sm:$0xff] %vm301_vm0, %v261_v43  ;;  %v224_v54 = vmax.f32 %v144_v51, %v184_v52  ;;  %v185_v57 = vld [vmem:[%s978_s3 + $0x40] sm:$0xff]  ;;  %v26_v61 = vld [vmem:[%s975_s0 + $0x48] sm:$0xff] }
   0xe   :  { %303 = vst [vmem:[%s979_s4 + $0x28] sm:$0xff] %v262_v48  ;;  %v225_v60 = vmax.f32 %v145_v56, %v185_v57  ;;  %v66_v62 = vld [vmem:[%s976_s1 + $0x48] sm:$0xff]  ;;  %v27_v3 = vld [vmem:[%s975_s0 + $0x50] sm:$0xff]  ;;  %v28_v10 = vld [vmem:[%s975_s0 + $0x58] sm:$0xff] }
   0xf   :  { %v263_v58 = vmax.f32 %v103_v44, %v223_v49  ;;  %v146_v63 = vld [vmem:[%s977_s2 + $0x48] sm:$0xff]  ;;  %v264_v0 = vmax.f32 %v104_v50, %v224_v54  ;;  %v106_v1 = vmax.f32 %v26_v61, %v66_v62  ;;  %v67_v4 = vld [vmem:[%s976_s1 + $0x50] sm:$0xff]  ;;  %v68_v12 = vld [vmem:[%s976_s1 + $0x58] sm:$0xff] }
  0x10   :  { %v186_v2 = vld [vmem:[%s978_s3 + $0x48] sm:$0xff]  ;;  %v265_v5 = vmax.f32 %v105_v59, %v225_v60  ;;  %v107_v7 = vmax.f32 %v27_v3, %v67_v4  ;;  %v147_v8 = vld [vmem:[%s977_s2 + $0x50] sm:$0xff]  ;;  %v148_v13 = vld [vmem:[%s977_s2 + $0x58] sm:$0xff]  ;;  %v108_v16 = vmax.f32 %v28_v10, %v68_v12 }
  0x11   :  { %304 = vst [vmem:[%s979_s4 + $0x30] sm:$0xff] %v263_v58  ;;  %v226_v6 = vmax.f32 %v146_v63, %v186_v2  ;;  %v187_v9 = vld [vmem:[%s978_s3 + $0x50] sm:$0xff]  ;;  %305 = vst [vmem:[%s979_s4 + $0x38] sm:$0xff] %v264_v0  ;;  %v188_v14 = vld [vmem:[%s978_s3 + $0x58] sm:$0xff] }
  0x12   :  { %v227_v11 = vmax.f32 %v147_v8, %v187_v9  ;;  %306 = vst [vmem:[%s979_s4 + $0x40] sm:$0xff] %v265_v5  ;;  %v228_v17 = vmax.f32 %v148_v13, %v188_v14  ;;  %v29_v18 = vld [vmem:[%s975_s0 + $0x60] sm:$0xff]  ;;  %v30_v24 = vld [vmem:[%s975_s0 + $0x68] sm:$0xff]  ;;  %v31_v31 = vld [vmem:[%s975_s0 + $0x70] sm:$0xff] }
  0x13   :  { %v266_v15 = vmax.f32 %v106_v1, %v226_v6  ;;  %v69_v19 = vld [vmem:[%s976_s1 + $0x60] sm:$0xff]  ;;  %v70_v25 = vld [vmem:[%s976_s1 + $0x68] sm:$0xff]  ;;  %v71_v33 = vld [vmem:[%s976_s1 + $0x70] sm:$0xff] }
  0x14   :  { %v149_v20 = vld [vmem:[%s977_s2 + $0x60] sm:$0xff]  ;;  %v267_v21 = vmax.f32 %v107_v7, %v227_v11  ;;  %v109_v22 = vmax.f32 %v29_v18, %v69_v19  ;;  %v268_v26 = vmax.f32 %v108_v16, %v228_v17  ;;  %v110_v28 = vmax.f32 %v30_v24, %v70_v25  ;;  %v150_v29 = vld [vmem:[%s977_s2 + $0x68] sm:$0xff]  ;;  %v151_v34 = vld [vmem:[%s977_s2 + $0x70] sm:$0xff] }
  0x15   :  { %v189_v23 = vld [vmem:[%s978_s3 + $0x60] sm:$0xff]  ;;  %307 = vst.msk [vmem:[%s979_s4 + $0x48] sm:$0xff] %vm301_vm0, %v266_v15  ;;  %v190_v30 = vld [vmem:[%s978_s3 + $0x68] sm:$0xff]  ;;  %v191_v35 = vld [vmem:[%s978_s3 + $0x70] sm:$0xff]  ;;  %v111_v37 = vmax.f32 %v31_v31, %v71_v33 }
  0x16   :  { %v229_v27 = vmax.f32 %v149_v20, %v189_v23  ;;  %308 = vst [vmem:[%s979_s4 + $0x50] sm:$0xff] %v267_v21  ;;  %v230_v32 = vmax.f32 %v150_v29, %v190_v30  ;;  %309 = vst [vmem:[%s979_s4 + $0x58] sm:$0xff] %v268_v26  ;;  %v231_v38 = vmax.f32 %v151_v34, %v191_v35  ;;  %v32_v39 = vld [vmem:[%s975_s0 + $0x78] sm:$0xff]  ;;  %v33_v45 = vld [vmem:[%s975_s0 + $0x80] sm:$0xff] }
  0x17   :  { %v72_v40 = vld [vmem:[%s976_s1 + $0x78] sm:$0xff]  ;;  %v73_v46 = vld [vmem:[%s976_s1 + $0x80] sm:$0xff]  ;;  %v34_v52 = vld [vmem:[%s975_s0 + $0x88] sm:$0xff] }
  0x18   :  { %v269_v36 = vmax.f32 %v109_v22, %v229_v27  ;;  %v152_v41 = vld [vmem:[%s977_s2 + $0x78] sm:$0xff]  ;;  %v270_v42 = vmax.f32 %v110_v28, %v230_v32  ;;  %v112_v43 = vmax.f32 %v32_v39, %v72_v40  ;;  %v271_v47 = vmax.f32 %v111_v37, %v231_v38  ;;  %v153_v50 = vld [vmem:[%s977_s2 + $0x80] sm:$0xff]  ;;  %v74_v54 = vld [vmem:[%s976_s1 + $0x88] sm:$0xff] }
  0x19   :  { %v192_v44 = vld [vmem:[%s978_s3 + $0x78] sm:$0xff]  ;;  %v113_v49 = vmax.f32 %v33_v45, %v73_v46  ;;  %v193_v51 = vld [vmem:[%s978_s3 + $0x80] sm:$0xff]  ;;  %v154_v55 = vld [vmem:[%s977_s2 + $0x88] sm:$0xff]  ;;  %v114_v58 = vmax.f32 %v34_v52, %v74_v54 }
  0x1a   :  { %310 = vst [vmem:[%s979_s4 + $0x60] sm:$0xff] %v269_v36  ;;  %v232_v48 = vmax.f32 %v152_v41, %v192_v44  ;;  %311 = vst [vmem:[%s979_s4 + $0x68] sm:$0xff] %v270_v42  ;;  %v233_v53 = vmax.f32 %v153_v50, %v193_v51  ;;  %v194_v56 = vld [vmem:[%s978_s3 + $0x88] sm:$0xff]  ;;  %v35_v60 = vld [vmem:[%s975_s0 + $0x90] sm:$0xff] }
  0x1b   :  { %312 = vst.msk [vmem:[%s979_s4 + $0x70] sm:$0xff] %vm301_vm0, %v271_v47  ;;  %v234_v59 = vmax.f32 %v154_v55, %v194_v56  ;;  %v75_v61 = vld [vmem:[%s976_s1 + $0x90] sm:$0xff]  ;;  %v36_v2 = vld [vmem:[%s975_s0 + $0x98] sm:$0xff]  ;;  %v37_v9 = vld [vmem:[%s975_s0 + $0xa0] sm:$0xff] }
  0x1c   :  { %v272_v57 = vmax.f32 %v112_v43, %v232_v48  ;;  %v155_v62 = vld [vmem:[%s977_s2 + $0x90] sm:$0xff]  ;;  %v273_v63 = vmax.f32 %v113_v49, %v233_v53  ;;  %v115_v0 = vmax.f32 %v35_v60, %v75_v61  ;;  %v76_v3 = vld [vmem:[%s976_s1 + $0x98] sm:$0xff]  ;;  %v77_v11 = vld [vmem:[%s976_s1 + $0xa0] sm:$0xff] }
  0x1d   :  { %v195_v1 = vld [vmem:[%s978_s3 + $0x90] sm:$0xff]  ;;  %v274_v4 = vmax.f32 %v114_v58, %v234_v59  ;;  %v116_v6 = vmax.f32 %v36_v2, %v76_v3  ;;  %v156_v7 = vld [vmem:[%s977_s2 + $0x98] sm:$0xff]  ;;  %v157_v12 = vld [vmem:[%s977_s2 + $0xa0] sm:$0xff]  ;;  %v117_v15 = vmax.f32 %v37_v9, %v77_v11 }
  0x1e   :  { %313 = vst [vmem:[%s979_s4 + $0x78] sm:$0xff] %v272_v57  ;;  %v235_v5 = vmax.f32 %v155_v62, %v195_v1  ;;  %v196_v8 = vld [vmem:[%s978_s3 + $0x98] sm:$0xff]  ;;  %314 = vst [vmem:[%s979_s4 + $0x80] sm:$0xff] %v273_v63  ;;  %v197_v13 = vld [vmem:[%s978_s3 + $0xa0] sm:$0xff] }
  0x1f   :  { %v236_v10 = vmax.f32 %v156_v7, %v196_v8  ;;  %315 = vst [vmem:[%s979_s4 + $0x88] sm:$0xff] %v274_v4  ;;  %v237_v16 = vmax.f32 %v157_v12, %v197_v13  ;;  %v38_v17 = vld [vmem:[%s975_s0 + $0xa8] sm:$0xff]  ;;  %v39_v23 = vld [vmem:[%s975_s0 + $0xb0] sm:$0xff]  ;;  %v40_v30 = vld [vmem:[%s975_s0 + $0xb8] sm:$0xff] }
  0x20   :  { %v275_v14 = vmax.f32 %v115_v0, %v235_v5  ;;  %v78_v18 = vld [vmem:[%s976_s1 + $0xa8] sm:$0xff]  ;;  %v79_v24 = vld [vmem:[%s976_s1 + $0xb0] sm:$0xff]  ;;  %v80_v32 = vld [vmem:[%s976_s1 + $0xb8] sm:$0xff] }
  0x21   :  { %v158_v19 = vld [vmem:[%s977_s2 + $0xa8] sm:$0xff]  ;;  %v276_v20 = vmax.f32 %v116_v6, %v236_v10  ;;  %v118_v21 = vmax.f32 %v38_v17, %v78_v18  ;;  %v277_v25 = vmax.f32 %v117_v15, %v237_v16  ;;  %v119_v27 = vmax.f32 %v39_v23, %v79_v24  ;;  %v159_v28 = vld [vmem:[%s977_s2 + $0xb0] sm:$0xff]  ;;  %v160_v33 = vld [vmem:[%s977_s2 + $0xb8] sm:$0xff] }
  0x22   :  { %v198_v22 = vld [vmem:[%s978_s3 + $0xa8] sm:$0xff]  ;;  %316 = vst [vmem:[%s979_s4 + $0x90] sm:$0xff] %v275_v14  ;;  %v199_v29 = vld [vmem:[%s978_s3 + $0xb0] sm:$0xff]  ;;  %v200_v34 = vld [vmem:[%s978_s3 + $0xb8] sm:$0xff]  ;;  %v120_v36 = vmax.f32 %v40_v30, %v80_v32 }
  0x23   :  { %v238_v26 = vmax.f32 %v158_v19, %v198_v22  ;;  %317 = vst.msk [vmem:[%s979_s4 + $0x98] sm:$0xff] %vm301_vm0, %v276_v20  ;;  %v239_v31 = vmax.f32 %v159_v28, %v199_v29  ;;  %318 = vst [vmem:[%s979_s4 + $0xa0] sm:$0xff] %v277_v25  ;;  %v240_v37 = vmax.f32 %v160_v33, %v200_v34  ;;  %v41_v38 = vld [vmem:[%s975_s0 + $0xc0] sm:$0xff]  ;;  %v42_v44 = vld [vmem:[%s975_s0 + $0xc8] sm:$0xff] }
  0x24   :  { %v81_v39 = vld [vmem:[%s976_s1 + $0xc0] sm:$0xff]  ;;  %v82_v45 = vld [vmem:[%s976_s1 + $0xc8] sm:$0xff]  ;;  %v43_v51 = vld [vmem:[%s975_s0 + $0xd0] sm:$0xff] }
  0x25   :  { %v278_v35 = vmax.f32 %v118_v21, %v238_v26  ;;  %v161_v40 = vld [vmem:[%s977_s2 + $0xc0] sm:$0xff]  ;;  %v279_v41 = vmax.f32 %v119_v27, %v239_v31  ;;  %v121_v42 = vmax.f32 %v41_v38, %v81_v39  ;;  %v280_v46 = vmax.f32 %v120_v36, %v240_v37  ;;  %v162_v49 = vld [vmem:[%s977_s2 + $0xc8] sm:$0xff]  ;;  %v83_v53 = vld [vmem:[%s976_s1 + $0xd0] sm:$0xff] }
  0x26   :  { %v201_v43 = vld [vmem:[%s978_s3 + $0xc0] sm:$0xff]  ;;  %v122_v48 = vmax.f32 %v42_v44, %v82_v45  ;;  %v202_v50 = vld [vmem:[%s978_s3 + $0xc8] sm:$0xff]  ;;  %v163_v54 = vld [vmem:[%s977_s2 + $0xd0] sm:$0xff]  ;;  %v123_v57 = vmax.f32 %v43_v51, %v83_v53 }
  0x27   :  { %319 = vst [vmem:[%s979_s4 + $0xa8] sm:$0xff] %v278_v35  ;;  %v241_v47 = vmax.f32 %v161_v40, %v201_v43  ;;  %320 = vst [vmem:[%s979_s4 + $0xb0] sm:$0xff] %v279_v41  ;;  %v242_v52 = vmax.f32 %v162_v49, %v202_v50  ;;  %v203_v55 = vld [vmem:[%s978_s3 + $0xd0] sm:$0xff]  ;;  %v44_v59 = vld [vmem:[%s975_s0 + $0xd8] sm:$0xff] }
  0x28   :  { %321 = vst [vmem:[%s979_s4 + $0xb8] sm:$0xff] %v280_v46  ;;  %v243_v58 = vmax.f32 %v163_v54, %v203_v55  ;;  %v84_v60 = vld [vmem:[%s976_s1 + $0xd8] sm:$0xff]  ;;  %v45_v1 = vld [vmem:[%s975_s0 + $0xe0] sm:$0xff]  ;;  %v46_v8 = vld [vmem:[%s975_s0 + $0xe8] sm:$0xff] }
  0x29   :  { %v281_v56 = vmax.f32 %v121_v42, %v241_v47  ;;  %v164_v61 = vld [vmem:[%s977_s2 + $0xd8] sm:$0xff]  ;;  %v282_v62 = vmax.f32 %v122_v48, %v242_v52  ;;  %v124_v63 = vmax.f32 %v44_v59, %v84_v60  ;;  %v85_v2 = vld [vmem:[%s976_s1 + $0xe0] sm:$0xff]  ;;  %v86_v10 = vld [vmem:[%s976_s1 + $0xe8] sm:$0xff] }
  0x2a   :  { %v204_v0 = vld [vmem:[%s978_s3 + $0xd8] sm:$0xff]  ;;  %v283_v3 = vmax.f32 %v123_v57, %v243_v58  ;;  %v125_v5 = vmax.f32 %v45_v1, %v85_v2  ;;  %v165_v6 = vld [vmem:[%s977_s2 + $0xe0] sm:$0xff]  ;;  %v166_v11 = vld [vmem:[%s977_s2 + $0xe8] sm:$0xff]  ;;  %v126_v14 = vmax.f32 %v46_v8, %v86_v10 }
  0x2b   :  { %322 = vst.msk [vmem:[%s979_s4 + $0xc0] sm:$0xff] %vm301_vm0, %v281_v56  ;;  %v244_v4 = vmax.f32 %v164_v61, %v204_v0  ;;  %v205_v7 = vld [vmem:[%s978_s3 + $0xe0] sm:$0xff]  ;;  %323 = vst [vmem:[%s979_s4 + $0xc8] sm:$0xff] %v282_v62  ;;  %v206_v12 = vld [vmem:[%s978_s3 + $0xe8] sm:$0xff] }
  0x2c   :  { %v245_v9 = vmax.f32 %v165_v6, %v205_v7  ;;  %324 = vst [vmem:[%s979_s4 + $0xd0] sm:$0xff] %v283_v3  ;;  %v246_v15 = vmax.f32 %v166_v11, %v206_v12  ;;  %v47_v16 = vld [vmem:[%s975_s0 + $0xf0] sm:$0xff]  ;;  %v48_v22 = vld [vmem:[%s975_s0 + $0xf8] sm:$0xff]  ;;  %v49_v29 = vld [vmem:[%s975_s0 + $0x100] sm:$0xff] }
  0x2d   :  { %v284_v13 = vmax.f32 %v124_v63, %v244_v4  ;;  %v87_v17 = vld [vmem:[%s976_s1 + $0xf0] sm:$0xff]  ;;  %v88_v23 = vld [vmem:[%s976_s1 + $0xf8] sm:$0xff]  ;;  %v89_v31 = vld [vmem:[%s976_s1 + $0x100] sm:$0xff] }
  0x2e   :  { %v167_v18 = vld [vmem:[%s977_s2 + $0xf0] sm:$0xff]  ;;  %v285_v19 = vmax.f32 %v125_v5, %v245_v9  ;;  %v127_v20 = vmax.f32 %v47_v16, %v87_v17  ;;  %v286_v24 = vmax.f32 %v126_v14, %v246_v15  ;;  %v128_v26 = vmax.f32 %v48_v22, %v88_v23  ;;  %v168_v27 = vld [vmem:[%s977_s2 + $0xf8] sm:$0xff]  ;;  %v169_v32 = vld [vmem:[%s977_s2 + $0x100] sm:$0xff] }
  0x2f   :  { %v207_v21 = vld [vmem:[%s978_s3 + $0xf0] sm:$0xff]  ;;  %325 = vst [vmem:[%s979_s4 + $0xd8] sm:$0xff] %v284_v13  ;;  %v208_v28 = vld [vmem:[%s978_s3 + $0xf8] sm:$0xff]  ;;  %v209_v33 = vld [vmem:[%s978_s3 + $0x100] sm:$0xff]  ;;  %v129_v35 = vmax.f32 %v49_v29, %v89_v31 }
  0x30   :  { %v247_v25 = vmax.f32 %v167_v18, %v207_v21  ;;  %326 = vst [vmem:[%s979_s4 + $0xe0] sm:$0xff] %v285_v19  ;;  %v248_v30 = vmax.f32 %v168_v27, %v208_v28  ;;  %327 = vst.msk [vmem:[%s979_s4 + $0xe8] sm:$0xff] %vm301_vm0, %v286_v24  ;;  %v249_v36 = vmax.f32 %v169_v32, %v209_v33  ;;  %v50_v37 = vld [vmem:[%s975_s0 + $0x108] sm:$0xff]  ;;  %v51_v43 = vld [vmem:[%s975_s0 + $0x110] sm:$0xff] }
  0x31   :  { %v90_v38 = vld [vmem:[%s976_s1 + $0x108] sm:$0xff]  ;;  %v91_v44 = vld [vmem:[%s976_s1 + $0x110] sm:$0xff]  ;;  %v52_v50 = vld [vmem:[%s975_s0 + $0x118] sm:$0xff] }
  0x32   :  { %v287_v34 = vmax.f32 %v127_v20, %v247_v25  ;;  %v170_v39 = vld [vmem:[%s977_s2 + $0x108] sm:$0xff]  ;;  %v288_v40 = vmax.f32 %v128_v26, %v248_v30  ;;  %v130_v41 = vmax.f32 %v50_v37, %v90_v38  ;;  %v289_v45 = vmax.f32 %v129_v35, %v249_v36  ;;  %v171_v48 = vld [vmem:[%s977_s2 + $0x110] sm:$0xff]  ;;  %v92_v52 = vld [vmem:[%s976_s1 + $0x118] sm:$0xff] }
  0x33   :  { %v210_v42 = vld [vmem:[%s978_s3 + $0x108] sm:$0xff]  ;;  %v131_v47 = vmax.f32 %v51_v43, %v91_v44  ;;  %v211_v49 = vld [vmem:[%s978_s3 + $0x110] sm:$0xff]  ;;  %v172_v53 = vld [vmem:[%s977_s2 + $0x118] sm:$0xff]  ;;  %v132_v56 = vmax.f32 %v52_v50, %v92_v52 }
  0x34   :  { %328 = vst [vmem:[%s979_s4 + $0xf0] sm:$0xff] %v287_v34  ;;  %v250_v46 = vmax.f32 %v170_v39, %v210_v42  ;;  %329 = vst [vmem:[%s979_s4 + $0xf8] sm:$0xff] %v288_v40  ;;  %v251_v51 = vmax.f32 %v171_v48, %v211_v49  ;;  %v212_v54 = vld [vmem:[%s978_s3 + $0x118] sm:$0xff]  ;;  %v53_v58 = vld [vmem:[%s975_s0 + $0x120] sm:$0xff] }
  0x35   :  { %330 = vst [vmem:[%s979_s4 + $0x100] sm:$0xff] %v289_v45  ;;  %v252_v57 = vmax.f32 %v172_v53, %v212_v54  ;;  %v93_v59 = vld [vmem:[%s976_s1 + $0x120] sm:$0xff]  ;;  %v54_v0 = vld [vmem:[%s975_s0 + $0x128] sm:$0xff]  ;;  %v55_v7 = vld [vmem:[%s975_s0 + $0x130] sm:$0xff] }
  0x36   :  { %v290_v55 = vmax.f32 %v130_v41, %v250_v46  ;;  %v173_v60 = vld [vmem:[%s977_s2 + $0x120] sm:$0xff]  ;;  %v291_v61 = vmax.f32 %v131_v47, %v251_v51  ;;  %v133_v62 = vmax.f32 %v53_v58, %v93_v59  ;;  %v94_v1 = vld [vmem:[%s976_s1 + $0x128] sm:$0xff]  ;;  %v95_v9 = vld [vmem:[%s976_s1 + $0x130] sm:$0xff] }
  0x37   :  { %v213_v63 = vld [vmem:[%s978_s3 + $0x120] sm:$0xff]  ;;  %v292_v2 = vmax.f32 %v132_v56, %v252_v57  ;;  %v134_v4 = vmax.f32 %v54_v0, %v94_v1  ;;  %v174_v5 = vld [vmem:[%s977_s2 + $0x128] sm:$0xff]  ;;  %v175_v10 = vld [vmem:[%s977_s2 + $0x130] sm:$0xff]  ;;  %v135_v13 = vmax.f32 %v55_v7, %v95_v9 }
  0x38   :  { %331 = vst [vmem:[%s979_s4 + $0x108] sm:$0xff] %v290_v55  ;;  %v253_v3 = vmax.f32 %v173_v60, %v213_v63  ;;  %v214_v6 = vld [vmem:[%s978_s3 + $0x128] sm:$0xff]  ;;  %332 = vst.msk [vmem:[%s979_s4 + $0x110] sm:$0xff] %vm301_vm0, %v291_v61  ;;  %v215_v11 = vld [vmem:[%s978_s3 + $0x130] sm:$0xff] }
  0x39   :  { %v254_v8 = vmax.f32 %v174_v5, %v214_v6  ;;  %333 = vst [vmem:[%s979_s4 + $0x118] sm:$0xff] %v292_v2  ;;  %v255_v14 = vmax.f32 %v175_v10, %v215_v11  ;;  %v56_v15 = vld [vmem:[%s975_s0 + $0x138] sm:$0xff] }
  0x3a   :  { %v293_v12 = vmax.f32 %v133_v62, %v253_v3  ;;  %v96_v16 = vld [vmem:[%s976_s1 + $0x138] sm:$0xff] }
  0x3b   :  { %v176_v17 = vld [vmem:[%s977_s2 + $0x138] sm:$0xff]  ;;  %v294_v18 = vmax.f32 %v134_v4, %v254_v8  ;;  %v136_v19 = vmax.f32 %v56_v15, %v96_v16  ;;  %v295_v21 = vmax.f32 %v135_v13, %v255_v14 }
  0x3c   :  { %v216_v20 = vld [vmem:[%s978_s3 + $0x138] sm:$0xff]  ;;  %334 = vst [vmem:[%s979_s4 + $0x120] sm:$0xff] %v293_v12 }
  0x3d   :  { %v256_v22 = vmax.f32 %v176_v17, %v216_v20  ;;  %335 = vst [vmem:[%s979_s4 + $0x128] sm:$0xff] %v294_v18  ;;  %336 = vst [vmem:[%s979_s4 + $0x130] sm:$0xff] %v295_v21 }
  0x3f   :  { %v296_v23 = vmax.f32 %v136_v19, %v256_v22 }
  0x41   :  { %337 = vst.msk [vmem:[%s979_s4 + $0x138] sm:$0xff] %vm301_vm0, %v296_v23 }

// kernel: mynet_forward.10
= control target key start
LH: loop header
LB: loop body
LE: loop exit
PB: predicated region body
PF: predicated region fallthrough
CT: control target
= control target key end

     0   :  { %v1282_v3 = vmov 0.0   ;;  %v1283_v39 = vmov 0   ;;  %vm284_vm0 = vcmask 261120   ;;  %vm923_vm1 = vcmask 932864   ;;  %s2185_s1 = inlined_call_operand.vmem [shape: f32[288,882], index: 1, kind: input, shape index: {}]   ;;  %s2186_s0 = inlined_call_operand.vmem [shape: f32[16,288], index: 0, kind: input, shape index: {}]   ;;  %s2187_s2 = inlined_call_operand.vmem [shape: f32[16,1], index: 2, kind: input, shape index: {}]   ;;  %s2188_s3 = inlined_call_operand.vmem [shape: f32[16,882], index: 3, kind: output, shape index: {}]  }
   0x1   :  { %v21_v0 = vld [vmem:[%s2185_s1 + $0x8] sm:$0xff]  ;;  %v28_v1 = vld [vmem:[%s2185_s1 + $0x40] sm:$0xff]  ;;  %432 = vmatprep.mubr.f32.mxu1 %v1282_v3  ;;  %v27_v7 = vld [vmem:[%s2185_s1 + $0x38] sm:$0xff]  ;;  %1281 = vset.pattern.permute.xlu0 %v1283_v39 }
   0x2   :  { %v245_v2 = vld [vmem:[%s2185_s1 + $0x708] sm:$0xff]  ;;  %v999_v4 = vpack.c.bf16 %v28_v1, %v21_v0  ;;  %v252_v5 = vld [vmem:[%s2185_s1 + $0x740] sm:$0xff]  ;;  %v251_v11 = vld [vmem:[%s2185_s1 + $0x738] sm:$0xff] }
   0x3   :  { %v20_v6 = vld [vmem:[%s2185_s1] sm:$0xff]  ;;  %v1063_v8 = vpack.c.bf16 %v252_v5, %v245_v2  ;;  %v35_v12 = vld [vmem:[%s2185_s1 + $0x78] sm:$0xff]  ;;  %v42_v14 = vld [vmem:[%s2185_s1 + $0xb0] sm:$0xff] }
   0x4   :  { %v1001_v9 = vpack.c.bf16 %v27_v7, %v20_v6  ;;  %v244_v10 = vld [vmem:[%s2185_s1 + $0x700] sm:$0xff]  ;;  %1000 = vmatprep.subr.bf16.mxu0 %v999_v4  ;;  %v259_v15 = vld [vmem:[%s2185_s1 + $0x778] sm:$0xff]  ;;  %v266_v16 = vld [vmem:[%s2185_s1 + $0x7b0] sm:$0xff]  ;;  %v1003_v17 = vpack.c.bf16 %v42_v14, %v35_v12 }
   0x5   :  { %v1065_v13 = vpack.c.bf16 %v251_v11, %v244_v10  ;;  %1064 = vmatprep.subr.bf16.mxu1 %v1063_v8  ;;  %v1067_v18 = vpack.c.bf16 %v266_v16, %v259_v15  ;;  %v34_v19 = vld [vmem:[%s2185_s1 + $0x70] sm:$0xff]  ;;  %v41_v20 = vld [vmem:[%s2185_s1 + $0xa8] sm:$0xff]  ;;  %v56_v25 = vld [vmem:[%s2185_s1 + $0x120] sm:$0xff] }
   0x6   :  { %1002 = vmatpush1.bf16.msra.mxu0 %v1001_v9  ;;  %v258_v21 = vld [vmem:[%s2185_s1 + $0x770] sm:$0xff]  ;;  %v1005_v22 = vpack.c.bf16 %v41_v20, %v34_v19  ;;  %v265_v23 = vld [vmem:[%s2185_s1 + $0x7a8] sm:$0xff]  ;;  %v23_v28 = vld [vmem:[%s2185_s1 + $0x18] sm:$0xff] }
   0x7   :  { %1066 = vmatpush1.bf16.msra.mxu1 %v1065_v13  ;;  %v49_v24 = vld [vmem:[%s2185_s1 + $0xe8] sm:$0xff]  ;;  %1004 = vmatprep.subr.bf16.mxu0 %v1003_v17  ;;  %v1069_v26 = vpack.c.bf16 %v265_v23, %v258_v21  ;;  %v30_v29 = vld [vmem:[%s2185_s1 + $0x50] sm:$0xff]  ;;  %v48_v30 = vld [vmem:[%s2185_s1 + $0xe0] sm:$0xff] }
   0x8   :  { %1068 = vmatprep.subr.bf16.mxu1 %v1067_v18  ;;  %v1007_v27 = vpack.c.bf16 %v56_v25, %v49_v24  ;;  %v1071_v31 = vpack.c.bf16 %v30_v29, %v23_v28  ;;  %v55_v32 = vld [vmem:[%s2185_s1 + $0x118] sm:$0xff]  ;;  %v1374_v33 = vld [vmem:[%s2186_s0 + $0x10] sm:$0xff]  ;;  %v29_v36 = vld [vmem:[%s2185_s1 + $0x48] sm:$0xff] }
   0x9   :  { %v22_v34 = vld [vmem:[%s2185_s1 + $0x10] sm:$0xff]  ;;  %v1009_v35 = vpack.c.bf16 %v55_v32, %v48_v30  ;;  %v63_v37 = vld [vmem:[%s2185_s1 + $0x158] sm:$0xff]  ;;  %v37_v42 = vld [vmem:[%s2185_s1 + $0x88] sm:$0xff] }
   0xa   :  { %1006 = vmatpush1.bf16.msra.mxu0 %v1005_v22  ;;  %v70_v38 = vld [vmem:[%s2185_s1 + $0x190] sm:$0xff]  ;;  %v1073_v40 = vpack.c.bf16 %v29_v36, %v22_v34  ;;  %v44_v43 = vld [vmem:[%s2185_s1 + $0xc0] sm:$0xff]  ;;  %v69_v46 = vld [vmem:[%s2185_s1 + $0x188] sm:$0xff] }
   0xb   :  { %1070 = vmatpush1.bf16.msra.mxu1 %v1069_v26  ;;  %1008 = vmatprep.subr.bf16.mxu0 %v1007_v27  ;;  %v1011_v41 = vpack.c.bf16 %v70_v38, %v63_v37  ;;  %v62_v44 = vld [vmem:[%s2185_s1 + $0x150] sm:$0xff]  ;;  %v1075_v45 = vpack.c.bf16 %v44_v43, %v37_v42  ;;  %v36_v47 = vld [vmem:[%s2185_s1 + $0x80] sm:$0xff]  ;;  %v43_v48 = vld [vmem:[%s2185_s1 + $0xb8] sm:$0xff] }
   0xc   :  { %1072 = vmatprep.subr.bf16.mxu1 %v1071_v31  ;;  %v77_v49 = vld [vmem:[%s2185_s1 + $0x1c8] sm:$0xff]  ;;  %v84_v50 = vld [vmem:[%s2185_s1 + $0x200] sm:$0xff]  ;;  %v51_v51 = vld [vmem:[%s2185_s1 + $0xf8] sm:$0xff]  ;;  %v1013_v52 = vpack.c.bf16 %v69_v46, %v62_v44  ;;  %v1077_v54 = vpack.c.bf16 %v43_v48, %v36_v47 }
   0xd   :  { %v58_v53 = vld [vmem:[%s2185_s1 + $0x130] sm:$0xff]  ;;  %v1015_v55 = vpack.c.bf16 %v84_v50, %v77_v49  ;;  %v76_v56 = vld [vmem:[%s2185_s1 + $0x1c0] sm:$0xff]  ;;  %v83_v57 = vld [vmem:[%s2185_s1 + $0x1f8] sm:$0xff] }
   0xe   :  { %1010 = vmatpush1.bf16.msra.mxu0 %v1009_v35  ;;  %936 = vmatmul.mubr.msk.f32.vlgmr.msra.gmra.mrb[0].mxu1 %vm284_vm0, %v1374_v33  ;;  %v50_v58 = vld [vmem:[%s2185_s1 + $0xf0] sm:$0xff]  ;;  %v1079_v59 = vpack.c.bf16 %v58_v53, %v51_v51  ;;  %v57_v60 = vld [vmem:[%s2185_s1 + $0x128] sm:$0xff]  ;;  %v91_v61 = vld [vmem:[%s2185_s1 + $0x238] sm:$0xff]  ;;  %v1017_v1 = vpack.c.bf16 %v83_v57, %v76_v56 }
   0xf   :  { %1074 = vmatpush1.bf16.msra.mxu1 %v1073_v40  ;;  %1012 = vmatprep.subr.bf16.mxu0 %v1011_v41  ;;  %v98_v62 = vld [vmem:[%s2185_s1 + $0x270] sm:$0xff]  ;;  %v65_v63 = vld [vmem:[%s2185_s1 + $0x168] sm:$0xff]  ;;  %v72_v0 = vld [vmem:[%s2185_s1 + $0x1a0] sm:$0xff]  ;;  %v1081_v2 = vpack.c.bf16 %v57_v60, %v50_v58 }
  0x10   :  { %1076 = vmatprep.subr.bf16.mxu1 %v1075_v45  ;;  %438 = vmatprep.mubr.f32.mxu1 %v1282_v3  ;;  %v1019_v4 = vpack.c.bf16 %v98_v62, %v91_v61  ;;  %v90_v5 = vld [vmem:[%s2185_s1 + $0x230] sm:$0xff]  ;;  %v97_v6 = vld [vmem:[%s2185_s1 + $0x268] sm:$0xff]  ;;  %v64_v7 = vld [vmem:[%s2185_s1 + $0x160] sm:$0xff]  ;;  %v1083_v8 = vpack.c.bf16 %v72_v0, %v65_v63 }
  0x11   :  { %v71_v9 = vld [vmem:[%s2185_s1 + $0x198] sm:$0xff]  ;;  %v105_v10 = vld [vmem:[%s2185_s1 + $0x2a8] sm:$0xff]  ;;  %v112_v11 = vld [vmem:[%s2185_s1 + $0x2e0] sm:$0xff]  ;;  %v1021_v14 = vpack.c.bf16 %v97_v6, %v90_v5 }
  0x12   :  { %1014 = vmatpush1.bf16.msra.mxu0 %v1013_v52  ;;  %v79_v12 = vld [vmem:[%s2185_s1 + $0x1d8] sm:$0xff]  ;;  %v86_v13 = vld [vmem:[%s2185_s1 + $0x210] sm:$0xff]  ;;  %v1085_v15 = vpack.c.bf16 %v71_v9, %v64_v7  ;;  %v1023_v16 = vpack.c.bf16 %v112_v11, %v105_v10  ;;  %v104_v17 = vld [vmem:[%s2185_s1 + $0x2a0] sm:$0xff] }
  0x13   :  { %1078 = vmatpush1.bf16.msra.mxu1 %v1077_v54  ;;  %1016 = vmatprep.subr.bf16.mxu0 %v1015_v55  ;;  %v111_v18 = vld [vmem:[%s2185_s1 + $0x2d8] sm:$0xff]  ;;  %v78_v19 = vld [vmem:[%s2185_s1 + $0x1d0] sm:$0xff]  ;;  %v1087_v20 = vpack.c.bf16 %v86_v13, %v79_v12  ;;  %v85_v21 = vld [vmem:[%s2185_s1 + $0x208] sm:$0xff] }
  0x14   :  { %1080 = vmatprep.subr.bf16.mxu1 %v1079_v59  ;;  %v119_v22 = vld [vmem:[%s2185_s1 + $0x318] sm:$0xff]  ;;  %v126_v23 = vld [vmem:[%s2185_s1 + $0x350] sm:$0xff]  ;;  %v93_v24 = vld [vmem:[%s2185_s1 + $0x248] sm:$0xff]  ;;  %v1025_v26 = vpack.c.bf16 %v111_v18, %v104_v17  ;;  %v1089_v27 = vpack.c.bf16 %v85_v21, %v78_v19 }
  0x15   :  { %v100_v25 = vld [vmem:[%s2185_s1 + $0x280] sm:$0xff]  ;;  %v1027_v28 = vpack.c.bf16 %v126_v23, %v119_v22  ;;  %v118_v29 = vld [vmem:[%s2185_s1 + $0x310] sm:$0xff]  ;;  %v125_v30 = vld [vmem:[%s2185_s1 + $0x348] sm:$0xff] }
  0x16   :  { %1018 = vmatpush1.bf16.msra.mxu0 %v1017_v1  ;;  %v92_v31 = vld [vmem:[%s2185_s1 + $0x240] sm:$0xff]  ;;  %v1091_v32 = vpack.c.bf16 %v100_v25, %v93_v24  ;;  %v99_v34 = vld [vmem:[%s2185_s1 + $0x278] sm:$0xff]  ;;  %v133_v35 = vld [vmem:[%s2185_s1 + $0x388] sm:$0xff]  ;;  %v1029_v39 = vpack.c.bf16 %v125_v30, %v118_v29 }
  0x17   :  { %1082 = vmatpush1.bf16.msra.mxu1 %v1081_v2  ;;  %1020 = vmatprep.subr.bf16.mxu0 %v1019_v4  ;;  %v140_v36 = vld [vmem:[%s2185_s1 + $0x3c0] sm:$0xff]  ;;  %v107_v37 = vld [vmem:[%s2185_s1 + $0x2b8] sm:$0xff]  ;;  %v114_v38 = vld [vmem:[%s2185_s1 + $0x2f0] sm:$0xff]  ;;  %v1093_v40 = vpack.c.bf16 %v99_v34, %v92_v31 }
  0x18   :  { %1084 = vmatprep.subr.bf16.mxu1 %v1083_v8  ;;  %v1031_v41 = vpack.c.bf16 %v140_v36, %v133_v35  ;;  %v132_v42 = vld [vmem:[%s2185_s1 + $0x380] sm:$0xff]  ;;  %v139_v43 = vld [vmem:[%s2185_s1 + $0x3b8] sm:$0xff]  ;;  %v106_v44 = vld [vmem:[%s2185_s1 + $0x2b0] sm:$0xff]  ;;  %v1095_v45 = vpack.c.bf16 %v114_v38, %v107_v37 }
  0x19   :  { %v113_v46 = vld [vmem:[%s2185_s1 + $0x2e8] sm:$0xff]  ;;  %v147_v47 = vld [vmem:[%s2185_s1 + $0x3f8] sm:$0xff]  ;;  %v154_v48 = vld [vmem:[%s2185_s1 + $0x430] sm:$0xff]  ;;  %v1033_v51 = vpack.c.bf16 %v139_v43, %v132_v42 }
  0x1a   :  { %1022 = vmatpush1.bf16.msra.mxu0 %v1021_v14  ;;  %v121_v49 = vld [vmem:[%s2185_s1 + $0x328] sm:$0xff]  ;;  %v128_v50 = vld [vmem:[%s2185_s1 + $0x360] sm:$0xff]  ;;  %v1097_v52 = vpack.c.bf16 %v113_v46, %v106_v44  ;;  %v1035_v53 = vpack.c.bf16 %v154_v48, %v147_v47  ;;  %v146_v54 = vld [vmem:[%s2185_s1 + $0x3f0] sm:$0xff] }
  0x1b   :  { %1086 = vmatpush1.bf16.msra.mxu1 %v1085_v15  ;;  %1024 = vmatprep.subr.bf16.mxu0 %v1023_v16  ;;  %v153_v55 = vld [vmem:[%s2185_s1 + $0x428] sm:$0xff]  ;;  %v120_v56 = vld [vmem:[%s2185_s1 + $0x320] sm:$0xff]  ;;  %v1099_v57 = vpack.c.bf16 %v128_v50, %v121_v49  ;;  %v127_v58 = vld [vmem:[%s2185_s1 + $0x358] sm:$0xff] }
  0x1c   :  { %1088 = vmatprep.subr.bf16.mxu1 %v1087_v20  ;;  %v161_v59 = vld [vmem:[%s2185_s1 + $0x468] sm:$0xff]  ;;  %v168_v60 = vld [vmem:[%s2185_s1 + $0x4a0] sm:$0xff]  ;;  %v135_v61 = vld [vmem:[%s2185_s1 + $0x398] sm:$0xff]  ;;  %v1037_v63 = vpack.c.bf16 %v153_v55, %v146_v54  ;;  %v1101_v0 = vpack.c.bf16 %v127_v58, %v120_v56 }
  0x1d   :  { %v142_v62 = vld [vmem:[%s2185_s1 + $0x3d0] sm:$0xff]  ;;  %v1039_v1 = vpack.c.bf16 %v168_v60, %v161_v59  ;;  %v160_v2 = vld [vmem:[%s2185_s1 + $0x460] sm:$0xff]  ;;  %v167_v4 = vld [vmem:[%s2185_s1 + $0x498] sm:$0xff] }
  0x1e   :  { %1026 = vmatpush1.bf16.msra.mxu0 %v1025_v26  ;;  %v134_v5 = vld [vmem:[%s2185_s1 + $0x390] sm:$0xff]  ;;  %v1103_v6 = vpack.c.bf16 %v142_v62, %v135_v61  ;;  %v141_v7 = vld [vmem:[%s2185_s1 + $0x3c8] sm:$0xff]  ;;  %v175_v8 = vld [vmem:[%s2185_s1 + $0x4d8] sm:$0xff]  ;;  %v1041_v12 = vpack.c.bf16 %v167_v4, %v160_v2 }
  0x1f   :  { %1090 = vmatpush1.bf16.msra.mxu1 %v1089_v27  ;;  %1028 = vmatprep.subr.bf16.mxu0 %v1027_v28  ;;  %v182_v9 = vld [vmem:[%s2185_s1 + $0x510] sm:$0xff]  ;;  %v149_v10 = vld [vmem:[%s2185_s1 + $0x408] sm:$0xff]  ;;  %v156_v11 = vld [vmem:[%s2185_s1 + $0x440] sm:$0xff]  ;;  %v1105_v13 = vpack.c.bf16 %v141_v7, %v134_v5 }
  0x20   :  { %1092 = vmatprep.subr.bf16.mxu1 %v1091_v32  ;;  %v1043_v14 = vpack.c.bf16 %v182_v9, %v175_v8  ;;  %v174_v15 = vld [vmem:[%s2185_s1 + $0x4d0] sm:$0xff]  ;;  %v181_v16 = vld [vmem:[%s2185_s1 + $0x508] sm:$0xff]  ;;  %v148_v17 = vld [vmem:[%s2185_s1 + $0x400] sm:$0xff]  ;;  %v1107_v18 = vpack.c.bf16 %v156_v11, %v149_v10 }
  0x21   :  { %v155_v19 = vld [vmem:[%s2185_s1 + $0x438] sm:$0xff]  ;;  %v189_v20 = vld [vmem:[%s2185_s1 + $0x548] sm:$0xff]  ;;  %v196_v21 = vld [vmem:[%s2185_s1 + $0x580] sm:$0xff]  ;;  %v1045_v25 = vpack.c.bf16 %v181_v16, %v174_v15 }
  0x22   :  { %1030 = vmatpush1.bf16.msra.mxu0 %v1029_v39  ;;  %v163_v22 = vld [vmem:[%s2185_s1 + $0x478] sm:$0xff]  ;;  %v170_v23 = vld [vmem:[%s2185_s1 + $0x4b0] sm:$0xff]  ;;  %v1616_v24 = vld [vmem:[%s2186_s0 + $0x8] sm:$0xff]  ;;  %v1109_v27 = vpack.c.bf16 %v155_v19, %v148_v17  ;;  %v1047_v28 = vpack.c.bf16 %v196_v21, %v189_v20 }
  0x23   :  { %1094 = vmatpush1.bf16.msra.mxu1 %v1093_v40  ;;  %1032 = vmatprep.subr.bf16.mxu0 %v1031_v41  ;;  %v188_v26 = vld [vmem:[%s2185_s1 + $0x540] sm:$0xff]  ;;  %v195_v29 = vld [vmem:[%s2185_s1 + $0x578] sm:$0xff]  ;;  %v162_v30 = vld [vmem:[%s2185_s1 + $0x470] sm:$0xff]  ;;  %v1111_v32 = vpack.c.bf16 %v170_v23, %v163_v22 }
  0x24   :  { %1096 = vmatprep.subr.bf16.mxu1 %v1095_v45  ;;  %355 = vmatprep.mubr.f32.mxu0 %v1616_v24  ;;  %v169_v31 = vld [vmem:[%s2185_s1 + $0x4a8] sm:$0xff]  ;;  %v203_v34 = vld [vmem:[%s2185_s1 + $0x5b8] sm:$0xff]  ;;  %v210_v35 = vld [vmem:[%s2185_s1 + $0x5f0] sm:$0xff]  ;;  %v1049_v39 = vpack.c.bf16 %v195_v29, %v188_v26 }
  0x25   :  { %v1640_v36 = vld [vmem:[%s2186_s0 + $0x28] sm:$0xff]  ;;  %v184_v38 = vld [vmem:[%s2185_s1 + $0x520] sm:$0xff]  ;;  %v1113_v40 = vpack.c.bf16 %v169_v31, %v162_v30  ;;  %v1051_v41 = vpack.c.bf16 %v210_v35, %v203_v34  ;;  %v202_v42 = vld [vmem:[%s2185_s1 + $0x5b0] sm:$0xff] }
  0x26   :  { %1034 = vmatpush1.bf16.msra.mxu0 %v1033_v51  ;;  %v177_v37 = vld [vmem:[%s2185_s1 + $0x4e8] sm:$0xff]  ;;  %937 = vmatmul.mubr.msk.f32.gmra.mrb[2].mxu1 %vm284_vm0, %v1640_v36  ;;  %v176_v44 = vld [vmem:[%s2185_s1 + $0x4e0] sm:$0xff]  ;;  %v183_v46 = vld [vmem:[%s2185_s1 + $0x518] sm:$0xff] }
  0x27   :  { %1098 = vmatpush1.bf16.msra.mxu1 %v1097_v52  ;;  %1036 = vmatprep.subr.bf16.mxu0 %v1035_v53  ;;  %v209_v43 = vld [vmem:[%s2185_s1 + $0x5e8] sm:$0xff]  ;;  %v1115_v45 = vpack.c.bf16 %v184_v38, %v177_v37  ;;  %v224_v48 = vld [vmem:[%s2185_s1 + $0x660] sm:$0xff]  ;;  %v191_v49 = vld [vmem:[%s2185_s1 + $0x558] sm:$0xff]  ;;  %v1117_v52 = vpack.c.bf16 %v183_v46, %v176_v44 }
  0x28   :  { %1100 = vmatprep.subr.bf16.mxu1 %v1099_v57  ;;  %509 = vmatprep.mubr.f32.mxu1 %v1616_v24  ;;  %v217_v47 = vld [vmem:[%s2185_s1 + $0x628] sm:$0xff]  ;;  %v198_v50 = vld [vmem:[%s2185_s1 + $0x590] sm:$0xff]  ;;  %v1053_v51 = vpack.c.bf16 %v209_v43, %v202_v42  ;;  %v216_v54 = vld [vmem:[%s2185_s1 + $0x620] sm:$0xff] }
  0x29   :  { %v1055_v53 = vpack.c.bf16 %v224_v48, %v217_v47  ;;  %v223_v55 = vld [vmem:[%s2185_s1 + $0x658] sm:$0xff]  ;;  %v190_v56 = vld [vmem:[%s2185_s1 + $0x550] sm:$0xff]  ;;  %v1119_v57 = vpack.c.bf16 %v198_v50, %v191_v49  ;;  %v197_v58 = vld [vmem:[%s2185_s1 + $0x588] sm:$0xff] }
  0x2a   :  { %1038 = vmatpush1.bf16.msra.mxu0 %v1037_v63  ;;  %v231_v59 = vld [vmem:[%s2185_s1 + $0x698] sm:$0xff]  ;;  %v238_v60 = vld [vmem:[%s2185_s1 + $0x6d0] sm:$0xff]  ;;  %v205_v61 = vld [vmem:[%s2185_s1 + $0x5c8] sm:$0xff]  ;;  %v1057_v63 = vpack.c.bf16 %v223_v55, %v216_v54 }
  0x2b   :  { %1102 = vmatpush1.bf16.msra.mxu1 %v1101_v0  ;;  %1040 = vmatprep.subr.bf16.mxu0 %v1039_v1  ;;  %v212_v62 = vld [vmem:[%s2185_s1 + $0x600] sm:$0xff]  ;;  %v1121_v0 = vpack.c.bf16 %v197_v58, %v190_v56  ;;  %v1059_v1 = vpack.c.bf16 %v238_v60, %v231_v59  ;;  %v230_v2 = vld [vmem:[%s2185_s1 + $0x690] sm:$0xff]  ;;  %v237_v4 = vld [vmem:[%s2185_s1 + $0x6c8] sm:$0xff] }
  0x2c   :  { %1104 = vmatprep.subr.bf16.mxu1 %v1103_v6  ;;  %v204_v5 = vld [vmem:[%s2185_s1 + $0x5c0] sm:$0xff]  ;;  %v1123_v6 = vpack.c.bf16 %v212_v62, %v205_v61  ;;  %v211_v7 = vld [vmem:[%s2185_s1 + $0x5f8] sm:$0xff]  ;;  %v25_v8 = vld [vmem:[%s2185_s1 + $0x28] sm:$0xff] }
  0x2d   :  { %v32_v9 = vld [vmem:[%s2185_s1 + $0x60] sm:$0xff]  ;;  %v219_v10 = vld [vmem:[%s2185_s1 + $0x638] sm:$0xff]  ;;  %v226_v11 = vld [vmem:[%s2185_s1 + $0x670] sm:$0xff] }
  0x2e   :  { %1042 = vmatpush1.bf16.msra.mxu0 %v1041_v12  ;;  %v1061_v12 = vpack.c.bf16 %v237_v4, %v230_v2  ;;  %v218_v15 = vld [vmem:[%s2185_s1 + $0x630] sm:$0xff]  ;;  %v24_v16 = vld [vmem:[%s2185_s1 + $0x20] sm:$0xff]  ;;  %v31_v17 = vld [vmem:[%s2185_s1 + $0x58] sm:$0xff] }
  0x2f   :  { %1106 = vmatpush1.bf16.msra.mxu1 %v1105_v13  ;;  %1044 = vmatprep.subr.bf16.mxu0 %v1043_v14  ;;  %v1125_v13 = vpack.c.bf16 %v211_v7, %v204_v5  ;;  %v1143_v14 = vpack.c.bf16 %v32_v9, %v25_v8  ;;  %v225_v19 = vld [vmem:[%s2185_s1 + $0x668] sm:$0xff]  ;;  %v39_v20 = vld [vmem:[%s2185_s1 + $0x98] sm:$0xff]  ;;  %v46_v21 = vld [vmem:[%s2185_s1 + $0xd0] sm:$0xff]  ;;  %v1145_v26 = vpack.c.bf16 %v31_v17, %v24_v16 }
  0x30   :  { %1108 = vmatprep.subr.bf16.mxu1 %v1107_v18  ;;  %v1127_v18 = vpack.c.bf16 %v226_v11, %v219_v10  ;;  %v233_v22 = vld [vmem:[%s2185_s1 + $0x6a8] sm:$0xff]  ;;  %v240_v23 = vld [vmem:[%s2185_s1 + $0x6e0] sm:$0xff]  ;;  %v1147_v29 = vpack.c.bf16 %v46_v21, %v39_v20  ;;  %v38_v30 = vld [vmem:[%s2185_s1 + $0x90] sm:$0xff] }
  0x31   :  { %v45_v31 = vld [vmem:[%s2185_s1 + $0xc8] sm:$0xff]  ;;  %v1131_v34 = vpack.c.bf16 %v240_v23, %v233_v22  ;;  %v239_v35 = vld [vmem:[%s2185_s1 + $0x6d8] sm:$0xff]  ;;  %v60_v38 = vld [vmem:[%s2185_s1 + $0x140] sm:$0xff] }
  0x32   :  { %1046 = vmatpush1.bf16.msra.mxu0 %v1045_v25  ;;  %v1750_v25 = vld [vmem:[%s2186_s0] sm:$0xff]  ;;  %v53_v37 = vld [vmem:[%s2185_s1 + $0x108] sm:$0xff]  ;;  %v1786_v42 = vld [vmem:[%s2186_s0 + $0x18] sm:$0xff] }
  0x33   :  { %1110 = vmatpush1.bf16.msra.mxu1 %v1109_v27  ;;  %1048 = vmatprep.subr.bf16.mxu0 %v1047_v28  ;;  %v232_v27 = vld [vmem:[%s2185_s1 + $0x6a0] sm:$0xff]  ;;  %v1129_v28 = vpack.c.bf16 %v225_v19, %v218_v15  ;;  %v1151_v44 = vpack.c.bf16 %v60_v38, %v53_v37  ;;  %v59_v46 = vld [vmem:[%s2185_s1 + $0x138] sm:$0xff]  ;;  %v246_v48 = vld [vmem:[%s2185_s1 + $0x710] sm:$0xff] }
  0x34   :  { %1112 = vmatprep.subr.bf16.mxu1 %v1111_v32  ;;  %v1764_v32 = vld [vmem:[%s2186_s0 + $0x20] sm:$0xff]  ;;  %v1133_v43 = vpack.c.bf16 %v239_v35, %v232_v27  ;;  %v253_v49 = vld [vmem:[%s2185_s1 + $0x748] sm:$0xff]  ;;  %v66_v56 = vld [vmem:[%s2185_s1 + $0x170] sm:$0xff] }
  0x35   :  { %v261_v50 = vld [vmem:[%s2185_s1 + $0x788] sm:$0xff]  ;;  %v1137_v55 = vpack.c.bf16 %v253_v49, %v246_v48  ;;  %v260_v60 = vld [vmem:[%s2185_s1 + $0x780] sm:$0xff]  ;;  %v267_v61 = vld [vmem:[%s2185_s1 + $0x7b8] sm:$0xff] }
  0x36   :  { %1050 = vmatpush1.bf16.msra.mxu0 %v1049_v39  ;;  %v247_v39 = vld [vmem:[%s2185_s1 + $0x718] sm:$0xff]  ;;  %v81_v62 = vld [vmem:[%s2185_s1 + $0x1e8] sm:$0xff]  ;;  %v1141_v4 = vpack.c.bf16 %v267_v61, %v260_v60  ;;  %v80_v5 = vld [vmem:[%s2185_s1 + $0x1e0] sm:$0xff] }
  0x37   :  { %1114 = vmatpush1.bf16.msra.mxu1 %v1113_v40  ;;  %1052 = vmatprep.subr.bf16.mxu0 %v1051_v41  ;;  %v254_v40 = vld [vmem:[%s2185_s1 + $0x750] sm:$0xff]  ;;  %v1149_v41 = vpack.c.bf16 %v45_v31, %v38_v30  ;;  %v248_v9 = vld [vmem:[%s2185_s1 + $0x720] sm:$0xff]  ;;  %v255_v10 = vld [vmem:[%s2185_s1 + $0x758] sm:$0xff] }
  0x38   :  { %1116 = vmatprep.subr.bf16.mxu1 %v1115_v45  ;;  %v52_v45 = vld [vmem:[%s2185_s1 + $0x100] sm:$0xff]  ;;  %v1135_v47 = vpack.c.bf16 %v254_v40, %v247_v39  ;;  %v95_v11 = vld [vmem:[%s2185_s1 + $0x258] sm:$0xff]  ;;  %v1209_v16 = vpack.c.bf16 %v255_v10, %v248_v9  ;;  %v94_v17 = vld [vmem:[%s2185_s1 + $0x250] sm:$0xff] }
  0x39   :  { %v1153_v54 = vpack.c.bf16 %v59_v46, %v52_v45  ;;  %v262_v19 = vld [vmem:[%s2185_s1 + $0x790] sm:$0xff]  ;;  %v269_v22 = vld [vmem:[%s2185_s1 + $0x7c8] sm:$0xff]  ;;  %v108_v30 = vld [vmem:[%s2185_s1 + $0x2c0] sm:$0xff] }
  0x3a   :  { %1054 = vmatpush1.bf16.msra.mxu0 %v1053_v51  ;;  %v268_v51 = vld [vmem:[%s2185_s1 + $0x7c0] sm:$0xff]  ;;  %v109_v23 = vld [vmem:[%s2185_s1 + $0x2c8] sm:$0xff]  ;;  %v138_v27 = vld [vmem:[%s2185_s1 + $0x3b0] sm:$0xff]  ;;  %v1213_v31 = vpack.c.bf16 %v269_v22, %v262_v19 }
  0x3b   :  { %1118 = vmatpush1.bf16.msra.mxu1 %v1117_v52  ;;  %1056 = vmatprep.subr.bf16.mxu0 %v1055_v53  ;;  %v67_v52 = vld [vmem:[%s2185_s1 + $0x178] sm:$0xff]  ;;  %v74_v53 = vld [vmem:[%s2185_s1 + $0x1b0] sm:$0xff]  ;;  %v1139_v58 = vpack.c.bf16 %v268_v51, %v261_v50  ;;  %v33_v38 = vld [vmem:[%s2185_s1 + $0x68] sm:$0xff] }
  0x3c   :  { %1120 = vmatprep.subr.bf16.mxu1 %v1119_v57  ;;  %v73_v57 = vld [vmem:[%s2185_s1 + $0x1a8] sm:$0xff]  ;;  %v1155_v59 = vpack.c.bf16 %v74_v53, %v67_v52  ;;  %v115_v35 = vld [vmem:[%s2185_s1 + $0x2f8] sm:$0xff]  ;;  %v26_v37 = vld [vmem:[%s2185_s1 + $0x30] sm:$0xff] }
  0x3d   :  { %v1157_v2 = vpack.c.bf16 %v73_v57, %v66_v56  ;;  %v123_v40 = vld [vmem:[%s2185_s1 + $0x338] sm:$0xff]  ;;  %v1169_v46 = vpack.c.bf16 %v115_v35, %v108_v30  ;;  %v1217_v48 = vpack.c.bf16 %v33_v38, %v26_v37  ;;  %v122_v50 = vld [vmem:[%s2185_s1 + $0x330] sm:$0xff]  ;;  %v129_v51 = vld [vmem:[%s2185_s1 + $0x368] sm:$0xff] }
  0x3e   :  { %1058 = vmatpush1.bf16.msra.mxu0 %v1057_v63  ;;  %v88_v63 = vld [vmem:[%s2185_s1 + $0x220] sm:$0xff]  ;;  %v159_v45 = vld [vmem:[%s2185_s1 + $0x458] sm:$0xff]  ;;  %v166_v57 = vld [vmem:[%s2185_s1 + $0x490] sm:$0xff] }
  0x3f   :  { %1122 = vmatpush1.bf16.msra.mxu1 %v1121_v0  ;;  %1060 = vmatprep.subr.bf16.mxu0 %v1059_v1  ;;  %v249_v0 = vld [vmem:[%s2185_s1 + $0x728] sm:$0xff]  ;;  %v256_v1 = vld [vmem:[%s2185_s1 + $0x760] sm:$0xff]  ;;  %v1159_v7 = vpack.c.bf16 %v88_v63, %v81_v62  ;;  %v143_v63 = vld [vmem:[%s2185_s1 + $0x3d8] sm:$0xff] }
  0x40   :  { %1124 = vmatprep.subr.bf16.mxu1 %v1123_v6  ;;  %v87_v6 = vld [vmem:[%s2185_s1 + $0x218] sm:$0xff]  ;;  %v1207_v8 = vpack.c.bf16 %v256_v1, %v249_v0  ;;  %v40_v52 = vld [vmem:[%s2185_s1 + $0xa0] sm:$0xff]  ;;  %v54_v0 = vld [vmem:[%s2185_s1 + $0x110] sm:$0xff] }
  0x41   :  { %v1161_v15 = vpack.c.bf16 %v87_v6, %v80_v5  ;;  %v144_v56 = vld [vmem:[%s2185_s1 + $0x3e0] sm:$0xff]  ;;  %v158_v5 = vld [vmem:[%s2185_s1 + $0x450] sm:$0xff] }
  0x42   :  { %1062 = vmatpush1.bf16.msra.mxu0 %v1061_v12  ;;  %v102_v12 = vld [vmem:[%s2185_s1 + $0x290] sm:$0xff]  ;;  %v136_v62 = vld [vmem:[%s2185_s1 + $0x3a0] sm:$0xff] }
  0x43   :  { %1126 = vmatpush1.bf16.msra.mxu1 %v1125_v13  ;;  %1144 = vmatprep.subr.bf16.mxu0 %v1143_v14  ;;  %v263_v13 = vld [vmem:[%s2185_s1 + $0x798] sm:$0xff]  ;;  %v270_v14 = vld [vmem:[%s2185_s1 + $0x7d0] sm:$0xff]  ;;  %v1163_v20 = vpack.c.bf16 %v102_v12, %v95_v11  ;;  %v180_v6 = vld [vmem:[%s2185_s1 + $0x500] sm:$0xff] }
  0x44   :  { %1128 = vmatprep.subr.bf16.mxu1 %v1127_v18  ;;  %v101_v18 = vld [vmem:[%s2185_s1 + $0x288] sm:$0xff]  ;;  %v1211_v21 = vpack.c.bf16 %v270_v14, %v263_v13  ;;  %v68_v12 = vld [vmem:[%s2185_s1 + $0x180] sm:$0xff]  ;;  %v75_v14 = vld [vmem:[%s2185_s1 + $0x1b8] sm:$0xff] }
  0x45   :  { %356 = vmatmul.mubr.f32.vlgmr.msra.gmra.mrb[0].mxu0 %v1750_v25  ;;  %v157_v11 = vld [vmem:[%s2185_s1 + $0x448] sm:$0xff]  ;;  %v164_v22 = vld [vmem:[%s2185_s1 + $0x480] sm:$0xff]  ;;  %v178_v38 = vld [vmem:[%s2185_s1 + $0x4f0] sm:$0xff] }
  0x46   :  { %1146 = vmatpush1.bf16.msra.mxu0 %v1145_v26  ;;  %361 = vmatprep.mubr.f32.mxu0 %v1764_v32  ;;  %v116_v26 = vld [vmem:[%s2185_s1 + $0x300] sm:$0xff] }
  0x47   :  { %1130 = vmatpush1.bf16.msra.mxu1 %v1129_v28  ;;  %1148 = vmatprep.subr.bf16.mxu0 %v1147_v29  ;;  %v145_v28 = vld [vmem:[%s2185_s1 + $0x3e8] sm:$0xff]  ;;  %v1165_v29 = vpack.c.bf16 %v101_v18, %v94_v17  ;;  %v194_v17 = vld [vmem:[%s2185_s1 + $0x570] sm:$0xff]  ;;  %v208_v30 = vld [vmem:[%s2185_s1 + $0x5e0] sm:$0xff] }
  0x48   :  { %1132 = vmatprep.subr.bf16.mxu1 %v1131_v34  ;;  %v1167_v34 = vpack.c.bf16 %v116_v26, %v109_v23  ;;  %v1215_v39 = vpack.c.bf16 %v145_v28, %v138_v27  ;;  %v201_v18 = vld [vmem:[%s2185_s1 + $0x5a8] sm:$0xff]  ;;  %v82_v23 = vld [vmem:[%s2185_s1 + $0x1f0] sm:$0xff]  ;;  %v179_v28 = vld [vmem:[%s2185_s1 + $0x4f8] sm:$0xff] }
  0x49   :  { %362 = vmatmul.mubr.f32.gmra.mrb[2].mxu0 %v1786_v42  ;;  %v1231_v26 = vpack.c.bf16 %v201_v18, %v194_v17  ;;  %v89_v27 = vld [vmem:[%s2185_s1 + $0x228] sm:$0xff]  ;;  %v271_v17 = vld [vmem:[%s2185_s1 + $0x7d8] sm:$0xff] }
  0x4a   :  { %1150 = vmatpush1.bf16.msra.mxu0 %v1149_v41  ;;  %663 = vmatprep.mubr.f32.mxu0 %v1616_v24  ;;  %v130_v41 = vld [vmem:[%s2185_s1 + $0x370] sm:$0xff]  ;;  %v1233_v35 = vpack.c.bf16 %v89_v27, %v82_v23 }
  0x4b   :  { %1134 = vmatpush1.bf16.msra.mxu1 %v1133_v43  ;;  %1152 = vmatprep.subr.bf16.mxu0 %v1151_v44  ;;  %v272_v43 = vld [vmem:[%s2187_s2] sm:$0xff]  ;;  %v1171_v49 = vpack.c.bf16 %v130_v41, %v123_v40 }
  0x4c   :  { %1136 = vmatprep.subr.bf16.mxu1 %v1135_v47  ;;  %v152_v44 = vld [vmem:[%s2185_s1 + $0x420] sm:$0xff]  ;;  %276 = vperm.xlu0 %1281, %v272_v43   ;;  %v273_v47 = vld [vmem:[%s2187_s2 + $0x8] sm:$0xff]  ;;  %v103_v43 = vld [vmem:[%s2185_s1 + $0x298] sm:$0xff] }
  0x4d   :  { %v1219_v53 = vpack.c.bf16 %v159_v45, %v152_v44  ;;  %v96_v40 = vld [vmem:[%s2185_s1 + $0x260] sm:$0xff]  ;;  %v193_v44 = vld [vmem:[%s2185_s1 + $0x568] sm:$0xff] }
  0x4e   :  { %510 = vmatmul.mubr.f32.vlgmr.msra.gmra.mrb[4].mxu1 %v1750_v25  ;;  %1154 = vmatpush1.bf16.msra.mxu0 %v1153_v54  ;;  %v47_v54 = vld [vmem:[%s2185_s1 + $0xd8] sm:$0xff]  ;;  %v200_v45 = vld [vmem:[%s2185_s1 + $0x5a0] sm:$0xff] }
  0x4f   :  { %1138 = vmatpush1.bf16.msra.mxu1 %v1137_v55  ;;  %515 = vmatprep.mubr.f32.mxu1 %v1764_v32  ;;  %v137_v55 = vld [vmem:[%s2185_s1 + $0x3a8] sm:$0xff]  ;;  %v1221_v60 = vpack.c.bf16 %v47_v54, %v40_v52  ;;  %v199_v52 = vld [vmem:[%s2185_s1 + $0x598] sm:$0xff] }
  0x50   :  { %1140 = vmatprep.subr.bf16.mxu1 %v1139_v58  ;;  %1156 = vmatprep.subr.bf16.mxu0 %v1155_v59  ;;  %v173_v58 = vld [vmem:[%s2185_s1 + $0x4c8] sm:$0xff]  ;;  %v1173_v59 = vpack.c.bf16 %v129_v51, %v122_v50  ;;  %v1175_v61 = vpack.c.bf16 %v144_v56, %v137_v55  ;;  %v1191_v50 = vpack.c.bf16 %v200_v45, %v193_v44  ;;  %v192_v51 = vld [vmem:[%s2185_s1 + $0x560] sm:$0xff]  ;;  %v207_v56 = vld [vmem:[%s2185_s1 + $0x5d8] sm:$0xff] }
  0x51   :  { %281 = vperm.xlu0 %1281, %v273_v47   ;;  %v1223_v1 = vpack.c.bf16 %v173_v58, %v166_v57  ;;  %v229_v47 = vld [vmem:[%s2185_s1 + $0x688] sm:$0xff]  ;;  %v214_v57 = vld [vmem:[%s2185_s1 + $0x610] sm:$0xff]  ;;  %v236_v58 = vld [vmem:[%s2185_s1 + $0x6c0] sm:$0xff] }
  0x52   :  { %516 = vmatmul.mubr.f32.gmra.mrb[6].mxu1 %v1786_v42  ;;  %1158 = vmatpush1.bf16.msra.mxu0 %v1157_v2  ;;  %v61_v2 = vld [vmem:[%s2185_s1 + $0x148] sm:$0xff] }
  0x53   :  { %1142 = vmatpush1.bf16.msra.mxu1 %v1141_v4  ;;  %586 = vmatprep.mubr.f32.mxu1 %v1282_v3  ;;  %v151_v4 = vld [vmem:[%s2185_s1 + $0x418] sm:$0xff]  ;;  %v1225_v9 = vpack.c.bf16 %v61_v2, %v54_v0  ;;  %v117_v55 = vld [vmem:[%s2185_s1 + $0x308] sm:$0xff] }
  0x54   :  { %1160 = vmatprep.subr.bf16.mxu0 %v1159_v7  ;;  %1208 = vmatprep.subr.bf16.mxu1 %v1207_v8  ;;  %v187_v7 = vld [vmem:[%s2185_s1 + $0x538] sm:$0xff]  ;;  %v1177_v8 = vpack.c.bf16 %v143_v63, %v136_v62  ;;  %v1179_v10 = vpack.c.bf16 %v158_v5, %v151_v4  ;;  %v1195_v62 = vpack.c.bf16 %v214_v57, %v207_v56  ;;  %v206_v63 = vld [vmem:[%s2185_s1 + $0x5d0] sm:$0xff]  ;;  %v213_v0 = vld [vmem:[%s2185_s1 + $0x608] sm:$0xff] }
  0x55   :  { %v1227_v13 = vpack.c.bf16 %v187_v7, %v180_v6  ;;  %v131_v4 = vld [vmem:[%s2185_s1 + $0x378] sm:$0xff]  ;;  %v221_v5 = vld [vmem:[%s2185_s1 + $0x648] sm:$0xff]  ;;  %v228_v6 = vld [vmem:[%s2185_s1 + $0x680] sm:$0xff] }
  0x56   :  { %938 = vmatmul.mubr.msk.f32.vlgmr.msra.gmra.mrb[4].mxu1 %vm284_vm0, %v1374_v33  ;;  %1162 = vmatpush1.bf16.msra.mxu0 %v1161_v15  ;;  %v165_v15 = vld [vmem:[%s2185_s1 + $0x488] sm:$0xff]  ;;  %v250_v7 = vld [vmem:[%s2185_s1 + $0x730] sm:$0xff] }
  0x57   :  { %1210 = vmatpush1.bf16.msra.mxu1 %v1209_v16  ;;  %592 = vmatprep.mubr.f32.mxu1 %v1282_v3  ;;  %v172_v16 = vld [vmem:[%s2185_s1 + $0x4c0] sm:$0xff] }
  0x58   :  { %1164 = vmatprep.subr.bf16.mxu0 %v1163_v20  ;;  %1212 = vmatprep.subr.bf16.mxu1 %v1211_v21  ;;  %v1229_v20 = vpack.c.bf16 %v75_v14, %v68_v12  ;;  %v1183_v21 = vpack.c.bf16 %v172_v16, %v165_v15  ;;  %v227_v12 = vld [vmem:[%s2185_s1 + $0x678] sm:$0xff]  ;;  %v242_v15 = vld [vmem:[%s2185_s1 + $0x6f0] sm:$0xff]  ;;  %v264_v16 = vld [vmem:[%s2185_s1 + $0x7a0] sm:$0xff] }
  0x59   :  { %v235_v14 = vld [vmem:[%s2185_s1 + $0x6b8] sm:$0xff] }
  0x5a   :  { %939 = vmatmul.mubr.msk.f32.gmra.mrb[6].mxu1 %vm284_vm0, %v1640_v36  ;;  %1166 = vmatpush1.bf16.msra.mxu0 %v1165_v29  ;;  %v186_v29 = vld [vmem:[%s2185_s1 + $0x530] sm:$0xff] }
  0x5b   :  { %1214 = vmatpush1.bf16.msra.mxu1 %v1213_v31  ;;  %1168 = vmatprep.subr.bf16.mxu0 %v1167_v34  ;;  %v215_v31 = vld [vmem:[%s2185_s1 + $0x618] sm:$0xff]  ;;  %v1187_v37 = vpack.c.bf16 %v186_v29, %v179_v28 }
  0x5c   :  { %740 = vmatprep.mubr.f32.mxu1 %v1282_v3  ;;  %1216 = vmatprep.subr.bf16.mxu1 %v1215_v39  ;;  %v185_v39 = vld [vmem:[%s2185_s1 + $0x528] sm:$0xff]  ;;  %v1235_v41 = vpack.c.bf16 %v215_v31, %v208_v30 }
  0x5e   :  { %1170 = vmatpush1.bf16.msra.mxu0 %v1169_v46  ;;  %940 = vmatmul.mubr.msk.f32.vlgmr.msra.gmra.mrb[8].mxu1 %vm284_vm0, %v1374_v33  ;;  %v222_v46 = vld [vmem:[%s2185_s1 + $0x650] sm:$0xff] }
  0x5f   :  { %1218 = vmatpush3.bf16.msra.mxu1 %v1217_v48  ;;  %1172 = vmatprep.subr.bf16.mxu0 %v1171_v49  ;;  %v1189_v48 = vpack.c.bf16 %v185_v39, %v178_v38  ;;  %v1237_v49 = vpack.c.bf16 %v103_v43, %v96_v40  ;;  %v1239_v54 = vpack.c.bf16 %v229_v47, %v222_v46 }
  0x60   :  { %1220 = vmatprep.subr.bf16.mxu1 %v1219_v53  ;;  %746 = vmatprep.mubr.f32.mxu1 %v1282_v3  ;;  %v150_v3 = vld [vmem:[%s2185_s1 + $0x410] sm:$0xff] }
  0x61   :  { %v1181_v19 = vpack.c.bf16 %v157_v11, %v150_v3  ;;  %v110_v53 = vld [vmem:[%s2185_s1 + $0x2d0] sm:$0xff]  ;;  %v1199_v3 = vpack.c.bf16 %v228_v6, %v221_v5  ;;  %v220_v11 = vld [vmem:[%s2185_s1 + $0x640] sm:$0xff] }
  0x62   :  { %1174 = vmatpush1.bf16.msra.mxu0 %v1173_v59  ;;  %941 = vmatmul.mubr.msk.f32.gmra.mrb[10].mxu1 %vm284_vm0, %v1640_v36  ;;  %v243_v59 = vld [vmem:[%s2185_s1 + $0x6f8] sm:$0xff]  ;;  %v1201_v18 = vpack.c.bf16 %v227_v12, %v220_v11 }
  0x63   :  { %1222 = vmatpush3.bf16.msra.mxu1 %v1221_v60  ;;  %1176 = vmatprep.subr.bf16.mxu0 %v1175_v61  ;;  %v1193_v60 = vpack.c.bf16 %v199_v52, %v192_v51  ;;  %v1241_v61 = vpack.c.bf16 %v117_v55, %v110_v53  ;;  %v1243_v2 = vpack.c.bf16 %v243_v59, %v236_v58 }
  0x64   :  { %1224 = vmatprep.subr.bf16.mxu1 %v1223_v1  ;;  %817 = vmatprep.mubr.f32.mxu1 %v1616_v24  ;;  %v171_v24 = vld [vmem:[%s2185_s1 + $0x4b8] sm:$0xff]  ;;  %v124_v1 = vld [vmem:[%s2185_s1 + $0x340] sm:$0xff] }
  0x65   :  { %v1185_v34 = vpack.c.bf16 %v171_v24, %v164_v22  ;;  %v1251_v22 = vpack.c.bf16 %v271_v17, %v264_v16 }
  0x66   :  { %1178 = vmatpush1.bf16.msra.mxu0 %v1177_v8  ;;  %v257_v8 = vld [vmem:[%s2185_s1 + $0x768] sm:$0xff] }
  0x67   :  { %1226 = vmatpush3.bf16.msra.mxu1 %v1225_v9  ;;  %1180 = vmatprep.subr.bf16.mxu0 %v1179_v10  ;;  %v1197_v9 = vpack.c.bf16 %v213_v0, %v206_v63  ;;  %v1245_v10 = vpack.c.bf16 %v131_v4, %v124_v1 }
  0x68   :  { %1228 = vmatprep.subr.bf16.mxu1 %v1227_v13  ;;  %v1247_v13 = vpack.c.bf16 %v257_v8, %v250_v7 }
  0x6a   :  { %1182 = vmatpush1.bf16.msra.mxu0 %v1181_v19  ;;  %v1203_v19 = vpack.c.bf16 %v242_v15, %v235_v14 }
  0x6b   :  { %1230 = vmatpush3.bf16.msra.mxu1 %v1229_v20  ;;  %1184 = vmatprep.subr.bf16.mxu0 %v1183_v21  ;;  %v234_v20 = vld [vmem:[%s2185_s1 + $0x6b0] sm:$0xff]  ;;  %v241_v21 = vld [vmem:[%s2185_s1 + $0x6e8] sm:$0xff] }
  0x6c   :  { %1232 = vmatprep.subr.bf16.mxu1 %v1231_v26  ;;  %v1205_v24 = vpack.c.bf16 %v241_v21, %v234_v20 }
  0x6e   :  { %1186 = vmatpush1.bf16.msra.mxu0 %v1185_v34 }
  0x6f   :  { %1234 = vmatpush3.bf16.msra.mxu1 %v1233_v35  ;;  %1188 = vmatprep.subr.bf16.mxu0 %v1187_v37 }
  0x70   :  { %1236 = vmatprep.subr.bf16.mxu1 %v1235_v41 }
  0x72   :  { %1190 = vmatpush1.bf16.msra.mxu0 %v1189_v48 }
  0x73   :  { %1238 = vmatpush3.bf16.msra.mxu1 %v1237_v49  ;;  %1192 = vmatprep.subr.bf16.mxu0 %v1191_v50 }
  0x74   :  { %1240 = vmatprep.subr.bf16.mxu1 %v1239_v54 }
  0x76   :  { %1194 = vmatpush1.bf16.msra.mxu0 %v1193_v60 }
  0x77   :  { %1242 = vmatpush3.bf16.msra.mxu1 %v1241_v61  ;;  %1196 = vmatprep.subr.bf16.mxu0 %v1195_v62 }
  0x78   :  { %1244 = vmatprep.subr.bf16.mxu1 %v1243_v2 }
  0x7a   :  { %1198 = vmatpush1.bf16.msra.mxu0 %v1197_v9 }
  0x7b   :  { %1246 = vmatpush3.bf16.msra.mxu1 %v1245_v10  ;;  %1200 = vmatprep.subr.bf16.mxu0 %v1199_v3 }
  0x7c   :  { %1248 = vmatprep.subr.bf16.mxu1 %v1247_v13 }
  0x7e   :  { %1202 = vmatpush1.bf16.msra.mxu0 %v1201_v18  ;;  %818 = vmatmul.mubr.f32.vlgmr.msra.gmra.mrb[12].mxu1 %v1750_v25 }
  0x7f   :  { %1250 = vmatpush3.bf16.msra.mxu1 %v1247_v13  ;;  %1204 = vmatprep.subr.bf16.mxu0 %v1203_v19 }
  0x80   :  { %822 = vmatprep.mubr.f32.mxu1 %v1764_v32  ;;  %1252 = vmatprep.subr.bf16.mxu1 %v1251_v22 }
  0x82   :  { %1206 = vmatpush1.bf16.msra.mxu0 %v1205_v24  ;;  %823 = vmatmul.mubr.f32.gmra.mrb[14].mxu1 %v1786_v42 }
  0x83   :  { %1254 = vmatpush3.bf16.msra.mxu1 %v1251_v22  ;;  %996 = vmatprep.mubr.msk.f32.mxu1 %vm284_vm0, %v1374_v33 }
  0x85   :  { %664 = vmatmul.mubr.f32.vlgmr.msra.gmra.mrb[4].mxu0 %v1750_v25 }
  0x86   :  { %997 = vmatmul.mubr.msk.f32.vlgmr.msra.gmra.mrb[16].mxu1 %vm284_vm0, %v1640_v36  ;;  %669 = vmatprep.mubr.f32.mxu0 %v1764_v32 }
  0x89   :  { %670 = vmatmul.mubr.f32.gmra.mrb[6].mxu0 %v1786_v42 }
  0xcb   :  { %v277_v29 = vpop.permute.xlu0 %276 }
  0xd0   :  { %v2134_v37 = vpop.permute.xlu0 %281 }
  0xe1   :  { %v434_v23 = vpop.f32.mrb[0].mxu1 }
  0xe2   :  { %v436_v26 = vpop.f32.mrb[1].mxu1 }
  0xf9   :  { %v440_v27 = vpop.f32.mrb[2].mxu1 }
  0xfa   :  { %v442_v28 = vpop.f32.mrb[3].mxu1 }
 0x118   :  { %v357_v30 = vpop.f32.mrb[0].mxu0 }
 0x119   :  { %v358_v31 = vadd.f32 %v357_v30, %v277_v29  ;;  %v359_v34 = vpop.f32.mrb[1].mxu0 }
 0x11a   :  { %v360_v35 = vadd.f32 %v359_v34, %v277_v29 }
 0x11b   :  { %v435_v33 = vadd.f32 %v434_v23, %v358_v31 }
 0x11c   :  { %v437_v25 = vadd.f32 %v436_v26, %v360_v35  ;;  %v363_v38 = vpop.f32.mrb[2].mxu0 }
 0x11d   :  { %v903_v39 = vmax.f32 %v435_v33, 0.0  ;;  %v365_v36 = vpop.f32.mrb[3].mxu0  ;;  %v364_v32 = vadd.f32 %v363_v38, %v2134_v37 }
 0x11e   :  { %v904_v40 = vmax.f32 %v437_v25, 0.0  ;;  %v366_v42 = vadd.f32 %v365_v36, %v2134_v37 }
 0x11f   :  { %917 = vst [vmem:[%s2188_s3] sm:$0xff] %v903_v39  ;;  %v441_v41 = vadd.f32 %v440_v27, %v364_v32 }
 0x120   :  { %918 = vst [vmem:[%s2188_s3 + $0x8] sm:$0xff] %v904_v40  ;;  %v443_v43 = vadd.f32 %v442_v28, %v366_v42 }
 0x121   :  { %v910_v44 = vmax.f32 %v441_v41, 0.0 }
 0x122   :  { %v911_v45 = vmax.f32 %v443_v43, 0.0 }
 0x123   :  { %925 = vst [vmem:[%s2188_s3 + $0x38] sm:$0xff] %v910_v44 }
 0x124   :  { %926 = vst [vmem:[%s2188_s3 + $0x40] sm:$0xff] %v911_v45 }
 0x129   :  { %v588_v46 = vpop.f32.mrb[4].mxu1 }
 0x12a   :  { %v1263_v47 = vadd.f32 %v588_v46, %v277_v29  ;;  %v590_v48 = vpop.f32.mrb[5].mxu1 }
 0x12b   :  { %v1264_v49 = vadd.f32 %v590_v48, %v277_v29 }
 0x12c   :  { %v905_v50 = vmax.f32 %v1263_v47, 0.0 }
 0x12d   :  { %v906_v51 = vmax.f32 %v1264_v49, 0.0  ;;  %v594_v52 = vpop.f32.mrb[6].mxu1 }
 0x12e   :  { %919 = vst [vmem:[%s2188_s3 + $0x10] sm:$0xff] %v905_v50  ;;  %v1265_v53 = vadd.f32 %v594_v52, %v2134_v37  ;;  %v596_v54 = vpop.f32.mrb[7].mxu1 }
 0x12f   :  { %920 = vst [vmem:[%s2188_s3 + $0x18] sm:$0xff] %v906_v51  ;;  %v1266_v55 = vadd.f32 %v596_v54, %v2134_v37 }
 0x130   :  { %v912_v56 = vmax.f32 %v1265_v53, 0.0 }
 0x131   :  { %v913_v57 = vmax.f32 %v1266_v55, 0.0  ;;  %v742_v58 = vpop.f32.mrb[8].mxu1 }
 0x132   :  { %927 = vst [vmem:[%s2188_s3 + $0x48] sm:$0xff] %v912_v56  ;;  %v744_v59 = vpop.f32.mrb[9].mxu1 }
 0x133   :  { %928 = vst [vmem:[%s2188_s3 + $0x50] sm:$0xff] %v913_v57 }
 0x135   :  { %v748_v60 = vpop.f32.mrb[10].mxu1 }
 0x136   :  { %v750_v61 = vpop.f32.mrb[11].mxu1 }
 0x151   :  { %v976_v62 = vpop.f32.mrb[12].mxu1 }
 0x152   :  { %v977_v63 = vpop.f32.mrb[13].mxu1 }
 0x153   :  { %v978_v0 = vadd.f32 %v977_v63, %v976_v62 }
 0x155   :  { %v979_v1 = vpop.f32.mrb[14].mxu1  ;;  %v820_v5 = vadd.f32 %v978_v0, %v277_v29 }
 0x156   :  { %v980_v2 = vpop.f32.mrb[15].mxu1 }
 0x157   :  { %v981_v4 = vadd.f32 %v980_v2, %v979_v1 }
 0x158   :  { %v665_v6 = vpop.f32.mrb[4].mxu0 }
 0x159   :  { %v666_v7 = vadd.f32 %v665_v6, %v277_v29  ;;  %v667_v8 = vpop.f32.mrb[5].mxu0  ;;  %v825_v9 = vadd.f32 %v981_v4, %v2134_v37  ;;  %v998_v10 = vpop.f32.mrb[16].mxu1 }
 0x15a   :  { %v668_v3 = vadd.f32 %v667_v8, %v277_v29  ;;  %v894_v11 = vpop.f32.mrb[17].mxu1 }
 0x15b   :  { %v743_v12 = vadd.f32 %v742_v58, %v666_v7  ;;  %v900_v13 = vadd.f32 %v998_v10, %v825_v9  ;;  %v895_v14 = vadd.f32 %v894_v11, %v820_v5 }
 0x15c   :  { %v745_v15 = vadd.f32 %v744_v59, %v668_v3  ;;  %v671_v16 = vpop.f32.mrb[6].mxu0 }
 0x15d   :  { %v907_v17 = vmax.f32 %v743_v12, 0.0  ;;  %v916_v18 = vmax.f32 %v900_v13, 0.0  ;;  %v909_v19 = vmax.f32 %v895_v14, 0.0  ;;  %v672_v20 = vadd.f32 %v671_v16, %v2134_v37  ;;  %v673_v21 = vpop.f32.mrb[7].mxu0 }
 0x15e   :  { %v908_v22 = vmax.f32 %v745_v15, 0.0  ;;  %v674_v24 = vadd.f32 %v673_v21, %v2134_v37 }
 0x15f   :  { %921 = vst [vmem:[%s2188_s3 + $0x20] sm:$0xff] %v907_v17  ;;  %931 = vst.msk [vmem:[%s2188_s3 + $0x68] sm:$0xff] %vm923_vm1, %v916_v18  ;;  %v749_v23 = vadd.f32 %v748_v60, %v672_v20 }
 0x160   :  { %924 = vst.msk [vmem:[%s2188_s3 + $0x30] sm:$0xff] %vm923_vm1, %v909_v19  ;;  %922 = vst [vmem:[%s2188_s3 + $0x28] sm:$0xff] %v908_v22  ;;  %v751_v26 = vadd.f32 %v750_v61, %v674_v24 }
 0x161   :  { %v914_v27 = vmax.f32 %v749_v23, 0.0 }
 0x162   :  { %v915_v28 = vmax.f32 %v751_v26, 0.0 }
 0x163   :  { %929 = vst [vmem:[%s2188_s3 + $0x58] sm:$0xff] %v914_v27 }
 0x164   :  { %930 = vst [vmem:[%s2188_s3 + $0x60] sm:$0xff] %v915_v28 }

// kernel: mynet_forward.11
= control target key start
LH: loop header
LB: loop body
LE: loop exit
PB: predicated region body
PF: predicated region fallthrough
CT: control target
= control target key end

     0   :  { %v5405_v47 = vmov 1983009808   ;;  %v948_v49 = vlaneseq  ;;  %s8427_s0 = inlined_call_operand.vmem [shape: f32[2,7056], index: 0, kind: input, shape index: {}]   ;;  %s8428_s1 = inlined_call_operand.vmem [shape: f32[7056,120], index: 1, kind: input, shape index: {}]   ;;  %s8429_s2 = inlined_call_operand.vmem [shape: f32[1,120], index: 2, kind: input, shape index: {}]   ;;  %s8430_s3 = inlined_call_operand.vmem [shape: f32[120,60], index: 3, kind: input, shape index: {}]   ;;  %s8431_s4 = inlined_call_operand.vmem [shape: f32[1,60], index: 4, kind: input, shape index: {}]   ;;  %s8432_s5 = inlined_call_operand.vmem [shape: f32[60,128], index: 5, kind: input, shape index: {}]   ;;  %s8433_s6 = inlined_call_operand.vmem [shape: f32[1,128], index: 6, kind: input, shape index: {}]   ;;  %s8434_s7 = inlined_call_operand.hbm [shape: f32[2,2], index: 7, kind: output, shape index: {}]  }
   0x1   :  { %v57_v0 = vld [vmem:[%s8428_s1 + $0x80] sm:$0xff]  ;;  %v58_v1 = vld [vmem:[%s8428_s1 + $0x88] sm:$0xff]  ;;  %v59_v11 = vld [vmem:[%s8428_s1 + $0x90] sm:$0xff]  ;;  %v946_v48 = vunpack.c.l.s4 %v5405_v47 }
   0x2   :  { %v89_v2 = vld [vmem:[%s8428_s1 + $0x180] sm:$0xff]  ;;  %v4436_v3 = vpack.c.bf16 %v58_v1, %v57_v0  ;;  %v90_v4 = vld [vmem:[%s8428_s1 + $0x188] sm:$0xff]  ;;  %v60_v13 = vld [vmem:[%s8428_s1 + $0x98] sm:$0xff]  ;;  %v949_v0 = vshrl.u32 %v948_v49, 7 }
   0x3   :  { %v41_v5 = vld [vmem:[%s8428_s1] sm:$0xff]  ;;  %v42_v6 = vld [vmem:[%s8428_s1 + $0x8] sm:$0xff]  ;;  %v4468_v7 = vpack.c.bf16 %v90_v4, %v89_v2  ;;  %v91_v14 = vld [vmem:[%s8428_s1 + $0x190] sm:$0xff]  ;;  %v4440_v16 = vpack.c.bf16 %v60_v13, %v59_v11  ;;  %v947_v63 = vunpack.c.0.s8 %v946_v48 }
   0x4   :  { %v4438_v8 = vpack.c.bf16 %v42_v6, %v41_v5  ;;  %v73_v9 = vld [vmem:[%s8428_s1 + $0x100] sm:$0xff]  ;;  %v74_v10 = vld [vmem:[%s8428_s1 + $0x108] sm:$0xff]  ;;  %4437 = vmatprep.subr.bf16.mxu0 %v4436_v3  ;;  %v92_v15 = vld [vmem:[%s8428_s1 + $0x198] sm:$0xff] }
   0x5   :  { %v4470_v12 = vpack.c.bf16 %v74_v10, %v73_v9  ;;  %4469 = vmatprep.subr.bf16.mxu1 %v4468_v7  ;;  %v4472_v17 = vpack.c.bf16 %v92_v15, %v91_v14  ;;  %v43_v18 = vld [vmem:[%s8428_s1 + $0x10] sm:$0xff]  ;;  %v44_v19 = vld [vmem:[%s8428_s1 + $0x18] sm:$0xff]  ;;  %v61_v23 = vld [vmem:[%s8428_s1 + $0xa0] sm:$0xff]  ;;  %v5601_v13 = vsub.s32 %v947_v63, %v949_v0 }
   0x6   :  { %4439 = vmatpush3.bf16.msra.mxu0 %v4438_v8  ;;  %v75_v20 = vld [vmem:[%s8428_s1 + $0x110] sm:$0xff]  ;;  %v4442_v21 = vpack.c.bf16 %v44_v19, %v43_v18  ;;  %v76_v22 = vld [vmem:[%s8428_s1 + $0x118] sm:$0xff]  ;;  %v62_v24 = vld [vmem:[%s8428_s1 + $0xa8] sm:$0xff] }
   0x7   :  { %4471 = vmatpush3.bf16.msra.mxu1 %v4470_v12  ;;  %4441 = vmatprep.subr.bf16.mxu0 %v4440_v16  ;;  %v4474_v25 = vpack.c.bf16 %v76_v22, %v75_v20  ;;  %v4444_v26 = vpack.c.bf16 %v62_v24, %v61_v23  ;;  %v93_v27 = vld [vmem:[%s8428_s1 + $0x1a0] sm:$0xff]  ;;  %v94_v28 = vld [vmem:[%s8428_s1 + $0x1a8] sm:$0xff]  ;;  %v63_v35 = vld [vmem:[%s8428_s1 + $0xb0] sm:$0xff] }
   0x8   :  { %4473 = vmatprep.subr.bf16.mxu1 %v4472_v17  ;;  %v45_v29 = vld [vmem:[%s8428_s1 + $0x20] sm:$0xff]  ;;  %v4476_v30 = vpack.c.bf16 %v94_v28, %v93_v27  ;;  %v46_v31 = vld [vmem:[%s8428_s1 + $0x28] sm:$0xff]  ;;  %v64_v36 = vld [vmem:[%s8428_s1 + $0xb8] sm:$0xff] }
   0x9   :  { %v77_v32 = vld [vmem:[%s8428_s1 + $0x120] sm:$0xff]  ;;  %v78_v33 = vld [vmem:[%s8428_s1 + $0x128] sm:$0xff]  ;;  %v4446_v34 = vpack.c.bf16 %v46_v31, %v45_v29  ;;  %v95_v37 = vld [vmem:[%s8428_s1 + $0x1b0] sm:$0xff]  ;;  %v4448_v39 = vpack.c.bf16 %v64_v36, %v63_v35 }
   0xa   :  { %4443 = vmatpush3.bf16.msra.mxu0 %v4442_v21  ;;  %v4478_v38 = vpack.c.bf16 %v78_v33, %v77_v32  ;;  %v96_v40 = vld [vmem:[%s8428_s1 + $0x1b8] sm:$0xff]  ;;  %v47_v41 = vld [vmem:[%s8428_s1 + $0x30] sm:$0xff]  ;;  %v65_v46 = vld [vmem:[%s8428_s1 + $0xc0] sm:$0xff] }
   0xb   :  { %4475 = vmatpush3.bf16.msra.mxu1 %v4474_v25  ;;  %4445 = vmatprep.subr.bf16.mxu0 %v4444_v26  ;;  %v48_v42 = vld [vmem:[%s8428_s1 + $0x38] sm:$0xff]  ;;  %v4480_v43 = vpack.c.bf16 %v96_v40, %v95_v37  ;;  %v79_v44 = vld [vmem:[%s8428_s1 + $0x130] sm:$0xff]  ;;  %v66_v50 = vld [vmem:[%s8428_s1 + $0xc8] sm:$0xff] }
   0xc   :  { %4477 = vmatprep.subr.bf16.mxu1 %v4476_v30  ;;  %v80_v45 = vld [vmem:[%s8428_s1 + $0x138] sm:$0xff]  ;;  %v97_v51 = vld [vmem:[%s8428_s1 + $0x1c0] sm:$0xff]  ;;  %v98_v52 = vld [vmem:[%s8428_s1 + $0x1c8] sm:$0xff]  ;;  %v4450_v53 = vpack.c.bf16 %v48_v42, %v47_v41  ;;  %v4452_v55 = vpack.c.bf16 %v66_v50, %v65_v46 }
   0xd   :  { %v4482_v54 = vpack.c.bf16 %v80_v45, %v79_v44  ;;  %v49_v56 = vld [vmem:[%s8428_s1 + $0x40] sm:$0xff]  ;;  %v50_v57 = vld [vmem:[%s8428_s1 + $0x48] sm:$0xff]  ;;  %v4484_v59 = vpack.c.bf16 %v98_v52, %v97_v51  ;;  %v67_v61 = vld [vmem:[%s8428_s1 + $0xd0] sm:$0xff] }
   0xe   :  { %4447 = vmatpush3.bf16.msra.mxu0 %v4446_v34  ;;  %v81_v58 = vld [vmem:[%s8428_s1 + $0x140] sm:$0xff]  ;;  %v82_v60 = vld [vmem:[%s8428_s1 + $0x148] sm:$0xff]  ;;  %v68_v62 = vld [vmem:[%s8428_s1 + $0xd8] sm:$0xff]  ;;  %v4454_v3 = vpack.c.bf16 %v50_v57, %v49_v56 }
   0xf   :  { %4479 = vmatpush3.bf16.msra.mxu1 %v4478_v38  ;;  %4449 = vmatprep.subr.bf16.mxu0 %v4448_v39  ;;  %v99_v1 = vld [vmem:[%s8428_s1 + $0x1d0] sm:$0xff]  ;;  %v100_v2 = vld [vmem:[%s8428_s1 + $0x1d8] sm:$0xff]  ;;  %v4486_v4 = vpack.c.bf16 %v82_v60, %v81_v58  ;;  %v4456_v5 = vpack.c.bf16 %v68_v62, %v67_v61  ;;  %v69_v11 = vld [vmem:[%s8428_s1 + $0xe0] sm:$0xff] }
  0x10   :  { %4481 = vmatprep.subr.bf16.mxu1 %v4480_v43  ;;  %v51_v6 = vld [vmem:[%s8428_s1 + $0x50] sm:$0xff]  ;;  %v52_v7 = vld [vmem:[%s8428_s1 + $0x58] sm:$0xff]  ;;  %v4488_v9 = vpack.c.bf16 %v100_v2, %v99_v1  ;;  %v70_v12 = vld [vmem:[%s8428_s1 + $0xe8] sm:$0xff] }
  0x11   :  { %v83_v8 = vld [vmem:[%s8428_s1 + $0x150] sm:$0xff]  ;;  %v84_v10 = vld [vmem:[%s8428_s1 + $0x158] sm:$0xff]  ;;  %v101_v14 = vld [vmem:[%s8428_s1 + $0x1e0] sm:$0xff]  ;;  %v4458_v16 = vpack.c.bf16 %v52_v7, %v51_v6  ;;  %v4460_v19 = vpack.c.bf16 %v70_v12, %v69_v11 }
  0x12   :  { %4451 = vmatpush3.bf16.msra.mxu0 %v4450_v53  ;;  %v102_v15 = vld [vmem:[%s8428_s1 + $0x1e8] sm:$0xff]  ;;  %v53_v17 = vld [vmem:[%s8428_s1 + $0x60] sm:$0xff]  ;;  %v4490_v18 = vpack.c.bf16 %v84_v10, %v83_v8  ;;  %v71_v25 = vld [vmem:[%s8428_s1 + $0xf0] sm:$0xff] }
  0x13   :  { %4483 = vmatpush3.bf16.msra.mxu1 %v4482_v54  ;;  %4453 = vmatprep.subr.bf16.mxu0 %v4452_v55  ;;  %v54_v20 = vld [vmem:[%s8428_s1 + $0x68] sm:$0xff]  ;;  %v85_v21 = vld [vmem:[%s8428_s1 + $0x160] sm:$0xff]  ;;  %v4492_v23 = vpack.c.bf16 %v102_v15, %v101_v14  ;;  %v72_v26 = vld [vmem:[%s8428_s1 + $0xf8] sm:$0xff] }
  0x14   :  { %4485 = vmatprep.subr.bf16.mxu1 %v4484_v59  ;;  %v27_v22 = vld [vmem:[%s8427_s0] sm:$0xff]  ;;  %v86_v24 = vld [vmem:[%s8428_s1 + $0x168] sm:$0xff]  ;;  %v103_v29 = vld [vmem:[%s8428_s1 + $0x1f0] sm:$0xff]  ;;  %v4462_v31 = vpack.c.bf16 %v54_v20, %v53_v17  ;;  %v4464_v35 = vpack.c.bf16 %v72_v26, %v71_v25 }
  0x15   :  { %v951_v27 = vrot.slane %v27_v22, %v5601_v13  ;;  %v944_v28 = vcombine.high %v27_v22, %v27_v22  ;;  %v104_v30 = vld [vmem:[%s8428_s1 + $0x1f8] sm:$0xff]  ;;  %v4494_v34 = vpack.c.bf16 %v86_v24, %v85_v21  ;;  %v55_v36 = vld [vmem:[%s8428_s1 + $0x70] sm:$0xff]  ;;  %v121_v42 = vld [vmem:[%s8428_s1 + $0x280] sm:$0xff] }
  0x16   :  { %4455 = vmatpush3.bf16.msra.mxu0 %v4454_v3  ;;  %v56_v37 = vld [vmem:[%s8428_s1 + $0x78] sm:$0xff]  ;;  %v87_v38 = vld [vmem:[%s8428_s1 + $0x170] sm:$0xff]  ;;  %v4496_v39 = vpack.c.bf16 %v104_v30, %v103_v29  ;;  %v122_v43 = vld [vmem:[%s8428_s1 + $0x288] sm:$0xff] }
  0x17   :  { %4487 = vmatpush3.bf16.msra.mxu1 %v4486_v4  ;;  %4457 = vmatprep.subr.bf16.mxu0 %v4456_v5  ;;  %v959_v32 = vcombine.high %v951_v27, %v951_v27  ;;  %v958_v33 = vrot.slane %v944_v28, %v5601_v13  ;;  %v88_v40 = vld [vmem:[%s8428_s1 + $0x178] sm:$0xff]  ;;  %v153_v44 = vld [vmem:[%s8428_s1 + $0x380] sm:$0xff]  ;;  %v154_v45 = vld [vmem:[%s8428_s1 + $0x388] sm:$0xff]  ;;  %v4466_v46 = vpack.c.bf16 %v56_v37, %v55_v36 }
  0x18   :  { %4489 = vmatprep.subr.bf16.mxu1 %v4488_v9  ;;  %v4498_v47 = vpack.c.bf16 %v88_v40, %v87_v38  ;;  %v4500_v48 = vpack.c.bf16 %v122_v43, %v121_v42  ;;  %v105_v49 = vld [vmem:[%s8428_s1 + $0x200] sm:$0xff]  ;;  %v106_v50 = vld [vmem:[%s8428_s1 + $0x208] sm:$0xff]  ;;  %v4532_v52 = vpack.c.bf16 %v154_v45, %v153_v44  ;;  %v123_v54 = vld [vmem:[%s8428_s1 + $0x290] sm:$0xff] }
  0x19   :  { %1304 = vmatprep.mubr.f32.mxu0 %v959_v32  ;;  %v960_v41 = vcombine.high %v958_v33, %v958_v33  ;;  %v137_v51 = vld [vmem:[%s8428_s1 + $0x300] sm:$0xff]  ;;  %v138_v53 = vld [vmem:[%s8428_s1 + $0x308] sm:$0xff]  ;;  %v124_v55 = vld [vmem:[%s8428_s1 + $0x298] sm:$0xff]  ;;  %v4502_v58 = vpack.c.bf16 %v106_v50, %v105_v49 }
  0x1a   :  { %4459 = vmatpush3.bf16.msra.mxu0 %v4458_v16  ;;  %v155_v56 = vld [vmem:[%s8428_s1 + $0x390] sm:$0xff]  ;;  %v156_v57 = vld [vmem:[%s8428_s1 + $0x398] sm:$0xff]  ;;  %v4534_v59 = vpack.c.bf16 %v138_v53, %v137_v51  ;;  %v4504_v60 = vpack.c.bf16 %v124_v55, %v123_v54  ;;  %v125_v2 = vld [vmem:[%s8428_s1 + $0x2a0] sm:$0xff] }
  0x1b   :  { %4491 = vmatpush3.bf16.msra.mxu1 %v4490_v18  ;;  %4461 = vmatprep.subr.bf16.mxu0 %v4460_v19  ;;  %v107_v61 = vld [vmem:[%s8428_s1 + $0x210] sm:$0xff]  ;;  %v108_v62 = vld [vmem:[%s8428_s1 + $0x218] sm:$0xff]  ;;  %v4536_v0 = vpack.c.bf16 %v156_v57, %v155_v56  ;;  %v126_v3 = vld [vmem:[%s8428_s1 + $0x2a8] sm:$0xff] }
  0x1c   :  { %4493 = vmatprep.subr.bf16.mxu1 %v4492_v23  ;;  %1374 = vmatprep.mubr.f32.mxu1 %v960_v41  ;;  %v139_v63 = vld [vmem:[%s8428_s1 + $0x310] sm:$0xff]  ;;  %v140_v1 = vld [vmem:[%s8428_s1 + $0x318] sm:$0xff]  ;;  %v157_v4 = vld [vmem:[%s8428_s1 + $0x3a0] sm:$0xff]  ;;  %v4506_v6 = vpack.c.bf16 %v108_v62, %v107_v61  ;;  %v4508_v8 = vpack.c.bf16 %v126_v3, %v125_v2 }
  0x1d   :  { %v158_v5 = vld [vmem:[%s8428_s1 + $0x3a8] sm:$0xff]  ;;  %v4538_v7 = vpack.c.bf16 %v140_v1, %v139_v63  ;;  %v109_v9 = vld [vmem:[%s8428_s1 + $0x220] sm:$0xff]  ;;  %v127_v15 = vld [vmem:[%s8428_s1 + $0x2b0] sm:$0xff] }
  0x1e   :  { %4463 = vmatpush3.bf16.msra.mxu0 %v4462_v31  ;;  %v110_v10 = vld [vmem:[%s8428_s1 + $0x228] sm:$0xff]  ;;  %v141_v11 = vld [vmem:[%s8428_s1 + $0x320] sm:$0xff]  ;;  %v4540_v12 = vpack.c.bf16 %v158_v5, %v157_v4  ;;  %v128_v16 = vld [vmem:[%s8428_s1 + $0x2b8] sm:$0xff] }
  0x1f   :  { %4495 = vmatpush3.bf16.msra.mxu1 %v4494_v34  ;;  %4465 = vmatprep.subr.bf16.mxu0 %v4464_v35  ;;  %v142_v14 = vld [vmem:[%s8428_s1 + $0x328] sm:$0xff]  ;;  %v159_v17 = vld [vmem:[%s8428_s1 + $0x3b0] sm:$0xff]  ;;  %v160_v18 = vld [vmem:[%s8428_s1 + $0x3b8] sm:$0xff]  ;;  %v4510_v19 = vpack.c.bf16 %v110_v10, %v109_v9  ;;  %v4512_v21 = vpack.c.bf16 %v128_v16, %v127_v15 }
  0x20   :  { %4497 = vmatprep.subr.bf16.mxu1 %v4496_v39  ;;  %v4542_v20 = vpack.c.bf16 %v142_v14, %v141_v11  ;;  %v111_v22 = vld [vmem:[%s8428_s1 + $0x230] sm:$0xff]  ;;  %v112_v23 = vld [vmem:[%s8428_s1 + $0x238] sm:$0xff]  ;;  %v4544_v25 = vpack.c.bf16 %v160_v18, %v159_v17  ;;  %v130_v28 = vld [vmem:[%s8428_s1 + $0x2c8] sm:$0xff] }
  0x21   :  { %v143_v24 = vld [vmem:[%s8428_s1 + $0x330] sm:$0xff]  ;;  %v144_v26 = vld [vmem:[%s8428_s1 + $0x338] sm:$0xff]  ;;  %v161_v29 = vld [vmem:[%s8428_s1 + $0x3c0] sm:$0xff]  ;;  %v4514_v32 = vpack.c.bf16 %v112_v23, %v111_v22 }
  0x22   :  { %4467 = vmatpush3.bf16.msra.mxu0 %v4466_v46  ;;  %v162_v30 = vld [vmem:[%s8428_s1 + $0x3c8] sm:$0xff]  ;;  %v4546_v35 = vpack.c.bf16 %v144_v26, %v143_v24  ;;  %v113_v37 = vld [vmem:[%s8428_s1 + $0x240] sm:$0xff]  ;;  %v131_v42 = vld [vmem:[%s8428_s1 + $0x2d0] sm:$0xff] }
  0x23   :  { %4499 = vmatpush3.bf16.msra.mxu1 %v4498_v47  ;;  %4501 = vmatprep.subr.bf16.mxu0 %v4500_v48  ;;  %v28_v31 = vld [vmem:[%s8427_s0 + $0x8] sm:$0xff]  ;;  %v145_v39 = vld [vmem:[%s8428_s1 + $0x340] sm:$0xff]  ;;  %v4548_v40 = vpack.c.bf16 %v162_v30, %v161_v29  ;;  %v132_v43 = vld [vmem:[%s8428_s1 + $0x2d8] sm:$0xff] }
  0x24   :  { %4533 = vmatprep.subr.bf16.mxu1 %v4532_v52  ;;  %v961_v34 = vcombine.high %v28_v31, %v28_v31  ;;  %v114_v38 = vld [vmem:[%s8428_s1 + $0x248] sm:$0xff]  ;;  %v163_v46 = vld [vmem:[%s8428_s1 + $0x3d0] sm:$0xff]  ;;  %v164_v47 = vld [vmem:[%s8428_s1 + $0x3d8] sm:$0xff]  ;;  %v4520_v51 = vpack.c.bf16 %v132_v43, %v131_v42 }
  0x25   :  { %1305 = vmatmul.mubr.f32.vlgmr.msra.gmra.mrb[0].mxu0 %v951_v27  ;;  %v129_v27 = vld [vmem:[%s8428_s1 + $0x2c0] sm:$0xff]  ;;  %v146_v41 = vld [vmem:[%s8428_s1 + $0x348] sm:$0xff]  ;;  %v4518_v48 = vpack.c.bf16 %v114_v38, %v113_v37  ;;  %v115_v52 = vld [vmem:[%s8428_s1 + $0x250] sm:$0xff]  ;;  %v4552_v55 = vpack.c.bf16 %v164_v47, %v163_v46 }
  0x26   :  { %1375 = vmatmul.mubr.f32.vlgmr.msra.gmra.mrb[0].mxu1 %v958_v33  ;;  %4503 = vmatpush3.bf16.msra.mxu0 %v4502_v58  ;;  %v5762_v33 = vrot.slane %v28_v31, %v5601_v13  ;;  %v4516_v36 = vpack.c.bf16 %v130_v28, %v129_v27  ;;  %v5785_v45 = vrot.slane %v961_v34, %v5601_v13  ;;  %v116_v53 = vld [vmem:[%s8428_s1 + $0x258] sm:$0xff]  ;;  %v147_v54 = vld [vmem:[%s8428_s1 + $0x350] sm:$0xff]  ;;  %v133_v57 = vld [vmem:[%s8428_s1 + $0x2e0] sm:$0xff] }
  0x27   :  { %4535 = vmatpush3.bf16.msra.mxu1 %v4534_v59  ;;  %4505 = vmatprep.subr.bf16.mxu0 %v4504_v60  ;;  %v4550_v50 = vpack.c.bf16 %v146_v41, %v145_v39  ;;  %v148_v56 = vld [vmem:[%s8428_s1 + $0x358] sm:$0xff]  ;;  %v134_v58 = vld [vmem:[%s8428_s1 + $0x2e8] sm:$0xff]  ;;  %v165_v59 = vld [vmem:[%s8428_s1 + $0x3e0] sm:$0xff]  ;;  %v4522_v61 = vpack.c.bf16 %v116_v53, %v115_v52 }
  0x28   :  { %4537 = vmatprep.subr.bf16.mxu1 %v4536_v0  ;;  %v976_v44 = vcombine.high %v5762_v33, %v5762_v33  ;;  %v977_v49 = vcombine.high %v5785_v45, %v5785_v45  ;;  %v166_v60 = vld [vmem:[%s8428_s1 + $0x3e8] sm:$0xff]  ;;  %v4554_v62 = vpack.c.bf16 %v148_v56, %v147_v54  ;;  %v4524_v63 = vpack.c.bf16 %v134_v58, %v133_v57  ;;  %v117_v0 = vld [vmem:[%s8428_s1 + $0x260] sm:$0xff]  ;;  %v135_v5 = vld [vmem:[%s8428_s1 + $0x2f0] sm:$0xff] }
  0x29   :  { %v118_v1 = vld [vmem:[%s8428_s1 + $0x268] sm:$0xff]  ;;  %v149_v2 = vld [vmem:[%s8428_s1 + $0x360] sm:$0xff]  ;;  %v4556_v3 = vpack.c.bf16 %v166_v60, %v165_v59  ;;  %v120_v14 = vld [vmem:[%s8428_s1 + $0x278] sm:$0xff] }
  0x2a   :  { %4507 = vmatpush3.bf16.msra.mxu0 %v4506_v6  ;;  %1444 = vmatprep.mubr.f32.mxu0 %v976_v44  ;;  %v150_v4 = vld [vmem:[%s8428_s1 + $0x368] sm:$0xff]  ;;  %v136_v6 = vld [vmem:[%s8428_s1 + $0x2f8] sm:$0xff]  ;;  %v4526_v9 = vpack.c.bf16 %v118_v1, %v117_v0  ;;  %v151_v15 = vld [vmem:[%s8428_s1 + $0x370] sm:$0xff] }
  0x2b   :  { %4539 = vmatpush3.bf16.msra.mxu1 %v4538_v7  ;;  %4509 = vmatprep.subr.bf16.mxu0 %v4508_v8  ;;  %v167_v7 = vld [vmem:[%s8428_s1 + $0x3f0] sm:$0xff]  ;;  %v168_v8 = vld [vmem:[%s8428_s1 + $0x3f8] sm:$0xff]  ;;  %v4558_v10 = vpack.c.bf16 %v150_v4, %v149_v2  ;;  %v4528_v11 = vpack.c.bf16 %v136_v6, %v135_v5  ;;  %v185_v18 = vld [vmem:[%s8428_s1 + $0x480] sm:$0xff] }
  0x2c   :  { %4541 = vmatprep.subr.bf16.mxu1 %v4540_v12  ;;  %1514 = vmatprep.mubr.f32.mxu1 %v977_v49  ;;  %v119_v12 = vld [vmem:[%s8428_s1 + $0x270] sm:$0xff]  ;;  %v4560_v16 = vpack.c.bf16 %v168_v8, %v167_v7  ;;  %v152_v17 = vld [vmem:[%s8428_s1 + $0x378] sm:$0xff]  ;;  %v169_v23 = vld [vmem:[%s8428_s1 + $0x400] sm:$0xff] }
  0x2d   :  { %v4530_v22 = vpack.c.bf16 %v120_v14, %v119_v12  ;;  %v4562_v24 = vpack.c.bf16 %v152_v17, %v151_v15  ;;  %v170_v26 = vld [vmem:[%s8428_s1 + $0x408] sm:$0xff]  ;;  %v201_v27 = vld [vmem:[%s8428_s1 + $0x500] sm:$0xff]  ;;  %v187_v30 = vld [vmem:[%s8428_s1 + $0x490] sm:$0xff] }
  0x2e   :  { %4511 = vmatpush3.bf16.msra.mxu0 %v4510_v19  ;;  %v186_v19 = vld [vmem:[%s8428_s1 + $0x488] sm:$0xff]  ;;  %v188_v31 = vld [vmem:[%s8428_s1 + $0x498] sm:$0xff]  ;;  %v29_v37 = vld [vmem:[%s8427_s0 + $0x10] sm:$0xff] }
  0x2f   :  { %4543 = vmatpush3.bf16.msra.mxu1 %v4542_v20  ;;  %4513 = vmatprep.subr.bf16.mxu0 %v4512_v21  ;;  %v217_v20 = vld [vmem:[%s8428_s1 + $0x580] sm:$0xff]  ;;  %v218_v21 = vld [vmem:[%s8428_s1 + $0x588] sm:$0xff]  ;;  %v220_v34 = vld [vmem:[%s8428_s1 + $0x598] sm:$0xff]  ;;  %v4568_v38 = vpack.c.bf16 %v188_v31, %v187_v30  ;;  %v5904_v42 = vrot.slane %v29_v37, %v5601_v13  ;;  %v978_v43 = vcombine.high %v29_v37, %v29_v37 }
  0x30   :  { %4545 = vmatprep.subr.bf16.mxu1 %v4544_v25  ;;  %v4564_v25 = vpack.c.bf16 %v186_v19, %v185_v18  ;;  %v202_v28 = vld [vmem:[%s8428_s1 + $0x508] sm:$0xff]  ;;  %v4596_v29 = vpack.c.bf16 %v218_v21, %v217_v20  ;;  %v171_v39 = vld [vmem:[%s8428_s1 + $0x410] sm:$0xff]  ;;  %v204_v46 = vld [vmem:[%s8428_s1 + $0x518] sm:$0xff] }
  0x31   :  { %v203_v41 = vld [vmem:[%s8428_s1 + $0x510] sm:$0xff]  ;;  %v189_v47 = vld [vmem:[%s8428_s1 + $0x4a0] sm:$0xff]  ;;  %v5925_v52 = vrot.slane %v978_v43, %v5601_v13  ;;  %v174_v56 = vld [vmem:[%s8428_s1 + $0x428] sm:$0xff] }
  0x32   :  { %4515 = vmatpush3.bf16.msra.mxu0 %v4514_v32  ;;  %v219_v32 = vld [vmem:[%s8428_s1 + $0x590] sm:$0xff]  ;;  %v221_v49 = vld [vmem:[%s8428_s1 + $0x5a0] sm:$0xff]  ;;  %v206_v59 = vld [vmem:[%s8428_s1 + $0x528] sm:$0xff] }
  0x33   :  { %4547 = vmatpush3.bf16.msra.mxu1 %v4546_v35  ;;  %4517 = vmatprep.subr.bf16.mxu0 %v4516_v36  ;;  %v4566_v35 = vpack.c.bf16 %v170_v26, %v169_v23  ;;  %v4598_v36 = vpack.c.bf16 %v202_v28, %v201_v27  ;;  %v4600_v44 = vpack.c.bf16 %v220_v34, %v219_v32  ;;  %v205_v57 = vld [vmem:[%s8428_s1 + $0x520] sm:$0xff]  ;;  %v191_v60 = vld [vmem:[%s8428_s1 + $0x4b0] sm:$0xff]  ;;  %v176_v4 = vld [vmem:[%s8428_s1 + $0x438] sm:$0xff] }
  0x34   :  { %4549 = vmatprep.subr.bf16.mxu1 %v4548_v40  ;;  %v172_v40 = vld [vmem:[%s8428_s1 + $0x418] sm:$0xff]  ;;  %v4606_v1 = vpack.c.bf16 %v206_v59, %v205_v57  ;;  %v207_v5 = vld [vmem:[%s8428_s1 + $0x530] sm:$0xff]  ;;  %v193_v8 = vld [vmem:[%s8428_s1 + $0x4c0] sm:$0xff] }
  0x35   :  { %v4570_v53 = vpack.c.bf16 %v172_v40, %v171_v39  ;;  %v208_v7 = vld [vmem:[%s8428_s1 + $0x538] sm:$0xff]  ;;  %v178_v17 = vld [vmem:[%s8428_s1 + $0x448] sm:$0xff]  ;;  %v209_v18 = vld [vmem:[%s8428_s1 + $0x540] sm:$0xff] }
  0x36   :  { %4519 = vmatpush3.bf16.msra.mxu0 %v4518_v48  ;;  %v190_v48 = vld [vmem:[%s8428_s1 + $0x4a8] sm:$0xff]  ;;  %v4610_v14 = vpack.c.bf16 %v208_v7, %v207_v5  ;;  %v195_v21 = vld [vmem:[%s8428_s1 + $0x4d0] sm:$0xff]  ;;  %v212_v32 = vld [vmem:[%s8428_s1 + $0x558] sm:$0xff] }
  0x37   :  { %4551 = vmatpush3.bf16.msra.mxu1 %v4550_v50  ;;  %4521 = vmatprep.subr.bf16.mxu0 %v4520_v51  ;;  %v222_v50 = vld [vmem:[%s8428_s1 + $0x5a8] sm:$0xff]  ;;  %v993_v51 = vcombine.high %v5904_v42, %v5904_v42  ;;  %v4572_v54 = vpack.c.bf16 %v190_v48, %v189_v47  ;;  %v227_v23 = vld [vmem:[%s8428_s1 + $0x5d0] sm:$0xff]  ;;  %v197_v34 = vld [vmem:[%s8428_s1 + $0x4e0] sm:$0xff] }
  0x38   :  { %4553 = vmatprep.subr.bf16.mxu1 %v4552_v55  ;;  %v173_v55 = vld [vmem:[%s8428_s1 + $0x420] sm:$0xff]  ;;  %v4604_v58 = vpack.c.bf16 %v222_v50, %v221_v49  ;;  %v210_v20 = vld [vmem:[%s8428_s1 + $0x548] sm:$0xff]  ;;  %v179_v28 = vld [vmem:[%s8428_s1 + $0x450] sm:$0xff] }
  0x39   :  { %v4574_v0 = vpack.c.bf16 %v174_v56, %v173_v55  ;;  %v4614_v26 = vpack.c.bf16 %v210_v20, %v209_v18  ;;  %v211_v30 = vld [vmem:[%s8428_s1 + $0x550] sm:$0xff]  ;;  %v230_v37 = vld [vmem:[%s8428_s1 + $0x5e8] sm:$0xff]  ;;  %v200_v49 = vld [vmem:[%s8428_s1 + $0x4f8] sm:$0xff] }
  0x3a   :  { %4523 = vmatpush3.bf16.msra.mxu0 %v4522_v61  ;;  %v192_v61 = vld [vmem:[%s8428_s1 + $0x4b8] sm:$0xff]  ;;  %v4618_v39 = vpack.c.bf16 %v212_v32, %v211_v30  ;;  %v182_v43 = vld [vmem:[%s8428_s1 + $0x468] sm:$0xff]  ;;  %v199_v48 = vld [vmem:[%s8428_s1 + $0x4f0] sm:$0xff] }
  0x3b   :  { %4555 = vmatpush3.bf16.msra.mxu1 %v4554_v62  ;;  %4525 = vmatprep.subr.bf16.mxu0 %v4524_v63  ;;  %v223_v62 = vld [vmem:[%s8428_s1 + $0x5b0] sm:$0xff]  ;;  %v224_v63 = vld [vmem:[%s8428_s1 + $0x5b8] sm:$0xff]  ;;  %v4576_v2 = vpack.c.bf16 %v192_v61, %v191_v60  ;;  %v214_v47 = vld [vmem:[%s8428_s1 + $0x568] sm:$0xff]  ;;  %v4592_v55 = vpack.c.bf16 %v200_v49, %v199_v48 }
  0x3c   :  { %4557 = vmatprep.subr.bf16.mxu1 %v4556_v3  ;;  %v175_v3 = vld [vmem:[%s8428_s1 + $0x430] sm:$0xff]  ;;  %v4608_v6 = vpack.c.bf16 %v224_v63, %v223_v62  ;;  %v184_v57 = vld [vmem:[%s8428_s1 + $0x478] sm:$0xff]  ;;  %v249_v60 = vld [vmem:[%s8428_s1 + $0x680] sm:$0xff] }
  0x3d   :  { %v4578_v12 = vpack.c.bf16 %v176_v4, %v175_v3  ;;  %v231_v50 = vld [vmem:[%s8428_s1 + $0x5f0] sm:$0xff]  ;;  %v216_v59 = vld [vmem:[%s8428_s1 + $0x578] sm:$0xff]  ;;  %v250_v61 = vld [vmem:[%s8428_s1 + $0x688] sm:$0xff] }
  0x3e   :  { %4527 = vmatpush3.bf16.msra.mxu0 %v4526_v9  ;;  %v194_v9 = vld [vmem:[%s8428_s1 + $0x4c8] sm:$0xff]  ;;  %v183_v56 = vld [vmem:[%s8428_s1 + $0x470] sm:$0xff]  ;;  %v281_v62 = vld [vmem:[%s8428_s1 + $0x780] sm:$0xff]  ;;  %v4628_v3 = vpack.c.bf16 %v250_v61, %v249_v60 }
  0x3f   :  { %4559 = vmatpush3.bf16.msra.mxu1 %v4558_v10  ;;  %4529 = vmatprep.subr.bf16.mxu0 %v4528_v11  ;;  %v225_v10 = vld [vmem:[%s8428_s1 + $0x5c0] sm:$0xff]  ;;  %v226_v11 = vld [vmem:[%s8428_s1 + $0x5c8] sm:$0xff]  ;;  %v4580_v15 = vpack.c.bf16 %v194_v9, %v193_v8  ;;  %v251_v9 = vld [vmem:[%s8428_s1 + $0x690] sm:$0xff] }
  0x40   :  { %4561 = vmatprep.subr.bf16.mxu1 %v4560_v16  ;;  %v177_v16 = vld [vmem:[%s8428_s1 + $0x440] sm:$0xff]  ;;  %v4612_v19 = vpack.c.bf16 %v226_v11, %v225_v10  ;;  %v282_v63 = vld [vmem:[%s8428_s1 + $0x788] sm:$0xff]  ;;  %v252_v10 = vld [vmem:[%s8428_s1 + $0x698] sm:$0xff] }
  0x41   :  { %v233_v4 = vld [vmem:[%s8428_s1 + $0x600] sm:$0xff]  ;;  %v234_v5 = vld [vmem:[%s8428_s1 + $0x608] sm:$0xff]  ;;  %v4660_v7 = vpack.c.bf16 %v282_v63, %v281_v62  ;;  %v4632_v18 = vpack.c.bf16 %v252_v10, %v251_v9  ;;  %v236_v20 = vld [vmem:[%s8428_s1 + $0x618] sm:$0xff] }
  0x42   :  { %4531 = vmatpush3.bf16.msra.mxu0 %v4530_v22  ;;  %v196_v22 = vld [vmem:[%s8428_s1 + $0x4d8] sm:$0xff]  ;;  %v266_v8 = vld [vmem:[%s8428_s1 + $0x708] sm:$0xff]  ;;  %v271_v48 = vld [vmem:[%s8428_s1 + $0x730] sm:$0xff] }
  0x43   :  { %4563 = vmatpush3.bf16.msra.mxu1 %v4562_v24  ;;  %4565 = vmatprep.subr.bf16.mxu0 %v4564_v25  ;;  %v228_v24 = vld [vmem:[%s8428_s1 + $0x5d8] sm:$0xff]  ;;  %v4582_v25 = vpack.c.bf16 %v178_v17, %v177_v16  ;;  %v4584_v27 = vpack.c.bf16 %v196_v22, %v195_v21  ;;  %v4630_v16 = vpack.c.bf16 %v234_v5, %v233_v4  ;;  %v267_v21 = vld [vmem:[%s8428_s1 + $0x710] sm:$0xff]  ;;  %v274_v61 = vld [vmem:[%s8428_s1 + $0x748] sm:$0xff] }
  0x44   :  { %4597 = vmatprep.subr.bf16.mxu1 %v4596_v29  ;;  %v180_v29 = vld [vmem:[%s8428_s1 + $0x458] sm:$0xff]  ;;  %v4616_v31 = vpack.c.bf16 %v228_v24, %v227_v23  ;;  %v253_v24 = vld [vmem:[%s8428_s1 + $0x6a0] sm:$0xff]  ;;  %v259_v62 = vld [vmem:[%s8428_s1 + $0x6d0] sm:$0xff] }
  0x45   :  { %1445 = vmatmul.mubr.f32.vlgmr.msra.gmra.mrb[2].mxu0 %v5762_v33  ;;  %v4602_v33 = vpack.c.bf16 %v204_v46, %v203_v41  ;;  %v181_v41 = vld [vmem:[%s8428_s1 + $0x460] sm:$0xff]  ;;  %v268_v23 = vld [vmem:[%s8428_s1 + $0x718] sm:$0xff]  ;;  %v243_v5 = vld [vmem:[%s8428_s1 + $0x650] sm:$0xff] }
  0x46   :  { %1515 = vmatmul.mubr.f32.vlgmr.msra.gmra.mrb[2].mxu1 %v5785_v45  ;;  %4567 = vmatpush3.bf16.msra.mxu0 %v4566_v35  ;;  %v994_v45 = vcombine.high %v5925_v52, %v5925_v52  ;;  %v198_v35 = vld [vmem:[%s8428_s1 + $0x4e8] sm:$0xff]  ;;  %v260_v63 = vld [vmem:[%s8428_s1 + $0x6d8] sm:$0xff]  ;;  %v261_v10 = vld [vmem:[%s8428_s1 + $0x6e0] sm:$0xff] }
  0x47   :  { %4599 = vmatpush3.bf16.msra.mxu1 %v4598_v36  ;;  %4569 = vmatprep.subr.bf16.mxu0 %v4568_v38  ;;  %v229_v36 = vld [vmem:[%s8428_s1 + $0x5e0] sm:$0xff]  ;;  %v4586_v38 = vpack.c.bf16 %v180_v29, %v179_v28  ;;  %v4588_v40 = vpack.c.bf16 %v198_v35, %v197_v34  ;;  %v286_v28 = vld [vmem:[%s8428_s1 + $0x7a8] sm:$0xff]  ;;  %v4648_v4 = vpack.c.bf16 %v260_v63, %v259_v62  ;;  %v276_v9 = vld [vmem:[%s8428_s1 + $0x758] sm:$0xff] }
  0x48   :  { %4601 = vmatprep.subr.bf16.mxu1 %v4600_v44  ;;  %1584 = vmatprep.mubr.f32.mxu0 %v993_v51  ;;  %v213_v44 = vld [vmem:[%s8428_s1 + $0x560] sm:$0xff]  ;;  %v4620_v46 = vpack.c.bf16 %v230_v37, %v229_v36  ;;  %v232_v51 = vld [vmem:[%s8428_s1 + $0x5f8] sm:$0xff]  ;;  %v238_v34 = vld [vmem:[%s8428_s1 + $0x628] sm:$0xff] }
  0x49   :  { %1654 = vmatprep.mubr.f32.mxu1 %v994_v45  ;;  %v215_v45 = vld [vmem:[%s8428_s1 + $0x570] sm:$0xff]  ;;  %v269_v35 = vld [vmem:[%s8428_s1 + $0x720] sm:$0xff]  ;;  %v270_v36 = vld [vmem:[%s8428_s1 + $0x728] sm:$0xff] }
  0x4a   :  { %4571 = vmatpush3.bf16.msra.mxu0 %v4570_v53  ;;  %v4590_v53 = vpack.c.bf16 %v182_v43, %v181_v41  ;;  %v255_v37 = vld [vmem:[%s8428_s1 + $0x6b0] sm:$0xff]  ;;  %v4670_v43 = vpack.c.bf16 %v270_v36, %v269_v35  ;;  %v280_v36 = vld [vmem:[%s8428_s1 + $0x778] sm:$0xff] }
  0x4b   :  { %4603 = vmatpush3.bf16.msra.mxu1 %v4602_v33  ;;  %4573 = vmatprep.subr.bf16.mxu0 %v4572_v54  ;;  %v30_v33 = vld [vmem:[%s8427_s0 + $0x18] sm:$0xff]  ;;  %v4622_v54 = vpack.c.bf16 %v214_v47, %v213_v44  ;;  %v279_v35 = vld [vmem:[%s8428_s1 + $0x770] sm:$0xff] }
  0x4c   :  { %4605 = vmatprep.subr.bf16.mxu1 %v4604_v58  ;;  %v4624_v58 = vpack.c.bf16 %v232_v51, %v231_v50  ;;  %v6096_v11 = vrot.slane %v30_v33, %v5601_v13  ;;  %v240_v47 = vld [vmem:[%s8428_s1 + $0x638] sm:$0xff]  ;;  %v257_v51 = vld [vmem:[%s8428_s1 + $0x6c0] sm:$0xff]  ;;  %v331_v62 = vld [vmem:[%s8428_s1 + $0x910] sm:$0xff] }
  0x4d   :  { %v272_v50 = vld [vmem:[%s8428_s1 + $0x738] sm:$0xff] }
  0x4e   :  { %4575 = vmatpush3.bf16.msra.mxu0 %v4574_v0  ;;  %v995_v0 = vcombine.high %v30_v33, %v30_v33  ;;  %v289_v33 = vld [vmem:[%s8428_s1 + $0x7c0] sm:$0xff] }
  0x4f   :  { %4607 = vmatpush3.bf16.msra.mxu1 %v4606_v1  ;;  %4577 = vmatprep.subr.bf16.mxu0 %v4576_v2  ;;  %v4594_v1 = vpack.c.bf16 %v184_v57, %v183_v56  ;;  %v4626_v2 = vpack.c.bf16 %v216_v59, %v215_v45  ;;  %v4674_v56 = vpack.c.bf16 %v272_v50, %v271_v48  ;;  %v241_v45 = vld [vmem:[%s8428_s1 + $0x640] sm:$0xff]  ;;  %v298_v48 = vld [vmem:[%s8428_s1 + $0x808] sm:$0xff] }
  0x50   :  { %4609 = vmatprep.subr.bf16.mxu1 %v4608_v6  ;;  %v265_v6 = vld [vmem:[%s8428_s1 + $0x700] sm:$0xff] }
  0x51   :  { %v4662_v17 = vpack.c.bf16 %v266_v8, %v265_v6  ;;  %v273_v59 = vld [vmem:[%s8428_s1 + $0x740] sm:$0xff]  ;;  %v244_v6 = vld [vmem:[%s8428_s1 + $0x658] sm:$0xff] }
  0x52   :  { %4579 = vmatpush3.bf16.msra.mxu0 %v4578_v12  ;;  %v283_v12 = vld [vmem:[%s8428_s1 + $0x790] sm:$0xff] }
  0x53   :  { %4611 = vmatpush3.bf16.msra.mxu1 %v4610_v14  ;;  %4581 = vmatprep.subr.bf16.mxu0 %v4580_v15  ;;  %v284_v14 = vld [vmem:[%s8428_s1 + $0x798] sm:$0xff]  ;;  %v6105_v15 = vrot.slane %v995_v0, %v5601_v13  ;;  %v291_v0 = vld [vmem:[%s8428_s1 + $0x7d0] sm:$0xff] }
  0x54   :  { %4613 = vmatprep.subr.bf16.mxu1 %v4612_v19  ;;  %v235_v19 = vld [vmem:[%s8428_s1 + $0x610] sm:$0xff]  ;;  %v4664_v22 = vpack.c.bf16 %v284_v14, %v283_v12  ;;  %v262_v12 = vld [vmem:[%s8428_s1 + $0x6e8] sm:$0xff]  ;;  %v293_v14 = vld [vmem:[%s8428_s1 + $0x7e0] sm:$0xff] }
  0x55   :  { %v1011_v29 = vcombine.high %v6105_v15, %v6105_v15  ;;  %v4634_v30 = vpack.c.bf16 %v236_v20, %v235_v19  ;;  %v4652_v19 = vpack.c.bf16 %v262_v12, %v261_v10  ;;  %v245_v20 = vld [vmem:[%s8428_s1 + $0x660] sm:$0xff]  ;;  %v302_v10 = vld [vmem:[%s8428_s1 + $0x828] sm:$0xff] }
  0x56   :  { %4583 = vmatpush3.bf16.msra.mxu0 %v4582_v25  ;;  %v254_v25 = vld [vmem:[%s8428_s1 + $0x6a8] sm:$0xff]  ;;  %v333_v12 = vld [vmem:[%s8428_s1 + $0x920] sm:$0xff] }
  0x57   :  { %4615 = vmatpush3.bf16.msra.mxu1 %v4614_v26  ;;  %4585 = vmatprep.subr.bf16.mxu0 %v4584_v27  ;;  %v1010_v26 = vcombine.high %v6096_v11, %v6096_v11  ;;  %v285_v27 = vld [vmem:[%s8428_s1 + $0x7a0] sm:$0xff]  ;;  %v4636_v32 = vpack.c.bf16 %v254_v25, %v253_v24  ;;  %v278_v24 = vld [vmem:[%s8428_s1 + $0x768] sm:$0xff]  ;;  %v263_v25 = vld [vmem:[%s8428_s1 + $0x6f0] sm:$0xff] }
  0x58   :  { %4617 = vmatprep.subr.bf16.mxu1 %v4616_v31  ;;  %v4666_v31 = vpack.c.bf16 %v268_v23, %v267_v21  ;;  %v246_v21 = vld [vmem:[%s8428_s1 + $0x668] sm:$0xff] }
  0x5a   :  { %4587 = vmatpush3.bf16.msra.mxu0 %v4586_v38  ;;  %v256_v38 = vld [vmem:[%s8428_s1 + $0x6b8] sm:$0xff] }
  0x5b   :  { %4619 = vmatpush3.bf16.msra.mxu1 %v4618_v39  ;;  %4589 = vmatprep.subr.bf16.mxu0 %v4588_v40  ;;  %v287_v39 = vld [vmem:[%s8428_s1 + $0x7b0] sm:$0xff]  ;;  %v288_v40 = vld [vmem:[%s8428_s1 + $0x7b8] sm:$0xff]  ;;  %v4640_v44 = vpack.c.bf16 %v256_v38, %v255_v37  ;;  %v313_v37 = vld [vmem:[%s8428_s1 + $0x880] sm:$0xff] }
  0x5c   :  { %4621 = vmatprep.subr.bf16.mxu1 %v4620_v46  ;;  %v239_v46 = vld [vmem:[%s8428_s1 + $0x630] sm:$0xff]  ;;  %v4672_v49 = vpack.c.bf16 %v288_v40, %v287_v39  ;;  %v314_v38 = vld [vmem:[%s8428_s1 + $0x888] sm:$0xff]  ;;  %v345_v39 = vld [vmem:[%s8428_s1 + $0x980] sm:$0xff] }
  0x5d   :  { %v346_v40 = vld [vmem:[%s8428_s1 + $0x988] sm:$0xff] }
  0x5e   :  { %4591 = vmatpush3.bf16.msra.mxu0 %v4590_v53  ;;  %v258_v53 = vld [vmem:[%s8428_s1 + $0x6c8] sm:$0xff]  ;;  %v4724_v50 = vpack.c.bf16 %v346_v40, %v345_v39  ;;  %v323_v39 = vld [vmem:[%s8428_s1 + $0x8d0] sm:$0xff]  ;;  %v324_v40 = vld [vmem:[%s8428_s1 + $0x8d8] sm:$0xff] }
  0x5f   :  { %4623 = vmatpush3.bf16.msra.mxu1 %v4622_v54  ;;  %4593 = vmatprep.subr.bf16.mxu0 %v4592_v55  ;;  %v290_v54 = vld [vmem:[%s8428_s1 + $0x7c8] sm:$0xff]  ;;  %v4642_v55 = vpack.c.bf16 %v240_v47, %v239_v46  ;;  %v4644_v57 = vpack.c.bf16 %v258_v53, %v257_v51  ;;  %v4692_v46 = vpack.c.bf16 %v314_v38, %v313_v37  ;;  %v297_v47 = vld [vmem:[%s8428_s1 + $0x800] sm:$0xff]  ;;  %v315_v53 = vld [vmem:[%s8428_s1 + $0x890] sm:$0xff] }
  0x60   :  { %4625 = vmatprep.subr.bf16.mxu1 %v4624_v58  ;;  %v242_v58 = vld [vmem:[%s8428_s1 + $0x648] sm:$0xff]  ;;  %v4676_v60 = vpack.c.bf16 %v290_v54, %v289_v33  ;;  %v316_v33 = vld [vmem:[%s8428_s1 + $0x898] sm:$0xff] }
  0x61   :  { %v330_v51 = vld [vmem:[%s8428_s1 + $0x908] sm:$0xff] }
  0x62   :  { %4595 = vmatpush3.bf16.msra.mxu0 %v4594_v1  ;;  %v292_v1 = vld [vmem:[%s8428_s1 + $0x7d8] sm:$0xff]  ;;  %v338_v38 = vld [vmem:[%s8428_s1 + $0x948] sm:$0xff] }
  0x63   :  { %4627 = vmatpush3.bf16.msra.mxu1 %v4626_v2  ;;  %4629 = vmatprep.subr.bf16.mxu0 %v4628_v3  ;;  %v4646_v2 = vpack.c.bf16 %v242_v58, %v241_v45  ;;  %v4678_v3 = vpack.c.bf16 %v274_v61, %v273_v59  ;;  %v4680_v8 = vpack.c.bf16 %v292_v1, %v291_v0  ;;  %v300_v61 = vld [vmem:[%s8428_s1 + $0x818] sm:$0xff]  ;;  %v317_v1 = vld [vmem:[%s8428_s1 + $0x8a0] sm:$0xff] }
  0x64   :  { %4661 = vmatprep.subr.bf16.mxu1 %v4660_v7  ;;  %v275_v7 = vld [vmem:[%s8428_s1 + $0x750] sm:$0xff]  ;;  %v4694_v45 = vpack.c.bf16 %v298_v48, %v297_v47  ;;  %v4696_v59 = vpack.c.bf16 %v316_v33, %v315_v53  ;;  %v332_v0 = vld [vmem:[%s8428_s1 + $0x918] sm:$0xff]  ;;  %v4712_v47 = vpack.c.bf16 %v324_v40, %v323_v39  ;;  %v325_v33 = vld [vmem:[%s8428_s1 + $0x8e0] sm:$0xff] }
  0x65   :  { %1585 = vmatmul.mubr.f32.vlgmr.msra.gmra.mrb[4].mxu0 %v5904_v42  ;;  %v237_v42 = vld [vmem:[%s8428_s1 + $0x620] sm:$0xff]  ;;  %v307_v48 = vld [vmem:[%s8428_s1 + $0x850] sm:$0xff]  ;;  %v340_v53 = vld [vmem:[%s8428_s1 + $0x958] sm:$0xff] }
  0x66   :  { %1655 = vmatmul.mubr.f32.vlgmr.msra.gmra.mrb[4].mxu1 %v5925_v52  ;;  %4631 = vmatpush3.bf16.msra.mxu0 %v4630_v16  ;;  %v4668_v52 = vpack.c.bf16 %v286_v28, %v285_v27  ;;  %v4638_v41 = vpack.c.bf16 %v238_v34, %v237_v42  ;;  %v294_v16 = vld [vmem:[%s8428_s1 + $0x7e8] sm:$0xff]  ;;  %v295_v27 = vld [vmem:[%s8428_s1 + $0x7f0] sm:$0xff]  ;;  %v296_v28 = vld [vmem:[%s8428_s1 + $0x7f8] sm:$0xff] }
  0x67   :  { %4663 = vmatpush3.bf16.msra.mxu1 %v4662_v17  ;;  %4633 = vmatprep.subr.bf16.mxu0 %v4632_v18  ;;  %v4650_v17 = vpack.c.bf16 %v244_v6, %v243_v5  ;;  %v4682_v18 = vpack.c.bf16 %v276_v9, %v275_v7  ;;  %v4684_v23 = vpack.c.bf16 %v294_v16, %v293_v14  ;;  %v247_v42 = vld [vmem:[%s8428_s1 + $0x670] sm:$0xff]  ;;  %v248_v34 = vld [vmem:[%s8428_s1 + $0x678] sm:$0xff]  ;;  %v350_v5 = vld [vmem:[%s8428_s1 + $0x9a8] sm:$0xff] }
  0x68   :  { %4665 = vmatprep.subr.bf16.mxu1 %v4664_v22  ;;  %1724 = vmatprep.mubr.f32.mxu0 %v1010_v26  ;;  %v277_v22 = vld [vmem:[%s8428_s1 + $0x760] sm:$0xff]  ;;  %v264_v26 = vld [vmem:[%s8428_s1 + $0x6f8] sm:$0xff]  ;;  %v334_v14 = vld [vmem:[%s8428_s1 + $0x928] sm:$0xff] }
  0x69   :  { %1794 = vmatprep.mubr.f32.mxu1 %v1011_v29  ;;  %v4654_v29 = vpack.c.bf16 %v246_v21, %v245_v20  ;;  %v319_v16 = vld [vmem:[%s8428_s1 + $0x8b0] sm:$0xff]  ;;  %v4734_v21 = vpack.c.bf16 %v334_v14, %v333_v12  ;;  %v344_v14 = vld [vmem:[%s8428_s1 + $0x978] sm:$0xff] }
  0x6a   :  { %4635 = vmatpush3.bf16.msra.mxu0 %v4634_v30  ;;  %v31_v30 = vld [vmem:[%s8427_s0 + $0x20] sm:$0xff]  ;;  %v343_v12 = vld [vmem:[%s8428_s1 + $0x970] sm:$0xff] }
  0x6b   :  { %4667 = vmatpush3.bf16.msra.mxu1 %v4666_v31  ;;  %4637 = vmatprep.subr.bf16.mxu0 %v4636_v32  ;;  %v4686_v31 = vpack.c.bf16 %v278_v24, %v277_v22  ;;  %v4656_v32 = vpack.c.bf16 %v264_v26, %v263_v25  ;;  %v6303_v54 = vrot.slane %v31_v30, %v5601_v13  ;;  %v304_v24 = vld [vmem:[%s8428_s1 + $0x838] sm:$0xff]  ;;  %v335_v25 = vld [vmem:[%s8428_s1 + $0x930] sm:$0xff] }
  0x6c   :  { %4669 = vmatprep.subr.bf16.mxu1 %v4668_v52  ;;  %v4688_v52 = vpack.c.bf16 %v296_v28, %v295_v27  ;;  %v336_v27 = vld [vmem:[%s8428_s1 + $0x938] sm:$0xff]  ;;  %v321_v28 = vld [vmem:[%s8428_s1 + $0x8c0] sm:$0xff]  ;;  %v395_v39 = vld [vmem:[%s8428_s1 + $0xb10] sm:$0xff] }
  0x6e   :  { %4639 = vmatpush3.bf16.msra.mxu0 %v4638_v41  ;;  %v1012_v41 = vcombine.high %v31_v30, %v31_v30  ;;  %v353_v30 = vld [vmem:[%s8428_s1 + $0x9c0] sm:$0xff] }
  0x6f   :  { %4671 = vmatpush3.bf16.msra.mxu1 %v4670_v43  ;;  %4641 = vmatprep.subr.bf16.mxu0 %v4640_v44  ;;  %v4658_v43 = vpack.c.bf16 %v248_v34, %v247_v42  ;;  %v4690_v44 = vpack.c.bf16 %v280_v36, %v279_v35  ;;  %v4738_v42 = vpack.c.bf16 %v336_v27, %v335_v25  ;;  %v305_v35 = vld [vmem:[%s8428_s1 + $0x840] sm:$0xff]  ;;  %v362_v25 = vld [vmem:[%s8428_s1 + $0xa08] sm:$0xff] }
  0x70   :  { %4673 = vmatprep.subr.bf16.mxu1 %v4672_v49  ;;  %v329_v49 = vld [vmem:[%s8428_s1 + $0x900] sm:$0xff] }
  0x71   :  { %v4726_v58 = vpack.c.bf16 %v330_v51, %v329_v49  ;;  %v337_v36 = vld [vmem:[%s8428_s1 + $0x940] sm:$0xff]  ;;  %v308_v49 = vld [vmem:[%s8428_s1 + $0x858] sm:$0xff] }
  0x72   :  { %4643 = vmatpush3.bf16.msra.mxu0 %v4642_v55  ;;  %v347_v55 = vld [vmem:[%s8428_s1 + $0x990] sm:$0xff] }
  0x73   :  { %4675 = vmatpush3.bf16.msra.mxu1 %v4674_v56  ;;  %4645 = vmatprep.subr.bf16.mxu0 %v4644_v57  ;;  %v348_v56 = vld [vmem:[%s8428_s1 + $0x998] sm:$0xff]  ;;  %v6312_v57 = vrot.slane %v1012_v41, %v5601_v13  ;;  %v355_v41 = vld [vmem:[%s8428_s1 + $0x9d0] sm:$0xff] }
  0x74   :  { %4677 = vmatprep.subr.bf16.mxu1 %v4676_v60  ;;  %v299_v60 = vld [vmem:[%s8428_s1 + $0x810] sm:$0xff]  ;;  %v4728_v63 = vpack.c.bf16 %v348_v56, %v347_v55  ;;  %v326_v55 = vld [vmem:[%s8428_s1 + $0x8e8] sm:$0xff]  ;;  %v357_v56 = vld [vmem:[%s8428_s1 + $0x9e0] sm:$0xff] }
  0x75   :  { %v1028_v6 = vcombine.high %v6312_v57, %v6312_v57  ;;  %v4698_v7 = vpack.c.bf16 %v300_v61, %v299_v60  ;;  %v4716_v60 = vpack.c.bf16 %v326_v55, %v325_v33  ;;  %v309_v61 = vld [vmem:[%s8428_s1 + $0x860] sm:$0xff]  ;;  %v366_v33 = vld [vmem:[%s8428_s1 + $0xa28] sm:$0xff] }
  0x76   :  { %4647 = vmatpush3.bf16.msra.mxu0 %v4646_v2  ;;  %v318_v2 = vld [vmem:[%s8428_s1 + $0x8a8] sm:$0xff]  ;;  %v397_v55 = vld [vmem:[%s8428_s1 + $0xb20] sm:$0xff] }
  0x77   :  { %4679 = vmatpush3.bf16.msra.mxu1 %v4678_v3  ;;  %4649 = vmatprep.subr.bf16.mxu0 %v4648_v4  ;;  %v1027_v3 = vcombine.high %v6303_v54, %v6303_v54  ;;  %v349_v4 = vld [vmem:[%s8428_s1 + $0x9a0] sm:$0xff]  ;;  %v4700_v9 = vpack.c.bf16 %v318_v2, %v317_v1  ;;  %v342_v1 = vld [vmem:[%s8428_s1 + $0x968] sm:$0xff]  ;;  %v327_v2 = vld [vmem:[%s8428_s1 + $0x8f0] sm:$0xff] }
  0x78   :  { %4681 = vmatprep.subr.bf16.mxu1 %v4680_v8  ;;  %v4730_v8 = vpack.c.bf16 %v332_v0, %v331_v62  ;;  %v310_v62 = vld [vmem:[%s8428_s1 + $0x868] sm:$0xff] }
  0x7a   :  { %4651 = vmatpush3.bf16.msra.mxu0 %v4650_v17  ;;  %v320_v17 = vld [vmem:[%s8428_s1 + $0x8b8] sm:$0xff] }
  0x7b   :  { %4683 = vmatpush3.bf16.msra.mxu1 %v4682_v18  ;;  %4653 = vmatprep.subr.bf16.mxu0 %v4652_v19  ;;  %v351_v18 = vld [vmem:[%s8428_s1 + $0x9b0] sm:$0xff]  ;;  %v352_v19 = vld [vmem:[%s8428_s1 + $0x9b8] sm:$0xff]  ;;  %v4704_v22 = vpack.c.bf16 %v320_v17, %v319_v16  ;;  %v377_v16 = vld [vmem:[%s8428_s1 + $0xa80] sm:$0xff] }
  0x7c   :  { %4685 = vmatprep.subr.bf16.mxu1 %v4684_v23  ;;  %v303_v23 = vld [vmem:[%s8428_s1 + $0x830] sm:$0xff]  ;;  %v4736_v26 = vpack.c.bf16 %v352_v19, %v351_v18  ;;  %v378_v17 = vld [vmem:[%s8428_s1 + $0xa88] sm:$0xff]  ;;  %v409_v18 = vld [vmem:[%s8428_s1 + $0xb80] sm:$0xff] }
  0x7d   :  { %v410_v19 = vld [vmem:[%s8428_s1 + $0xb88] sm:$0xff] }
  0x7e   :  { %4655 = vmatpush3.bf16.msra.mxu0 %v4654_v29  ;;  %v322_v29 = vld [vmem:[%s8428_s1 + $0x8c8] sm:$0xff]  ;;  %v4788_v27 = vpack.c.bf16 %v410_v19, %v409_v18  ;;  %v387_v18 = vld [vmem:[%s8428_s1 + $0xad0] sm:$0xff]  ;;  %v388_v19 = vld [vmem:[%s8428_s1 + $0xad8] sm:$0xff] }
  0x7f   :  { %4687 = vmatpush3.bf16.msra.mxu1 %v4686_v31  ;;  %4657 = vmatprep.subr.bf16.mxu0 %v4656_v32  ;;  %v354_v31 = vld [vmem:[%s8428_s1 + $0x9c8] sm:$0xff]  ;;  %v4706_v32 = vpack.c.bf16 %v304_v24, %v303_v23  ;;  %v4708_v34 = vpack.c.bf16 %v322_v29, %v321_v28  ;;  %v4756_v23 = vpack.c.bf16 %v378_v17, %v377_v16  ;;  %v361_v24 = vld [vmem:[%s8428_s1 + $0xa00] sm:$0xff]  ;;  %v379_v29 = vld [vmem:[%s8428_s1 + $0xa90] sm:$0xff] }
  0x80   :  { %4689 = vmatprep.subr.bf16.mxu1 %v4688_v52  ;;  %v306_v52 = vld [vmem:[%s8428_s1 + $0x848] sm:$0xff]  ;;  %v4740_v37 = vpack.c.bf16 %v354_v31, %v353_v30  ;;  %v380_v30 = vld [vmem:[%s8428_s1 + $0xa98] sm:$0xff] }
  0x81   :  { %v394_v28 = vld [vmem:[%s8428_s1 + $0xb08] sm:$0xff] }
  0x82   :  { %4659 = vmatpush3.bf16.msra.mxu0 %v4658_v43  ;;  %v356_v43 = vld [vmem:[%s8428_s1 + $0x9d8] sm:$0xff]  ;;  %v402_v17 = vld [vmem:[%s8428_s1 + $0xb48] sm:$0xff] }
  0x83   :  { %4691 = vmatpush3.bf16.msra.mxu1 %v4690_v44  ;;  %4693 = vmatprep.subr.bf16.mxu0 %v4692_v46  ;;  %v4710_v44 = vpack.c.bf16 %v306_v52, %v305_v35  ;;  %v4742_v46 = vpack.c.bf16 %v338_v38, %v337_v36  ;;  %v4744_v51 = vpack.c.bf16 %v356_v43, %v355_v41  ;;  %v364_v38 = vld [vmem:[%s8428_s1 + $0xa18] sm:$0xff]  ;;  %v381_v43 = vld [vmem:[%s8428_s1 + $0xaa0] sm:$0xff] }
  0x84   :  { %4725 = vmatprep.subr.bf16.mxu1 %v4724_v50  ;;  %v339_v50 = vld [vmem:[%s8428_s1 + $0x950] sm:$0xff]  ;;  %v4758_v35 = vpack.c.bf16 %v362_v25, %v361_v24  ;;  %v4760_v36 = vpack.c.bf16 %v380_v30, %v379_v29  ;;  %v396_v41 = vld [vmem:[%s8428_s1 + $0xb18] sm:$0xff]  ;;  %v4776_v24 = vpack.c.bf16 %v388_v19, %v387_v18  ;;  %v389_v30 = vld [vmem:[%s8428_s1 + $0xae0] sm:$0xff] }
  0x85   :  { %1725 = vmatmul.mubr.f32.vlgmr.msra.gmra.mrb[6].mxu0 %v6096_v11  ;;  %v301_v11 = vld [vmem:[%s8428_s1 + $0x820] sm:$0xff]  ;;  %v371_v25 = vld [vmem:[%s8428_s1 + $0xa50] sm:$0xff]  ;;  %v404_v29 = vld [vmem:[%s8428_s1 + $0xb58] sm:$0xff] }
  0x86   :  { %1795 = vmatmul.mubr.f32.vlgmr.msra.gmra.mrb[6].mxu1 %v6105_v15  ;;  %4695 = vmatpush3.bf16.msra.mxu0 %v4694_v45  ;;  %v4732_v15 = vpack.c.bf16 %v350_v5, %v349_v4  ;;  %v4702_v20 = vpack.c.bf16 %v302_v10, %v301_v11  ;;  %v358_v45 = vld [vmem:[%s8428_s1 + $0x9e8] sm:$0xff]  ;;  %v359_v4 = vld [vmem:[%s8428_s1 + $0x9f0] sm:$0xff]  ;;  %v360_v5 = vld [vmem:[%s8428_s1 + $0x9f8] sm:$0xff] }
  0x87   :  { %4727 = vmatpush3.bf16.msra.mxu1 %v4726_v58  ;;  %4697 = vmatprep.subr.bf16.mxu0 %v4696_v59  ;;  %v4714_v58 = vpack.c.bf16 %v308_v49, %v307_v48  ;;  %v4746_v59 = vpack.c.bf16 %v340_v53, %v339_v50  ;;  %v4748_v0 = vpack.c.bf16 %v358_v45, %v357_v56  ;;  %v311_v11 = vld [vmem:[%s8428_s1 + $0x870] sm:$0xff]  ;;  %v312_v10 = vld [vmem:[%s8428_s1 + $0x878] sm:$0xff]  ;;  %v414_v48 = vld [vmem:[%s8428_s1 + $0xba8] sm:$0xff] }
  0x88   :  { %4729 = vmatprep.subr.bf16.mxu1 %v4728_v63  ;;  %1864 = vmatprep.mubr.f32.mxu0 %v1027_v3  ;;  %v341_v63 = vld [vmem:[%s8428_s1 + $0x960] sm:$0xff]  ;;  %v328_v3 = vld [vmem:[%s8428_s1 + $0x8f8] sm:$0xff]  ;;  %v398_v56 = vld [vmem:[%s8428_s1 + $0xb28] sm:$0xff] }
  0x89   :  { %1934 = vmatprep.mubr.f32.mxu1 %v1028_v6  ;;  %v4718_v6 = vpack.c.bf16 %v310_v62, %v309_v61  ;;  %v383_v45 = vld [vmem:[%s8428_s1 + $0xab0] sm:$0xff]  ;;  %v4798_v62 = vpack.c.bf16 %v398_v56, %v397_v55  ;;  %v408_v56 = vld [vmem:[%s8428_s1 + $0xb78] sm:$0xff] }
  0x8a   :  { %4699 = vmatpush3.bf16.msra.mxu0 %v4698_v7  ;;  %v32_v7 = vld [vmem:[%s8427_s0 + $0x28] sm:$0xff]  ;;  %v407_v55 = vld [vmem:[%s8428_s1 + $0xb70] sm:$0xff] }
  0x8b   :  { %4731 = vmatpush3.bf16.msra.mxu1 %v4730_v8  ;;  %4701 = vmatprep.subr.bf16.mxu0 %v4700_v9  ;;  %v4750_v8 = vpack.c.bf16 %v342_v1, %v341_v63  ;;  %v4720_v9 = vpack.c.bf16 %v328_v3, %v327_v2  ;;  %v6510_v31 = vrot.slane %v32_v7, %v5601_v13  ;;  %v368_v1 = vld [vmem:[%s8428_s1 + $0xa38] sm:$0xff]  ;;  %v399_v2 = vld [vmem:[%s8428_s1 + $0xb30] sm:$0xff] }
  0x8c   :  { %4733 = vmatprep.subr.bf16.mxu1 %v4732_v15  ;;  %v4752_v15 = vpack.c.bf16 %v360_v5, %v359_v4  ;;  %v400_v4 = vld [vmem:[%s8428_s1 + $0xb38] sm:$0xff]  ;;  %v385_v5 = vld [vmem:[%s8428_s1 + $0xac0] sm:$0xff]  ;;  %v459_v18 = vld [vmem:[%s8428_s1 + $0xd10] sm:$0xff] }
  0x8e   :  { %4703 = vmatpush3.bf16.msra.mxu0 %v4702_v20  ;;  %v1029_v20 = vcombine.high %v32_v7, %v32_v7  ;;  %v417_v7 = vld [vmem:[%s8428_s1 + $0xbc0] sm:$0xff] }
  0x8f   :  { %4735 = vmatpush3.bf16.msra.mxu1 %v4734_v21  ;;  %4705 = vmatprep.subr.bf16.mxu0 %v4704_v22  ;;  %v4722_v21 = vpack.c.bf16 %v312_v10, %v311_v11  ;;  %v4754_v22 = vpack.c.bf16 %v344_v14, %v343_v12  ;;  %v4802_v11 = vpack.c.bf16 %v400_v4, %v399_v2  ;;  %v369_v12 = vld [vmem:[%s8428_s1 + $0xa40] sm:$0xff]  ;;  %v426_v2 = vld [vmem:[%s8428_s1 + $0xc08] sm:$0xff] }
  0x90   :  { %4737 = vmatprep.subr.bf16.mxu1 %v4736_v26  ;;  %v393_v26 = vld [vmem:[%s8428_s1 + $0xb00] sm:$0xff] }
  0x91   :  { %v4790_v52 = vpack.c.bf16 %v394_v28, %v393_v26  ;;  %v401_v14 = vld [vmem:[%s8428_s1 + $0xb40] sm:$0xff]  ;;  %v372_v26 = vld [vmem:[%s8428_s1 + $0xa58] sm:$0xff] }
  0x92   :  { %4707 = vmatpush3.bf16.msra.mxu0 %v4706_v32  ;;  %v411_v32 = vld [vmem:[%s8428_s1 + $0xb90] sm:$0xff] }
  0x93   :  { %4739 = vmatpush3.bf16.msra.mxu1 %v4738_v42  ;;  %4709 = vmatprep.subr.bf16.mxu0 %v4708_v34  ;;  %v412_v42 = vld [vmem:[%s8428_s1 + $0xb98] sm:$0xff]  ;;  %v6519_v34 = vrot.slane %v1029_v20, %v5601_v13  ;;  %v419_v20 = vld [vmem:[%s8428_s1 + $0xbd0] sm:$0xff] }
  0x94   :  { %4741 = vmatprep.subr.bf16.mxu1 %v4740_v37  ;;  %v363_v37 = vld [vmem:[%s8428_s1 + $0xa10] sm:$0xff]  ;;  %v4792_v40 = vpack.c.bf16 %v412_v42, %v411_v32  ;;  %v390_v32 = vld [vmem:[%s8428_s1 + $0xae8] sm:$0xff]  ;;  %v421_v42 = vld [vmem:[%s8428_s1 + $0xbe0] sm:$0xff] }
  0x95   :  { %v1045_v49 = vcombine.high %v6519_v34, %v6519_v34  ;;  %v4762_v50 = vpack.c.bf16 %v364_v38, %v363_v37  ;;  %v4780_v37 = vpack.c.bf16 %v390_v32, %v389_v30  ;;  %v373_v38 = vld [vmem:[%s8428_s1 + $0xa60] sm:$0xff]  ;;  %v430_v30 = vld [vmem:[%s8428_s1 + $0xc28] sm:$0xff] }
  0x96   :  { %4711 = vmatpush3.bf16.msra.mxu0 %v4710_v44  ;;  %v382_v44 = vld [vmem:[%s8428_s1 + $0xaa8] sm:$0xff]  ;;  %v461_v32 = vld [vmem:[%s8428_s1 + $0xd20] sm:$0xff] }
  0x97   :  { %4743 = vmatpush3.bf16.msra.mxu1 %v4742_v46  ;;  %4713 = vmatprep.subr.bf16.mxu0 %v4712_v47  ;;  %v1044_v46 = vcombine.high %v6510_v31, %v6510_v31  ;;  %v413_v47 = vld [vmem:[%s8428_s1 + $0xba0] sm:$0xff]  ;;  %v4764_v53 = vpack.c.bf16 %v382_v44, %v381_v43  ;;  %v406_v43 = vld [vmem:[%s8428_s1 + $0xb68] sm:$0xff]  ;;  %v391_v44 = vld [vmem:[%s8428_s1 + $0xaf0] sm:$0xff] }
  0x98   :  { %4745 = vmatprep.subr.bf16.mxu1 %v4744_v51  ;;  %v4794_v51 = vpack.c.bf16 %v396_v41, %v395_v39  ;;  %v374_v39 = vld [vmem:[%s8428_s1 + $0xa68] sm:$0xff] }
  0x9a   :  { %4715 = vmatpush3.bf16.msra.mxu0 %v4714_v58  ;;  %v384_v58 = vld [vmem:[%s8428_s1 + $0xab8] sm:$0xff] }
  0x9b   :  { %4747 = vmatpush3.bf16.msra.mxu1 %v4746_v59  ;;  %4717 = vmatprep.subr.bf16.mxu0 %v4716_v60  ;;  %v415_v59 = vld [vmem:[%s8428_s1 + $0xbb0] sm:$0xff]  ;;  %v416_v60 = vld [vmem:[%s8428_s1 + $0xbb8] sm:$0xff]  ;;  %v4768_v63 = vpack.c.bf16 %v384_v58, %v383_v45  ;;  %v441_v45 = vld [vmem:[%s8428_s1 + $0xc80] sm:$0xff] }
  0x9c   :  { %4749 = vmatprep.subr.bf16.mxu1 %v4748_v0  ;;  %v367_v0 = vld [vmem:[%s8428_s1 + $0xa30] sm:$0xff]  ;;  %v4800_v3 = vpack.c.bf16 %v416_v60, %v415_v59  ;;  %v442_v58 = vld [vmem:[%s8428_s1 + $0xc88] sm:$0xff]  ;;  %v473_v59 = vld [vmem:[%s8428_s1 + $0xd80] sm:$0xff] }
  0x9d   :  { %v474_v60 = vld [vmem:[%s8428_s1 + $0xd88] sm:$0xff] }
  0x9e   :  { %4719 = vmatpush3.bf16.msra.mxu0 %v4718_v6  ;;  %v386_v6 = vld [vmem:[%s8428_s1 + $0xac8] sm:$0xff]  ;;  %v4852_v4 = vpack.c.bf16 %v474_v60, %v473_v59  ;;  %v451_v59 = vld [vmem:[%s8428_s1 + $0xcd0] sm:$0xff]  ;;  %v452_v60 = vld [vmem:[%s8428_s1 + $0xcd8] sm:$0xff] }
  0x9f   :  { %4751 = vmatpush3.bf16.msra.mxu1 %v4750_v8  ;;  %4721 = vmatprep.subr.bf16.mxu0 %v4720_v9  ;;  %v418_v8 = vld [vmem:[%s8428_s1 + $0xbc8] sm:$0xff]  ;;  %v4770_v9 = vpack.c.bf16 %v368_v1, %v367_v0  ;;  %v4772_v10 = vpack.c.bf16 %v386_v6, %v385_v5  ;;  %v4820_v0 = vpack.c.bf16 %v442_v58, %v441_v45  ;;  %v425_v1 = vld [vmem:[%s8428_s1 + $0xc00] sm:$0xff]  ;;  %v443_v6 = vld [vmem:[%s8428_s1 + $0xc90] sm:$0xff] }
  0xa0   :  { %4753 = vmatprep.subr.bf16.mxu1 %v4752_v15  ;;  %v370_v15 = vld [vmem:[%s8428_s1 + $0xa48] sm:$0xff]  ;;  %v4804_v16 = vpack.c.bf16 %v418_v8, %v417_v7  ;;  %v444_v7 = vld [vmem:[%s8428_s1 + $0xc98] sm:$0xff] }
  0xa1   :  { %v458_v5 = vld [vmem:[%s8428_s1 + $0xd08] sm:$0xff] }
  0xa2   :  { %4723 = vmatpush3.bf16.msra.mxu0 %v4722_v21  ;;  %v420_v21 = vld [vmem:[%s8428_s1 + $0xbd8] sm:$0xff]  ;;  %v466_v58 = vld [vmem:[%s8428_s1 + $0xd48] sm:$0xff] }
  0xa3   :  { %4755 = vmatpush3.bf16.msra.mxu1 %v4754_v22  ;;  %4757 = vmatprep.subr.bf16.mxu0 %v4756_v23  ;;  %v4774_v22 = vpack.c.bf16 %v370_v15, %v369_v12  ;;  %v4806_v23 = vpack.c.bf16 %v402_v17, %v401_v14  ;;  %v4808_v28 = vpack.c.bf16 %v420_v21, %v419_v20  ;;  %v428_v17 = vld [vmem:[%s8428_s1 + $0xc18] sm:$0xff]  ;;  %v445_v21 = vld [vmem:[%s8428_s1 + $0xca0] sm:$0xff] }
  0xa4   :  { %4789 = vmatprep.subr.bf16.mxu1 %v4788_v27  ;;  %v403_v27 = vld [vmem:[%s8428_s1 + $0xb50] sm:$0xff]  ;;  %v4822_v12 = vpack.c.bf16 %v426_v2, %v425_v1  ;;  %v4824_v14 = vpack.c.bf16 %v444_v7, %v443_v6  ;;  %v460_v20 = vld [vmem:[%s8428_s1 + $0xd18] sm:$0xff]  ;;  %v4840_v1 = vpack.c.bf16 %v452_v60, %v451_v59  ;;  %v453_v7 = vld [vmem:[%s8428_s1 + $0xce0] sm:$0xff] }
  0xa5   :  { %1865 = vmatmul.mubr.f32.vlgmr.msra.gmra.mrb[8].mxu0 %v6303_v54  ;;  %v365_v54 = vld [vmem:[%s8428_s1 + $0xa20] sm:$0xff]  ;;  %v435_v2 = vld [vmem:[%s8428_s1 + $0xc50] sm:$0xff]  ;;  %v468_v6 = vld [vmem:[%s8428_s1 + $0xd58] sm:$0xff] }
  0xa6   :  { %1935 = vmatmul.mubr.f32.vlgmr.msra.gmra.mrb[8].mxu1 %v6312_v57  ;;  %4759 = vmatpush3.bf16.msra.mxu0 %v4758_v35  ;;  %v4796_v57 = vpack.c.bf16 %v414_v48, %v413_v47  ;;  %v4766_v61 = vpack.c.bf16 %v366_v33, %v365_v54  ;;  %v422_v35 = vld [vmem:[%s8428_s1 + $0xbe8] sm:$0xff]  ;;  %v423_v47 = vld [vmem:[%s8428_s1 + $0xbf0] sm:$0xff]  ;;  %v424_v48 = vld [vmem:[%s8428_s1 + $0xbf8] sm:$0xff] }
  0xa7   :  { %4791 = vmatpush3.bf16.msra.mxu1 %v4790_v52  ;;  %4761 = vmatprep.subr.bf16.mxu0 %v4760_v36  ;;  %v4778_v52 = vpack.c.bf16 %v372_v26, %v371_v25  ;;  %v4810_v36 = vpack.c.bf16 %v404_v29, %v403_v27  ;;  %v4812_v41 = vpack.c.bf16 %v422_v35, %v421_v42  ;;  %v375_v54 = vld [vmem:[%s8428_s1 + $0xa70] sm:$0xff]  ;;  %v376_v33 = vld [vmem:[%s8428_s1 + $0xa78] sm:$0xff]  ;;  %v478_v25 = vld [vmem:[%s8428_s1 + $0xda8] sm:$0xff] }
  0xa8   :  { %4793 = vmatprep.subr.bf16.mxu1 %v4792_v40  ;;  %2004 = vmatprep.mubr.f32.mxu0 %v1044_v46  ;;  %v405_v40 = vld [vmem:[%s8428_s1 + $0xb60] sm:$0xff]  ;;  %v392_v46 = vld [vmem:[%s8428_s1 + $0xaf8] sm:$0xff]  ;;  %v462_v42 = vld [vmem:[%s8428_s1 + $0xd28] sm:$0xff] }
  0xa9   :  { %2074 = vmatprep.mubr.f32.mxu1 %v1045_v49  ;;  %v4782_v49 = vpack.c.bf16 %v374_v39, %v373_v38  ;;  %v447_v35 = vld [vmem:[%s8428_s1 + $0xcb0] sm:$0xff]  ;;  %v4862_v39 = vpack.c.bf16 %v462_v42, %v461_v32  ;;  %v472_v42 = vld [vmem:[%s8428_s1 + $0xd78] sm:$0xff] }
  0xaa   :  { %4763 = vmatpush3.bf16.msra.mxu0 %v4762_v50  ;;  %v33_v50 = vld [vmem:[%s8427_s0 + $0x30] sm:$0xff] }
  0xab   :  { %4795 = vmatpush3.bf16.msra.mxu1 %v4794_v51  ;;  %4765 = vmatprep.subr.bf16.mxu0 %v4764_v53  ;;  %v4814_v51 = vpack.c.bf16 %v406_v43, %v405_v40  ;;  %v4784_v53 = vpack.c.bf16 %v392_v46, %v391_v44  ;;  %v6717_v8 = vrot.slane %v33_v50, %v5601_v13  ;;  %v432_v43 = vld [vmem:[%s8428_s1 + $0xc38] sm:$0xff]  ;;  %v463_v44 = vld [vmem:[%s8428_s1 + $0xd30] sm:$0xff] }
  0xac   :  { %4797 = vmatprep.subr.bf16.mxu1 %v4796_v57  ;;  %v4816_v57 = vpack.c.bf16 %v424_v48, %v423_v47  ;;  %v464_v47 = vld [vmem:[%s8428_s1 + $0xd38] sm:$0xff]  ;;  %v449_v48 = vld [vmem:[%s8428_s1 + $0xcc0] sm:$0xff]  ;;  %v471_v32 = vld [vmem:[%s8428_s1 + $0xd70] sm:$0xff] }
  0xad   :  { %v523_v59 = vld [vmem:[%s8428_s1 + $0xf10] sm:$0xff] }
  0xae   :  { %4767 = vmatpush3.bf16.msra.mxu0 %v4766_v61  ;;  %v1046_v61 = vcombine.high %v33_v50, %v33_v50  ;;  %v481_v50 = vld [vmem:[%s8428_s1 + $0xdc0] sm:$0xff] }
  0xaf   :  { %4799 = vmatpush3.bf16.msra.mxu1 %v4798_v62  ;;  %4769 = vmatprep.subr.bf16.mxu0 %v4768_v63  ;;  %v4786_v62 = vpack.c.bf16 %v376_v33, %v375_v54  ;;  %v4818_v63 = vpack.c.bf16 %v408_v56, %v407_v55  ;;  %v4866_v54 = vpack.c.bf16 %v464_v47, %v463_v44  ;;  %v433_v55 = vld [vmem:[%s8428_s1 + $0xc40] sm:$0xff]  ;;  %v490_v44 = vld [vmem:[%s8428_s1 + $0xe08] sm:$0xff] }
  0xb0   :  { %4801 = vmatprep.subr.bf16.mxu1 %v4800_v3  ;;  %v457_v3 = vld [vmem:[%s8428_s1 + $0xd00] sm:$0xff] }
  0xb1   :  { %v4854_v15 = vpack.c.bf16 %v458_v5, %v457_v3  ;;  %v465_v56 = vld [vmem:[%s8428_s1 + $0xd40] sm:$0xff]  ;;  %v436_v3 = vld [vmem:[%s8428_s1 + $0xc58] sm:$0xff] }
  0xb2   :  { %4771 = vmatpush3.bf16.msra.mxu0 %v4770_v9  ;;  %v475_v9 = vld [vmem:[%s8428_s1 + $0xd90] sm:$0xff] }
  0xb3   :  { %4803 = vmatpush3.bf16.msra.mxu1 %v4802_v11  ;;  %4773 = vmatprep.subr.bf16.mxu0 %v4772_v10  ;;  %v476_v11 = vld [vmem:[%s8428_s1 + $0xd98] sm:$0xff]  ;;  %v6726_v10 = vrot.slane %v1046_v61, %v5601_v13  ;;  %v483_v61 = vld [vmem:[%s8428_s1 + $0xdd0] sm:$0xff] }
  0xb4   :  { %4805 = vmatprep.subr.bf16.mxu1 %v4804_v16  ;;  %v427_v16 = vld [vmem:[%s8428_s1 + $0xc10] sm:$0xff]  ;;  %v4856_v19 = vpack.c.bf16 %v476_v11, %v475_v9  ;;  %v454_v9 = vld [vmem:[%s8428_s1 + $0xce8] sm:$0xff]  ;;  %v485_v11 = vld [vmem:[%s8428_s1 + $0xde0] sm:$0xff] }
  0xb5   :  { %v1062_v26 = vcombine.high %v6726_v10, %v6726_v10  ;;  %v4826_v27 = vpack.c.bf16 %v428_v17, %v427_v16  ;;  %v4844_v16 = vpack.c.bf16 %v454_v9, %v453_v7  ;;  %v437_v17 = vld [vmem:[%s8428_s1 + $0xc60] sm:$0xff]  ;;  %v494_v7 = vld [vmem:[%s8428_s1 + $0xe28] sm:$0xff] }
  0xb6   :  { %4775 = vmatpush3.bf16.msra.mxu0 %v4774_v22  ;;  %v446_v22 = vld [vmem:[%s8428_s1 + $0xca8] sm:$0xff]  ;;  %v525_v9 = vld [vmem:[%s8428_s1 + $0xf20] sm:$0xff] }
  0xb7   :  { %4807 = vmatpush3.bf16.msra.mxu1 %v4806_v23  ;;  %4777 = vmatprep.subr.bf16.mxu0 %v4776_v24  ;;  %v1061_v23 = vcombine.high %v6717_v8, %v6717_v8  ;;  %v477_v24 = vld [vmem:[%s8428_s1 + $0xda0] sm:$0xff]  ;;  %v4828_v29 = vpack.c.bf16 %v446_v22, %v445_v21  ;;  %v470_v21 = vld [vmem:[%s8428_s1 + $0xd68] sm:$0xff]  ;;  %v455_v22 = vld [vmem:[%s8428_s1 + $0xcf0] sm:$0xff] }
  0xb8   :  { %4809 = vmatprep.subr.bf16.mxu1 %v4808_v28  ;;  %v4858_v28 = vpack.c.bf16 %v460_v20, %v459_v18  ;;  %v438_v18 = vld [vmem:[%s8428_s1 + $0xc68] sm:$0xff] }
  0xba   :  { %4779 = vmatpush3.bf16.msra.mxu0 %v4778_v52  ;;  %v448_v52 = vld [vmem:[%s8428_s1 + $0xcb8] sm:$0xff] }
  0xbb   :  { %4811 = vmatpush3.bf16.msra.mxu1 %v4810_v36  ;;  %4781 = vmatprep.subr.bf16.mxu0 %v4780_v37  ;;  %v479_v36 = vld [vmem:[%s8428_s1 + $0xdb0] sm:$0xff]  ;;  %v480_v37 = vld [vmem:[%s8428_s1 + $0xdb8] sm:$0xff]  ;;  %v4832_v40 = vpack.c.bf16 %v448_v52, %v447_v35  ;;  %v505_v35 = vld [vmem:[%s8428_s1 + $0xe80] sm:$0xff] }
  0xbc   :  { %4813 = vmatprep.subr.bf16.mxu1 %v4812_v41  ;;  %v431_v41 = vld [vmem:[%s8428_s1 + $0xc30] sm:$0xff]  ;;  %v4864_v46 = vpack.c.bf16 %v480_v37, %v479_v36  ;;  %v506_v52 = vld [vmem:[%s8428_s1 + $0xe88] sm:$0xff]  ;;  %v537_v36 = vld [vmem:[%s8428_s1 + $0xf80] sm:$0xff] }
  0xbd   :  { %v538_v37 = vld [vmem:[%s8428_s1 + $0xf88] sm:$0xff] }
  0xbe   :  { %4783 = vmatpush3.bf16.msra.mxu0 %v4782_v49  ;;  %v450_v49 = vld [vmem:[%s8428_s1 + $0xcc8] sm:$0xff]  ;;  %v4916_v47 = vpack.c.bf16 %v538_v37, %v537_v36  ;;  %v515_v36 = vld [vmem:[%s8428_s1 + $0xed0] sm:$0xff]  ;;  %v516_v37 = vld [vmem:[%s8428_s1 + $0xed8] sm:$0xff] }
  0xbf   :  { %4815 = vmatpush3.bf16.msra.mxu1 %v4814_v51  ;;  %4785 = vmatprep.subr.bf16.mxu0 %v4784_v53  ;;  %v482_v51 = vld [vmem:[%s8428_s1 + $0xdc8] sm:$0xff]  ;;  %v4834_v53 = vpack.c.bf16 %v432_v43, %v431_v41  ;;  %v4836_v33 = vpack.c.bf16 %v450_v49, %v449_v48  ;;  %v4884_v41 = vpack.c.bf16 %v506_v52, %v505_v35  ;;  %v489_v43 = vld [vmem:[%s8428_s1 + $0xe00] sm:$0xff]  ;;  %v507_v49 = vld [vmem:[%s8428_s1 + $0xe90] sm:$0xff] }
  0xc0   :  { %4817 = vmatprep.subr.bf16.mxu1 %v4816_v57  ;;  %v434_v57 = vld [vmem:[%s8428_s1 + $0xc48] sm:$0xff]  ;;  %v4868_v45 = vpack.c.bf16 %v482_v51, %v481_v50  ;;  %v508_v50 = vld [vmem:[%s8428_s1 + $0xe98] sm:$0xff] }
  0xc1   :  { %v522_v48 = vld [vmem:[%s8428_s1 + $0xf08] sm:$0xff] }
  0xc2   :  { %4787 = vmatpush3.bf16.msra.mxu0 %v4786_v62  ;;  %v484_v62 = vld [vmem:[%s8428_s1 + $0xdd8] sm:$0xff]  ;;  %v530_v52 = vld [vmem:[%s8428_s1 + $0xf48] sm:$0xff] }
  0xc3   :  { %4819 = vmatpush3.bf16.msra.mxu1 %v4818_v63  ;;  %4821 = vmatprep.subr.bf16.mxu0 %v4820_v0  ;;  %v4838_v63 = vpack.c.bf16 %v434_v57, %v433_v55  ;;  %v4870_v0 = vpack.c.bf16 %v466_v58, %v465_v56  ;;  %v4872_v5 = vpack.c.bf16 %v484_v62, %v483_v61  ;;  %v492_v58 = vld [vmem:[%s8428_s1 + $0xe18] sm:$0xff]  ;;  %v509_v62 = vld [vmem:[%s8428_s1 + $0xea0] sm:$0xff] }
  0xc4   :  { %4853 = vmatprep.subr.bf16.mxu1 %v4852_v4  ;;  %v467_v4 = vld [vmem:[%s8428_s1 + $0xd50] sm:$0xff]  ;;  %v4886_v55 = vpack.c.bf16 %v490_v44, %v489_v43  ;;  %v4888_v56 = vpack.c.bf16 %v508_v50, %v507_v49  ;;  %v524_v61 = vld [vmem:[%s8428_s1 + $0xf18] sm:$0xff]  ;;  %v4904_v43 = vpack.c.bf16 %v516_v37, %v515_v36  ;;  %v517_v50 = vld [vmem:[%s8428_s1 + $0xee0] sm:$0xff] }
  0xc5   :  { %2005 = vmatmul.mubr.f32.vlgmr.msra.gmra.mrb[10].mxu0 %v6510_v31  ;;  %v429_v31 = vld [vmem:[%s8428_s1 + $0xc20] sm:$0xff]  ;;  %v499_v44 = vld [vmem:[%s8428_s1 + $0xe50] sm:$0xff]  ;;  %v532_v49 = vld [vmem:[%s8428_s1 + $0xf58] sm:$0xff] }
  0xc6   :  { %2075 = vmatmul.mubr.f32.vlgmr.msra.gmra.mrb[10].mxu1 %v6519_v34  ;;  %4823 = vmatpush3.bf16.msra.mxu0 %v4822_v12  ;;  %v4860_v34 = vpack.c.bf16 %v478_v25, %v477_v24  ;;  %v4830_v38 = vpack.c.bf16 %v430_v30, %v429_v31  ;;  %v486_v12 = vld [vmem:[%s8428_s1 + $0xde8] sm:$0xff]  ;;  %v487_v24 = vld [vmem:[%s8428_s1 + $0xdf0] sm:$0xff]  ;;  %v488_v25 = vld [vmem:[%s8428_s1 + $0xdf8] sm:$0xff] }
  0xc7   :  { %4855 = vmatpush3.bf16.msra.mxu1 %v4854_v15  ;;  %4825 = vmatprep.subr.bf16.mxu0 %v4824_v14  ;;  %v4842_v15 = vpack.c.bf16 %v436_v3, %v435_v2  ;;  %v4874_v14 = vpack.c.bf16 %v468_v6, %v467_v4  ;;  %v4876_v20 = vpack.c.bf16 %v486_v12, %v485_v11  ;;  %v439_v31 = vld [vmem:[%s8428_s1 + $0xc70] sm:$0xff]  ;;  %v440_v30 = vld [vmem:[%s8428_s1 + $0xc78] sm:$0xff]  ;;  %v542_v2 = vld [vmem:[%s8428_s1 + $0xfa8] sm:$0xff] }
  0xc8   :  { %4857 = vmatprep.subr.bf16.mxu1 %v4856_v19  ;;  %2144 = vmatprep.mubr.f32.mxu0 %v1061_v23  ;;  %v469_v19 = vld [vmem:[%s8428_s1 + $0xd60] sm:$0xff]  ;;  %v456_v23 = vld [vmem:[%s8428_s1 + $0xcf8] sm:$0xff]  ;;  %v526_v11 = vld [vmem:[%s8428_s1 + $0xf28] sm:$0xff] }
  0xc9   :  { %2214 = vmatprep.mubr.f32.mxu1 %v1062_v26  ;;  %v4846_v26 = vpack.c.bf16 %v438_v18, %v437_v17  ;;  %v511_v12 = vld [vmem:[%s8428_s1 + $0xeb0] sm:$0xff]  ;;  %v4926_v18 = vpack.c.bf16 %v526_v11, %v525_v9 }
  0xca   :  { %4827 = vmatpush3.bf16.msra.mxu0 %v4826_v27  ;;  %v34_v27 = vld [vmem:[%s8427_s0 + $0x38] sm:$0xff]  ;;  %v603_v37 = vld [vmem:[%s8428_s1 + $0x1190] sm:$0xff] }
  0xcb   :  { %4859 = vmatpush3.bf16.msra.mxu1 %v4858_v28  ;;  %4829 = vmatprep.subr.bf16.mxu0 %v4828_v29  ;;  %v4878_v28 = vpack.c.bf16 %v470_v21, %v469_v19  ;;  %v4848_v29 = vpack.c.bf16 %v456_v23, %v455_v22  ;;  %v6924_v51 = vrot.slane %v34_v27, %v5601_v13  ;;  %v496_v21 = vld [vmem:[%s8428_s1 + $0xe38] sm:$0xff]  ;;  %v527_v22 = vld [vmem:[%s8428_s1 + $0xf30] sm:$0xff] }
  0xcc   :  { %4861 = vmatprep.subr.bf16.mxu1 %v4860_v34  ;;  %v4880_v34 = vpack.c.bf16 %v488_v25, %v487_v24  ;;  %v528_v24 = vld [vmem:[%s8428_s1 + $0xf38] sm:$0xff]  ;;  %v513_v25 = vld [vmem:[%s8428_s1 + $0xec0] sm:$0xff] }
  0xce   :  { %4831 = vmatpush3.bf16.msra.mxu0 %v4830_v38  ;;  %v1063_v38 = vcombine.high %v34_v27, %v34_v27  ;;  %v545_v27 = vld [vmem:[%s8428_s1 + $0xfc0] sm:$0xff] }
  0xcf   :  { %4863 = vmatpush3.bf16.msra.mxu1 %v4862_v39  ;;  %4833 = vmatprep.subr.bf16.mxu0 %v4832_v40  ;;  %v4850_v39 = vpack.c.bf16 %v440_v30, %v439_v31  ;;  %v4882_v40 = vpack.c.bf16 %v472_v42, %v471_v32  ;;  %v4930_v31 = vpack.c.bf16 %v528_v24, %v527_v22  ;;  %v497_v32 = vld [vmem:[%s8428_s1 + $0xe40] sm:$0xff]  ;;  %v570_v22 = vld [vmem:[%s8428_s1 + $0x1088] sm:$0xff] }
  0xd0   :  { %4865 = vmatprep.subr.bf16.mxu1 %v4864_v46  ;;  %v521_v46 = vld [vmem:[%s8428_s1 + $0xf00] sm:$0xff]  ;;  %v602_v24 = vld [vmem:[%s8428_s1 + $0x1188] sm:$0xff] }
  0xd1   :  { %v4918_v57 = vpack.c.bf16 %v522_v48, %v521_v46  ;;  %v529_v42 = vld [vmem:[%s8428_s1 + $0xf40] sm:$0xff]  ;;  %v500_v46 = vld [vmem:[%s8428_s1 + $0xe58] sm:$0xff] }
  0xd2   :  { %4835 = vmatpush3.bf16.msra.mxu0 %v4834_v53  ;;  %v539_v53 = vld [vmem:[%s8428_s1 + $0xf90] sm:$0xff] }
  0xd3   :  { %4867 = vmatpush3.bf16.msra.mxu1 %v4866_v54  ;;  %4837 = vmatprep.subr.bf16.mxu0 %v4836_v33  ;;  %v540_v54 = vld [vmem:[%s8428_s1 + $0xf98] sm:$0xff]  ;;  %v6933_v33 = vrot.slane %v1063_v38, %v5601_v13  ;;  %v547_v38 = vld [vmem:[%s8428_s1 + $0xfd0] sm:$0xff] }
  0xd4   :  { %4869 = vmatprep.subr.bf16.mxu1 %v4868_v45  ;;  %v491_v45 = vld [vmem:[%s8428_s1 + $0xe10] sm:$0xff]  ;;  %v4920_v60 = vpack.c.bf16 %v540_v54, %v539_v53  ;;  %v518_v53 = vld [vmem:[%s8428_s1 + $0xee8] sm:$0xff]  ;;  %v549_v54 = vld [vmem:[%s8428_s1 + $0xfe0] sm:$0xff] }
  0xd5   :  { %v1079_v3 = vcombine.high %v6933_v33, %v6933_v33  ;;  %v4890_v4 = vpack.c.bf16 %v492_v58, %v491_v45  ;;  %v4908_v45 = vpack.c.bf16 %v518_v53, %v517_v50  ;;  %v501_v58 = vld [vmem:[%s8428_s1 + $0xe60] sm:$0xff]  ;;  %v574_v53 = vld [vmem:[%s8428_s1 + $0x10a8] sm:$0xff] }
  0xd6   :  { %4839 = vmatpush3.bf16.msra.mxu0 %v4838_v63  ;;  %v510_v63 = vld [vmem:[%s8428_s1 + $0xea8] sm:$0xff]  ;;  %v573_v50 = vld [vmem:[%s8428_s1 + $0x10a0] sm:$0xff] }
  0xd7   :  { %4871 = vmatpush3.bf16.msra.mxu1 %v4870_v0  ;;  %4841 = vmatprep.subr.bf16.mxu0 %v4840_v1  ;;  %v1078_v0 = vcombine.high %v6924_v51, %v6924_v51  ;;  %v541_v1 = vld [vmem:[%s8428_s1 + $0xfa0] sm:$0xff]  ;;  %v4892_v6 = vpack.c.bf16 %v510_v63, %v509_v62  ;;  %v534_v63 = vld [vmem:[%s8428_s1 + $0xf68] sm:$0xff] }
  0xd8   :  { %4873 = vmatprep.subr.bf16.mxu1 %v4872_v5  ;;  %v4922_v5 = vpack.c.bf16 %v524_v61, %v523_v59  ;;  %v502_v59 = vld [vmem:[%s8428_s1 + $0xe68] sm:$0xff] }
  0xd9   :  { %v4910_v9 = vpack.c.bf16 %v502_v59, %v501_v58  ;;  %v4956_v59 = vpack.c.bf16 %v574_v53, %v573_v50 }
  0xda   :  { %4843 = vmatpush3.bf16.msra.mxu0 %v4842_v15  ;;  %v512_v15 = vld [vmem:[%s8428_s1 + $0xeb8] sm:$0xff] }
  0xdb   :  { %4875 = vmatpush3.bf16.msra.mxu1 %v4874_v14  ;;  %4845 = vmatprep.subr.bf16.mxu0 %v4844_v16  ;;  %v543_v14 = vld [vmem:[%s8428_s1 + $0xfb0] sm:$0xff]  ;;  %v544_v16 = vld [vmem:[%s8428_s1 + $0xfb8] sm:$0xff]  ;;  %v4896_v19 = vpack.c.bf16 %v512_v15, %v511_v12 }
  0xdc   :  { %4877 = vmatprep.subr.bf16.mxu1 %v4876_v20  ;;  %v495_v20 = vld [vmem:[%s8428_s1 + $0xe30] sm:$0xff]  ;;  %v4928_v23 = vpack.c.bf16 %v544_v16, %v543_v14  ;;  %v504_v16 = vld [vmem:[%s8428_s1 + $0xe78] sm:$0xff] }
  0xdd   :  { %v503_v14 = vld [vmem:[%s8428_s1 + $0xe70] sm:$0xff] }
  0xde   :  { %4847 = vmatpush3.bf16.msra.mxu0 %v4846_v26  ;;  %v514_v26 = vld [vmem:[%s8428_s1 + $0xec8] sm:$0xff] }
  0xdf   :  { %4879 = vmatpush3.bf16.msra.mxu1 %v4878_v28  ;;  %4849 = vmatprep.subr.bf16.mxu0 %v4848_v29  ;;  %v546_v28 = vld [vmem:[%s8428_s1 + $0xfc8] sm:$0xff]  ;;  %v4898_v29 = vpack.c.bf16 %v496_v21, %v495_v20  ;;  %v4900_v30 = vpack.c.bf16 %v514_v26, %v513_v25  ;;  %v536_v20 = vld [vmem:[%s8428_s1 + $0xf78] sm:$0xff]  ;;  %v569_v21 = vld [vmem:[%s8428_s1 + $0x1080] sm:$0xff] }
  0xe0   :  { %4881 = vmatprep.subr.bf16.mxu1 %v4880_v34  ;;  %v498_v34 = vld [vmem:[%s8428_s1 + $0xe48] sm:$0xff]  ;;  %v4932_v35 = vpack.c.bf16 %v546_v28, %v545_v27  ;;  %v4914_v27 = vpack.c.bf16 %v504_v16, %v503_v14 }
  0xe1   :  { %v610_v14 = vld [vmem:[%s8428_s1 + $0x11c8] sm:$0xff] }
  0xe2   :  { %4851 = vmatpush3.bf16.msra.mxu0 %v4850_v39  ;;  %v548_v39 = vld [vmem:[%s8428_s1 + $0xfd8] sm:$0xff] }
  0xe3   :  { %4883 = vmatpush3.bf16.msra.mxu1 %v4882_v40  ;;  %4885 = vmatprep.subr.bf16.mxu0 %v4884_v41  ;;  %v4902_v40 = vpack.c.bf16 %v498_v34, %v497_v32  ;;  %v4934_v41 = vpack.c.bf16 %v530_v52, %v529_v42  ;;  %v4936_v48 = vpack.c.bf16 %v548_v39, %v547_v38  ;;  %v585_v32 = vld [vmem:[%s8428_s1 + $0x1100] sm:$0xff]  ;;  %v586_v42 = vld [vmem:[%s8428_s1 + $0x1108] sm:$0xff]  ;;  %v572_v52 = vld [vmem:[%s8428_s1 + $0x1098] sm:$0xff] }
  0xe4   :  { %4917 = vmatprep.subr.bf16.mxu1 %v4916_v47  ;;  %v531_v47 = vld [vmem:[%s8428_s1 + $0xf50] sm:$0xff]  ;;  %v604_v38 = vld [vmem:[%s8428_s1 + $0x1198] sm:$0xff] }
  0xe5   :  { %2145 = vmatmul.mubr.f32.vlgmr.msra.gmra.mrb[12].mxu0 %v6717_v8  ;;  %v493_v8 = vld [vmem:[%s8428_s1 + $0xe20] sm:$0xff] }
  0xe6   :  { %2215 = vmatmul.mubr.f32.vlgmr.msra.gmra.mrb[12].mxu1 %v6726_v10  ;;  %4887 = vmatpush3.bf16.msra.mxu0 %v4886_v55  ;;  %v4924_v10 = vpack.c.bf16 %v542_v2, %v541_v1  ;;  %v4894_v17 = vpack.c.bf16 %v494_v7, %v493_v8  ;;  %v550_v55 = vld [vmem:[%s8428_s1 + $0xfe8] sm:$0xff]  ;;  %v520_v1 = vld [vmem:[%s8428_s1 + $0xef8] sm:$0xff]  ;;  %v3407_v2 = vld [vmem:[%s8429_s2] ss:$0 sm:$0xff] }
  0xe7   :  { %4919 = vmatpush3.bf16.msra.mxu1 %v4918_v57  ;;  %4889 = vmatprep.subr.bf16.mxu0 %v4888_v56  ;;  %v4906_v57 = vpack.c.bf16 %v500_v46, %v499_v44  ;;  %v4938_v56 = vpack.c.bf16 %v532_v49, %v531_v47  ;;  %v4940_v62 = vpack.c.bf16 %v550_v55, %v549_v54  ;;  %v555_v44 = vld [vmem:[%s8428_s1 + $0x1010] sm:$0xff]  ;;  %v556_v46 = vld [vmem:[%s8428_s1 + $0x1018] sm:$0xff]  ;;  %v605_v55 = vld [vmem:[%s8428_s1 + $0x11a0] sm:$0xff] }
  0xe8   :  { %4921 = vmatprep.subr.bf16.mxu1 %v4920_v60  ;;  %2284 = vmatprep.mubr.f32.mxu0 %v1078_v0  ;;  %v533_v60 = vld [vmem:[%s8428_s1 + $0xf60] sm:$0xff]  ;;  %v519_v0 = vld [vmem:[%s8428_s1 + $0xef0] sm:$0xff]  ;;  %v588_v49 = vld [vmem:[%s8428_s1 + $0x1118] sm:$0xff] }
  0xe9   :  { %2354 = vmatprep.mubr.f32.mxu1 %v1079_v3  ;;  %v4942_v12 = vpack.c.bf16 %v534_v63, %v533_v60  ;;  %v4912_v15 = vpack.c.bf16 %v520_v1, %v519_v0  ;;  %v587_v47 = vld [vmem:[%s8428_s1 + $0x1110] sm:$0xff]  ;;  %v558_v60 = vld [vmem:[%s8428_s1 + $0x1028] sm:$0xff]  ;;  %v576_v0 = vld [vmem:[%s8428_s1 + $0x10b8] sm:$0xff] }
  0xea   :  { %4891 = vmatpush3.bf16.msra.mxu0 %v4890_v4  ;;  %v4986_v58 = vpack.c.bf16 %v588_v49, %v587_v47  ;;  %v575_v63 = vld [vmem:[%s8428_s1 + $0x10b0] sm:$0xff] }
  0xeb   :  { %4923 = vmatpush3.bf16.msra.mxu1 %v4922_v5  ;;  %4893 = vmatprep.subr.bf16.mxu0 %v4892_v6  ;;  %v551_v5 = vld [vmem:[%s8428_s1 + $0xff0] sm:$0xff]  ;;  %v552_v6 = vld [vmem:[%s8428_s1 + $0xff8] sm:$0xff] }
  0xec   :  { %4925 = vmatprep.subr.bf16.mxu1 %v4924_v10  ;;  %v35_v10 = vld [vmem:[%s8427_s0 + $0x40] sm:$0xff]  ;;  %v607_v1 = vld [vmem:[%s8428_s1 + $0x11b0] sm:$0xff] }
  0xed   :  { %v1080_v25 = vcombine.high %v35_v10, %v35_v10  ;;  %v7136_v36 = vrot.slane %v35_v10, %v5601_v13  ;;  %v592_v10 = vld [vmem:[%s8428_s1 + $0x1138] sm:$0xff] }
  0xee   :  { %4895 = vmatpush3.bf16.msra.mxu0 %v4894_v17  ;;  %v535_v17 = vld [vmem:[%s8428_s1 + $0xf70] sm:$0xff] }
  0xef   :  { %4927 = vmatpush3.bf16.msra.mxu1 %v4926_v18  ;;  %4897 = vmatprep.subr.bf16.mxu0 %v4896_v19  ;;  %v4944_v19 = vpack.c.bf16 %v552_v6, %v551_v5  ;;  %v4946_v28 = vpack.c.bf16 %v536_v20, %v535_v17  ;;  %v7145_v39 = vrot.slane %v1080_v25, %v5601_v13  ;;  %v559_v6 = vld [vmem:[%s8428_s1 + $0x1030] sm:$0xff] }
  0xf0   :  { %4929 = vmatprep.subr.bf16.mxu1 %v4928_v23  ;;  %v601_v23 = vld [vmem:[%s8428_s1 + $0x1180] sm:$0xff]  ;;  %v1095_v54 = vcombine.high %v7136_v36, %v7136_v36  ;;  %v4960_v5 = vpack.c.bf16 %v576_v0, %v575_v63 }
  0xf1   :  { %v4980_v34 = vpack.c.bf16 %v602_v24, %v601_v23 }
  0xf2   :  { %4899 = vmatpush3.bf16.msra.mxu0 %v4898_v29  ;;  %v4948_v29 = vpack.c.bf16 %v570_v22, %v569_v21 }
  0xf3   :  { %4931 = vmatpush3.bf16.msra.mxu1 %v4930_v31  ;;  %4901 = vmatprep.subr.bf16.mxu0 %v4900_v30  ;;  %v553_v31 = vld [vmem:[%s8428_s1 + $0x1000] sm:$0xff]  ;;  %v554_v30 = vld [vmem:[%s8428_s1 + $0x1008] sm:$0xff] }
  0xf4   :  { %4933 = vmatprep.subr.bf16.mxu1 %v4932_v35  ;;  %v571_v35 = vld [vmem:[%s8428_s1 + $0x1090] sm:$0xff] }
  0xf6   :  { %4903 = vmatpush3.bf16.msra.mxu0 %v4902_v40  ;;  %v4950_v40 = vpack.c.bf16 %v554_v30, %v553_v31 }
  0xf7   :  { %4935 = vmatpush3.bf16.msra.mxu1 %v4934_v41  ;;  %4905 = vmatprep.subr.bf16.mxu0 %v4904_v43  ;;  %v4982_v41 = vpack.c.bf16 %v586_v42, %v585_v32  ;;  %v4952_v43 = vpack.c.bf16 %v572_v52, %v571_v35 }
  0xf8   :  { %v3446_v61 = vpop.f32.mrb[0].mxu0  ;;  %4937 = vmatprep.subr.bf16.mxu1 %v4936_v48  ;;  %v4984_v48 = vpack.c.bf16 %v604_v38, %v603_v37 }
  0xf9   :  { %v3447_v3 = vpop.f32.mrb[1].mxu0  ;;  %v3481_v4 = vpop.f32.mrb[0].mxu1 }
  0xfa   :  { %v3448_v8 = vadd.f32 %v3447_v3, %v3446_v61  ;;  %v3482_v7 = vpop.f32.mrb[1].mxu1  ;;  %4907 = vmatpush3.bf16.msra.mxu0 %v4906_v57  ;;  %v606_v57 = vld [vmem:[%s8428_s1 + $0x11a8] sm:$0xff]  ;;  %v589_v61 = vld [vmem:[%s8428_s1 + $0x1120] sm:$0xff] }
  0xfb   :  { %v3483_v11 = vadd.f32 %v3482_v7, %v3481_v4  ;;  %4939 = vmatpush3.bf16.msra.mxu1 %v4938_v56  ;;  %4909 = vmatprep.subr.bf16.mxu0 %v4908_v45  ;;  %v1096_v56 = vcombine.high %v7145_v39, %v7145_v39  ;;  %v4954_v45 = vpack.c.bf16 %v556_v46, %v555_v44  ;;  %v591_v7 = vld [vmem:[%s8428_s1 + $0x1130] sm:$0xff] }
  0xfc   :  { %v1307_v18 = vadd.f32 %v3448_v8, %v3407_v2  ;;  %4941 = vmatprep.subr.bf16.mxu1 %v4940_v62  ;;  %v590_v62 = vld [vmem:[%s8428_s1 + $0x1128] sm:$0xff]  ;;  %v608_v2 = vld [vmem:[%s8428_s1 + $0x11b8] sm:$0xff] }
  0xfd   :  { %v4990_v4 = vpack.c.bf16 %v590_v62, %v589_v61  ;;  %v560_v8 = vld [vmem:[%s8428_s1 + $0x1038] sm:$0xff] }
  0xfe   :  { %v7115_v26 = vadd.f32 %v3483_v11, %v1307_v18  ;;  %4911 = vmatpush3.bf16.msra.mxu0 %v4910_v9  ;;  %v4992_v9 = vpack.c.bf16 %v608_v2, %v607_v1  ;;  %v577_v11 = vld [vmem:[%s8428_s1 + $0x10c0] sm:$0xff]  ;;  %v4962_v16 = vpack.c.bf16 %v560_v8, %v559_v6 }
  0xff   :  { %4943 = vmatpush3.bf16.msra.mxu1 %v4942_v12  ;;  %4913 = vmatprep.subr.bf16.mxu0 %v4912_v15  ;;  %v578_v12 = vld [vmem:[%s8428_s1 + $0x10c8] sm:$0xff]  ;;  %v609_v15 = vld [vmem:[%s8428_s1 + $0x11c0] sm:$0xff] }
 0x100   :  { %4945 = vmatprep.subr.bf16.mxu1 %v4944_v19 }
 0x102   :  { %4915 = vmatpush3.bf16.msra.mxu0 %v4914_v27 }
 0x103   :  { %4947 = vmatpush3.bf16.msra.mxu1 %v4946_v28  ;;  %4949 = vmatprep.subr.bf16.mxu0 %v4948_v29 }
 0x104   :  { %4981 = vmatprep.subr.bf16.mxu1 %v4980_v34 }
 0x105   :  { %2285 = vmatmul.mubr.f32.vlgmr.msra.gmra.mrb[14].mxu0 %v6924_v51  ;;  %v557_v51 = vld [vmem:[%s8428_s1 + $0x1020] sm:$0xff] }
 0x106   :  { %2355 = vmatmul.mubr.f32.vlgmr.msra.gmra.mrb[14].mxu1 %v6933_v33  ;;  %4951 = vmatpush3.bf16.msra.mxu0 %v4950_v40  ;;  %v4988_v33 = vpack.c.bf16 %v606_v57, %v605_v55  ;;  %v4958_v3 = vpack.c.bf16 %v558_v60, %v557_v51 }
 0x107   :  { %4983 = vmatpush3.bf16.msra.mxu1 %v4982_v41  ;;  %4953 = vmatprep.subr.bf16.mxu0 %v4952_v43 }
 0x108   :  { %4985 = vmatprep.subr.bf16.mxu1 %v4984_v48  ;;  %2424 = vmatprep.mubr.f32.mxu0 %v1095_v54 }
 0x109   :  { %2494 = vmatprep.mubr.f32.mxu1 %v1096_v56 }
 0x10a   :  { %4955 = vmatpush3.bf16.msra.mxu0 %v4954_v45 }
 0x10b   :  { %4987 = vmatpush3.bf16.msra.mxu1 %v4986_v58  ;;  %4957 = vmatprep.subr.bf16.mxu0 %v4956_v59 }
 0x10c   :  { %4989 = vmatprep.subr.bf16.mxu1 %v4988_v33 }
 0x10e   :  { %4959 = vmatpush3.bf16.msra.mxu0 %v4958_v3 }
 0x10f   :  { %12 = vsyncpa [#allocation3], 0  ;;  %4991 = vmatpush3.bf16.msra.mxu1 %v4990_v4  ;;  %4961 = vmatprep.subr.bf16.mxu0 %v4960_v5  ;;  %v4994_v17 = vpack.c.bf16 %v592_v10, %v591_v7  ;;  %v4964_v18 = vpack.c.bf16 %v578_v12, %v577_v11  ;;  %v561_v19 = vld [vmem:[%s8428_s1 + $0x1040] sm:$0xff]  ;;  %v562_v20 = vld [vmem:[%s8428_s1 + $0x1048] sm:$0xff]  ;;  %v4996_v22 = vpack.c.bf16 %v610_v14, %v609_v15  ;;  %vm1237_vm0 = vcmask 130048  }
 0x110   :  { %v593_v21 = vld [vmem:[%s8428_s1 + $0x1140] sm:$0xff]  ;;  %4993 = vmatprep.subr.bf16.mxu1 %v4992_v9  ;;  %v594_v23 = vld [vmem:[%s8428_s1 + $0x1148] sm:$0xff]  ;;  %v579_v24 = vld [vmem:[%s8428_s1 + $0x10d0] sm:$0xff]  ;;  %v4966_v29 = vpack.c.bf16 %v562_v20, %v561_v19  ;;  %vm5408_vm1 = vmmov 0   ;;  %vm3223_vm2 = vcmask 982016   ;;  %vm3317_vm3 = vcmask 1043456  }
 0x111   :  { %v580_v25 = vld [vmem:[%s8428_s1 + $0x10d8] sm:$0xff]  ;;  %v611_v27 = vld [vmem:[%s8428_s1 + $0x11d0] sm:$0xff]  ;;  %v4998_v31 = vpack.c.bf16 %v594_v23, %v593_v21  ;;  %v581_v37 = vld [vmem:[%s8428_s1 + $0x10e0] sm:$0xff]  ;;  %vm5409_vm4 = vmmov 1   ;;  %vm3313_vm6 = vcmask 490496   ;;  %vm3391_vm7 = vcmask 9216  }
 0x112   :  { %v612_v28 = vld [vmem:[%s8428_s1 + $0x11d8] sm:$0xff]  ;;  %4963 = vmatpush3.bf16.msra.mxu0 %v4962_v16  ;;  %v4968_v30 = vpack.c.bf16 %v580_v25, %v579_v24  ;;  %v563_v32 = vld [vmem:[%s8428_s1 + $0x1050] sm:$0xff]  ;;  %v582_v38 = vld [vmem:[%s8428_s1 + $0x10e8] sm:$0xff] }
 0x113   :  { %4995 = vmatpush3.bf16.msra.mxu1 %v4994_v17  ;;  %4965 = vmatprep.subr.bf16.mxu0 %v4964_v18  ;;  %v564_v34 = vld [vmem:[%s8428_s1 + $0x1058] sm:$0xff]  ;;  %v595_v42 = vld [vmem:[%s8428_s1 + $0x1150] sm:$0xff]  ;;  %v5000_v35 = vpack.c.bf16 %v612_v28, %v611_v27  ;;  %v613_v40 = vld [vmem:[%s8428_s1 + $0x11e0] sm:$0xff]  ;;  %v4972_v46 = vpack.c.bf16 %v582_v38, %v581_v37 }
 0x114   :  { %4997 = vmatprep.subr.bf16.mxu1 %v4996_v22  ;;  %v596_v52 = vld [vmem:[%s8428_s1 + $0x1158] sm:$0xff]  ;;  %v614_v41 = vld [vmem:[%s8428_s1 + $0x11e8] sm:$0xff]  ;;  %v4970_v43 = vpack.c.bf16 %v564_v34, %v563_v32  ;;  %v565_v47 = vld [vmem:[%s8428_s1 + $0x1060] sm:$0xff] }
 0x115   :  { %v5002_v44 = vpack.c.bf16 %v596_v52, %v595_v42  ;;  %v566_v48 = vld [vmem:[%s8428_s1 + $0x1068] sm:$0xff]  ;;  %v597_v49 = vld [vmem:[%s8428_s1 + $0x1160] sm:$0xff]  ;;  %v5004_v53 = vpack.c.bf16 %v614_v41, %v613_v40  ;;  %v583_v55 = vld [vmem:[%s8428_s1 + $0x10f0] sm:$0xff] }
 0x116   :  { %4967 = vmatpush3.bf16.msra.mxu0 %v4966_v29  ;;  %v598_v54 = vld [vmem:[%s8428_s1 + $0x1168] sm:$0xff]  ;;  %v584_v57 = vld [vmem:[%s8428_s1 + $0x10f8] sm:$0xff]  ;;  %v615_v58 = vld [vmem:[%s8428_s1 + $0x11f0] sm:$0xff]  ;;  %v4974_v61 = vpack.c.bf16 %v566_v48, %v565_v47 }
 0x117   :  { %4999 = vmatpush3.bf16.msra.mxu1 %v4998_v31  ;;  %4969 = vmatprep.subr.bf16.mxu0 %v4968_v30  ;;  %v616_v59 = vld [vmem:[%s8428_s1 + $0x11f8] sm:$0xff]  ;;  %v36_v33 = vld [vmem:[%s8427_s0 + $0x48] sm:$0xff]  ;;  %v5006_v63 = vpack.c.bf16 %v598_v54, %v597_v49  ;;  %v4976_v0 = vpack.c.bf16 %v584_v57, %v583_v55  ;;  %v567_v1 = vld [vmem:[%s8428_s1 + $0x1070] sm:$0xff] }
 0x118   :  { %v3516_v50 = vpop.f32.mrb[2].mxu0  ;;  %5001 = vmatprep.subr.bf16.mxu1 %v5000_v35  ;;  %v568_v2 = vld [vmem:[%s8428_s1 + $0x1078] sm:$0xff]  ;;  %v599_v3 = vld [vmem:[%s8428_s1 + $0x1170] sm:$0xff]  ;;  %v5008_v5 = vpack.c.bf16 %v616_v59, %v615_v58  ;;  %v633_v8 = vld [vmem:[%s8428_s1 + $0x1280] sm:$0xff]  ;;  %v1097_v10 = vcombine.high %v36_v33, %v36_v33  ;;  %v7346_v23 = vrot.slane %v36_v33, %v5601_v13 }
 0x119   :  { %v3517_v56 = vpop.f32.mrb[3].mxu0  ;;  %v3551_v45 = vpop.f32.mrb[2].mxu1  ;;  %v600_v6 = vld [vmem:[%s8428_s1 + $0x1178] sm:$0xff]  ;;  %v634_v7 = vld [vmem:[%s8428_s1 + $0x1288] sm:$0xff]  ;;  %v665_v9 = vld [vmem:[%s8428_s1 + $0x1380] sm:$0xff]  ;;  %v4978_v12 = vpack.c.bf16 %v568_v2, %v567_v1 }
 0x11a   :  { %v3518_v51 = vadd.f32 %v3517_v56, %v3516_v50  ;;  %v3552_v60 = vpop.f32.mrb[3].mxu1  ;;  %4971 = vmatpush3.bf16.msra.mxu0 %v4970_v43  ;;  %v5010_v15 = vpack.c.bf16 %v600_v6, %v599_v3  ;;  %v5012_v14 = vpack.c.bf16 %v634_v7, %v633_v8  ;;  %v617_v16 = vld [vmem:[%s8428_s1 + $0x1200] sm:$0xff]  ;;  %v618_v17 = vld [vmem:[%s8428_s1 + $0x1208] sm:$0xff]  ;;  %v635_v21 = vld [vmem:[%s8428_s1 + $0x1290] sm:$0xff]  ;;  %v7355_v27 = vrot.slane %v1097_v10, %v5601_v13 }
 0x11b   :  { %v3553_v62 = vadd.f32 %v3552_v60, %v3551_v45  ;;  %5003 = vmatpush3.bf16.msra.mxu1 %v5002_v44  ;;  %4973 = vmatprep.subr.bf16.mxu0 %v4972_v46  ;;  %v649_v18 = vld [vmem:[%s8428_s1 + $0x1300] sm:$0xff]  ;;  %v650_v20 = vld [vmem:[%s8428_s1 + $0x1308] sm:$0xff]  ;;  %v636_v22 = vld [vmem:[%s8428_s1 + $0x1298] sm:$0xff]  ;;  %v5014_v28 = vpack.c.bf16 %v618_v17, %v617_v16  ;;  %v1112_v38 = vcombine.high %v7346_v23, %v7346_v23 }
 0x11c   :  { %v1447_v4 = vadd.f32 %v3518_v51, %v7115_v26  ;;  %5005 = vmatprep.subr.bf16.mxu1 %v5004_v53  ;;  %v666_v26 = vld [vmem:[%s8428_s1 + $0x1388] sm:$0xff]  ;;  %v667_v24 = vld [vmem:[%s8428_s1 + $0x1390] sm:$0xff]  ;;  %v668_v25 = vld [vmem:[%s8428_s1 + $0x1398] sm:$0xff]  ;;  %v5046_v29 = vpack.c.bf16 %v650_v20, %v649_v18  ;;  %v5016_v31 = vpack.c.bf16 %v636_v22, %v635_v21  ;;  %v1113_v43 = vcombine.high %v7355_v27, %v7355_v27 }
 0x11d   :  { %v5044_v19 = vpack.c.bf16 %v666_v26, %v665_v9  ;;  %v619_v30 = vld [vmem:[%s8428_s1 + $0x1210] sm:$0xff]  ;;  %v620_v32 = vld [vmem:[%s8428_s1 + $0x1218] sm:$0xff]  ;;  %v5048_v42 = vpack.c.bf16 %v668_v25, %v667_v24  ;;  %v637_v52 = vld [vmem:[%s8428_s1 + $0x12a0] sm:$0xff] }
 0x11e   :  { %v7325_v11 = vadd.f32 %v3553_v62, %v1447_v4  ;;  %4975 = vmatpush3.bf16.msra.mxu0 %v4974_v61  ;;  %v651_v34 = vld [vmem:[%s8428_s1 + $0x1310] sm:$0xff]  ;;  %v652_v35 = vld [vmem:[%s8428_s1 + $0x1318] sm:$0xff]  ;;  %v638_v37 = vld [vmem:[%s8428_s1 + $0x12a8] sm:$0xff]  ;;  %v5018_v44 = vpack.c.bf16 %v620_v32, %v619_v30 }
 0x11f   :  { %5007 = vmatpush3.bf16.msra.mxu1 %v5006_v63  ;;  %4977 = vmatprep.subr.bf16.mxu0 %v4976_v0  ;;  %v669_v40 = vld [vmem:[%s8428_s1 + $0x13a0] sm:$0xff]  ;;  %v670_v41 = vld [vmem:[%s8428_s1 + $0x13a8] sm:$0xff]  ;;  %v5050_v46 = vpack.c.bf16 %v652_v35, %v651_v34  ;;  %v5020_v47 = vpack.c.bf16 %v638_v37, %v637_v52  ;;  %v639_v53 = vld [vmem:[%s8428_s1 + $0x12b0] sm:$0xff] }
 0x120   :  { %5009 = vmatprep.subr.bf16.mxu1 %v5008_v5  ;;  %v622_v48 = vld [vmem:[%s8428_s1 + $0x1228] sm:$0xff]  ;;  %v653_v49 = vld [vmem:[%s8428_s1 + $0x1320] sm:$0xff]  ;;  %v640_v54 = vld [vmem:[%s8428_s1 + $0x12b8] sm:$0xff] }
 0x121   :  { %v654_v50 = vld [vmem:[%s8428_s1 + $0x1328] sm:$0xff]  ;;  %v671_v55 = vld [vmem:[%s8428_s1 + $0x13b0] sm:$0xff]  ;;  %v672_v57 = vld [vmem:[%s8428_s1 + $0x13b8] sm:$0xff]  ;;  %v5024_v58 = vpack.c.bf16 %v640_v54, %v639_v53 }
 0x122   :  { %4979 = vmatpush3.bf16.msra.mxu0 %v4978_v12  ;;  %v5054_v45 = vpack.c.bf16 %v654_v50, %v653_v49  ;;  %v623_v59 = vld [vmem:[%s8428_s1 + $0x1230] sm:$0xff]  ;;  %v624_v51 = vld [vmem:[%s8428_s1 + $0x1238] sm:$0xff]  ;;  %v5056_v61 = vpack.c.bf16 %v672_v57, %v671_v55  ;;  %v641_v62 = vld [vmem:[%s8428_s1 + $0x12c0] sm:$0xff] }
 0x123   :  { %5011 = vmatpush3.bf16.msra.mxu1 %v5010_v15  ;;  %5013 = vmatprep.subr.bf16.mxu0 %v5012_v14  ;;  %v655_v60 = vld [vmem:[%s8428_s1 + $0x1330] sm:$0xff]  ;;  %v656_v33 = vld [vmem:[%s8428_s1 + $0x1338] sm:$0xff]  ;;  %v642_v63 = vld [vmem:[%s8428_s1 + $0x12c8] sm:$0xff]  ;;  %v5026_v2 = vpack.c.bf16 %v624_v51, %v623_v59 }
 0x124   :  { %5045 = vmatprep.subr.bf16.mxu1 %v5044_v19  ;;  %v673_v0 = vld [vmem:[%s8428_s1 + $0x13c0] sm:$0xff]  ;;  %v674_v1 = vld [vmem:[%s8428_s1 + $0x13c8] sm:$0xff]  ;;  %v5058_v3 = vpack.c.bf16 %v656_v33, %v655_v60  ;;  %v5028_v4 = vpack.c.bf16 %v642_v63, %v641_v62  ;;  %v643_v26 = vld [vmem:[%s8428_s1 + $0x12d0] sm:$0xff] }
 0x125   :  { %2425 = vmatmul.mubr.f32.vlgmr.msra.gmra.mrb[16].mxu0 %v7136_v36  ;;  %v621_v36 = vld [vmem:[%s8428_s1 + $0x1220] sm:$0xff]  ;;  %v626_v6 = vld [vmem:[%s8428_s1 + $0x1248] sm:$0xff]  ;;  %v5060_v7 = vpack.c.bf16 %v674_v1, %v673_v0  ;;  %v644_v10 = vld [vmem:[%s8428_s1 + $0x12d8] sm:$0xff] }
 0x126   :  { %2495 = vmatmul.mubr.f32.vlgmr.msra.gmra.mrb[16].mxu1 %v7145_v39  ;;  %5015 = vmatpush3.bf16.msra.mxu0 %v5014_v28  ;;  %v5052_v39 = vpack.c.bf16 %v670_v41, %v669_v40  ;;  %v5022_v56 = vpack.c.bf16 %v622_v48, %v621_v36  ;;  %v625_v5 = vld [vmem:[%s8428_s1 + $0x1240] sm:$0xff]  ;;  %v658_v9 = vld [vmem:[%s8428_s1 + $0x1348] sm:$0xff]  ;;  %v675_v12 = vld [vmem:[%s8428_s1 + $0x13d0] sm:$0xff]  ;;  %v5032_v17 = vpack.c.bf16 %v644_v10, %v643_v26 }
 0x127   :  { %5047 = vmatpush3.bf16.msra.mxu1 %v5046_v29  ;;  %5017 = vmatprep.subr.bf16.mxu0 %v5016_v31  ;;  %v657_v8 = vld [vmem:[%s8428_s1 + $0x1340] sm:$0xff]  ;;  %v676_v15 = vld [vmem:[%s8428_s1 + $0x13d8] sm:$0xff]  ;;  %v5030_v14 = vpack.c.bf16 %v626_v6, %v625_v5  ;;  %v627_v18 = vld [vmem:[%s8428_s1 + $0x1250] sm:$0xff] }
 0x128   :  { %5049 = vmatprep.subr.bf16.mxu1 %v5048_v42  ;;  %2564 = vmatprep.mubr.f32.mxu0 %v1112_v38  ;;  %v5062_v16 = vpack.c.bf16 %v658_v9, %v657_v8  ;;  %v628_v19 = vld [vmem:[%s8428_s1 + $0x1258] sm:$0xff]  ;;  %v659_v20 = vld [vmem:[%s8428_s1 + $0x1350] sm:$0xff]  ;;  %v5064_v21 = vpack.c.bf16 %v676_v15, %v675_v12  ;;  %v645_v24 = vld [vmem:[%s8428_s1 + $0x12e0] sm:$0xff] }
 0x129   :  { %2634 = vmatprep.mubr.f32.mxu1 %v1113_v43  ;;  %v660_v22 = vld [vmem:[%s8428_s1 + $0x1358] sm:$0xff]  ;;  %v646_v25 = vld [vmem:[%s8428_s1 + $0x12e8] sm:$0xff]  ;;  %v677_v28 = vld [vmem:[%s8428_s1 + $0x13e0] sm:$0xff]  ;;  %v5034_v31 = vpack.c.bf16 %v628_v19, %v627_v18 }
 0x12a   :  { %5019 = vmatpush3.bf16.msra.mxu0 %v5018_v44  ;;  %v678_v29 = vld [vmem:[%s8428_s1 + $0x13e8] sm:$0xff]  ;;  %v5066_v30 = vpack.c.bf16 %v660_v22, %v659_v20  ;;  %v5036_v32 = vpack.c.bf16 %v646_v25, %v645_v24  ;;  %v629_v34 = vld [vmem:[%s8428_s1 + $0x1260] sm:$0xff]  ;;  %v647_v40 = vld [vmem:[%s8428_s1 + $0x12f0] sm:$0xff] }
 0x12b   :  { %5051 = vmatpush3.bf16.msra.mxu1 %v5050_v46  ;;  %5021 = vmatprep.subr.bf16.mxu0 %v5020_v47  ;;  %v630_v42 = vld [vmem:[%s8428_s1 + $0x1268] sm:$0xff]  ;;  %v661_v35 = vld [vmem:[%s8428_s1 + $0x1360] sm:$0xff]  ;;  %v5068_v37 = vpack.c.bf16 %v678_v29, %v677_v28  ;;  %v648_v41 = vld [vmem:[%s8428_s1 + $0x12f8] sm:$0xff] }
 0x12c   :  { %5053 = vmatprep.subr.bf16.mxu1 %v5052_v39  ;;  %v662_v38 = vld [vmem:[%s8428_s1 + $0x1368] sm:$0xff]  ;;  %v679_v46 = vld [vmem:[%s8428_s1 + $0x13f0] sm:$0xff]  ;;  %v680_v47 = vld [vmem:[%s8428_s1 + $0x13f8] sm:$0xff]  ;;  %v5038_v49 = vpack.c.bf16 %v630_v42, %v629_v34  ;;  %v5040_v54 = vpack.c.bf16 %v648_v41, %v647_v40 }
 0x12d   :  { %v37_v39 = vld [vmem:[%s8427_s0 + $0x50] sm:$0xff]  ;;  %v5070_v53 = vpack.c.bf16 %v662_v38, %v661_v35  ;;  %v632_v57 = vld [vmem:[%s8428_s1 + $0x1278] sm:$0xff]  ;;  %v697_v51 = vld [vmem:[%s8428_s1 + $0x1480] sm:$0xff] }
 0x12e   :  { %5023 = vmatpush3.bf16.msra.mxu0 %v5022_v56  ;;  %v631_v55 = vld [vmem:[%s8428_s1 + $0x1270] sm:$0xff]  ;;  %v664_v59 = vld [vmem:[%s8428_s1 + $0x1378] sm:$0xff]  ;;  %v698_v60 = vld [vmem:[%s8428_s1 + $0x1488] sm:$0xff]  ;;  %v1114_v33 = vcombine.high %v37_v39, %v37_v39  ;;  %v7556_v9 = vrot.slane %v37_v39, %v5601_v13 }
 0x12f   :  { %5055 = vmatpush3.bf16.msra.mxu1 %v5054_v45  ;;  %5025 = vmatprep.subr.bf16.mxu0 %v5024_v58  ;;  %v663_v56 = vld [vmem:[%s8428_s1 + $0x1370] sm:$0xff]  ;;  %v5072_v58 = vpack.c.bf16 %v680_v47, %v679_v46  ;;  %v5042_v63 = vpack.c.bf16 %v632_v57, %v631_v55  ;;  %v5076_v1 = vpack.c.bf16 %v698_v60, %v697_v51  ;;  %v714_v6 = vld [vmem:[%s8428_s1 + $0x1508] sm:$0xff]  ;;  %v732_v10 = vld [vmem:[%s8428_s1 + $0x1598] sm:$0xff] }
 0x130   :  { %5057 = vmatprep.subr.bf16.mxu1 %v5056_v61  ;;  %v729_v61 = vld [vmem:[%s8428_s1 + $0x1580] sm:$0xff]  ;;  %v5074_v0 = vpack.c.bf16 %v664_v59, %v663_v56  ;;  %v699_v8 = vld [vmem:[%s8428_s1 + $0x1490] sm:$0xff]  ;;  %v7565_v12 = vrot.slane %v1114_v33, %v5601_v13  ;;  %v684_v18 = vld [vmem:[%s8428_s1 + $0x1418] sm:$0xff]  ;;  %v1129_v25 = vcombine.high %v7556_v9, %v7556_v9 }
 0x131   :  { %v731_v26 = vld [vmem:[%s8428_s1 + $0x1590] sm:$0xff]  ;;  %v701_v22 = vld [vmem:[%s8428_s1 + $0x14a0] sm:$0xff]  ;;  %v702_v24 = vld [vmem:[%s8428_s1 + $0x14a8] sm:$0xff] }
 0x132   :  { %5027 = vmatpush3.bf16.msra.mxu0 %v5026_v2  ;;  %v681_v2 = vld [vmem:[%s8428_s1 + $0x1400] sm:$0xff]  ;;  %v715_v19 = vld [vmem:[%s8428_s1 + $0x1510] sm:$0xff]  ;;  %v5112_v20 = vpack.c.bf16 %v732_v10, %v731_v26  ;;  %v734_v29 = vld [vmem:[%s8428_s1 + $0x15a8] sm:$0xff]  ;;  %v5084_v34 = vpack.c.bf16 %v702_v24, %v701_v22 }
 0x133   :  { %5059 = vmatpush3.bf16.msra.mxu1 %v5058_v3  ;;  %5029 = vmatprep.subr.bf16.mxu0 %v5028_v4  ;;  %v682_v3 = vld [vmem:[%s8428_s1 + $0x1408] sm:$0xff]  ;;  %v713_v4 = vld [vmem:[%s8428_s1 + $0x1500] sm:$0xff]  ;;  %v704_v38 = vld [vmem:[%s8428_s1 + $0x14b8] sm:$0xff] }
 0x134   :  { %5061 = vmatprep.subr.bf16.mxu1 %v5060_v7  ;;  %v700_v7 = vld [vmem:[%s8428_s1 + $0x1498] sm:$0xff]  ;;  %v5078_v15 = vpack.c.bf16 %v682_v3, %v681_v2  ;;  %v733_v28 = vld [vmem:[%s8428_s1 + $0x15a0] sm:$0xff]  ;;  %v686_v42 = vld [vmem:[%s8428_s1 + $0x1428] sm:$0xff] }
 0x135   :  { %v717_v35 = vld [vmem:[%s8428_s1 + $0x1520] sm:$0xff]  ;;  %v735_v40 = vld [vmem:[%s8428_s1 + $0x15b0] sm:$0xff]  ;;  %v736_v41 = vld [vmem:[%s8428_s1 + $0x15b8] sm:$0xff] }
 0x136   :  { %5031 = vmatpush3.bf16.msra.mxu0 %v5030_v14  ;;  %v5110_v14 = vpack.c.bf16 %v714_v6, %v713_v4  ;;  %v687_v47 = vld [vmem:[%s8428_s1 + $0x1430] sm:$0xff]  ;;  %v720_v39 = vld [vmem:[%s8428_s1 + $0x1538] sm:$0xff]  ;;  %v738_v55 = vld [vmem:[%s8428_s1 + $0x15c8] sm:$0xff] }
 0x137   :  { %5063 = vmatpush3.bf16.msra.mxu1 %v5062_v16  ;;  %5033 = vmatprep.subr.bf16.mxu0 %v5032_v17  ;;  %v5080_v16 = vpack.c.bf16 %v700_v7, %v699_v8  ;;  %v683_v17 = vld [vmem:[%s8428_s1 + $0x1410] sm:$0xff]  ;;  %v690_v59 = vld [vmem:[%s8428_s1 + $0x1448] sm:$0xff]  ;;  %v721_v51 = vld [vmem:[%s8428_s1 + $0x1540] sm:$0xff] }
 0x138   :  { %v3586_v52 = vpop.f32.mrb[4].mxu0  ;;  %5065 = vmatprep.subr.bf16.mxu1 %v5064_v21  ;;  %v716_v21 = vld [vmem:[%s8428_s1 + $0x1518] sm:$0xff]  ;;  %v691_v4 = vld [vmem:[%s8428_s1 + $0x1450] sm:$0xff]  ;;  %v709_v26 = vld [vmem:[%s8428_s1 + $0x14e0] sm:$0xff] }
 0x139   :  { %v3587_v43 = vpop.f32.mrb[5].mxu0  ;;  %v3621_v44 = vpop.f32.mrb[4].mxu1  ;;  %v708_v33 = vld [vmem:[%s8428_s1 + $0x14d8] sm:$0xff]  ;;  %v723_v6 = vld [vmem:[%s8428_s1 + $0x1550] sm:$0xff]  ;;  %v710_v10 = vld [vmem:[%s8428_s1 + $0x14e8] sm:$0xff] }
 0x13a   :  { %v3588_v36 = vadd.f32 %v3587_v43, %v3586_v52  ;;  %v3622_v48 = vpop.f32.mrb[5].mxu1  ;;  %5035 = vmatpush3.bf16.msra.mxu0 %v5034_v31  ;;  %v1130_v31 = vcombine.high %v7565_v12, %v7565_v12  ;;  %v718_v52 = vld [vmem:[%s8428_s1 + $0x1528] sm:$0xff]  ;;  %v724_v7 = vld [vmem:[%s8428_s1 + $0x1558] sm:$0xff]  ;;  %vm5359_vm5 = vmpackc.low %vm3317_vm3, %vm5409_vm4 }
 0x13b   :  { %v3623_v50 = vadd.f32 %v3622_v48, %v3621_v44  ;;  %5067 = vmatpush3.bf16.msra.mxu1 %v5066_v30  ;;  %5037 = vmatprep.subr.bf16.mxu0 %v5036_v32  ;;  %v5082_v30 = vpack.c.bf16 %v684_v18, %v683_v17  ;;  %v5114_v32 = vpack.c.bf16 %v716_v21, %v715_v19  ;;  %v719_v48 = vld [vmem:[%s8428_s1 + $0x1530] sm:$0xff]  ;;  %v693_v19 = vld [vmem:[%s8428_s1 + $0x1460] sm:$0xff] }
 0x13c   :  { %v1587_v45 = vadd.f32 %v3588_v36, %v7325_v11  ;;  %5069 = vmatprep.subr.bf16.mxu1 %v5068_v37  ;;  %v730_v11 = vld [vmem:[%s8428_s1 + $0x1588] sm:$0xff]  ;;  %v703_v37 = vld [vmem:[%s8428_s1 + $0x14b0] sm:$0xff]  ;;  %v5118_v44 = vpack.c.bf16 %v718_v52, %v717_v35  ;;  %v688_v36 = vld [vmem:[%s8428_s1 + $0x1438] sm:$0xff]  ;;  %v5122_v56 = vpack.c.bf16 %v720_v39, %v719_v48  ;;  %v5130_v17 = vpack.c.bf16 %v724_v7, %v723_v6 }
 0x13d   :  { %v5108_v5 = vpack.c.bf16 %v730_v11, %v729_v61  ;;  %v5088_v46 = vpack.c.bf16 %v704_v38, %v703_v37  ;;  %v5090_v57 = vpack.c.bf16 %v688_v36, %v687_v47  ;;  %v722_v61 = vld [vmem:[%s8428_s1 + $0x1548] sm:$0xff]  ;;  %v707_v11 = vld [vmem:[%s8428_s1 + $0x14d0] sm:$0xff]  ;;  %v5100_v18 = vpack.c.bf16 %v710_v10, %v709_v26  ;;  %v725_v21 = vld [vmem:[%s8428_s1 + $0x1560] sm:$0xff] }
 0x13e   :  { %v7535_v62 = vadd.f32 %v3623_v50, %v1587_v45  ;;  %5039 = vmatpush3.bf16.msra.mxu0 %v5038_v49  ;;  %v5120_v49 = vpack.c.bf16 %v736_v41, %v735_v40  ;;  %v705_v50 = vld [vmem:[%s8428_s1 + $0x14c0] sm:$0xff]  ;;  %v5126_v2 = vpack.c.bf16 %v722_v61, %v721_v51  ;;  %v5096_v3 = vpack.c.bf16 %v708_v33, %v707_v11  ;;  %v695_v40 = vld [vmem:[%s8428_s1 + $0x1470] sm:$0xff]  ;;  %v696_v41 = vld [vmem:[%s8428_s1 + $0x1478] sm:$0xff] }
 0x13f   :  { %5071 = vmatpush3.bf16.msra.mxu1 %v5070_v53  ;;  %5041 = vmatprep.subr.bf16.mxu0 %v5040_v54  ;;  %v706_v53 = vld [vmem:[%s8428_s1 + $0x14c8] sm:$0xff]  ;;  %v737_v54 = vld [vmem:[%s8428_s1 + $0x15c0] sm:$0xff]  ;;  %v728_v47 = vld [vmem:[%s8428_s1 + $0x1578] sm:$0xff] }
 0x140   :  { %5073 = vmatprep.subr.bf16.mxu1 %v5072_v58  ;;  %v5092_v45 = vpack.c.bf16 %v706_v53, %v705_v50  ;;  %v689_v58 = vld [vmem:[%s8428_s1 + $0x1440] sm:$0xff]  ;;  %v5124_v60 = vpack.c.bf16 %v738_v55, %v737_v54  ;;  %v762_v48 = vld [vmem:[%s8428_s1 + $0x1688] sm:$0xff]  ;;  %v5106_v53 = vpack.c.bf16 %v696_v41, %v695_v40  ;;  %v763_v51 = vld [vmem:[%s8428_s1 + $0x1690] sm:$0xff] }
 0x141   :  { %v761_v36 = vld [vmem:[%s8428_s1 + $0x1680] sm:$0xff]  ;;  %v795_v11 = vld [vmem:[%s8428_s1 + $0x1790] sm:$0xff]  ;;  %v796_v33 = vld [vmem:[%s8428_s1 + $0x1798] sm:$0xff] }
 0x142   :  { %5043 = vmatpush3.bf16.msra.mxu0 %v5042_v63  ;;  %v739_v63 = vld [vmem:[%s8428_s1 + $0x15d0] sm:$0xff]  ;;  %v5140_v55 = vpack.c.bf16 %v762_v48, %v761_v36  ;;  %v5176_v6 = vpack.c.bf16 %v796_v33, %v795_v11  ;;  %v765_v7 = vld [vmem:[%s8428_s1 + $0x16a0] sm:$0xff]  ;;  %v766_v26 = vld [vmem:[%s8428_s1 + $0x16a8] sm:$0xff] }
 0x143   :  { %5075 = vmatpush3.bf16.msra.mxu1 %v5074_v0  ;;  %5077 = vmatprep.subr.bf16.mxu0 %v5076_v1  ;;  %v740_v0 = vld [vmem:[%s8428_s1 + $0x15d8] sm:$0xff]  ;;  %v5094_v1 = vpack.c.bf16 %v690_v59, %v689_v58  ;;  %v778_v59 = vld [vmem:[%s8428_s1 + $0x1708] sm:$0xff]  ;;  %v785_v36 = vld [vmem:[%s8428_s1 + $0x1740] sm:$0xff] }
 0x144   :  { %5109 = vmatprep.subr.bf16.mxu1 %v5108_v5  ;;  %v692_v5 = vld [vmem:[%s8428_s1 + $0x1458] sm:$0xff]  ;;  %v5128_v8 = vpack.c.bf16 %v740_v0, %v739_v63  ;;  %v802_v40 = vld [vmem:[%s8428_s1 + $0x17c8] sm:$0xff]  ;;  %v773_v11 = vld [vmem:[%s8428_s1 + $0x16e0] sm:$0xff] }
 0x145   :  { %2565 = vmatmul.mubr.f32.vlgmr.msra.gmra.mrb[18].mxu0 %v7346_v23  ;;  %v685_v23 = vld [vmem:[%s8428_s1 + $0x1420] sm:$0xff]  ;;  %v774_v33 = vld [vmem:[%s8428_s1 + $0x16e8] sm:$0xff] }
 0x146   :  { %2635 = vmatmul.mubr.f32.vlgmr.msra.gmra.mrb[18].mxu1 %v7355_v27  ;;  %5079 = vmatpush3.bf16.msra.mxu0 %v5078_v15  ;;  %v5116_v27 = vpack.c.bf16 %v734_v29, %v733_v28  ;;  %v5086_v43 = vpack.c.bf16 %v686_v42, %v685_v23  ;;  %v741_v15 = vld [vmem:[%s8428_s1 + $0x15e0] sm:$0xff]  ;;  %v711_v28 = vld [vmem:[%s8428_s1 + $0x14f0] sm:$0xff]  ;;  %v712_v29 = vld [vmem:[%s8428_s1 + $0x14f8] sm:$0xff] }
 0x147   :  { %5111 = vmatpush3.bf16.msra.mxu1 %v5110_v14  ;;  %5081 = vmatprep.subr.bf16.mxu0 %v5080_v16  ;;  %v742_v14 = vld [vmem:[%s8428_s1 + $0x15e8] sm:$0xff]  ;;  %v5098_v16 = vpack.c.bf16 %v692_v5, %v691_v4  ;;  %v5104_v38 = vpack.c.bf16 %v712_v29, %v711_v28  ;;  %v748_v4 = vld [vmem:[%s8428_s1 + $0x1618] sm:$0xff]  ;;  %v779_v5 = vld [vmem:[%s8428_s1 + $0x1710] sm:$0xff] }
 0x148   :  { %5113 = vmatprep.subr.bf16.mxu1 %v5112_v20  ;;  %2704 = vmatprep.mubr.f32.mxu0 %v1129_v25  ;;  %v694_v20 = vld [vmem:[%s8428_s1 + $0x1468] sm:$0xff]  ;;  %v5132_v24 = vpack.c.bf16 %v742_v14, %v741_v15  ;;  %v797_v15 = vld [vmem:[%s8428_s1 + $0x17a0] sm:$0xff]  ;;  %v799_v28 = vld [vmem:[%s8428_s1 + $0x17b0] sm:$0xff] }
 0x149   :  { %2774 = vmatprep.mubr.f32.mxu1 %v1130_v31  ;;  %v726_v25 = vld [vmem:[%s8428_s1 + $0x1568] sm:$0xff]  ;;  %v5102_v35 = vpack.c.bf16 %v694_v20, %v693_v19  ;;  %v5148_v19 = vpack.c.bf16 %v766_v26, %v765_v7  ;;  %v800_v29 = vld [vmem:[%s8428_s1 + $0x17b8] sm:$0xff] }
 0x14a   :  { %5083 = vmatpush3.bf16.msra.mxu0 %v5082_v30  ;;  %v5134_v37 = vpack.c.bf16 %v726_v25, %v725_v21  ;;  %v798_v14 = vld [vmem:[%s8428_s1 + $0x17a8] sm:$0xff]  ;;  %v781_v21 = vld [vmem:[%s8428_s1 + $0x1720] sm:$0xff]  ;;  %v768_v25 = vld [vmem:[%s8428_s1 + $0x16b8] sm:$0xff] }
 0x14b   :  { %5115 = vmatpush3.bf16.msra.mxu1 %v5114_v32  ;;  %5085 = vmatprep.subr.bf16.mxu0 %v5084_v34  ;;  %v743_v32 = vld [vmem:[%s8428_s1 + $0x15f0] sm:$0xff]  ;;  %v744_v34 = vld [vmem:[%s8428_s1 + $0x15f8] sm:$0xff]  ;;  %v750_v20 = vld [vmem:[%s8428_s1 + $0x1628] sm:$0xff] }
 0x14c   :  { %5117 = vmatprep.subr.bf16.mxu1 %v5116_v27  ;;  %v38_v27 = vld [vmem:[%s8427_s0 + $0x58] sm:$0xff] }
 0x14d   :  { %v1131_v39 = vcombine.high %v38_v27, %v38_v27  ;;  %v7766_v61 = vrot.slane %v38_v27, %v5601_v13  ;;  %v784_v27 = vld [vmem:[%s8428_s1 + $0x1738] sm:$0xff] }
 0x14e   :  { %5087 = vmatpush3.bf16.msra.mxu0 %v5086_v43  ;;  %v727_v43 = vld [vmem:[%s8428_s1 + $0x1570] sm:$0xff] }
 0x14f   :  { %5119 = vmatpush3.bf16.msra.mxu1 %v5118_v44  ;;  %5089 = vmatprep.subr.bf16.mxu0 %v5088_v46  ;;  %v5136_v46 = vpack.c.bf16 %v744_v34, %v743_v32  ;;  %v5138_v54 = vpack.c.bf16 %v728_v47, %v727_v43  ;;  %v7775_v63 = vrot.slane %v1131_v39, %v5601_v13  ;;  %v751_v34 = vld [vmem:[%s8428_s1 + $0x1630] sm:$0xff]  ;;  %v754_v47 = vld [vmem:[%s8428_s1 + $0x1648] sm:$0xff]  ;;  %v772_v39 = vld [vmem:[%s8428_s1 + $0x16d8] sm:$0xff] }
 0x150   :  { %5121 = vmatprep.subr.bf16.mxu1 %v5120_v49  ;;  %v793_v49 = vld [vmem:[%s8428_s1 + $0x1780] sm:$0xff]  ;;  %v1146_v10 = vcombine.high %v7766_v61, %v7766_v61 }
 0x152   :  { %5091 = vmatpush3.bf16.msra.mxu0 %v5090_v57  ;;  %v745_v57 = vld [vmem:[%s8428_s1 + $0x1600] sm:$0xff] }
 0x153   :  { %5123 = vmatpush3.bf16.msra.mxu1 %v5122_v56  ;;  %5093 = vmatprep.subr.bf16.mxu0 %v5092_v45  ;;  %v746_v56 = vld [vmem:[%s8428_s1 + $0x1608] sm:$0xff]  ;;  %v777_v45 = vld [vmem:[%s8428_s1 + $0x1700] sm:$0xff] }
 0x154   :  { %5125 = vmatprep.subr.bf16.mxu1 %v5124_v60  ;;  %v764_v60 = vld [vmem:[%s8428_s1 + $0x1698] sm:$0xff]  ;;  %v5142_v0 = vpack.c.bf16 %v746_v56, %v745_v57 }
 0x156   :  { %5095 = vmatpush3.bf16.msra.mxu0 %v5094_v1  ;;  %v5174_v1 = vpack.c.bf16 %v778_v59, %v777_v45  ;;  %v755_v45 = vld [vmem:[%s8428_s1 + $0x1650] sm:$0xff] }
 0x157   :  { %5127 = vmatpush3.bf16.msra.mxu1 %v5126_v2  ;;  %5097 = vmatprep.subr.bf16.mxu0 %v5096_v3  ;;  %v5144_v2 = vpack.c.bf16 %v764_v60, %v763_v51  ;;  %v747_v3 = vld [vmem:[%s8428_s1 + $0x1610] sm:$0xff]  ;;  %v788_v60 = vld [vmem:[%s8428_s1 + $0x1758] sm:$0xff] }
 0x158   :  { %v3656_v22 = vpop.f32.mrb[6].mxu0  ;;  %5129 = vmatprep.subr.bf16.mxu1 %v5128_v8  ;;  %v780_v8 = vld [vmem:[%s8428_s1 + $0x1718] sm:$0xff]  ;;  %v787_v59 = vld [vmem:[%s8428_s1 + $0x1750] sm:$0xff] }
 0x159   :  { %v3657_v31 = vpop.f32.mrb[7].mxu0  ;;  %v3691_v30 = vpop.f32.mrb[6].mxu1 }
 0x15a   :  { %v3658_v23 = vadd.f32 %v3657_v31, %v3656_v22  ;;  %v3692_v42 = vpop.f32.mrb[7].mxu1  ;;  %5099 = vmatpush3.bf16.msra.mxu0 %v5098_v16  ;;  %v1147_v16 = vcombine.high %v7775_v63, %v7775_v63  ;;  %v782_v22 = vld [vmem:[%s8428_s1 + $0x1728] sm:$0xff] }
 0x15b   :  { %v3693_v52 = vadd.f32 %v3692_v42, %v3691_v30  ;;  %5131 = vmatpush3.bf16.msra.mxu1 %v5130_v17  ;;  %5101 = vmatprep.subr.bf16.mxu0 %v5100_v18  ;;  %v5146_v17 = vpack.c.bf16 %v748_v4, %v747_v3  ;;  %v5178_v18 = vpack.c.bf16 %v780_v8, %v779_v5  ;;  %v783_v42 = vld [vmem:[%s8428_s1 + $0x1730] sm:$0xff]  ;;  %v757_v5 = vld [vmem:[%s8428_s1 + $0x1660] sm:$0xff] }
 0x15c   :  { %v1727_v44 = vadd.f32 %v3658_v23, %v7535_v62  ;;  %5133 = vmatprep.subr.bf16.mxu1 %v5132_v24  ;;  %v794_v62 = vld [vmem:[%s8428_s1 + $0x1788] sm:$0xff]  ;;  %v767_v24 = vld [vmem:[%s8428_s1 + $0x16b0] sm:$0xff]  ;;  %v5182_v30 = vpack.c.bf16 %v782_v22, %v781_v21  ;;  %v752_v23 = vld [vmem:[%s8428_s1 + $0x1638] sm:$0xff]  ;;  %v5186_v43 = vpack.c.bf16 %v784_v27, %v783_v42  ;;  %v5194_v3 = vpack.c.bf16 %v788_v60, %v787_v59 }
 0x15d   :  { %v5172_v58 = vpack.c.bf16 %v794_v62, %v793_v49  ;;  %v5152_v32 = vpack.c.bf16 %v768_v25, %v767_v24  ;;  %v5154_v41 = vpack.c.bf16 %v752_v23, %v751_v34  ;;  %v786_v49 = vld [vmem:[%s8428_s1 + $0x1748] sm:$0xff]  ;;  %v771_v62 = vld [vmem:[%s8428_s1 + $0x16d0] sm:$0xff]  ;;  %v5164_v4 = vpack.c.bf16 %v774_v33, %v773_v11  ;;  %v789_v8 = vld [vmem:[%s8428_s1 + $0x1760] sm:$0xff] }
 0x15e   :  { %v7745_v50 = vadd.f32 %v3693_v52, %v1727_v44  ;;  %5103 = vmatpush3.bf16.msra.mxu0 %v5102_v35  ;;  %v5184_v35 = vpack.c.bf16 %v800_v29, %v799_v28  ;;  %v769_v52 = vld [vmem:[%s8428_s1 + $0x16c0] sm:$0xff]  ;;  %v5190_v57 = vpack.c.bf16 %v786_v49, %v785_v36  ;;  %v5160_v56 = vpack.c.bf16 %v772_v39, %v771_v62  ;;  %v759_v28 = vld [vmem:[%s8428_s1 + $0x1670] sm:$0xff]  ;;  %v760_v29 = vld [vmem:[%s8428_s1 + $0x1678] sm:$0xff] }
 0x15f   :  { %5135 = vmatpush3.bf16.msra.mxu1 %v5134_v37  ;;  %5105 = vmatprep.subr.bf16.mxu0 %v5104_v38  ;;  %v770_v37 = vld [vmem:[%s8428_s1 + $0x16c8] sm:$0xff]  ;;  %v801_v38 = vld [vmem:[%s8428_s1 + $0x17c0] sm:$0xff]  ;;  %v792_v34 = vld [vmem:[%s8428_s1 + $0x1778] sm:$0xff] }
 0x160   :  { %5137 = vmatprep.subr.bf16.mxu1 %v5136_v46  ;;  %v5156_v44 = vpack.c.bf16 %v770_v37, %v769_v52  ;;  %v753_v46 = vld [vmem:[%s8428_s1 + $0x1640] sm:$0xff]  ;;  %v5188_v48 = vpack.c.bf16 %v802_v40, %v801_v38  ;;  %v826_v42 = vld [vmem:[%s8428_s1 + $0x1888] sm:$0xff]  ;;  %v5170_v37 = vpack.c.bf16 %v760_v29, %v759_v28  ;;  %v827_v36 = vld [vmem:[%s8428_s1 + $0x1890] sm:$0xff] }
 0x161   :  { %v825_v23 = vld [vmem:[%s8428_s1 + $0x1880] sm:$0xff]  ;;  %v859_v62 = vld [vmem:[%s8428_s1 + $0x1990] sm:$0xff]  ;;  %v860_v39 = vld [vmem:[%s8428_s1 + $0x1998] sm:$0xff] }
 0x162   :  { %5107 = vmatpush3.bf16.msra.mxu0 %v5106_v53  ;;  %v803_v53 = vld [vmem:[%s8428_s1 + $0x17d0] sm:$0xff]  ;;  %v5204_v40 = vpack.c.bf16 %v826_v42, %v825_v23  ;;  %v5240_v59 = vpack.c.bf16 %v860_v39, %v859_v62  ;;  %v829_v60 = vld [vmem:[%s8428_s1 + $0x18a0] sm:$0xff]  ;;  %v830_v11 = vld [vmem:[%s8428_s1 + $0x18a8] sm:$0xff] }
 0x163   :  { %5139 = vmatpush3.bf16.msra.mxu1 %v5138_v54  ;;  %5141 = vmatprep.subr.bf16.mxu0 %v5140_v55  ;;  %v804_v54 = vld [vmem:[%s8428_s1 + $0x17d8] sm:$0xff]  ;;  %v5158_v55 = vpack.c.bf16 %v754_v47, %v753_v46  ;;  %v842_v47 = vld [vmem:[%s8428_s1 + $0x1908] sm:$0xff]  ;;  %v849_v23 = vld [vmem:[%s8428_s1 + $0x1940] sm:$0xff] }
 0x164   :  { %5173 = vmatprep.subr.bf16.mxu1 %v5172_v58  ;;  %v756_v58 = vld [vmem:[%s8428_s1 + $0x1658] sm:$0xff]  ;;  %v5192_v51 = vpack.c.bf16 %v804_v54, %v803_v53  ;;  %v866_v28 = vld [vmem:[%s8428_s1 + $0x19c8] sm:$0xff]  ;;  %v837_v62 = vld [vmem:[%s8428_s1 + $0x18e0] sm:$0xff] }
 0x165   :  { %2705 = vmatmul.mubr.f32.vlgmr.msra.gmra.mrb[20].mxu0 %v7556_v9  ;;  %v749_v9 = vld [vmem:[%s8428_s1 + $0x1620] sm:$0xff]  ;;  %v838_v39 = vld [vmem:[%s8428_s1 + $0x18e8] sm:$0xff] }
 0x166   :  { %2775 = vmatmul.mubr.f32.vlgmr.msra.gmra.mrb[20].mxu1 %v7565_v12  ;;  %5143 = vmatpush3.bf16.msra.mxu0 %v5142_v0  ;;  %v5180_v12 = vpack.c.bf16 %v798_v14, %v797_v15  ;;  %v5150_v31 = vpack.c.bf16 %v750_v20, %v749_v9  ;;  %v805_v0 = vld [vmem:[%s8428_s1 + $0x17e0] sm:$0xff]  ;;  %v775_v15 = vld [vmem:[%s8428_s1 + $0x16f0] sm:$0xff]  ;;  %v776_v14 = vld [vmem:[%s8428_s1 + $0x16f8] sm:$0xff] }
 0x167   :  { %5175 = vmatpush3.bf16.msra.mxu1 %v5174_v1  ;;  %5145 = vmatprep.subr.bf16.mxu0 %v5144_v2  ;;  %v806_v1 = vld [vmem:[%s8428_s1 + $0x17e8] sm:$0xff]  ;;  %v5162_v2 = vpack.c.bf16 %v756_v58, %v755_v45  ;;  %v5168_v25 = vpack.c.bf16 %v776_v14, %v775_v15  ;;  %v812_v45 = vld [vmem:[%s8428_s1 + $0x1818] sm:$0xff]  ;;  %v843_v58 = vld [vmem:[%s8428_s1 + $0x1910] sm:$0xff] }
 0x168   :  { %5177 = vmatprep.subr.bf16.mxu1 %v5176_v6  ;;  %2844 = vmatprep.mubr.f32.mxu0 %v1146_v10  ;;  %v758_v6 = vld [vmem:[%s8428_s1 + $0x1668] sm:$0xff]  ;;  %v5196_v26 = vpack.c.bf16 %v806_v1, %v805_v0  ;;  %v861_v0 = vld [vmem:[%s8428_s1 + $0x19a0] sm:$0xff]  ;;  %v863_v15 = vld [vmem:[%s8428_s1 + $0x19b0] sm:$0xff] }
 0x169   :  { %2914 = vmatprep.mubr.f32.mxu1 %v1147_v16  ;;  %v790_v10 = vld [vmem:[%s8428_s1 + $0x1768] sm:$0xff]  ;;  %v5166_v21 = vpack.c.bf16 %v758_v6, %v757_v5  ;;  %v5212_v5 = vpack.c.bf16 %v830_v11, %v829_v60  ;;  %v864_v14 = vld [vmem:[%s8428_s1 + $0x19b8] sm:$0xff] }
 0x16a   :  { %5147 = vmatpush3.bf16.msra.mxu0 %v5146_v17  ;;  %v5198_v24 = vpack.c.bf16 %v790_v10, %v789_v8  ;;  %v862_v1 = vld [vmem:[%s8428_s1 + $0x19a8] sm:$0xff]  ;;  %v845_v8 = vld [vmem:[%s8428_s1 + $0x1920] sm:$0xff]  ;;  %v832_v10 = vld [vmem:[%s8428_s1 + $0x18b8] sm:$0xff] }
 0x16b   :  { %5179 = vmatpush3.bf16.msra.mxu1 %v5178_v18  ;;  %5149 = vmatprep.subr.bf16.mxu0 %v5148_v19  ;;  %v807_v18 = vld [vmem:[%s8428_s1 + $0x17f0] sm:$0xff]  ;;  %v808_v19 = vld [vmem:[%s8428_s1 + $0x17f8] sm:$0xff]  ;;  %v814_v6 = vld [vmem:[%s8428_s1 + $0x1828] sm:$0xff] }
 0x16c   :  { %5181 = vmatprep.subr.bf16.mxu1 %v5180_v12  ;;  %v39_v12 = vld [vmem:[%s8427_s0 + $0x60] sm:$0xff] }
 0x16d   :  { %v1148_v27 = vcombine.high %v39_v12, %v39_v12  ;;  %v7976_v49 = vrot.slane %v39_v12, %v5601_v13  ;;  %v848_v12 = vld [vmem:[%s8428_s1 + $0x1938] sm:$0xff] }
 0x16e   :  { %5151 = vmatpush3.bf16.msra.mxu0 %v5150_v31  ;;  %v791_v31 = vld [vmem:[%s8428_s1 + $0x1770] sm:$0xff] }
 0x16f   :  { %5183 = vmatpush3.bf16.msra.mxu1 %v5182_v30  ;;  %5153 = vmatprep.subr.bf16.mxu0 %v5152_v32  ;;  %v5200_v32 = vpack.c.bf16 %v808_v19, %v807_v18  ;;  %v5202_v38 = vpack.c.bf16 %v792_v34, %v791_v31  ;;  %v7985_v53 = vrot.slane %v1148_v27, %v5601_v13  ;;  %v815_v19 = vld [vmem:[%s8428_s1 + $0x1830] sm:$0xff]  ;;  %v818_v34 = vld [vmem:[%s8428_s1 + $0x1848] sm:$0xff]  ;;  %v836_v27 = vld [vmem:[%s8428_s1 + $0x18d8] sm:$0xff] }
 0x170   :  { %5185 = vmatprep.subr.bf16.mxu1 %v5184_v35  ;;  %v857_v35 = vld [vmem:[%s8428_s1 + $0x1980] sm:$0xff]  ;;  %v1163_v33 = vcombine.high %v7976_v49, %v7976_v49 }
 0x172   :  { %5155 = vmatpush3.bf16.msra.mxu0 %v5154_v41  ;;  %v809_v41 = vld [vmem:[%s8428_s1 + $0x1800] sm:$0xff] }
 0x173   :  { %5187 = vmatpush3.bf16.msra.mxu1 %v5186_v43  ;;  %5157 = vmatprep.subr.bf16.mxu0 %v5156_v44  ;;  %v810_v43 = vld [vmem:[%s8428_s1 + $0x1808] sm:$0xff]  ;;  %v841_v44 = vld [vmem:[%s8428_s1 + $0x1900] sm:$0xff] }
 0x174   :  { %5189 = vmatprep.subr.bf16.mxu1 %v5188_v48  ;;  %v828_v48 = vld [vmem:[%s8428_s1 + $0x1898] sm:$0xff]  ;;  %v5206_v54 = vpack.c.bf16 %v810_v43, %v809_v41 }
 0x176   :  { %5159 = vmatpush3.bf16.msra.mxu0 %v5158_v55  ;;  %v5238_v55 = vpack.c.bf16 %v842_v47, %v841_v44  ;;  %v819_v44 = vld [vmem:[%s8428_s1 + $0x1850] sm:$0xff] }
 0x177   :  { %5191 = vmatpush3.bf16.msra.mxu1 %v5190_v57  ;;  %5161 = vmatprep.subr.bf16.mxu0 %v5160_v56  ;;  %v5208_v57 = vpack.c.bf16 %v828_v48, %v827_v36  ;;  %v811_v56 = vld [vmem:[%s8428_s1 + $0x1810] sm:$0xff]  ;;  %v852_v48 = vld [vmem:[%s8428_s1 + $0x1958] sm:$0xff] }
 0x178   :  { %v3726_v7 = vpop.f32.mrb[8].mxu0  ;;  %5193 = vmatprep.subr.bf16.mxu1 %v5192_v51  ;;  %v844_v51 = vld [vmem:[%s8428_s1 + $0x1918] sm:$0xff]  ;;  %v851_v47 = vld [vmem:[%s8428_s1 + $0x1950] sm:$0xff] }
 0x179   :  { %v3727_v16 = vpop.f32.mrb[9].mxu0  ;;  %v3761_v17 = vpop.f32.mrb[8].mxu1 }
 0x17a   :  { %v3728_v9 = vadd.f32 %v3727_v16, %v3726_v7  ;;  %v3762_v20 = vpop.f32.mrb[9].mxu1  ;;  %5163 = vmatpush3.bf16.msra.mxu0 %v5162_v2  ;;  %v1164_v2 = vcombine.high %v7985_v53, %v7985_v53  ;;  %v846_v7 = vld [vmem:[%s8428_s1 + $0x1928] sm:$0xff] }
 0x17b   :  { %v3763_v22 = vadd.f32 %v3762_v20, %v3761_v17  ;;  %5195 = vmatpush3.bf16.msra.mxu1 %v5194_v3  ;;  %5165 = vmatprep.subr.bf16.mxu0 %v5164_v4  ;;  %v5210_v3 = vpack.c.bf16 %v812_v45, %v811_v56  ;;  %v5242_v4 = vpack.c.bf16 %v844_v51, %v843_v58  ;;  %v847_v20 = vld [vmem:[%s8428_s1 + $0x1930] sm:$0xff]  ;;  %v821_v58 = vld [vmem:[%s8428_s1 + $0x1860] sm:$0xff] }
 0x17c   :  { %v1867_v30 = vadd.f32 %v3728_v9, %v7745_v50  ;;  %5197 = vmatprep.subr.bf16.mxu1 %v5196_v26  ;;  %v858_v50 = vld [vmem:[%s8428_s1 + $0x1988] sm:$0xff]  ;;  %v831_v26 = vld [vmem:[%s8428_s1 + $0x18b0] sm:$0xff]  ;;  %v5246_v17 = vpack.c.bf16 %v846_v7, %v845_v8  ;;  %v816_v9 = vld [vmem:[%s8428_s1 + $0x1838] sm:$0xff]  ;;  %v5250_v31 = vpack.c.bf16 %v848_v12, %v847_v20  ;;  %v5258_v56 = vpack.c.bf16 %v852_v48, %v851_v47 }
 0x17d   :  { %v5236_v46 = vpack.c.bf16 %v858_v50, %v857_v35  ;;  %v5216_v18 = vpack.c.bf16 %v832_v10, %v831_v26  ;;  %v5218_v29 = vpack.c.bf16 %v816_v9, %v815_v19  ;;  %v850_v35 = vld [vmem:[%s8428_s1 + $0x1948] sm:$0xff]  ;;  %v835_v50 = vld [vmem:[%s8428_s1 + $0x18d0] sm:$0xff]  ;;  %v5228_v45 = vpack.c.bf16 %v838_v39, %v837_v62  ;;  %v853_v51 = vld [vmem:[%s8428_s1 + $0x1960] sm:$0xff] }
 0x17e   :  { %v7955_v52 = vadd.f32 %v3763_v22, %v1867_v30  ;;  %5167 = vmatpush3.bf16.msra.mxu0 %v5166_v21  ;;  %v5248_v21 = vpack.c.bf16 %v864_v14, %v863_v15  ;;  %v833_v22 = vld [vmem:[%s8428_s1 + $0x18c0] sm:$0xff]  ;;  %v5254_v41 = vpack.c.bf16 %v850_v35, %v849_v23  ;;  %v5224_v43 = vpack.c.bf16 %v836_v27, %v835_v50  ;;  %v824_v15 = vld [vmem:[%s8428_s1 + $0x1878] sm:$0xff]  ;;  %v855_v14 = vld [vmem:[%s8428_s1 + $0x1970] sm:$0xff] }
 0x17f   :  { %5199 = vmatpush3.bf16.msra.mxu1 %v5198_v24  ;;  %5169 = vmatprep.subr.bf16.mxu0 %v5168_v25  ;;  %v834_v24 = vld [vmem:[%s8428_s1 + $0x18c8] sm:$0xff]  ;;  %v865_v25 = vld [vmem:[%s8428_s1 + $0x19c0] sm:$0xff]  ;;  %v875_v27 = vld [vmem:[%s8428_s1 + $0x1a10] sm:$0xff] }
 0x180   :  { %5201 = vmatprep.subr.bf16.mxu1 %v5200_v32  ;;  %v5220_v30 = vpack.c.bf16 %v834_v24, %v833_v22  ;;  %v817_v32 = vld [vmem:[%s8428_s1 + $0x1840] sm:$0xff]  ;;  %v5252_v42 = vpack.c.bf16 %v866_v28, %v865_v25  ;;  %v890_v9 = vld [vmem:[%s8428_s1 + $0x1a88] sm:$0xff] }
 0x181   :  { %v889_v19 = vld [vmem:[%s8428_s1 + $0x1a80] sm:$0xff]  ;;  %v40_v20 = vld [vmem:[%s8427_s0 + $0x68] sm:$0xff] }
 0x182   :  { %5171 = vmatpush3.bf16.msra.mxu0 %v5170_v37  ;;  %v867_v37 = vld [vmem:[%s8428_s1 + $0x19d0] sm:$0xff]  ;;  %v5268_v24 = vpack.c.bf16 %v890_v9, %v889_v19  ;;  %v873_v25 = vld [vmem:[%s8428_s1 + $0x1a00] sm:$0xff]  ;;  %v874_v28 = vld [vmem:[%s8428_s1 + $0x1a08] sm:$0xff] }
 0x183   :  { %5203 = vmatpush3.bf16.msra.mxu1 %v5202_v38  ;;  %5205 = vmatprep.subr.bf16.mxu0 %v5204_v40  ;;  %v868_v38 = vld [vmem:[%s8428_s1 + $0x19d8] sm:$0xff]  ;;  %v5222_v40 = vpack.c.bf16 %v818_v34, %v817_v32  ;;  %v8180_v34 = vrot.slane %v40_v20, %v5601_v13  ;;  %v877_v62 = vld [vmem:[%s8428_s1 + $0x1a20] sm:$0xff] }
 0x184   :  { %5237 = vmatprep.subr.bf16.mxu1 %v5236_v46  ;;  %v820_v46 = vld [vmem:[%s8428_s1 + $0x1858] sm:$0xff]  ;;  %v5256_v36 = vpack.c.bf16 %v868_v38, %v867_v37  ;;  %v907_v38 = vld [vmem:[%s8428_s1 + $0x1b10] sm:$0xff]  ;;  %v909_v39 = vld [vmem:[%s8428_s1 + $0x1b20] sm:$0xff] }
 0x185   :  { %2845 = vmatmul.mubr.f32.vlgmr.msra.gmra.mrb[22].mxu0 %v7766_v61  ;;  %v813_v61 = vld [vmem:[%s8428_s1 + $0x1820] sm:$0xff]  ;;  %v892_v32 = vld [vmem:[%s8428_s1 + $0x1a98] sm:$0xff] }
 0x186   :  { %2915 = vmatmul.mubr.f32.vlgmr.msra.gmra.mrb[22].mxu1 %v7775_v63  ;;  %5207 = vmatpush3.bf16.msra.mxu0 %v5206_v54  ;;  %v5244_v63 = vpack.c.bf16 %v862_v1, %v861_v0  ;;  %v5214_v16 = vpack.c.bf16 %v814_v6, %v813_v61  ;;  %v869_v54 = vld [vmem:[%s8428_s1 + $0x19e0] sm:$0xff]  ;;  %v839_v0 = vld [vmem:[%s8428_s1 + $0x18f0] sm:$0xff]  ;;  %v840_v1 = vld [vmem:[%s8428_s1 + $0x18f8] sm:$0xff] }
 0x187   :  { %5239 = vmatpush3.bf16.msra.mxu1 %v5238_v55  ;;  %5209 = vmatprep.subr.bf16.mxu0 %v5208_v57  ;;  %v870_v55 = vld [vmem:[%s8428_s1 + $0x19e8] sm:$0xff]  ;;  %v5226_v57 = vpack.c.bf16 %v820_v46, %v819_v44  ;;  %v5232_v10 = vpack.c.bf16 %v840_v1, %v839_v0  ;;  %v876_v37 = vld [vmem:[%s8428_s1 + $0x1a18] sm:$0xff]  ;;  %v1180_v44 = vcombine.high %v8180_v34, %v8180_v34 }
 0x188   :  { %5241 = vmatprep.subr.bf16.mxu1 %v5240_v59  ;;  %2984 = vmatprep.mubr.f32.mxu0 %v1163_v33  ;;  %v822_v59 = vld [vmem:[%s8428_s1 + $0x1868] sm:$0xff]  ;;  %v5260_v11 = vpack.c.bf16 %v870_v55, %v869_v54  ;;  %v5274_v47 = vpack.c.bf16 %v876_v37, %v875_v27  ;;  %v895_v54 = vld [vmem:[%s8428_s1 + $0x1ab0] sm:$0xff]  ;;  %v896_v55 = vld [vmem:[%s8428_s1 + $0x1ab8] sm:$0xff] }
 0x189   :  { %3054 = vmatprep.mubr.f32.mxu1 %v1164_v2  ;;  %v854_v33 = vld [vmem:[%s8428_s1 + $0x1968] sm:$0xff]  ;;  %v5230_v8 = vpack.c.bf16 %v822_v59, %v821_v58  ;;  %v879_v58 = vld [vmem:[%s8428_s1 + $0x1a30] sm:$0xff]  ;;  %v880_v59 = vld [vmem:[%s8428_s1 + $0x1a38] sm:$0xff] }
 0x18a   :  { %5211 = vmatpush3.bf16.msra.mxu0 %v5210_v3  ;;  %v5262_v26 = vpack.c.bf16 %v854_v33, %v853_v51  ;;  %v911_v51 = vld [vmem:[%s8428_s1 + $0x1b30] sm:$0xff]  ;;  %v898_v33 = vld [vmem:[%s8428_s1 + $0x1ac8] sm:$0xff]  ;;  %v5282_v0 = vpack.c.bf16 %v880_v59, %v879_v58 }
 0x18b   :  { %5243 = vmatpush3.bf16.msra.mxu1 %v5242_v4  ;;  %5213 = vmatprep.subr.bf16.mxu0 %v5212_v5  ;;  %v871_v4 = vld [vmem:[%s8428_s1 + $0x19f0] sm:$0xff]  ;;  %v872_v5 = vld [vmem:[%s8428_s1 + $0x19f8] sm:$0xff] }
 0x18c   :  { %5245 = vmatprep.subr.bf16.mxu1 %v5244_v63  ;;  %v823_v63 = vld [vmem:[%s8428_s1 + $0x1870] sm:$0xff] }
 0x18d   :  { %v5234_v22 = vpack.c.bf16 %v824_v15, %v823_v63  ;;  %v884_v15 = vld [vmem:[%s8428_s1 + $0x1a58] sm:$0xff] }
 0x18e   :  { %5215 = vmatpush3.bf16.msra.mxu0 %v5214_v16  ;;  %v856_v16 = vld [vmem:[%s8428_s1 + $0x1978] sm:$0xff] }
 0x18f   :  { %5247 = vmatpush3.bf16.msra.mxu1 %v5246_v17  ;;  %5217 = vmatprep.subr.bf16.mxu0 %v5216_v18  ;;  %v5264_v18 = vpack.c.bf16 %v872_v5, %v871_v4  ;;  %v882_v4 = vld [vmem:[%s8428_s1 + $0x1a48] sm:$0xff]  ;;  %v913_v5 = vld [vmem:[%s8428_s1 + $0x1b40] sm:$0xff] }
 0x190   :  { %5249 = vmatprep.subr.bf16.mxu1 %v5248_v21  ;;  %v1165_v21 = vcombine.high %v40_v20, %v40_v20 }
 0x192   :  { %5219 = vmatpush3.bf16.msra.mxu0 %v5218_v29  ;;  %v905_v29 = vld [vmem:[%s8428_s1 + $0x1b00] sm:$0xff]  ;;  %v8183_v23 = vrot.slane %v1165_v21, %v5601_v13  ;;  %v5406_v13 = vmov 0.0|0.0  }
 0x193   :  { %5251 = vmatpush3.bf16.msra.mxu1 %v5250_v31  ;;  %5221 = vmatprep.subr.bf16.mxu0 %v5220_v30  ;;  %v906_v31 = vld [vmem:[%s8428_s1 + $0x1b08] sm:$0xff]  ;;  %v891_v30 = vld [vmem:[%s8428_s1 + $0x1a90] sm:$0xff]  ;;  %v885_v21 = vld [vmem:[%s8428_s1 + $0x1a60] sm:$0xff] }
 0x194   :  { %5253 = vmatprep.subr.bf16.mxu1 %v5252_v42  ;;  %v5270_v42 = vpack.c.bf16 %v874_v28, %v873_v25  ;;  %v5301_v35 = vpack.c.bf16 %v906_v31, %v905_v29  ;;  %v5272_v50 = vpack.c.bf16 %v892_v32, %v891_v30  ;;  %v1181_v46 = vcombine.high %v8183_v23, %v8183_v23  ;;  %v918_v25 = vld [vmem:[%s8428_s1 + $0x1b68] sm:$0xff]  ;;  %v903_v28 = vld [vmem:[%s8428_s1 + $0x1af0] sm:$0xff]  ;;  %v904_v29 = vld [vmem:[%s8428_s1 + $0x1af8] sm:$0xff] }
 0x195   :  { %v5296_v37 = vpack.c.bf16 %v904_v29, %v903_v28 }
 0x196   :  { %5223 = vmatpush3.bf16.msra.mxu0 %v5222_v40  ;;  %v908_v40 = vld [vmem:[%s8428_s1 + $0x1b18] sm:$0xff] }
 0x197   :  { %5255 = vmatpush3.bf16.msra.mxu1 %v5254_v41  ;;  %5225 = vmatprep.subr.bf16.mxu0 %v5224_v43  ;;  %v893_v41 = vld [vmem:[%s8428_s1 + $0x1aa0] sm:$0xff]  ;;  %v894_v43 = vld [vmem:[%s8428_s1 + $0x1aa8] sm:$0xff] }
 0x198   :  { %v3796_v60 = vpop.f32.mrb[10].mxu0  ;;  %5257 = vmatprep.subr.bf16.mxu1 %v5256_v36  ;;  %v5304_v36 = vpack.c.bf16 %v908_v40, %v907_v38  ;;  %v5276_v48 = vpack.c.bf16 %v894_v43, %v893_v41  ;;  %v887_v38 = vld [vmem:[%s8428_s1 + $0x1a70] sm:$0xff]  ;;  %v888_v40 = vld [vmem:[%s8428_s1 + $0x1a78] sm:$0xff] }
 0x199   :  { %v3797_v2 = vpop.f32.mrb[11].mxu0  ;;  %v3831_v3 = vpop.f32.mrb[10].mxu1  ;;  %v919_v43 = vld [vmem:[%s8428_s1 + $0x1b70] sm:$0xff] }
 0x19a   :  { %v3798_v61 = vadd.f32 %v3797_v2, %v3796_v60  ;;  %v3832_v6 = vpop.f32.mrb[11].mxu1  ;;  %5227 = vmatpush3.bf16.msra.mxu0 %v5226_v57  ;;  %v912_v60 = vld [vmem:[%s8428_s1 + $0x1b38] sm:$0xff] }
 0x19b   :  { %v3833_v7 = vadd.f32 %v3832_v6, %v3831_v3  ;;  %5259 = vmatpush3.bf16.msra.mxu1 %v5258_v56  ;;  %5229 = vmatprep.subr.bf16.mxu0 %v5228_v45  ;;  %v5280_v45 = vpack.c.bf16 %v896_v55, %v895_v54  ;;  %v5310_v1 = vpack.c.bf16 %v912_v60, %v911_v51  ;;  %v881_v3 = vld [vmem:[%s8428_s1 + $0x1a40] sm:$0xff]  ;;  %v899_v6 = vld [vmem:[%s8428_s1 + $0x1ad0] sm:$0xff] }
 0x19c   :  { %v2007_v17 = vadd.f32 %v3798_v61, %v7955_v52  ;;  %5261 = vmatprep.subr.bf16.mxu1 %v5260_v11  ;;  %v5266_v52 = vpack.c.bf16 %v856_v16, %v855_v14  ;;  %v897_v11 = vld [vmem:[%s8428_s1 + $0x1ac0] sm:$0xff]  ;;  %v914_v61 = vld [vmem:[%s8428_s1 + $0x1b48] sm:$0xff]  ;;  %v5286_v63 = vpack.c.bf16 %v882_v4, %v881_v3  ;;  %v915_v14 = vld [vmem:[%s8428_s1 + $0x1b50] sm:$0xff] }
 0x19d   :  { %v5284_v2 = vpack.c.bf16 %v898_v33, %v897_v11  ;;  %v916_v16 = vld [vmem:[%s8428_s1 + $0x1b58] sm:$0xff] }
 0x19e   :  { %v8159_v12 = vadd.f32 %v3833_v7, %v2007_v17  ;;  %5231 = vmatpush3.bf16.msra.mxu0 %v5230_v8  ;;  %v900_v8 = vld [vmem:[%s8428_s1 + $0x1ad8] sm:$0xff]  ;;  %v5313_v7 = vpack.c.bf16 %v914_v61, %v913_v5  ;;  %v901_v17 = vld [vmem:[%s8428_s1 + $0x1ae0] sm:$0xff]  ;;  %v5316_v9 = vpack.c.bf16 %v916_v16, %v915_v14  ;;  %v3211_v16 = vld [vmem:[%s8430_s3 + $0x50] sm:$0xff] }
 0x19f   :  { %5263 = vmatpush3.bf16.msra.mxu1 %v5262_v26  ;;  %5233 = vmatprep.subr.bf16.mxu0 %v5232_v10  ;;  %v5288_v26 = vpack.c.bf16 %v900_v8, %v899_v6  ;;  %v883_v10 = vld [vmem:[%s8428_s1 + $0x1a50] sm:$0xff]  ;;  %v3204_v4 = vld [vmem:[%s8430_s3 + $0x18] sm:$0xff]  ;;  %v3205_v61 = vld [vmem:[%s8430_s3 + $0x20] sm:$0xff] }
 0x1a0   :  { %5265 = vmatprep.subr.bf16.mxu1 %v5264_v18  ;;  %v902_v18 = vld [vmem:[%s8428_s1 + $0x1ae8] sm:$0xff]  ;;  %v5290_v19 = vpack.c.bf16 %v884_v15, %v883_v10  ;;  %v3209_v10 = vld [vmem:[%s8430_s3 + $0x40] sm:$0xff] }
 0x1a1   :  { %v5292_v20 = vpack.c.bf16 %v902_v18, %v901_v17  ;;  %v3206_v6 = vld [vmem:[%s8430_s3 + $0x28] sm:$0xff]  ;;  %v3212_v17 = vld [vmem:[%s8430_s3 + $0x58] sm:$0xff] }
 0x1a2   :  { %5235 = vmatpush3.bf16.msra.mxu0 %v5234_v22  ;;  %v886_v22 = vld [vmem:[%s8428_s1 + $0x1a68] sm:$0xff]  ;;  %v5334_v8 = vpack.c.bf16 %v3206_v6, %v3205_v61 }
 0x1a3   :  { %5267 = vmatpush3.bf16.msra.mxu1 %v5266_v52  ;;  %5269 = vmatprep.subr.bf16.mxu0 %v5268_v24  ;;  %v917_v52 = vld [vmem:[%s8428_s1 + $0x1b60] sm:$0xff]  ;;  %v3210_v15 = vld [vmem:[%s8430_s3 + $0x48] sm:$0xff] }
 0x1a4   :  { %5300 = vmatprep.subr.bf16.mxu1 %v5406_v13  ;;  %v5319_v27 = vpack.c.bf16 %v918_v25, %v917_v52  ;;  %v5340_v14 = vpack.c.bf16 %v3210_v15, %v3209_v10  ;;  %v3214_v25 = vld [vmem:[%s8430_s3 + $0x68] sm:$0xff] }
 0x1a5   :  { %2985 = vmatmul.mubr.f32.vlgmr.msra.gmra.mrb[24].mxu0 %v7976_v49  ;;  %v878_v49 = vld [vmem:[%s8428_s1 + $0x1a28] sm:$0xff] }
 0x1a6   :  { %3055 = vmatmul.mubr.f32.vlgmr.msra.gmra.mrb[24].mxu1 %v7985_v53  ;;  %5271 = vmatpush3.bf16.msra.mxu0 %v5270_v42  ;;  %v910_v53 = vld [vmem:[%s8428_s1 + $0x1b28] sm:$0xff]  ;;  %v5278_v57 = vpack.c.bf16 %v878_v49, %v877_v62 }
 0x1a7   :  { %5302 = vmatpush1.bf16.msra.mxu1 %v5301_v35  ;;  %5273 = vmatprep.subr.bf16.mxu0 %v5272_v50  ;;  %v5307_v56 = vpack.c.bf16 %v910_v53, %v909_v39  ;;  %v5294_v35 = vpack.c.bf16 %v886_v22, %v885_v21 }
 0x1a8   :  { %5303 = vmatprep.subr.bf16.mxu1 %v5406_v13  ;;  %3124 = vmatprep.mubr.f32.mxu0 %v1180_v44  ;;  %v920_v44 = vld [vmem:[%s8428_s1 + $0x1b78] sm:$0xff] }
 0x1a9   :  { %3408 = vmatprep.mubr.msk.f32.mxu1 %vm1237_vm0, %v1181_v46 }
 0x1aa   :  { %5275 = vmatpush3.bf16.msra.mxu0 %v5274_v47  ;;  %v5298_v47 = vpack.c.bf16 %v888_v40, %v887_v38  ;;  %v3302_v40 = vld [vmem:[%s8432_s5 + $0x20] sm:$0xff] }
 0x1ab   :  { %5305 = vmatpush1.bf16.msra.mxu1 %v5304_v36  ;;  %5277 = vmatprep.subr.bf16.mxu0 %v5276_v48  ;;  %v5322_v36 = vpack.c.bf16 %v920_v44, %v919_v43  ;;  %v922_v48 = vld [vmem:[%s8428_s1 + $0x1b88] sm:$0xff] }
 0x1ac   :  { %5306 = vmatprep.subr.bf16.mxu1 %v5406_v13 }
 0x1ae   :  { %5279 = vmatpush3.bf16.msra.mxu0 %v5278_v57 }
 0x1af   :  { %5308 = vmatpush1.bf16.msra.mxu1 %v5307_v56  ;;  %5281 = vmatprep.subr.bf16.mxu0 %v5280_v45 }
 0x1b0   :  { %5309 = vmatprep.subr.bf16.mxu1 %v5406_v13 }
 0x1b2   :  { %5283 = vmatpush3.bf16.msra.mxu0 %v5282_v0 }
 0x1b3   :  { %5311 = vmatpush1.bf16.msra.mxu1 %v5310_v1  ;;  %5285 = vmatprep.subr.bf16.mxu0 %v5284_v2  ;;  %v3202_v1 = vld [vmem:[%s8430_s3 + $0x8] sm:$0xff]  ;;  %v3203_v2 = vld [vmem:[%s8430_s3 + $0x10] sm:$0xff] }
 0x1b4   :  { %5312 = vmatprep.subr.bf16.mxu1 %v5406_v13  ;;  %v5331_v5 = vpack.c.bf16 %v3204_v4, %v3203_v2 }
 0x1b6   :  { %5287 = vmatpush3.bf16.msra.mxu0 %v5286_v63  ;;  %v3207_v63 = vld [vmem:[%s8430_s3 + $0x30] sm:$0xff] }
 0x1b7   :  { %5314 = vmatpush1.bf16.msra.mxu1 %v5313_v7  ;;  %5289 = vmatprep.subr.bf16.mxu0 %v5288_v26  ;;  %v3208_v7 = vld [vmem:[%s8430_s3 + $0x38] sm:$0xff] }
 0x1b8   :  { %v3866_v24 = vpop.f32.mrb[12].mxu0  ;;  %5315 = vmatprep.subr.bf16.mxu1 %v5406_v13  ;;  %v5337_v26 = vpack.c.bf16 %v3208_v7, %v3207_v63  ;;  %v3305_v63 = vld [vmem:[%s8432_s5 + $0x38] sm:$0xf] }
 0x1b9   :  { %v3867_v31 = vpop.f32.mrb[13].mxu0  ;;  %v3901_v30 = vpop.f32.mrb[12].mxu1 }
 0x1ba   :  { %v3868_v32 = vadd.f32 %v3867_v31, %v3866_v24  ;;  %v3902_v42 = vpop.f32.mrb[13].mxu1  ;;  %5291 = vmatpush3.bf16.msra.mxu0 %v5290_v19  ;;  %v5343_v19 = vpack.c.bf16 %v3212_v17, %v3211_v16  ;;  %v3213_v24 = vld [vmem:[%s8430_s3 + $0x60] sm:$0xff] }
 0x1bb   :  { %v3903_v50 = vadd.f32 %v3902_v42, %v3901_v30  ;;  %5317 = vmatpush1.bf16.msra.mxu1 %v5316_v9  ;;  %5293 = vmatprep.subr.bf16.mxu0 %v5292_v20  ;;  %v5346_v29 = vpack.c.bf16 %v3214_v25, %v3213_v24  ;;  %v3215_v30 = vld [vmem:[%s8430_s3 + $0x70] sm:$0xff]  ;;  %v3298_v42 = vld [vmem:[%s8432_s5] sm:$0xff] }
 0x1bc   :  { %v2147_v41 = vadd.f32 %v3868_v32, %v8159_v12  ;;  %5318 = vmatprep.subr.bf16.mxu1 %v5406_v13  ;;  %v921_v12 = vld [vmem:[%s8428_s1 + $0x1b80] sm:$0xff]  ;;  %v5407_v32 = vmov 0.0  }
 0x1bd   :  { %v5325_v62 = vpack.c.bf16 %v922_v48, %v921_v12  ;;  %v3411_v17 = vld [vmem:[%s8433_s6] ss:$0 sm:$0xff] }
 0x1be   :  { %v2217_v46 = vadd.f32 %v3903_v50, %v2147_v41  ;;  %5295 = vmatpush3.bf16.msra.mxu0 %v5294_v35  ;;  %v3299_v35 = vld [vmem:[%s8432_s5 + $0x8] sm:$0xff]  ;;  %v3300_v50 = vld [vmem:[%s8432_s5 + $0x10] sm:$0xff] }
 0x1bf   :  { %5320 = vmatpush1.bf16.msra.mxu1 %v5319_v27  ;;  %5297 = vmatprep.subr.bf16.mxu0 %v5296_v37  ;;  %v5349_v27 = vpack.c.bf16 %v3299_v35, %v3298_v42  ;;  %v3301_v37 = vld [vmem:[%s8432_s5 + $0x18] sm:$0xff]  ;;  %v3303_v41 = vld [vmem:[%s8432_s5 + $0x28] sm:$0xff] }
 0x1c0   :  { %5321 = vmatprep.subr.bf16.mxu1 %v5406_v13  ;;  %v5352_v38 = vpack.c.bf16 %v3301_v37, %v3300_v50  ;;  %v5355_v43 = vpack.c.bf16 %v3303_v41, %v3302_v40 }
 0x1c2   :  { %5299 = vmatpush3.bf16.msra.mxu0 %v5298_v47 }
 0x1c3   :  { %5323 = vmatpush1.bf16.msra.mxu1 %v5322_v36  ;;  %5327 = vmatprep.subr.bf16.mxu0 %v5406_v13 }
 0x1c4   :  { %5324 = vmatprep.subr.bf16.mxu1 %v5406_v13 }
 0x1c5   :  { %3125 = vmatmul.mubr.f32.vlgmr.msra.gmra.mrb[26].mxu0 %v8180_v34 }
 0x1c6   :  { %4414 = vmatprep.mubr.msk.f32.mxu0 %vm5408_vm1, %v5407_v32 }
 0x1c7   :  { %5326 = vmatpush1.bf16.msra.mxu1 %v5325_v62 }
 0x1c8   :  { %5348 = vmatprep.subr.bf16.mxu1 %v5406_v13 }
 0x1ca   :  { %3195 = vmatmul.mubr.f32.vlgmr.msra.gmra.mrb[26].mxu1 %v8183_v23  ;;  %v3201_v23 = vld [vmem:[%s8430_s3] sm:$0xff] }
 0x1cb   :  { %v5328_v3 = vpack.c.bf16 %v3202_v1, %v3201_v23  ;;  %4433 = vmatprep.mubr.msk.f32.mxu1 %vm5408_vm1, %v5407_v32  ;;  %5350 = vmatpush3.bf16.msra.mxu1 %v5349_v27 }
 0x1cc   :  { %5351 = vmatprep.subr.bf16.mxu1 %v5406_v13 }
 0x1cd   :  { %5329 = vmatpush3.bf16.msra.mxu0 %v5328_v3 }
 0x1ce   :  { %5330 = vmatprep.subr.bf16.mxu0 %v5406_v13 }
 0x1cf   :  { %5353 = vmatpush3.bf16.msra.mxu1 %v5352_v38 }
 0x1d0   :  { %5354 = vmatprep.subr.bf16.mxu1 %v5406_v13 }
 0x1d1   :  { %5332 = vmatpush3.bf16.msra.mxu0 %v5331_v5 }
 0x1d2   :  { %5333 = vmatprep.subr.bf16.mxu0 %v5406_v13 }
 0x1d3   :  { %5356 = vmatpush3.bf16.msra.mxu1 %v5355_v43 }
 0x1d4   :  { %5357 = vmatprep.subr.bf16.mxu1 %v5406_v13 }
 0x1d5   :  { %5335 = vmatpush3.bf16.msra.mxu0 %v5334_v8  ;;  %v3304_v8 = vld [vmem:[%s8432_s5 + $0x30] sm:$0xff]  ;;  %s5410_s5 = smov [#allocation2]  }
 0x1d6   :  { %5336 = vmatprep.subr.bf16.mxu0 %v5406_v13  ;;  %v5358_v7 = vpack.c.bf16 %v3305_v63, %v3304_v8  ;;  %s3399_s8 = sshll.u32 %s5410_s5, 4  ;;  %s3400_s8 = int_to_ptr.vmem [resolvable:$true] %s3399_s8 }
 0x1d7   :  { %s5381_s9 = scalar_lea.vmem %s3400_s8, 32  ;;  %p5386_p1 = scmp.lt.s32.totalorder %s3400_s8, %s3400_s8 }
 0x1d8   :  { %v3936_v49 = vpop.f32.mrb[14].mxu0  ;;  %5360 = vmatpush3.bf16.msk.msra.mxu1 %vm5359_vm5, %v5358_v7  ;;  %p5382_p0 = scmp.ne.s32.totalorder %s3400_s8, %s5381_s9  ;;  %p5387_p2 = scmp.lt.s32.totalorder %s5381_s9, %s5381_s9 }
 0x1d9   :  { %v3937_v39 = vpop.f32.mrb[15].mxu0  ;;  %v3971_v53 = vpop.f32.mrb[14].mxu1  ;;  %5338 = vmatpush3.bf16.msra.mxu0 %v5337_v26  ;;  %v3409_v26 = vld [vmem:[%s8431_s4] ss:$0 sm:$0xff] }
 0x1da   :  { %v3938_v54 = vadd.f32 %v3937_v39, %v3936_v49  ;;  %v3972_v55 = vpop.f32.mrb[15].mxu1  ;;  %5339 = vmatprep.subr.bf16.mxu0 %v5406_v13  ;;  %p5388_p3 = por %p5387_p2, %p5386_p1 }
 0x1db   :  { %v3973_v57 = vadd.f32 %v3972_v55, %v3971_v53 }
 0x1dc   :  { %v2287_v56 = vadd.f32 %v3938_v54, %v2217_v46  ;;  %p5389_p4 = pnand %p5388_p3, %p5382_p0 }
 0x1dd   :  { %5341 = vmatpush3.bf16.msra.mxu0 %v5340_v14 }
 0x1de   :  { %v2357_v45 = vadd.f32 %v3973_v57, %v2287_v56  ;;  %5342 = vmatprep.subr.bf16.mxu0 %v5406_v13 }
 0x1e1   :  { %5344 = vmatpush3.bf16.msra.mxu0 %v5343_v19 }
 0x1e2   :  { %5345 = vmatprep.subr.bf16.mxu0 %v5406_v13 }
 0x1e5   :  { %5347 = vmatpush3.bf16.msra.mxu0 %v5346_v29 }
 0x1e6   :  { %4412 = vmatprep.subr.mxu0 %v5407_v32 }
 0x1e9   :  { %4413 = vmatpush3.msra.mxu0 %v3215_v30 }
 0x1f8   :  { %v4006_v58 = vpop.f32.mrb[16].mxu0 }
 0x1f9   :  { %v4007_v59 = vpop.f32.mrb[17].mxu0  ;;  %v4041_v51 = vpop.f32.mrb[16].mxu1 }
 0x1fa   :  { %v4008_v60 = vadd.f32 %v4007_v59, %v4006_v58  ;;  %v4042_v11 = vpop.f32.mrb[17].mxu1 }
 0x1fb   :  { %v4043_v33 = vadd.f32 %v4042_v11, %v4041_v51 }
 0x1fc   :  { %v2427_v34 = vadd.f32 %v4008_v60, %v2357_v45 }
 0x1fe   :  { %v2497_v0 = vadd.f32 %v4043_v33, %v2427_v34 }
 0x218   :  { %v4076_v18 = vpop.f32.mrb[18].mxu0 }
 0x219   :  { %v4077_v9 = vpop.f32.mrb[19].mxu0  ;;  %v4111_v20 = vpop.f32.mrb[18].mxu1 }
 0x21a   :  { %v4078_v21 = vadd.f32 %v4077_v9, %v4076_v18  ;;  %v4112_v22 = vpop.f32.mrb[19].mxu1 }
 0x21b   :  { %v4113_v52 = vadd.f32 %v4112_v22, %v4111_v20 }
 0x21c   :  { %v2567_v28 = vadd.f32 %v4078_v21, %v2497_v0 }
 0x21e   :  { %v2637_v31 = vadd.f32 %v4113_v52, %v2567_v28 }
 0x238   :  { %v4146_v44 = vpop.f32.mrb[20].mxu0 }
 0x239   :  { %v4147_v46 = vpop.f32.mrb[21].mxu0  ;;  %v4181_v47 = vpop.f32.mrb[20].mxu1 }
 0x23a   :  { %v4148_v36 = vadd.f32 %v4147_v46, %v4146_v44  ;;  %v4182_v12 = vpop.f32.mrb[21].mxu1 }
 0x23b   :  { %v4183_v48 = vadd.f32 %v4182_v12, %v4181_v47 }
 0x23c   :  { %v2707_v62 = vadd.f32 %v4148_v36, %v2637_v31 }
 0x23e   :  { %v2777_v49 = vadd.f32 %v4183_v48, %v2707_v62 }
 0x258   :  { %v4216_v39 = vpop.f32.mrb[22].mxu0 }
 0x259   :  { %v4217_v53 = vpop.f32.mrb[23].mxu0  ;;  %v4251_v54 = vpop.f32.mrb[22].mxu1 }
 0x25a   :  { %v4218_v55 = vadd.f32 %v4217_v53, %v4216_v39  ;;  %v4252_v57 = vpop.f32.mrb[23].mxu1 }
 0x25b   :  { %v4253_v56 = vadd.f32 %v4252_v57, %v4251_v54 }
 0x25c   :  { %v2847_v45 = vadd.f32 %v4218_v55, %v2777_v49 }
 0x25e   :  { %v2917_v58 = vadd.f32 %v4253_v56, %v2847_v45 }
 0x278   :  { %v4286_v59 = vpop.f32.mrb[24].mxu0 }
 0x279   :  { %v4287_v51 = vpop.f32.mrb[25].mxu0  ;;  %v4321_v60 = vpop.f32.mrb[24].mxu1 }
 0x27a   :  { %v4288_v13 = vadd.f32 %v4287_v51, %v4286_v59  ;;  %v4322_v11 = vpop.f32.mrb[25].mxu1 }
 0x27b   :  { %v4323_v33 = vadd.f32 %v4322_v11, %v4321_v60 }
 0x27c   :  { %v2987_v34 = vadd.f32 %v4288_v13, %v2917_v58 }
 0x27e   :  { %v3057_v0 = vadd.f32 %v4323_v33, %v2987_v34 }
 0x298   :  { %v4356_v23 = vpop.f32.mrb[26].mxu0 }
 0x299   :  { %v4357_v1 = vpop.f32.mrb[27].mxu0 }
 0x29a   :  { %v4358_v2 = vadd.f32 %v4357_v1, %v4356_v23 }
 0x29c   :  { %v3127_v3 = vadd.f32 %v4358_v2, %v3057_v0 }
 0x29d   :  { %v3196_v4 = vpop.f32.mrb[26].mxu1 }
 0x29e   :  { %v3197_v5 = vadd.f32 %v3196_v4, %v3127_v3  ;;  %v3198_v61 = vpop.f32.mrb[27].mxu1 }
 0x2a0   :  { %v3200_v6 = vmax.f32 %v3197_v5, 0.0 }
 0x2a2   :  { %4415 = vmatmul.mubr.msk.f32.vlgmr.msra.gmra.mrb[28].mxu0 %vm3223_vm2, %v3200_v6 }
 0x375   :  { %v3293_v10 = vpop.f32.mrb[28].mxu0 }
 0x376   :  { %v3294_v15 = vadd.f32 %v3409_v26, %v3293_v10  ;;  %v4416_v14 = vpop.f32.mrb[29].mxu0 }
 0x378   :  { %v3297_v16 = vmax.f32 %v3294_v15, 0.0 }
 0x37a   :  { %4434 = vmatmul.mubr.msk.f32.vlgmr.msra.gmra.mrb[28].mxu1 %vm3313_vm6, %v3297_v16 }
 0x44d   :  { %v3387_v18 = vpop.f32.mrb[28].mxu1 }
 0x44e   :  { %v3388_v19 = vadd.f32 %v3411_v17, %v3387_v18  ;;  %v4435_v9 = vpop.f32.mrb[29].mxu1 }
 0x450   :  { %3392 = vst.msk [vmem:[#allocation2] sm:$0x3] %vm3391_vm7, %v3388_v19 }
 0x451   :  { %5392 = shalt.err (!%p5389_p4)
}
 0x452   :  { %s5393_s1 = scalar_lea.hbm %s8434_s7, 32 }
 0x453   :  { %p5394_p5 = scmp.ne.s32.totalorder %s8434_s7, %s5393_s1  ;;  %p5397_p6 = scmp.lt.u32.totalorder %s5393_s1, %s8434_s7 }
 0x455   :  { %p5399_p7 = pnand %p5397_p6, %p5394_p5 }
 0x457   :  { %5402 = shalt.err (!%p5399_p7)
}
 0x458   :  { %3402 = dma.vmem_to_hbm [thread:$0]  %s3400_s8, 32, %s8434_s7, [#allocation3]  }
 0x459   :  { %5403 = dma.done.wait [#allocation3], 32  }
 0x45a   :  { %5404 = vsyncadd [#allocation3], 4294967264 }
 0x45b   :  { %3406 = vsyncpa [#allocation3], 1 }

</bundles_post_ra>
